<compile_context>
chip_gen: v7x
topology: tpu7x:2x2x1
jax: 0.10.0
libtpu: 0.0.40
codegen_flags: <defaults>
</compile_context>

<pallas_src>
import functools

import jax
import jax.numpy as jnp
from jax.experimental import pallas as pl
from jax.experimental.pallas import tpu as pltpu


def _cp(sem=("arbitrary",)):
    return pltpu.CompilerParams(
        dimension_semantics=sem,
        vmem_limit_bytes=32 * 1024 * 1024,
    )


# ----------------------------------------------------------------------------
# fused conv (+ BN batch-statistics) kernels
# ----------------------------------------------------------------------------
def _make_conv3x3_s1_stats_kernel(N, Ho, Wo, C_in, C_out):
    """3x3 / stride-1 / pad-1 conv.  The padded NHWC activation lives in VMEM
    as a single block; the 9 taps are sliced in-VMEM and fed to the MXU.
    Also emits per-channel sum / sum-of-squares of the conv output (the BN
    batch statistics) so no second HBM pass is needed."""
    M = N * Ho * Wo

    def kernel(xp_ref, w_ref, out_ref, sum_ref, sq_ref):
        acc = jnp.zeros((M, C_out), jnp.float32)
        t = 0
        for di in range(3):
            for dj in range(3):
                tap = xp_ref[:, di:di + Ho, dj:dj + Wo, :]      # (N,Ho,Wo,Cin)
                tap2 = tap.reshape(M, C_in)                     # Wo % 8 == 0
                acc = acc + jnp.dot(tap2, w_ref[t],
                                    preferred_element_type=jnp.float32)
                t += 1
        out_ref[...] = acc
        sum_ref[...] = jnp.sum(acc, axis=0, keepdims=True)
        sq_ref[...] = jnp.sum(acc * acc, axis=0, keepdims=True)

    return kernel


def _matmul_stats_kernel(a_ref, w_ref, out_ref, sum_ref, sq_ref):
    """Patch-matrix conv + BN stats (only used for the tiny strided / deep
    layers where the patch matrix is a few KB)."""
    y = jnp.dot(a_ref[...], w_ref[...], preferred_element_type=jnp.float32)
    out_ref[...] = y
    sum_ref[...] = jnp.sum(y, axis=0, keepdims=True)
    sq_ref[...] = jnp.sum(y * y, axis=0, keepdims=True)


def _make_bn_act_kernel(has_residual, relu, inv_count, eps=1e-5):
    """Fused: finalize BN batch stats -> affine -> (+residual) -> (ReLU)."""

    def affine(s, q, g, b):
        mean = s * inv_count
        var = jnp.maximum(q * inv_count - mean * mean, 0.0)   # guard cancellation
        scale = g * jax.lax.rsqrt(var + eps)
        shift = b - mean * scale
        return scale, shift

    if has_residual:
        def kernel(x_ref, s_ref, q_ref, g_ref, b_ref, r_ref, o_ref):
            scale, shift = affine(s_ref[...], q_ref[...], g_ref[...], b_ref[...])
            y = x_ref[...] * scale + shift + r_ref[...]
            if relu:
                y = jnp.maximum(y, 0.0)
            o_ref[...] = y
    else:
        def kernel(x_ref, s_ref, q_ref, g_ref, b_ref, o_ref):
            scale, shift = affine(s_ref[...], q_ref[...], g_ref[...], b_ref[...])
            y = x_ref[...] * scale + shift
            if relu:
                y = jnp.maximum(y, 0.0)
            o_ref[...] = y
    return kernel


def _make_maxpool_kernel(Ho, Wo):
    """3x3 / stride-2 / pad-1 max pool as an elementwise maximum tree over the
    9 shifted views of the even/odd phase decomposition (pure VPU)."""

    def kernel(p00_ref, p01_ref, p10_ref, p11_ref, o_ref):
        phases = ((p00_ref, p01_ref), (p10_ref, p11_ref))
        acc = None
        for di in range(3):
            for dj in range(3):
                pref = phases[di % 2][dj % 2]
                v = pref[:, di // 2:di // 2 + Ho, dj // 2:dj // 2 + Wo, :]
                acc = v if acc is None else jnp.maximum(acc, v)
        o_ref[...] = acc

    return kernel


def _head_kernel(x_ref, w_ref, b_ref, o_ref):
    """Fused AdaptiveAvgPool2d((1,1)) + flatten + Linear."""
    pooled = jnp.mean(x_ref[...], axis=1)                      # (N, C)
    o_ref[...] = (jnp.dot(pooled, w_ref[...],
                          preferred_element_type=jnp.float32) + b_ref[...])


# ----------------------------------------------------------------------------
# Pallas wrappers
# ----------------------------------------------------------------------------
_USE_FUSED_TAP_CONV = True  # may be cleared by _probe_fused_tap_conv()


def _im2col(x, kh, kw, stride, pad, pad_value=0.0):
    """Wrapper-side patch matrix -- only used for tiny tensors."""
    if pad:
        x = jnp.pad(x, ((0, 0), (pad, pad), (pad, pad), (0, 0)),
                    constant_values=pad_value)
    N, Hp, Wp, C = x.shape
    Ho = (Hp - kh) // stride + 1
    Wo = (Wp - kw) // stride + 1
    cols = []
    for di in range(kh):
        for dj in range(kw):
            cols.append(x[:, di:di + stride * (Ho - 1) + 1:stride,
                          dj:dj + stride * (Wo - 1) + 1:stride, :])
    p = jnp.stack(cols, axis=3).reshape(N * Ho * Wo, kh * kw * C)
    return p, Ho, Wo


def conv_bn_stats(x, w_taps, kh, stride, pad):
    """x: (N,H,W,Cin) NHWC.  w_taps: (kh*kh, Cin, Cout), matmul-ready.

    Returns (y2, ssum, ssq, (N, Ho, Wo)); y2 is (N*Ho*Wo, Cout) f32.
    Conv bias is intentionally omitted (cancelled exactly by training-mode BN).
    """
    N, H, W, C_in = x.shape
    C_out = w_taps.shape[-1]
    Ho = (H + 2 * pad - kh) // stride + 1
    Wo = (W + 2 * pad - kh) // stride + 1
    M = N * Ho * Wo

    out_shape = (jax.ShapeDtypeStruct((M, C_out), jnp.float32),
                 jax.ShapeDtypeStruct((1, C_out), jnp.float32),
                 jax.ShapeDtypeStruct((1, C_out), jnp.float32))
    out_specs = (pl.BlockSpec((M, C_out), lambda i: (0, 0)),
                 pl.BlockSpec((1, C_out), lambda i: (0, 0)),
                 pl.BlockSpec((1, C_out), lambda i: (0, 0)))

    if (kh == 3 and stride == 1 and pad == 1 and Wo % 8 == 0
            and _USE_FUSED_TAP_CONV):
        # Large stride-1 convs: one ~1x DMA of the padded activation; taps are
        # sliced in VMEM inside the kernel (no HBM patch tensor).
        xp = jnp.pad(x, ((0, 0), (1, 1), (1, 1), (0, 0)))
        kernel = _make_conv3x3_s1_stats_kernel(N, Ho, Wo, C_in, C_out)
        y2, ssum, ssq = pl.pallas_call(
            kernel,
            out_shape=out_shape,
            grid=(1,),
            in_specs=[pl.BlockSpec(xp.shape, lambda i: (0, 0, 0, 0)),
                      pl.BlockSpec(w_taps.shape, lambda i: (0, 0, 0))],
            out_specs=out_specs,
            compiler_params=_cp(),
        )(xp, w_taps)
    else:
        # Tiny strided / late-stage convs: wrapper patch matrix (few KB).
        patches, Ho2, Wo2 = _im2col(x, kh, kh, stride, pad)
        assert (Ho2, Wo2) == (Ho, Wo)
        wm = w_taps.reshape(kh * kh * C_in, C_out)
        y2, ssum, ssq = pl.pallas_call(
            _matmul_stats_kernel,
            out_shape=out_shape,
            grid=(1,),
            in_specs=[pl.BlockSpec(patches.shape, lambda i: (0, 0)),
                      pl.BlockSpec(wm.shape, lambda i: (0, 0))],
            out_specs=out_specs,
            compiler_params=_cp(),
        )(patches, wm)
    return y2, ssum, ssq, (N, Ho, Wo)


def bn_act(y2, ssum, ssq, gamma, beta, residual=None, relu=True):
    """Training-mode BatchNorm (batch stats, biased variance, eps=1e-5) folded
    to a single affine, fused with the optional residual add and ReLU."""
    M, C = y2.shape
    kernel = _make_bn_act_kernel(residual is not None, relu, 1.0 / M)
    args = [y2, ssum, ssq, gamma, beta]
    in_specs = ([pl.BlockSpec((M, C), lambda i: (0, 0))]
                + [pl.BlockSpec((1, C), lambda i: (0, 0)) for _ in range(4)])
    if residual is not None:
        args.append(residual)
        in_specs.append(pl.BlockSpec((M, C), lambda i: (0, 0)))
    return pl.pallas_call(
        kernel,
        out_shape=jax.ShapeDtypeStruct((M, C), jnp.float32),
        grid=(1,),
        in_specs=in_specs,
        out_specs=pl.BlockSpec((M, C), lambda i: (0, 0)),
        compiler_params=_cp(("parallel",)),
    )(*args)


def maxpool_3x3_s2_p1(x):
    """x: (N,H,W,C) -> (N,Ho,Wo,C); MaxPool2d(3, stride=2, padding=1)."""
    N, H, W, C = x.shape
    Ho = (H + 2 - 3) // 2 + 1
    Wo = (W + 2 - 3) // 2 + 1
    xp = jnp.pad(x, ((0, 0), (1, 1), (1, 1), (0, 0)),
                 constant_values=-jnp.inf)
    # Even/odd phase decomposition (same total bytes as x) so the stride-2
    # taps become contiguous slices inside the kernel.
    phases = [xp[:, a::2, b::2, :] for a in range(2) for b in range(2)]
    return pl.pallas_call(
        _make_maxpool_kernel(Ho, Wo),
        out_shape=jax.ShapeDtypeStruct((N, Ho, Wo, C), jnp.float32),
        grid=(1,),
        in_specs=[pl.BlockSpec(p.shape, lambda i: (0, 0, 0, 0))
                  for p in phases],
        out_specs=pl.BlockSpec((N, Ho, Wo, C), lambda i: (0, 0, 0, 0)),
        compiler_params=_cp(("parallel",)),
    )(*phases)


def head_avgpool_fc(x, fc_w, fc_b):
    """x: (N,H,W,C) -> logits (N, num_classes).  Fused avgpool + linear."""
    N, H, W, C = x.shape
    ncls = fc_w.shape[-1]
    x3 = x.reshape(N, H * W, C)
    return pl.pallas_call(
        _head_kernel,
        out_shape=jax.ShapeDtypeStruct((N, ncls), jnp.float32),
        grid=(1,),
        in_specs=[pl.BlockSpec((N, H * W, C), lambda i: (0, 0, 0)),
                  pl.BlockSpec((C, ncls), lambda i: (0, 0)),
                  pl.BlockSpec((1, ncls), lambda i: (0, 0))],
        out_specs=pl.BlockSpec((N, ncls), lambda i: (0, 0)),
        compiler_params=_cp(("parallel",)),
    )(x3, fc_w, fc_b)


def _probe_fused_tap_conv():
    """Compile the in-VMEM tap-slicing conv once; on failure fall back to the
    (already validated) patch-matrix path for every conv."""
    global _USE_FUSED_TAP_CONV
    try:
        xt = jnp.zeros((1, 8, 8, 8), jnp.float32)
        wt = jnp.zeros((9, 8, 8), jnp.float32)
        jax.block_until_ready(conv_bn_stats(xt, wt, 3, 1, 1)[0])
    except Exception:  # pragma: no cover - graceful degradation only
        _USE_FUSED_TAP_CONV = False


# ----------------------------------------------------------------------------
# network glue
# ----------------------------------------------------------------------------
def residual_block(x, blk, stride):
    N, H, W, C_in = x.shape
    C_out = blk["conv1_w"].shape[-1]

    # residual branch
    if stride != 1 or C_in != C_out:
        r2, rs, rq, _ = conv_bn_stats(x, blk["ds_w"], 1, stride, 0)
        r2 = bn_act(r2, rs, rq, blk["ds_gamma"], blk["ds_beta"], relu=False)
    else:
        r2 = x.reshape(N * H * W, C_in)

    y2, s1, q1, (_, Ho, Wo) = conv_bn_stats(x, blk["conv1_w"], 3, stride, 1)
    y2 = bn_act(y2, s1, q1, blk["bn1_gamma"], blk["bn1_beta"], relu=True)

    y4 = y2.reshape(N, Ho, Wo, C_out)
    y2, s2, q2, _ = conv_bn_stats(y4, blk["conv2_w"], 3, 1, 1)
    y2 = bn_act(y2, s2, q2, blk["bn2_gamma"], blk["bn2_beta"],
                residual=r2, relu=True)
    return y2.reshape(N, Ho, Wo, C_out)


def basic_resnet_forward(cfg, params, x_nchw):
    """cfg: static nested tuple of per-block strides (kept out of the pytree)."""
    x = jnp.transpose(x_nchw, (0, 2, 3, 1)).astype(jnp.float32)   # NCHW->NHWC
    N = x.shape[0]

    # stem: conv(3x3, s1, p1, bias=False) -> maxpool.  forward() of the
    # PyTorch module never applies self.bn / ReLU here, so the BN statistics
    # produced by the fused conv kernel are simply discarded.
    y2, _, _, (_, Ho, Wo) = conv_bn_stats(x, params["stem_w"], 3, 1, 1)
    x = maxpool_3x3_s2_p1(y2.reshape(N, Ho, Wo, -1))

    for layer_strides, layer_params in zip(cfg, params["layers"]):
        for stride, blk in zip(layer_strides, layer_params):
            x = residual_block(x, blk, stride)

    return head_avgpool_fc(x, params["fc_w"], params["fc_b"])


# ----------------------------------------------------------------------------
# deterministic parameter init (matmul-ready layouts, computed once)
# ----------------------------------------------------------------------------
def _conv_taps(key, c_out, c_in, k):
    """Conv weight stored directly in matmul-ready (k*k, C_in, C_out) layout."""
    fan_in = c_in * k * k
    w = jax.random.normal(key, (c_out, c_in, k, k), jnp.float32) * fan_in ** -0.5
    return jnp.transpose(w, (2, 3, 1, 0)).reshape(k * k, c_in, c_out)


def init_params(key, num_channels, num_blocks, num_classes):
    params = {}
    key, k = jax.random.split(key)
    params["stem_w"] = _conv_taps(k, num_channels[0], 3, 3)

    cfg = []
    layers = []
    in_c = num_channels[0]
    for li in range(4):
        out_c = num_channels[li]
        first_stride = 1 if li == 0 else 2
        strides = []
        blocks = []
        for bi in range(num_blocks[li]):
            s = first_stride if bi == 0 else 1
            key, k1, k2, k3 = jax.random.split(key, 4)
            blk = {
                "conv1_w": _conv_taps(k1, out_c, in_c, 3),
                "conv2_w": _conv_taps(k2, out_c, out_c, 3),
                "bn1_gamma": jnp.ones((1, out_c), jnp.float32),
                "bn1_beta": jnp.zeros((1, out_c), jnp.float32),
                "bn2_gamma": jnp.ones((1, out_c), jnp.float32),
                "bn2_beta": jnp.zeros((1, out_c), jnp.float32),
            }
            # Conv biases are not materialized: a per-channel bias in front of
            # training-mode BatchNorm is cancelled exactly by the batch mean.
            if s != 1 or in_c != out_c:
                blk["ds_w"] = _conv_taps(k3, out_c, in_c, 1)
                blk["ds_gamma"] = jnp.ones((1, out_c), jnp.float32)
                blk["ds_beta"] = jnp.zeros((1, out_c), jnp.float32)
            blocks.append(blk)
            strides.append(s)
            in_c = out_c
        layers.append(blocks)
        cfg.append(tuple(strides))
    params["layers"] = layers

    key, kw, kb = jax.random.split(key, 3)
    c_last = num_channels[-1]
    params["fc_w"] = (jax.random.normal(kw, (num_classes, c_last), jnp.float32)
                      * c_last ** -0.5).T                  # stored (C_last, ncls)
    params["fc_b"] = jax.random.normal(kb, (1, num_classes), jnp.float32) * 0.01
    return params, tuple(cfg)


# ----------------------------------------------------------------------------
if __name__ == "__main__":
    # Small config consistent with the module's constructor signature.
    num_channels = [8, 16, 32, 64]
    num_blocks = [1, 1, 1, 1]
    num_classes = 10

    key = jax.random.PRNGKey(0)
    kp, kx = jax.random.split(key)
    params, cfg = init_params(kp, num_channels, num_blocks, num_classes)

    # Input in PyTorch NCHW convention: (batch=2, C=3, H=16, W=16)
    x = jax.random.normal(kx, (2, 3, 16, 16), jnp.float32)

    _probe_fused_tap_conv()
    fwd = jax.jit(functools.partial(basic_resnet_forward, cfg))
    logits = jax.block_until_ready(fwd(params, x))

    assert logits.shape == (2, num_classes), logits.shape
    assert bool(jnp.all(jnp.isfinite(logits)))
    print("KERNEL_OK")
</pallas_src>

<mosaic_0001>
module attributes {stable_mosaic.version = 11 : i64} {
  func.func @kernel(%arg0: i32, %arg1: memref<1x10x10x8xf32, #tpu.memory_space<vmem>>, %arg2: memref<9x8x8xf32, #tpu.memory_space<vmem>>, %arg3: memref<64x8xf32, #tpu.memory_space<vmem>>, %arg4: memref<1x8xf32, #tpu.memory_space<vmem>>, %arg5: memref<1x8xf32, #tpu.memory_space<vmem>>) attributes {dimension_semantics = [#tpu.dimension_semantics<arbitrary>], iteration_bounds = array<i64: 1>, scalar_prefetch = 0 : i64, scratch_operands = 0 : i64, tpu.core_type = #tpu.core_type<tc>, window_params = [{pipeline_mode = #tpu.pipeline_mode<synchronous>, transform_indices = @transform_0, window_bounds = array<i64: 1, 10, 10, 8>}, {pipeline_mode = #tpu.pipeline_mode<synchronous>, transform_indices = @transform_1, window_bounds = array<i64: 9, 8, 8>}, {pipeline_mode = #tpu.pipeline_mode<synchronous>, transform_indices = @transform_2, window_bounds = array<i64: 64, 8>}, {pipeline_mode = #tpu.pipeline_mode<synchronous>, transform_indices = @transform_3, window_bounds = array<i64: 1, 8>}, {pipeline_mode = #tpu.pipeline_mode<synchronous>, transform_indices = @transform_4, window_bounds = array<i64: 1, 8>}]} {
    %cst = arith.constant 0.000000e+00 : f32
    %0 = vector.broadcast %cst : f32 to vector<64x8xf32>
    %c0 = arith.constant 0 : index
    %c0_0 = arith.constant 0 : index
    %c0_1 = arith.constant 0 : index
    %c0_2 = arith.constant 0 : index
    %1 = vector.load %arg1[%c0, %c0_0, %c0_1, %c0_2] : memref<1x10x10x8xf32, #tpu.memory_space<vmem>>, vector<1x8x8x8xf32>
    %2 = vector.shape_cast %1 : vector<1x8x8x8xf32> to vector<64x8xf32>
    %c0_3 = arith.constant 0 : index
    %c0_4 = arith.constant 0 : index
    %c0_5 = arith.constant 0 : index
    %3 = vector.load %arg2[%c0_3, %c0_4, %c0_5] : memref<9x8x8xf32, #tpu.memory_space<vmem>>, vector<1x8x8xf32>
    %4 = vector.shape_cast %3 : vector<1x8x8xf32> to vector<8x8xf32>
    %cst_6 = arith.constant dense<0.000000e+00> : vector<64x8xf32>
    %5 = tpu.matmul %2, %4, %cst_6 {dimension_numbers = #tpu.dot_dimension_numbers<[1], [0], [0], [1], [0, 0, 1, 1], [], []>} : vector<64x8xf32>, vector<8x8xf32>, vector<64x8xf32> -> vector<64x8xf32>
    %6 = arith.addf %0, %5 : vector<64x8xf32>
    %c0_7 = arith.constant 0 : index
    %c0_8 = arith.constant 0 : index
    %c1 = arith.constant 1 : index
    %c0_9 = arith.constant 0 : index
    %7 = vector.load %arg1[%c0_7, %c0_8, %c1, %c0_9] : memref<1x10x10x8xf32, #tpu.memory_space<vmem>>, vector<1x8x8x8xf32>
    %8 = vector.shape_cast %7 : vector<1x8x8x8xf32> to vector<64x8xf32>
    %c1_10 = arith.constant 1 : index
    %c0_11 = arith.constant 0 : index
    %c0_12 = arith.constant 0 : index
    %9 = vector.load %arg2[%c1_10, %c0_11, %c0_12] : memref<9x8x8xf32, #tpu.memory_space<vmem>>, vector<1x8x8xf32>
    %10 = vector.shape_cast %9 : vector<1x8x8xf32> to vector<8x8xf32>
    %cst_13 = arith.constant dense<0.000000e+00> : vector<64x8xf32>
    %11 = tpu.matmul %8, %10, %cst_13 {dimension_numbers = #tpu.dot_dimension_numbers<[1], [0], [0], [1], [0, 0, 1, 1], [], []>} : vector<64x8xf32>, vector<8x8xf32>, vector<64x8xf32> -> vector<64x8xf32>
    %12 = arith.addf %6, %11 : vector<64x8xf32>
    %c0_14 = arith.constant 0 : index
    %c0_15 = arith.constant 0 : index
    %c2 = arith.constant 2 : index
    %c0_16 = arith.constant 0 : index
    %13 = vector.load %arg1[%c0_14, %c0_15, %c2, %c0_16] : memref<1x10x10x8xf32, #tpu.memory_space<vmem>>, vector<1x8x8x8xf32>
    %14 = vector.shape_cast %13 : vector<1x8x8x8xf32> to vector<64x8xf32>
    %c2_17 = arith.constant 2 : index
    %c0_18 = arith.constant 0 : index
    %c0_19 = arith.constant 0 : index
    %15 = vector.load %arg2[%c2_17, %c0_18, %c0_19] : memref<9x8x8xf32, #tpu.memory_space<vmem>>, vector<1x8x8xf32>
    %16 = vector.shape_cast %15 : vector<1x8x8xf32> to vector<8x8xf32>
    %cst_20 = arith.constant dense<0.000000e+00> : vector<64x8xf32>
    %17 = tpu.matmul %14, %16, %cst_20 {dimension_numbers = #tpu.dot_dimension_numbers<[1], [0], [0], [1], [0, 0, 1, 1], [], []>} : vector<64x8xf32>, vector<8x8xf32>, vector<64x8xf32> -> vector<64x8xf32>
    %18 = arith.addf %12, %17 : vector<64x8xf32>
    %c0_21 = arith.constant 0 : index
    %c1_22 = arith.constant 1 : index
    %c0_23 = arith.constant 0 : index
    %c0_24 = arith.constant 0 : index
    %19 = vector.load %arg1[%c0_21, %c1_22, %c0_23, %c0_24] : memref<1x10x10x8xf32, #tpu.memory_space<vmem>>, vector<1x8x8x8xf32>
    %20 = vector.shape_cast %19 : vector<1x8x8x8xf32> to vector<64x8xf32>
    %c3 = arith.constant 3 : index
    %c0_25 = arith.constant 0 : index
    %c0_26 = arith.constant 0 : index
    %21 = vector.load %arg2[%c3, %c0_25, %c0_26] : memref<9x8x8xf32, #tpu.memory_space<vmem>>, vector<1x8x8xf32>
    %22 = vector.shape_cast %21 : vector<1x8x8xf32> to vector<8x8xf32>
    %cst_27 = arith.constant dense<0.000000e+00> : vector<64x8xf32>
    %23 = tpu.matmul %20, %22, %cst_27 {dimension_numbers = #tpu.dot_dimension_numbers<[1], [0], [0], [1], [0, 0, 1, 1], [], []>} : vector<64x8xf32>, vector<8x8xf32>, vector<64x8xf32> -> vector<64x8xf32>
    %24 = arith.addf %18, %23 : vector<64x8xf32>
    %c0_28 = arith.constant 0 : index
    %c1_29 = arith.constant 1 : index
    %c1_30 = arith.constant 1 : index
    %c0_31 = arith.constant 0 : index
    %25 = vector.load %arg1[%c0_28, %c1_29, %c1_30, %c0_31] : memref<1x10x10x8xf32, #tpu.memory_space<vmem>>, vector<1x8x8x8xf32>
    %26 = vector.shape_cast %25 : vector<1x8x8x8xf32> to vector<64x8xf32>
    %c4 = arith.constant 4 : index
    %c0_32 = arith.constant 0 : index
    %c0_33 = arith.constant 0 : index
    %27 = vector.load %arg2[%c4, %c0_32, %c0_33] : memref<9x8x8xf32, #tpu.memory_space<vmem>>, vector<1x8x8xf32>
    %28 = vector.shape_cast %27 : vector<1x8x8xf32> to vector<8x8xf32>
    %cst_34 = arith.constant dense<0.000000e+00> : vector<64x8xf32>
    %29 = tpu.matmul %26, %28, %cst_34 {dimension_numbers = #tpu.dot_dimension_numbers<[1], [0], [0], [1], [0, 0, 1, 1], [], []>} : vector<64x8xf32>, vector<8x8xf32>, vector<64x8xf32> -> vector<64x8xf32>
    %30 = arith.addf %24, %29 : vector<64x8xf32>
    %c0_35 = arith.constant 0 : index
    %c1_36 = arith.constant 1 : index
    %c2_37 = arith.constant 2 : index
    %c0_38 = arith.constant 0 : index
    %31 = vector.load %arg1[%c0_35, %c1_36, %c2_37, %c0_38] : memref<1x10x10x8xf32, #tpu.memory_space<vmem>>, vector<1x8x8x8xf32>
    %32 = vector.shape_cast %31 : vector<1x8x8x8xf32> to vector<64x8xf32>
    %c5 = arith.constant 5 : index
    %c0_39 = arith.constant 0 : index
    %c0_40 = arith.constant 0 : index
    %33 = vector.load %arg2[%c5, %c0_39, %c0_40] : memref<9x8x8xf32, #tpu.memory_space<vmem>>, vector<1x8x8xf32>
    %34 = vector.shape_cast %33 : vector<1x8x8xf32> to vector<8x8xf32>
    %cst_41 = arith.constant dense<0.000000e+00> : vector<64x8xf32>
    %35 = tpu.matmul %32, %34, %cst_41 {dimension_numbers = #tpu.dot_dimension_numbers<[1], [0], [0], [1], [0, 0, 1, 1], [], []>} : vector<64x8xf32>, vector<8x8xf32>, vector<64x8xf32> -> vector<64x8xf32>
    %36 = arith.addf %30, %35 : vector<64x8xf32>
    %c0_42 = arith.constant 0 : index
    %c2_43 = arith.constant 2 : index
    %c0_44 = arith.constant 0 : index
    %c0_45 = arith.constant 0 : index
    %37 = vector.load %arg1[%c0_42, %c2_43, %c0_44, %c0_45] : memref<1x10x10x8xf32, #tpu.memory_space<vmem>>, vector<1x8x8x8xf32>
    %38 = vector.shape_cast %37 : vector<1x8x8x8xf32> to vector<64x8xf32>
    %c6 = arith.constant 6 : index
    %c0_46 = arith.constant 0 : index
    %c0_47 = arith.constant 0 : index
    %39 = vector.load %arg2[%c6, %c0_46, %c0_47] : memref<9x8x8xf32, #tpu.memory_space<vmem>>, vector<1x8x8xf32>
    %40 = vector.shape_cast %39 : vector<1x8x8xf32> to vector<8x8xf32>
    %cst_48 = arith.constant dense<0.000000e+00> : vector<64x8xf32>
    %41 = tpu.matmul %38, %40, %cst_48 {dimension_numbers = #tpu.dot_dimension_numbers<[1], [0], [0], [1], [0, 0, 1, 1], [], []>} : vector<64x8xf32>, vector<8x8xf32>, vector<64x8xf32> -> vector<64x8xf32>
    %42 = arith.addf %36, %41 : vector<64x8xf32>
    %c0_49 = arith.constant 0 : index
    %c2_50 = arith.constant 2 : index
    %c1_51 = arith.constant 1 : index
    %c0_52 = arith.constant 0 : index
    %43 = vector.load %arg1[%c0_49, %c2_50, %c1_51, %c0_52] : memref<1x10x10x8xf32, #tpu.memory_space<vmem>>, vector<1x8x8x8xf32>
    %44 = vector.shape_cast %43 : vector<1x8x8x8xf32> to vector<64x8xf32>
    %c7 = arith.constant 7 : index
    %c0_53 = arith.constant 0 : index
    %c0_54 = arith.constant 0 : index
    %45 = vector.load %arg2[%c7, %c0_53, %c0_54] : memref<9x8x8xf32, #tpu.memory_space<vmem>>, vector<1x8x8xf32>
    %46 = vector.shape_cast %45 : vector<1x8x8xf32> to vector<8x8xf32>
    %cst_55 = arith.constant dense<0.000000e+00> : vector<64x8xf32>
    %47 = tpu.matmul %44, %46, %cst_55 {dimension_numbers = #tpu.dot_dimension_numbers<[1], [0], [0], [1], [0, 0, 1, 1], [], []>} : vector<64x8xf32>, vector<8x8xf32>, vector<64x8xf32> -> vector<64x8xf32>
    %48 = arith.addf %42, %47 : vector<64x8xf32>
    %c0_56 = arith.constant 0 : index
    %c2_57 = arith.constant 2 : index
    %c2_58 = arith.constant 2 : index
    %c0_59 = arith.constant 0 : index
    %49 = vector.load %arg1[%c0_56, %c2_57, %c2_58, %c0_59] : memref<1x10x10x8xf32, #tpu.memory_space<vmem>>, vector<1x8x8x8xf32>
    %50 = vector.shape_cast %49 : vector<1x8x8x8xf32> to vector<64x8xf32>
    %c8 = arith.constant 8 : index
    %c0_60 = arith.constant 0 : index
    %c0_61 = arith.constant 0 : index
    %51 = vector.load %arg2[%c8, %c0_60, %c0_61] : memref<9x8x8xf32, #tpu.memory_space<vmem>>, vector<1x8x8xf32>
    %52 = vector.shape_cast %51 : vector<1x8x8xf32> to vector<8x8xf32>
    %cst_62 = arith.constant dense<0.000000e+00> : vector<64x8xf32>
    %53 = tpu.matmul %50, %52, %cst_62 {dimension_numbers = #tpu.dot_dimension_numbers<[1], [0], [0], [1], [0, 0, 1, 1], [], []>} : vector<64x8xf32>, vector<8x8xf32>, vector<64x8xf32> -> vector<64x8xf32>
    %54 = arith.addf %48, %53 : vector<64x8xf32>
    %c0_63 = arith.constant 0 : index
    %c0_64 = arith.constant 0 : index
    %55 = vector.load %arg3[%c0_63, %c0_64] : memref<64x8xf32, #tpu.memory_space<vmem>>, vector<64x8xf32>
    tpu.vector_store %arg3[%c0_63, %c0_64], %54 {strides = array<i32>} : memref<64x8xf32, #tpu.memory_space<vmem>>, vector<64x8xf32>,
    %cst_65 = arith.constant dense<0.000000e+00> : vector<8xf32>
    %56 = vector.multi_reduction <add>, %54, %cst_65 [0] : vector<64x8xf32> to vector<8xf32>
    %57 = vector.shape_cast %56 : vector<8xf32> to vector<1x8xf32>
    %c0_66 = arith.constant 0 : index
    %c0_67 = arith.constant 0 : index
    %58 = vector.load %arg4[%c0_66, %c0_67] : memref<1x8xf32, #tpu.memory_space<vmem>>, vector<1x8xf32>
    tpu.vector_store %arg4[%c0_66, %c0_67], %57 {strides = array<i32>} : memref<1x8xf32, #tpu.memory_space<vmem>>, vector<1x8xf32>,
    %59 = arith.mulf %54, %54 : vector<64x8xf32>
    %cst_68 = arith.constant dense<0.000000e+00> : vector<8xf32>
    %60 = vector.multi_reduction <add>, %59, %cst_68 [0] : vector<64x8xf32> to vector<8xf32>
    %61 = vector.shape_cast %60 : vector<8xf32> to vector<1x8xf32>
    %c0_69 = arith.constant 0 : index
    %c0_70 = arith.constant 0 : index
    %62 = vector.load %arg5[%c0_69, %c0_70] : memref<1x8xf32, #tpu.memory_space<vmem>>, vector<1x8xf32>
    tpu.vector_store %arg5[%c0_69, %c0_70], %61 {strides = array<i32>} : memref<1x8xf32, #tpu.memory_space<vmem>>, vector<1x8xf32>,
    return
  }
  func.func @transform_0(%arg0: i32) -> (i32, i32, i32, i32) {
    %c0_i32 = arith.constant 0 : i32
    %c0_i32_0 = arith.constant 0 : i32
    %c0_i32_1 = arith.constant 0 : i32
    %c0_i32_2 = arith.constant 0 : i32
    %c0_i32_3 = arith.constant 0 : i32
    return %c0_i32, %c0_i32_0, %c0_i32_1, %c0_i32_2 : i32, i32, i32, i32
  }
  func.func @transform_1(%arg0: i32) -> (i32, i32, i32) {
    %c0_i32 = arith.constant 0 : i32
    %c0_i32_0 = arith.constant 0 : i32
    %c0_i32_1 = arith.constant 0 : i32
    %c0_i32_2 = arith.constant 0 : i32
    return %c0_i32, %c0_i32_0, %c0_i32_1 : i32, i32, i32
  }
  func.func @transform_2(%arg0: i32) -> (i32, i32) {
    %c0_i32 = arith.constant 0 : i32
    %c0_i32_0 = arith.constant 0 : i32
    %c0_i32_1 = arith.constant 0 : i32
    return %c0_i32, %c0_i32_0 : i32, i32
  }
  func.func @transform_3(%arg0: i32) -> (i32, i32) {
    %c0_i32 = arith.constant 0 : i32
    %c0_i32_0 = arith.constant 0 : i32
    %c0_i32_1 = arith.constant 0 : i32
    return %c0_i32, %c0_i32_0 : i32, i32
  }
  func.func @transform_4(%arg0: i32) -> (i32, i32) {
    %c0_i32 = arith.constant 0 : i32
    %c0_i32_0 = arith.constant 0 : i32
    %c0_i32_1 = arith.constant 0 : i32
    return %c0_i32, %c0_i32_0 : i32, i32
  }
}

module attributes {stable_mosaic.version = 11 : i64} {
  func.func @kernel(%arg0: i32, %arg1: memref<2x9x9x8xf32, #tpu.memory_space<vmem>>, %arg2: memref<2x9x9x8xf32, #tpu.memory_space<vmem>>, %arg3: memref<2x9x9x8xf32, #tpu.memory_space<vmem>>, %arg4: memref<2x9x9x8xf32, #tpu.memory_space<vmem>>, %arg5: memref<2x8x8x8xf32, #tpu.memory_space<vmem>>) attributes {dimension_semantics = [#tpu.dimension_semantics<parallel>], iteration_bounds = array<i64: 1>, scalar_prefetch = 0 : i64, scratch_operands = 0 : i64, tpu.core_type = #tpu.core_type<tc>, window_params = [{pipeline_mode = #tpu.pipeline_mode<synchronous>, transform_indices = @transform_0, window_bounds = array<i64: 2, 9, 9, 8>}, {pipeline_mode = #tpu.pipeline_mode<synchronous>, transform_indices = @transform_1, window_bounds = array<i64: 2, 9, 9, 8>}, {pipeline_mode = #tpu.pipeline_mode<synchronous>, transform_indices = @transform_2, window_bounds = array<i64: 2, 9, 9, 8>}, {pipeline_mode = #tpu.pipeline_mode<synchronous>, transform_indices = @transform_3, window_bounds = array<i64: 2, 9, 9, 8>}, {pipeline_mode = #tpu.pipeline_mode<synchronous>, transform_indices = @transform_4, window_bounds = array<i64: 2, 8, 8, 8>}]} {
    %c0 = arith.constant 0 : index
    %c0_0 = arith.constant 0 : index
    %c0_1 = arith.constant 0 : index
    %c0_2 = arith.constant 0 : index
    %0 = vector.load %arg1[%c0, %c0_0, %c0_1, %c0_2] : memref<2x9x9x8xf32, #tpu.memory_space<vmem>>, vector<2x8x8x8xf32>
    %c0_3 = arith.constant 0 : index
    %c0_4 = arith.constant 0 : index
    %c0_5 = arith.constant 0 : index
    %c0_6 = arith.constant 0 : index
    %1 = vector.load %arg2[%c0_3, %c0_4, %c0_5, %c0_6] : memref<2x9x9x8xf32, #tpu.memory_space<vmem>>, vector<2x8x8x8xf32>
    %2 = arith.maximumf %0, %1 : vector<2x8x8x8xf32>
    %c0_7 = arith.constant 0 : index
    %c0_8 = arith.constant 0 : index
    %c1 = arith.constant 1 : index
    %c0_9 = arith.constant 0 : index
    %3 = vector.load %arg1[%c0_7, %c0_8, %c1, %c0_9] : memref<2x9x9x8xf32, #tpu.memory_space<vmem>>, vector<2x8x8x8xf32>
    %4 = arith.maximumf %2, %3 : vector<2x8x8x8xf32>
    %c0_10 = arith.constant 0 : index
    %c0_11 = arith.constant 0 : index
    %c0_12 = arith.constant 0 : index
    %c0_13 = arith.constant 0 : index
    %5 = vector.load %arg3[%c0_10, %c0_11, %c0_12, %c0_13] : memref<2x9x9x8xf32, #tpu.memory_space<vmem>>, vector<2x8x8x8xf32>
    %6 = arith.maximumf %4, %5 : vector<2x8x8x8xf32>
    %c0_14 = arith.constant 0 : index
    %c0_15 = arith.constant 0 : index
    %c0_16 = arith.constant 0 : index
    %c0_17 = arith.constant 0 : index
    %7 = vector.load %arg4[%c0_14, %c0_15, %c0_16, %c0_17] : memref<2x9x9x8xf32, #tpu.memory_space<vmem>>, vector<2x8x8x8xf32>
    %8 = arith.maximumf %6, %7 : vector<2x8x8x8xf32>
    %c0_18 = arith.constant 0 : index
    %c0_19 = arith.constant 0 : index
    %c1_20 = arith.constant 1 : index
    %c0_21 = arith.constant 0 : index
    %9 = vector.load %arg3[%c0_18, %c0_19, %c1_20, %c0_21] : memref<2x9x9x8xf32, #tpu.memory_space<vmem>>, vector<2x8x8x8xf32>
    %10 = arith.maximumf %8, %9 : vector<2x8x8x8xf32>
    %c0_22 = arith.constant 0 : index
    %c1_23 = arith.constant 1 : index
    %c0_24 = arith.constant 0 : index
    %c0_25 = arith.constant 0 : index
    %11 = vector.load %arg1[%c0_22, %c1_23, %c0_24, %c0_25] : memref<2x9x9x8xf32, #tpu.memory_space<vmem>>, vector<2x8x8x8xf32>
    %12 = arith.maximumf %10, %11 : vector<2x8x8x8xf32>
    %c0_26 = arith.constant 0 : index
    %c1_27 = arith.constant 1 : index
    %c0_28 = arith.constant 0 : index
    %c0_29 = arith.constant 0 : index
    %13 = vector.load %arg2[%c0_26, %c1_27, %c0_28, %c0_29] : memref<2x9x9x8xf32, #tpu.memory_space<vmem>>, vector<2x8x8x8xf32>
    %14 = arith.maximumf %12, %13 : vector<2x8x8x8xf32>
    %c0_30 = arith.constant 0 : index
    %c1_31 = arith.constant 1 : index
    %c1_32 = arith.constant 1 : index
    %c0_33 = arith.constant 0 : index
    %15 = vector.load %arg1[%c0_30, %c1_31, %c1_32, %c0_33] : memref<2x9x9x8xf32, #tpu.memory_space<vmem>>, vector<2x8x8x8xf32>
    %16 = arith.maximumf %14, %15 : vector<2x8x8x8xf32>
    %c0_34 = arith.constant 0 : index
    %c0_35 = arith.constant 0 : index
    %c0_36 = arith.constant 0 : index
    %c0_37 = arith.constant 0 : index
    %17 = vector.load %arg5[%c0_34, %c0_35, %c0_36, %c0_37] : memref<2x8x8x8xf32, #tpu.memory_space<vmem>>, vector<2x8x8x8xf32>
    tpu.vector_store %arg5[%c0_34, %c0_35, %c0_36, %c0_37], %16 {strides = array<i32>} : memref<2x8x8x8xf32, #tpu.memory_space<vmem>>, vector<2x8x8x8xf32>,
    return
  }
  func.func @transform_0(%arg0: i32) -> (i32, i32, i32, i32) {
    %c0_i32 = arith.constant 0 : i32
    %c0_i32_0 = arith.constant 0 : i32
    %c0_i32_1 = arith.constant 0 : i32
    %c0_i32_2 = arith.constant 0 : i32
    %c0_i32_3 = arith.constant 0 : i32
    return %c0_i32, %c0_i32_0, %c0_i32_1, %c0_i32_2 : i32, i32, i32, i32
  }
  func.func @transform_1(%arg0: i32) -> (i32, i32, i32, i32) {
    %c0_i32 = arith.constant 0 : i32
    %c0_i32_0 = arith.constant 0 : i32
    %c0_i32_1 = arith.constant 0 : i32
    %c0_i32_2 = arith.constant 0 : i32
    %c0_i32_3 = arith.constant 0 : i32
    return %c0_i32, %c0_i32_0, %c0_i32_1, %c0_i32_2 : i32, i32, i32, i32
  }
  func.func @transform_2(%arg0: i32) -> (i32, i32, i32, i32) {
    %c0_i32 = arith.constant 0 : i32
    %c0_i32_0 = arith.constant 0 : i32
    %c0_i32_1 = arith.constant 0 : i32
    %c0_i32_2 = arith.constant 0 : i32
    %c0_i32_3 = arith.constant 0 : i32
    return %c0_i32, %c0_i32_0, %c0_i32_1, %c0_i32_2 : i32, i32, i32, i32
  }
  func.func @transform_3(%arg0: i32) -> (i32, i32, i32, i32) {
    %c0_i32 = arith.constant 0 : i32
    %c0_i32_0 = arith.constant 0 : i32
    %c0_i32_1 = arith.constant 0 : i32
    %c0_i32_2 = arith.constant 0 : i32
    %c0_i32_3 = arith.constant 0 : i32
    return %c0_i32, %c0_i32_0, %c0_i32_1, %c0_i32_2 : i32, i32, i32, i32
  }
  func.func @transform_4(%arg0: i32) -> (i32, i32, i32, i32) {
    %c0_i32 = arith.constant 0 : i32
    %c0_i32_0 = arith.constant 0 : i32
    %c0_i32_1 = arith.constant 0 : i32
    %c0_i32_2 = arith.constant 0 : i32
    %c0_i32_3 = arith.constant 0 : i32
    return %c0_i32, %c0_i32_0, %c0_i32_1, %c0_i32_2 : i32, i32, i32, i32
  }
}

module attributes {stable_mosaic.version = 11 : i64} {
  func.func @_matmul_stats_kernel(%arg0: i32, %arg1: memref<512x27xf32, #tpu.memory_space<vmem>>, %arg2: memref<27x8xf32, #tpu.memory_space<vmem>>, %arg3: memref<512x8xf32, #tpu.memory_space<vmem>>, %arg4: memref<1x8xf32, #tpu.memory_space<vmem>>, %arg5: memref<1x8xf32, #tpu.memory_space<vmem>>) attributes {dimension_semantics = [#tpu.dimension_semantics<arbitrary>], iteration_bounds = array<i64: 1>, scalar_prefetch = 0 : i64, scratch_operands = 0 : i64, tpu.core_type = #tpu.core_type<tc>, window_params = [{pipeline_mode = #tpu.pipeline_mode<synchronous>, transform_indices = @transform_0, window_bounds = array<i64: 512, 27>}, {pipeline_mode = #tpu.pipeline_mode<synchronous>, transform_indices = @transform_1, window_bounds = array<i64: 27, 8>}, {pipeline_mode = #tpu.pipeline_mode<synchronous>, transform_indices = @transform_2, window_bounds = array<i64: 512, 8>}, {pipeline_mode = #tpu.pipeline_mode<synchronous>, transform_indices = @transform_3, window_bounds = array<i64: 1, 8>}, {pipeline_mode = #tpu.pipeline_mode<synchronous>, transform_indices = @transform_4, window_bounds = array<i64: 1, 8>}]} {
    %c0 = arith.constant 0 : index
    %c0_0 = arith.constant 0 : index
    %0 = vector.load %arg1[%c0, %c0_0] : memref<512x27xf32, #tpu.memory_space<vmem>>, vector<512x27xf32>
    %c0_1 = arith.constant 0 : index
    %c0_2 = arith.constant 0 : index
    %1 = vector.load %arg2[%c0_1, %c0_2] : memref<27x8xf32, #tpu.memory_space<vmem>>, vector<27x8xf32>
    %cst = arith.constant dense<0.000000e+00> : vector<512x8xf32>
    %2 = tpu.matmul %0, %1, %cst {dimension_numbers = #tpu.dot_dimension_numbers<[1], [0], [0], [1], [0, 0, 1, 1], [], []>} : vector<512x27xf32>, vector<27x8xf32>, vector<512x8xf32> -> vector<512x8xf32>
    %c0_3 = arith.constant 0 : index
    %c0_4 = arith.constant 0 : index
    %3 = vector.load %arg3[%c0_3, %c0_4] : memref<512x8xf32, #tpu.memory_space<vmem>>, vector<512x8xf32>
    tpu.vector_store %arg3[%c0_3, %c0_4], %2 {strides = array<i32>} : memref<512x8xf32, #tpu.memory_space<vmem>>, vector<512x8xf32>,
    %cst_5 = arith.constant dense<0.000000e+00> : vector<8xf32>
    %4 = vector.multi_reduction <add>, %2, %cst_5 [0] : vector<512x8xf32> to vector<8xf32>
    %5 = vector.shape_cast %4 : vector<8xf32> to vector<1x8xf32>
    %c0_6 = arith.constant 0 : index
    %c0_7 = arith.constant 0 : index
    %6 = vector.load %arg4[%c0_6, %c0_7] : memref<1x8xf32, #tpu.memory_space<vmem>>, vector<1x8xf32>
    tpu.vector_store %arg4[%c0_6, %c0_7], %5 {strides = array<i32>} : memref<1x8xf32, #tpu.memory_space<vmem>>, vector<1x8xf32>,
    %7 = arith.mulf %2, %2 : vector<512x8xf32>
    %cst_8 = arith.constant dense<0.000000e+00> : vector<8xf32>
    %8 = vector.multi_reduction <add>, %7, %cst_8 [0] : vector<512x8xf32> to vector<8xf32>
    %9 = vector.shape_cast %8 : vector<8xf32> to vector<1x8xf32>
    %c0_9 = arith.constant 0 : index
    %c0_10 = arith.constant 0 : index
    %10 = vector.load %arg5[%c0_9, %c0_10] : memref<1x8xf32, #tpu.memory_space<vmem>>, vector<1x8xf32>
    tpu.vector_store %arg5[%c0_9, %c0_10], %9 {strides = array<i32>} : memref<1x8xf32, #tpu.memory_space<vmem>>, vector<1x8xf32>,
    return
  }
  func.func @transform_0(%arg0: i32) -> (i32, i32) {
    %c0_i32 = arith.constant 0 : i32
    %c0_i32_0 = arith.constant 0 : i32
    %c0_i32_1 = arith.constant 0 : i32
    return %c0_i32, %c0_i32_0 : i32, i32
  }
  func.func @transform_1(%arg0: i32) -> (i32, i32) {
    %c0_i32 = arith.constant 0 : i32
    %c0_i32_0 = arith.constant 0 : i32
    %c0_i32_1 = arith.constant 0 : i32
    return %c0_i32, %c0_i32_0 : i32, i32
  }
  func.func @transform_2(%arg0: i32) -> (i32, i32) {
    %c0_i32 = arith.constant 0 : i32
    %c0_i32_0 = arith.constant 0 : i32
    %c0_i32_1 = arith.constant 0 : i32
    return %c0_i32, %c0_i32_0 : i32, i32
  }
  func.func @transform_3(%arg0: i32) -> (i32, i32) {
    %c0_i32 = arith.constant 0 : i32
    %c0_i32_0 = arith.constant 0 : i32
    %c0_i32_1 = arith.constant 0 : i32
    return %c0_i32, %c0_i32_0 : i32, i32
  }
  func.func @transform_4(%arg0: i32) -> (i32, i32) {
    %c0_i32 = arith.constant 0 : i32
    %c0_i32_0 = arith.constant 0 : i32
    %c0_i32_1 = arith.constant 0 : i32
    return %c0_i32, %c0_i32_0 : i32, i32
  }
}

module attributes {stable_mosaic.version = 11 : i64} {
  func.func @_matmul_stats_kernel(%arg0: i32, %arg1: memref<128x72xf32, #tpu.memory_space<vmem>>, %arg2: memref<72x8xf32, #tpu.memory_space<vmem>>, %arg3: memref<128x8xf32, #tpu.memory_space<vmem>>, %arg4: memref<1x8xf32, #tpu.memory_space<vmem>>, %arg5: memref<1x8xf32, #tpu.memory_space<vmem>>) attributes {dimension_semantics = [#tpu.dimension_semantics<arbitrary>], iteration_bounds = array<i64: 1>, scalar_prefetch = 0 : i64, scratch_operands = 0 : i64, tpu.core_type = #tpu.core_type<tc>, window_params = [{pipeline_mode = #tpu.pipeline_mode<synchronous>, transform_indices = @transform_0, window_bounds = array<i64: 128, 72>}, {pipeline_mode = #tpu.pipeline_mode<synchronous>, transform_indices = @transform_1, window_bounds = array<i64: 72, 8>}, {pipeline_mode = #tpu.pipeline_mode<synchronous>, transform_indices = @transform_2, window_bounds = array<i64: 128, 8>}, {pipeline_mode = #tpu.pipeline_mode<synchronous>, transform_indices = @transform_3, window_bounds = array<i64: 1, 8>}, {pipeline_mode = #tpu.pipeline_mode<synchronous>, transform_indices = @transform_4, window_bounds = array<i64: 1, 8>}]} {
    %c0 = arith.constant 0 : index
    %c0_0 = arith.constant 0 : index
    %0 = vector.load %arg1[%c0, %c0_0] : memref<128x72xf32, #tpu.memory_space<vmem>>, vector<128x72xf32>
    %c0_1 = arith.constant 0 : index
    %c0_2 = arith.constant 0 : index
    %1 = vector.load %arg2[%c0_1, %c0_2] : memref<72x8xf32, #tpu.memory_space<vmem>>, vector<72x8xf32>
    %cst = arith.constant dense<0.000000e+00> : vector<128x8xf32>
    %2 = tpu.matmul %0, %1, %cst {dimension_numbers = #tpu.dot_dimension_numbers<[1], [0], [0], [1], [0, 0, 1, 1], [], []>} : vector<128x72xf32>, vector<72x8xf32>, vector<128x8xf32> -> vector<128x8xf32>
    %c0_3 = arith.constant 0 : index
    %c0_4 = arith.constant 0 : index
    %3 = vector.load %arg3[%c0_3, %c0_4] : memref<128x8xf32, #tpu.memory_space<vmem>>, vector<128x8xf32>
    tpu.vector_store %arg3[%c0_3, %c0_4], %2 {strides = array<i32>} : memref<128x8xf32, #tpu.memory_space<vmem>>, vector<128x8xf32>,
    %cst_5 = arith.constant dense<0.000000e+00> : vector<8xf32>
    %4 = vector.multi_reduction <add>, %2, %cst_5 [0] : vector<128x8xf32> to vector<8xf32>
    %5 = vector.shape_cast %4 : vector<8xf32> to vector<1x8xf32>
    %c0_6 = arith.constant 0 : index
    %c0_7 = arith.constant 0 : index
    %6 = vector.load %arg4[%c0_6, %c0_7] : memref<1x8xf32, #tpu.memory_space<vmem>>, vector<1x8xf32>
    tpu.vector_store %arg4[%c0_6, %c0_7], %5 {strides = array<i32>} : memref<1x8xf32, #tpu.memory_space<vmem>>, vector<1x8xf32>,
    %7 = arith.mulf %2, %2 : vector<128x8xf32>
    %cst_8 = arith.constant dense<0.000000e+00> : vector<8xf32>
    %8 = vector.multi_reduction <add>, %7, %cst_8 [0] : vector<128x8xf32> to vector<8xf32>
    %9 = vector.shape_cast %8 : vector<8xf32> to vector<1x8xf32>
    %c0_9 = arith.constant 0 : index
    %c0_10 = arith.constant 0 : index
    %10 = vector.load %arg5[%c0_9, %c0_10] : memref<1x8xf32, #tpu.memory_space<vmem>>, vector<1x8xf32>
    tpu.vector_store %arg5[%c0_9, %c0_10], %9 {strides = array<i32>} : memref<1x8xf32, #tpu.memory_space<vmem>>, vector<1x8xf32>,
    return
  }
  func.func @transform_0(%arg0: i32) -> (i32, i32) {
    %c0_i32 = arith.constant 0 : i32
    %c0_i32_0 = arith.constant 0 : i32
    %c0_i32_1 = arith.constant 0 : i32
    return %c0_i32, %c0_i32_0 : i32, i32
  }
  func.func @transform_1(%arg0: i32) -> (i32, i32) {
    %c0_i32 = arith.constant 0 : i32
    %c0_i32_0 = arith.constant 0 : i32
    %c0_i32_1 = arith.constant 0 : i32
    return %c0_i32, %c0_i32_0 : i32, i32
  }
  func.func @transform_2(%arg0: i32) -> (i32, i32) {
    %c0_i32 = arith.constant 0 : i32
    %c0_i32_0 = arith.constant 0 : i32
    %c0_i32_1 = arith.constant 0 : i32
    return %c0_i32, %c0_i32_0 : i32, i32
  }
  func.func @transform_3(%arg0: i32) -> (i32, i32) {
    %c0_i32 = arith.constant 0 : i32
    %c0_i32_0 = arith.constant 0 : i32
    %c0_i32_1 = arith.constant 0 : i32
    return %c0_i32, %c0_i32_0 : i32, i32
  }
  func.func @transform_4(%arg0: i32) -> (i32, i32) {
    %c0_i32 = arith.constant 0 : i32
    %c0_i32_0 = arith.constant 0 : i32
    %c0_i32_1 = arith.constant 0 : i32
    return %c0_i32, %c0_i32_0 : i32, i32
  }
}

module attributes {stable_mosaic.version = 11 : i64} {
  func.func @kernel(%arg0: i32, %arg1: memref<128x8xf32, #tpu.memory_space<vmem>>, %arg2: memref<1x8xf32, #tpu.memory_space<vmem>>, %arg3: memref<1x8xf32, #tpu.memory_space<vmem>>, %arg4: memref<1x8xf32, #tpu.memory_space<vmem>>, %arg5: memref<1x8xf32, #tpu.memory_space<vmem>>, %arg6: memref<128x8xf32, #tpu.memory_space<vmem>>) attributes {dimension_semantics = [#tpu.dimension_semantics<parallel>], iteration_bounds = array<i64: 1>, scalar_prefetch = 0 : i64, scratch_operands = 0 : i64, tpu.core_type = #tpu.core_type<tc>, window_params = [{pipeline_mode = #tpu.pipeline_mode<synchronous>, transform_indices = @transform_0, window_bounds = array<i64: 128, 8>}, {pipeline_mode = #tpu.pipeline_mode<synchronous>, transform_indices = @transform_1, window_bounds = array<i64: 1, 8>}, {pipeline_mode = #tpu.pipeline_mode<synchronous>, transform_indices = @transform_2, window_bounds = array<i64: 1, 8>}, {pipeline_mode = #tpu.pipeline_mode<synchronous>, transform_indices = @transform_3, window_bounds = array<i64: 1, 8>}, {pipeline_mode = #tpu.pipeline_mode<synchronous>, transform_indices = @transform_4, window_bounds = array<i64: 1, 8>}, {pipeline_mode = #tpu.pipeline_mode<synchronous>, transform_indices = @transform_5, window_bounds = array<i64: 128, 8>}]} {
    %c0 = arith.constant 0 : index
    %c0_0 = arith.constant 0 : index
    %0 = vector.load %arg2[%c0, %c0_0] : memref<1x8xf32, #tpu.memory_space<vmem>>, vector<1x8xf32>
    %c0_1 = arith.constant 0 : index
    %c0_2 = arith.constant 0 : index
    %1 = vector.load %arg3[%c0_1, %c0_2] : memref<1x8xf32, #tpu.memory_space<vmem>>, vector<1x8xf32>
    %c0_3 = arith.constant 0 : index
    %c0_4 = arith.constant 0 : index
    %2 = vector.load %arg4[%c0_3, %c0_4] : memref<1x8xf32, #tpu.memory_space<vmem>>, vector<1x8xf32>
    %c0_5 = arith.constant 0 : index
    %c0_6 = arith.constant 0 : index
    %3 = vector.load %arg5[%c0_5, %c0_6] : memref<1x8xf32, #tpu.memory_space<vmem>>, vector<1x8xf32>
    %cst = arith.constant 7.812500e-03 : f32
    %4 = vector.broadcast %cst : f32 to vector<1x8xf32>
    %5 = arith.mulf %0, %4 : vector<1x8xf32>
    %cst_7 = arith.constant 7.812500e-03 : f32
    %6 = vector.broadcast %cst_7 : f32 to vector<1x8xf32>
    %7 = arith.mulf %1, %6 : vector<1x8xf32>
    %8 = arith.mulf %5, %5 : vector<1x8xf32>
    %9 = arith.subf %7, %8 : vector<1x8xf32>
    %cst_8 = arith.constant 0.000000e+00 : f32
    %10 = vector.broadcast %cst_8 : f32 to vector<1x8xf32>
    %11 = arith.maximumf %9, %10 : vector<1x8xf32>
    %cst_9 = arith.constant 9.99999974E-6 : f32
    %12 = vector.broadcast %cst_9 : f32 to vector<1x8xf32>
    %13 = arith.addf %11, %12 : vector<1x8xf32>
    %14 = math.rsqrt %13 : vector<1x8xf32>
    %15 = arith.mulf %2, %14 : vector<1x8xf32>
    %16 = arith.mulf %5, %15 : vector<1x8xf32>
    %17 = arith.subf %3, %16 : vector<1x8xf32>
    %c0_10 = arith.constant 0 : index
    %c0_11 = arith.constant 0 : index
    %18 = vector.load %arg1[%c0_10, %c0_11] : memref<128x8xf32, #tpu.memory_space<vmem>>, vector<128x8xf32>
    %19 = vector.broadcast %15 : vector<1x8xf32> to vector<128x8xf32>
    %20 = arith.mulf %18, %19 : vector<128x8xf32>
    %21 = vector.broadcast %17 : vector<1x8xf32> to vector<128x8xf32>
    %22 = arith.addf %20, %21 : vector<128x8xf32>
    %cst_12 = arith.constant 0.000000e+00 : f32
    %23 = vector.broadcast %cst_12 : f32 to vector<128x8xf32>
    %24 = arith.maximumf %22, %23 : vector<128x8xf32>
    %c0_13 = arith.constant 0 : index
    %c0_14 = arith.constant 0 : index
    %25 = vector.load %arg6[%c0_13, %c0_14] : memref<128x8xf32, #tpu.memory_space<vmem>>, vector<128x8xf32>
    tpu.vector_store %arg6[%c0_13, %c0_14], %24 {strides = array<i32>} : memref<128x8xf32, #tpu.memory_space<vmem>>, vector<128x8xf32>,
    return
  }
  func.func @transform_0(%arg0: i32) -> (i32, i32) {
    %c0_i32 = arith.constant 0 : i32
    %c0_i32_0 = arith.constant 0 : i32
    %c0_i32_1 = arith.constant 0 : i32
    return %c0_i32, %c0_i32_0 : i32, i32
  }
  func.func @transform_1(%arg0: i32) -> (i32, i32) {
    %c0_i32 = arith.constant 0 : i32
    %c0_i32_0 = arith.constant 0 : i32
    %c0_i32_1 = arith.constant 0 : i32
    return %c0_i32, %c0_i32_0 : i32, i32
  }
  func.func @transform_2(%arg0: i32) -> (i32, i32) {
    %c0_i32 = arith.constant 0 : i32
    %c0_i32_0 = arith.constant 0 : i32
    %c0_i32_1 = arith.constant 0 : i32
    return %c0_i32, %c0_i32_0 : i32, i32
  }
  func.func @transform_3(%arg0: i32) -> (i32, i32) {
    %c0_i32 = arith.constant 0 : i32
    %c0_i32_0 = arith.constant 0 : i32
    %c0_i32_1 = arith.constant 0 : i32
    return %c0_i32, %c0_i32_0 : i32, i32
  }
  func.func @transform_4(%arg0: i32) -> (i32, i32) {
    %c0_i32 = arith.constant 0 : i32
    %c0_i32_0 = arith.constant 0 : i32
    %c0_i32_1 = arith.constant 0 : i32
    return %c0_i32, %c0_i32_0 : i32, i32
  }
  func.func @transform_5(%arg0: i32) -> (i32, i32) {
    %c0_i32 = arith.constant 0 : i32
    %c0_i32_0 = arith.constant 0 : i32
    %c0_i32_1 = arith.constant 0 : i32
    return %c0_i32, %c0_i32_0 : i32, i32
  }
}

module attributes {stable_mosaic.version = 11 : i64} {
  func.func @_matmul_stats_kernel(%arg0: i32, %arg1: memref<32x8xf32, #tpu.memory_space<vmem>>, %arg2: memref<8x16xf32, #tpu.memory_space<vmem>>, %arg3: memref<32x16xf32, #tpu.memory_space<vmem>>, %arg4: memref<1x16xf32, #tpu.memory_space<vmem>>, %arg5: memref<1x16xf32, #tpu.memory_space<vmem>>) attributes {dimension_semantics = [#tpu.dimension_semantics<arbitrary>], iteration_bounds = array<i64: 1>, scalar_prefetch = 0 : i64, scratch_operands = 0 : i64, tpu.core_type = #tpu.core_type<tc>, window_params = [{pipeline_mode = #tpu.pipeline_mode<synchronous>, transform_indices = @transform_0, window_bounds = array<i64: 32, 8>}, {pipeline_mode = #tpu.pipeline_mode<synchronous>, transform_indices = @transform_1, window_bounds = array<i64: 8, 16>}, {pipeline_mode = #tpu.pipeline_mode<synchronous>, transform_indices = @transform_2, window_bounds = array<i64: 32, 16>}, {pipeline_mode = #tpu.pipeline_mode<synchronous>, transform_indices = @transform_3, window_bounds = array<i64: 1, 16>}, {pipeline_mode = #tpu.pipeline_mode<synchronous>, transform_indices = @transform_4, window_bounds = array<i64: 1, 16>}]} {
    %c0 = arith.constant 0 : index
    %c0_0 = arith.constant 0 : index
    %0 = vector.load %arg1[%c0, %c0_0] : memref<32x8xf32, #tpu.memory_space<vmem>>, vector<32x8xf32>
    %c0_1 = arith.constant 0 : index
    %c0_2 = arith.constant 0 : index
    %1 = vector.load %arg2[%c0_1, %c0_2] : memref<8x16xf32, #tpu.memory_space<vmem>>, vector<8x16xf32>
    %cst = arith.constant dense<0.000000e+00> : vector<32x16xf32>
    %2 = tpu.matmul %0, %1, %cst {dimension_numbers = #tpu.dot_dimension_numbers<[1], [0], [0], [1], [0, 0, 1, 1], [], []>} : vector<32x8xf32>, vector<8x16xf32>, vector<32x16xf32> -> vector<32x16xf32>
    %c0_3 = arith.constant 0 : index
    %c0_4 = arith.constant 0 : index
    %3 = vector.load %arg3[%c0_3, %c0_4] : memref<32x16xf32, #tpu.memory_space<vmem>>, vector<32x16xf32>
    tpu.vector_store %arg3[%c0_3, %c0_4], %2 {strides = array<i32>} : memref<32x16xf32, #tpu.memory_space<vmem>>, vector<32x16xf32>,
    %cst_5 = arith.constant dense<0.000000e+00> : vector<16xf32>
    %4 = vector.multi_reduction <add>, %2, %cst_5 [0] : vector<32x16xf32> to vector<16xf32>
    %5 = vector.shape_cast %4 : vector<16xf32> to vector<1x16xf32>
    %c0_6 = arith.constant 0 : index
    %c0_7 = arith.constant 0 : index
    %6 = vector.load %arg4[%c0_6, %c0_7] : memref<1x16xf32, #tpu.memory_space<vmem>>, vector<1x16xf32>
    tpu.vector_store %arg4[%c0_6, %c0_7], %5 {strides = array<i32>} : memref<1x16xf32, #tpu.memory_space<vmem>>, vector<1x16xf32>,
    %7 = arith.mulf %2, %2 : vector<32x16xf32>
    %cst_8 = arith.constant dense<0.000000e+00> : vector<16xf32>
    %8 = vector.multi_reduction <add>, %7, %cst_8 [0] : vector<32x16xf32> to vector<16xf32>
    %9 = vector.shape_cast %8 : vector<16xf32> to vector<1x16xf32>
    %c0_9 = arith.constant 0 : index
    %c0_10 = arith.constant 0 : index
    %10 = vector.load %arg5[%c0_9, %c0_10] : memref<1x16xf32, #tpu.memory_space<vmem>>, vector<1x16xf32>
    tpu.vector_store %arg5[%c0_9, %c0_10], %9 {strides = array<i32>} : memref<1x16xf32, #tpu.memory_space<vmem>>, vector<1x16xf32>,
    return
  }
  func.func @transform_0(%arg0: i32) -> (i32, i32) {
    %c0_i32 = arith.constant 0 : i32
    %c0_i32_0 = arith.constant 0 : i32
    %c0_i32_1 = arith.constant 0 : i32
    return %c0_i32, %c0_i32_0 : i32, i32
  }
  func.func @transform_1(%arg0: i32) -> (i32, i32) {
    %c0_i32 = arith.constant 0 : i32
    %c0_i32_0 = arith.constant 0 : i32
    %c0_i32_1 = arith.constant 0 : i32
    return %c0_i32, %c0_i32_0 : i32, i32
  }
  func.func @transform_2(%arg0: i32) -> (i32, i32) {
    %c0_i32 = arith.constant 0 : i32
    %c0_i32_0 = arith.constant 0 : i32
    %c0_i32_1 = arith.constant 0 : i32
    return %c0_i32, %c0_i32_0 : i32, i32
  }
  func.func @transform_3(%arg0: i32) -> (i32, i32) {
    %c0_i32 = arith.constant 0 : i32
    %c0_i32_0 = arith.constant 0 : i32
    %c0_i32_1 = arith.constant 0 : i32
    return %c0_i32, %c0_i32_0 : i32, i32
  }
  func.func @transform_4(%arg0: i32) -> (i32, i32) {
    %c0_i32 = arith.constant 0 : i32
    %c0_i32_0 = arith.constant 0 : i32
    %c0_i32_1 = arith.constant 0 : i32
    return %c0_i32, %c0_i32_0 : i32, i32
  }
}

module attributes {stable_mosaic.version = 11 : i64} {
  func.func @kernel(%arg0: i32, %arg1: memref<128x8xf32, #tpu.memory_space<vmem>>, %arg2: memref<1x8xf32, #tpu.memory_space<vmem>>, %arg3: memref<1x8xf32, #tpu.memory_space<vmem>>, %arg4: memref<1x8xf32, #tpu.memory_space<vmem>>, %arg5: memref<1x8xf32, #tpu.memory_space<vmem>>, %arg6: memref<128x8xf32, #tpu.memory_space<vmem>>, %arg7: memref<128x8xf32, #tpu.memory_space<vmem>>) attributes {dimension_semantics = [#tpu.dimension_semantics<parallel>], iteration_bounds = array<i64: 1>, scalar_prefetch = 0 : i64, scratch_operands = 0 : i64, tpu.core_type = #tpu.core_type<tc>, window_params = [{pipeline_mode = #tpu.pipeline_mode<synchronous>, transform_indices = @transform_0, window_bounds = array<i64: 128, 8>}, {pipeline_mode = #tpu.pipeline_mode<synchronous>, transform_indices = @transform_1, window_bounds = array<i64: 1, 8>}, {pipeline_mode = #tpu.pipeline_mode<synchronous>, transform_indices = @transform_2, window_bounds = array<i64: 1, 8>}, {pipeline_mode = #tpu.pipeline_mode<synchronous>, transform_indices = @transform_3, window_bounds = array<i64: 1, 8>}, {pipeline_mode = #tpu.pipeline_mode<synchronous>, transform_indices = @transform_4, window_bounds = array<i64: 1, 8>}, {pipeline_mode = #tpu.pipeline_mode<synchronous>, transform_indices = @transform_5, window_bounds = array<i64: 128, 8>}, {pipeline_mode = #tpu.pipeline_mode<synchronous>, transform_indices = @transform_6, window_bounds = array<i64: 128, 8>}]} {
    %c0 = arith.constant 0 : index
    %c0_0 = arith.constant 0 : index
    %0 = vector.load %arg2[%c0, %c0_0] : memref<1x8xf32, #tpu.memory_space<vmem>>, vector<1x8xf32>
    %c0_1 = arith.constant 0 : index
    %c0_2 = arith.constant 0 : index
    %1 = vector.load %arg3[%c0_1, %c0_2] : memref<1x8xf32, #tpu.memory_space<vmem>>, vector<1x8xf32>
    %c0_3 = arith.constant 0 : index
    %c0_4 = arith.constant 0 : index
    %2 = vector.load %arg4[%c0_3, %c0_4] : memref<1x8xf32, #tpu.memory_space<vmem>>, vector<1x8xf32>
    %c0_5 = arith.constant 0 : index
    %c0_6 = arith.constant 0 : index
    %3 = vector.load %arg5[%c0_5, %c0_6] : memref<1x8xf32, #tpu.memory_space<vmem>>, vector<1x8xf32>
    %cst = arith.constant 7.812500e-03 : f32
    %4 = vector.broadcast %cst : f32 to vector<1x8xf32>
    %5 = arith.mulf %0, %4 : vector<1x8xf32>
    %cst_7 = arith.constant 7.812500e-03 : f32
    %6 = vector.broadcast %cst_7 : f32 to vector<1x8xf32>
    %7 = arith.mulf %1, %6 : vector<1x8xf32>
    %8 = arith.mulf %5, %5 : vector<1x8xf32>
    %9 = arith.subf %7, %8 : vector<1x8xf32>
    %cst_8 = arith.constant 0.000000e+00 : f32
    %10 = vector.broadcast %cst_8 : f32 to vector<1x8xf32>
    %11 = arith.maximumf %9, %10 : vector<1x8xf32>
    %cst_9 = arith.constant 9.99999974E-6 : f32
    %12 = vector.broadcast %cst_9 : f32 to vector<1x8xf32>
    %13 = arith.addf %11, %12 : vector<1x8xf32>
    %14 = math.rsqrt %13 : vector<1x8xf32>
    %15 = arith.mulf %2, %14 : vector<1x8xf32>
    %16 = arith.mulf %5, %15 : vector<1x8xf32>
    %17 = arith.subf %3, %16 : vector<1x8xf32>
    %c0_10 = arith.constant 0 : index
    %c0_11 = arith.constant 0 : index
    %18 = vector.load %arg1[%c0_10, %c0_11] : memref<128x8xf32, #tpu.memory_space<vmem>>, vector<128x8xf32>
    %19 = vector.broadcast %15 : vector<1x8xf32> to vector<128x8xf32>
    %20 = arith.mulf %18, %19 : vector<128x8xf32>
    %21 = vector.broadcast %17 : vector<1x8xf32> to vector<128x8xf32>
    %22 = arith.addf %20, %21 : vector<128x8xf32>
    %c0_12 = arith.constant 0 : index
    %c0_13 = arith.constant 0 : index
    %23 = vector.load %arg6[%c0_12, %c0_13] : memref<128x8xf32, #tpu.memory_space<vmem>>, vector<128x8xf32>
    %24 = arith.addf %22, %23 : vector<128x8xf32>
    %cst_14 = arith.constant 0.000000e+00 : f32
    %25 = vector.broadcast %cst_14 : f32 to vector<128x8xf32>
    %26 = arith.maximumf %24, %25 : vector<128x8xf32>
    %c0_15 = arith.constant 0 : index
    %c0_16 = arith.constant 0 : index
    %27 = vector.load %arg7[%c0_15, %c0_16] : memref<128x8xf32, #tpu.memory_space<vmem>>, vector<128x8xf32>
    tpu.vector_store %arg7[%c0_15, %c0_16], %26 {strides = array<i32>} : memref<128x8xf32, #tpu.memory_space<vmem>>, vector<128x8xf32>,
    return
  }
  func.func @transform_0(%arg0: i32) -> (i32, i32) {
    %c0_i32 = arith.constant 0 : i32
    %c0_i32_0 = arith.constant 0 : i32
    %c0_i32_1 = arith.constant 0 : i32
    return %c0_i32, %c0_i32_0 : i32, i32
  }
  func.func @transform_1(%arg0: i32) -> (i32, i32) {
    %c0_i32 = arith.constant 0 : i32
    %c0_i32_0 = arith.constant 0 : i32
    %c0_i32_1 = arith.constant 0 : i32
    return %c0_i32, %c0_i32_0 : i32, i32
  }
  func.func @transform_2(%arg0: i32) -> (i32, i32) {
    %c0_i32 = arith.constant 0 : i32
    %c0_i32_0 = arith.constant 0 : i32
    %c0_i32_1 = arith.constant 0 : i32
    return %c0_i32, %c0_i32_0 : i32, i32
  }
  func.func @transform_3(%arg0: i32) -> (i32, i32) {
    %c0_i32 = arith.constant 0 : i32
    %c0_i32_0 = arith.constant 0 : i32
    %c0_i32_1 = arith.constant 0 : i32
    return %c0_i32, %c0_i32_0 : i32, i32
  }
  func.func @transform_4(%arg0: i32) -> (i32, i32) {
    %c0_i32 = arith.constant 0 : i32
    %c0_i32_0 = arith.constant 0 : i32
    %c0_i32_1 = arith.constant 0 : i32
    return %c0_i32, %c0_i32_0 : i32, i32
  }
  func.func @transform_5(%arg0: i32) -> (i32, i32) {
    %c0_i32 = arith.constant 0 : i32
    %c0_i32_0 = arith.constant 0 : i32
    %c0_i32_1 = arith.constant 0 : i32
    return %c0_i32, %c0_i32_0 : i32, i32
  }
  func.func @transform_6(%arg0: i32) -> (i32, i32) {
    %c0_i32 = arith.constant 0 : i32
    %c0_i32_0 = arith.constant 0 : i32
    %c0_i32_1 = arith.constant 0 : i32
    return %c0_i32, %c0_i32_0 : i32, i32
  }
}

module attributes {stable_mosaic.version = 11 : i64} {
  func.func @kernel(%arg0: i32, %arg1: memref<32x16xf32, #tpu.memory_space<vmem>>, %arg2: memref<1x16xf32, #tpu.memory_space<vmem>>, %arg3: memref<1x16xf32, #tpu.memory_space<vmem>>, %arg4: memref<1x16xf32, #tpu.memory_space<vmem>>, %arg5: memref<1x16xf32, #tpu.memory_space<vmem>>, %arg6: memref<32x16xf32, #tpu.memory_space<vmem>>) attributes {dimension_semantics = [#tpu.dimension_semantics<parallel>], iteration_bounds = array<i64: 1>, scalar_prefetch = 0 : i64, scratch_operands = 0 : i64, tpu.core_type = #tpu.core_type<tc>, window_params = [{pipeline_mode = #tpu.pipeline_mode<synchronous>, transform_indices = @transform_0, window_bounds = array<i64: 32, 16>}, {pipeline_mode = #tpu.pipeline_mode<synchronous>, transform_indices = @transform_1, window_bounds = array<i64: 1, 16>}, {pipeline_mode = #tpu.pipeline_mode<synchronous>, transform_indices = @transform_2, window_bounds = array<i64: 1, 16>}, {pipeline_mode = #tpu.pipeline_mode<synchronous>, transform_indices = @transform_3, window_bounds = array<i64: 1, 16>}, {pipeline_mode = #tpu.pipeline_mode<synchronous>, transform_indices = @transform_4, window_bounds = array<i64: 1, 16>}, {pipeline_mode = #tpu.pipeline_mode<synchronous>, transform_indices = @transform_5, window_bounds = array<i64: 32, 16>}]} {
    %c0 = arith.constant 0 : index
    %c0_0 = arith.constant 0 : index
    %0 = vector.load %arg2[%c0, %c0_0] : memref<1x16xf32, #tpu.memory_space<vmem>>, vector<1x16xf32>
    %c0_1 = arith.constant 0 : index
    %c0_2 = arith.constant 0 : index
    %1 = vector.load %arg3[%c0_1, %c0_2] : memref<1x16xf32, #tpu.memory_space<vmem>>, vector<1x16xf32>
    %c0_3 = arith.constant 0 : index
    %c0_4 = arith.constant 0 : index
    %2 = vector.load %arg4[%c0_3, %c0_4] : memref<1x16xf32, #tpu.memory_space<vmem>>, vector<1x16xf32>
    %c0_5 = arith.constant 0 : index
    %c0_6 = arith.constant 0 : index
    %3 = vector.load %arg5[%c0_5, %c0_6] : memref<1x16xf32, #tpu.memory_space<vmem>>, vector<1x16xf32>
    %cst = arith.constant 3.125000e-02 : f32
    %4 = vector.broadcast %cst : f32 to vector<1x16xf32>
    %5 = arith.mulf %0, %4 : vector<1x16xf32>
    %cst_7 = arith.constant 3.125000e-02 : f32
    %6 = vector.broadcast %cst_7 : f32 to vector<1x16xf32>
    %7 = arith.mulf %1, %6 : vector<1x16xf32>
    %8 = arith.mulf %5, %5 : vector<1x16xf32>
    %9 = arith.subf %7, %8 : vector<1x16xf32>
    %cst_8 = arith.constant 0.000000e+00 : f32
    %10 = vector.broadcast %cst_8 : f32 to vector<1x16xf32>
    %11 = arith.maximumf %9, %10 : vector<1x16xf32>
    %cst_9 = arith.constant 9.99999974E-6 : f32
    %12 = vector.broadcast %cst_9 : f32 to vector<1x16xf32>
    %13 = arith.addf %11, %12 : vector<1x16xf32>
    %14 = math.rsqrt %13 : vector<1x16xf32>
    %15 = arith.mulf %2, %14 : vector<1x16xf32>
    %16 = arith.mulf %5, %15 : vector<1x16xf32>
    %17 = arith.subf %3, %16 : vector<1x16xf32>
    %c0_10 = arith.constant 0 : index
    %c0_11 = arith.constant 0 : index
    %18 = vector.load %arg1[%c0_10, %c0_11] : memref<32x16xf32, #tpu.memory_space<vmem>>, vector<32x16xf32>
    %19 = vector.broadcast %15 : vector<1x16xf32> to vector<32x16xf32>
    %20 = arith.mulf %18, %19 : vector<32x16xf32>
    %21 = vector.broadcast %17 : vector<1x16xf32> to vector<32x16xf32>
    %22 = arith.addf %20, %21 : vector<32x16xf32>
    %c0_12 = arith.constant 0 : index
    %c0_13 = arith.constant 0 : index
    %23 = vector.load %arg6[%c0_12, %c0_13] : memref<32x16xf32, #tpu.memory_space<vmem>>, vector<32x16xf32>
    tpu.vector_store %arg6[%c0_12, %c0_13], %22 {strides = array<i32>} : memref<32x16xf32, #tpu.memory_space<vmem>>, vector<32x16xf32>,
    return
  }
  func.func @transform_0(%arg0: i32) -> (i32, i32) {
    %c0_i32 = arith.constant 0 : i32
    %c0_i32_0 = arith.constant 0 : i32
    %c0_i32_1 = arith.constant 0 : i32
    return %c0_i32, %c0_i32_0 : i32, i32
  }
  func.func @transform_1(%arg0: i32) -> (i32, i32) {
    %c0_i32 = arith.constant 0 : i32
    %c0_i32_0 = arith.constant 0 : i32
    %c0_i32_1 = arith.constant 0 : i32
    return %c0_i32, %c0_i32_0 : i32, i32
  }
  func.func @transform_2(%arg0: i32) -> (i32, i32) {
    %c0_i32 = arith.constant 0 : i32
    %c0_i32_0 = arith.constant 0 : i32
    %c0_i32_1 = arith.constant 0 : i32
    return %c0_i32, %c0_i32_0 : i32, i32
  }
  func.func @transform_3(%arg0: i32) -> (i32, i32) {
    %c0_i32 = arith.constant 0 : i32
    %c0_i32_0 = arith.constant 0 : i32
    %c0_i32_1 = arith.constant 0 : i32
    return %c0_i32, %c0_i32_0 : i32, i32
  }
  func.func @transform_4(%arg0: i32) -> (i32, i32) {
    %c0_i32 = arith.constant 0 : i32
    %c0_i32_0 = arith.constant 0 : i32
    %c0_i32_1 = arith.constant 0 : i32
    return %c0_i32, %c0_i32_0 : i32, i32
  }
  func.func @transform_5(%arg0: i32) -> (i32, i32) {
    %c0_i32 = arith.constant 0 : i32
    %c0_i32_0 = arith.constant 0 : i32
    %c0_i32_1 = arith.constant 0 : i32
    return %c0_i32, %c0_i32_0 : i32, i32
  }
}

module attributes {stable_mosaic.version = 11 : i64} {
  func.func @_matmul_stats_kernel(%arg0: i32, %arg1: memref<32x72xf32, #tpu.memory_space<vmem>>, %arg2: memref<72x16xf32, #tpu.memory_space<vmem>>, %arg3: memref<32x16xf32, #tpu.memory_space<vmem>>, %arg4: memref<1x16xf32, #tpu.memory_space<vmem>>, %arg5: memref<1x16xf32, #tpu.memory_space<vmem>>) attributes {dimension_semantics = [#tpu.dimension_semantics<arbitrary>], iteration_bounds = array<i64: 1>, scalar_prefetch = 0 : i64, scratch_operands = 0 : i64, tpu.core_type = #tpu.core_type<tc>, window_params = [{pipeline_mode = #tpu.pipeline_mode<synchronous>, transform_indices = @transform_0, window_bounds = array<i64: 32, 72>}, {pipeline_mode = #tpu.pipeline_mode<synchronous>, transform_indices = @transform_1, window_bounds = array<i64: 72, 16>}, {pipeline_mode = #tpu.pipeline_mode<synchronous>, transform_indices = @transform_2, window_bounds = array<i64: 32, 16>}, {pipeline_mode = #tpu.pipeline_mode<synchronous>, transform_indices = @transform_3, window_bounds = array<i64: 1, 16>}, {pipeline_mode = #tpu.pipeline_mode<synchronous>, transform_indices = @transform_4, window_bounds = array<i64: 1, 16>}]} {
    %c0 = arith.constant 0 : index
    %c0_0 = arith.constant 0 : index
    %0 = vector.load %arg1[%c0, %c0_0] : memref<32x72xf32, #tpu.memory_space<vmem>>, vector<32x72xf32>
    %c0_1 = arith.constant 0 : index
    %c0_2 = arith.constant 0 : index
    %1 = vector.load %arg2[%c0_1, %c0_2] : memref<72x16xf32, #tpu.memory_space<vmem>>, vector<72x16xf32>
    %cst = arith.constant dense<0.000000e+00> : vector<32x16xf32>
    %2 = tpu.matmul %0, %1, %cst {dimension_numbers = #tpu.dot_dimension_numbers<[1], [0], [0], [1], [0, 0, 1, 1], [], []>} : vector<32x72xf32>, vector<72x16xf32>, vector<32x16xf32> -> vector<32x16xf32>
    %c0_3 = arith.constant 0 : index
    %c0_4 = arith.constant 0 : index
    %3 = vector.load %arg3[%c0_3, %c0_4] : memref<32x16xf32, #tpu.memory_space<vmem>>, vector<32x16xf32>
    tpu.vector_store %arg3[%c0_3, %c0_4], %2 {strides = array<i32>} : memref<32x16xf32, #tpu.memory_space<vmem>>, vector<32x16xf32>,
    %cst_5 = arith.constant dense<0.000000e+00> : vector<16xf32>
    %4 = vector.multi_reduction <add>, %2, %cst_5 [0] : vector<32x16xf32> to vector<16xf32>
    %5 = vector.shape_cast %4 : vector<16xf32> to vector<1x16xf32>
    %c0_6 = arith.constant 0 : index
    %c0_7 = arith.constant 0 : index
    %6 = vector.load %arg4[%c0_6, %c0_7] : memref<1x16xf32, #tpu.memory_space<vmem>>, vector<1x16xf32>
    tpu.vector_store %arg4[%c0_6, %c0_7], %5 {strides = array<i32>} : memref<1x16xf32, #tpu.memory_space<vmem>>, vector<1x16xf32>,
    %7 = arith.mulf %2, %2 : vector<32x16xf32>
    %cst_8 = arith.constant dense<0.000000e+00> : vector<16xf32>
    %8 = vector.multi_reduction <add>, %7, %cst_8 [0] : vector<32x16xf32> to vector<16xf32>
    %9 = vector.shape_cast %8 : vector<16xf32> to vector<1x16xf32>
    %c0_9 = arith.constant 0 : index
    %c0_10 = arith.constant 0 : index
    %10 = vector.load %arg5[%c0_9, %c0_10] : memref<1x16xf32, #tpu.memory_space<vmem>>, vector<1x16xf32>
    tpu.vector_store %arg5[%c0_9, %c0_10], %9 {strides = array<i32>} : memref<1x16xf32, #tpu.memory_space<vmem>>, vector<1x16xf32>,
    return
  }
  func.func @transform_0(%arg0: i32) -> (i32, i32) {
    %c0_i32 = arith.constant 0 : i32
    %c0_i32_0 = arith.constant 0 : i32
    %c0_i32_1 = arith.constant 0 : i32
    return %c0_i32, %c0_i32_0 : i32, i32
  }
  func.func @transform_1(%arg0: i32) -> (i32, i32) {
    %c0_i32 = arith.constant 0 : i32
    %c0_i32_0 = arith.constant 0 : i32
    %c0_i32_1 = arith.constant 0 : i32
    return %c0_i32, %c0_i32_0 : i32, i32
  }
  func.func @transform_2(%arg0: i32) -> (i32, i32) {
    %c0_i32 = arith.constant 0 : i32
    %c0_i32_0 = arith.constant 0 : i32
    %c0_i32_1 = arith.constant 0 : i32
    return %c0_i32, %c0_i32_0 : i32, i32
  }
  func.func @transform_3(%arg0: i32) -> (i32, i32) {
    %c0_i32 = arith.constant 0 : i32
    %c0_i32_0 = arith.constant 0 : i32
    %c0_i32_1 = arith.constant 0 : i32
    return %c0_i32, %c0_i32_0 : i32, i32
  }
  func.func @transform_4(%arg0: i32) -> (i32, i32) {
    %c0_i32 = arith.constant 0 : i32
    %c0_i32_0 = arith.constant 0 : i32
    %c0_i32_1 = arith.constant 0 : i32
    return %c0_i32, %c0_i32_0 : i32, i32
  }
}

module attributes {stable_mosaic.version = 11 : i64} {
  func.func @kernel(%arg0: i32, %arg1: memref<32x16xf32, #tpu.memory_space<vmem>>, %arg2: memref<1x16xf32, #tpu.memory_space<vmem>>, %arg3: memref<1x16xf32, #tpu.memory_space<vmem>>, %arg4: memref<1x16xf32, #tpu.memory_space<vmem>>, %arg5: memref<1x16xf32, #tpu.memory_space<vmem>>, %arg6: memref<32x16xf32, #tpu.memory_space<vmem>>) attributes {dimension_semantics = [#tpu.dimension_semantics<parallel>], iteration_bounds = array<i64: 1>, scalar_prefetch = 0 : i64, scratch_operands = 0 : i64, tpu.core_type = #tpu.core_type<tc>, window_params = [{pipeline_mode = #tpu.pipeline_mode<synchronous>, transform_indices = @transform_0, window_bounds = array<i64: 32, 16>}, {pipeline_mode = #tpu.pipeline_mode<synchronous>, transform_indices = @transform_1, window_bounds = array<i64: 1, 16>}, {pipeline_mode = #tpu.pipeline_mode<synchronous>, transform_indices = @transform_2, window_bounds = array<i64: 1, 16>}, {pipeline_mode = #tpu.pipeline_mode<synchronous>, transform_indices = @transform_3, window_bounds = array<i64: 1, 16>}, {pipeline_mode = #tpu.pipeline_mode<synchronous>, transform_indices = @transform_4, window_bounds = array<i64: 1, 16>}, {pipeline_mode = #tpu.pipeline_mode<synchronous>, transform_indices = @transform_5, window_bounds = array<i64: 32, 16>}]} {
    %c0 = arith.constant 0 : index
    %c0_0 = arith.constant 0 : index
    %0 = vector.load %arg2[%c0, %c0_0] : memref<1x16xf32, #tpu.memory_space<vmem>>, vector<1x16xf32>
    %c0_1 = arith.constant 0 : index
    %c0_2 = arith.constant 0 : index
    %1 = vector.load %arg3[%c0_1, %c0_2] : memref<1x16xf32, #tpu.memory_space<vmem>>, vector<1x16xf32>
    %c0_3 = arith.constant 0 : index
    %c0_4 = arith.constant 0 : index
    %2 = vector.load %arg4[%c0_3, %c0_4] : memref<1x16xf32, #tpu.memory_space<vmem>>, vector<1x16xf32>
    %c0_5 = arith.constant 0 : index
    %c0_6 = arith.constant 0 : index
    %3 = vector.load %arg5[%c0_5, %c0_6] : memref<1x16xf32, #tpu.memory_space<vmem>>, vector<1x16xf32>
    %cst = arith.constant 3.125000e-02 : f32
    %4 = vector.broadcast %cst : f32 to vector<1x16xf32>
    %5 = arith.mulf %0, %4 : vector<1x16xf32>
    %cst_7 = arith.constant 3.125000e-02 : f32
    %6 = vector.broadcast %cst_7 : f32 to vector<1x16xf32>
    %7 = arith.mulf %1, %6 : vector<1x16xf32>
    %8 = arith.mulf %5, %5 : vector<1x16xf32>
    %9 = arith.subf %7, %8 : vector<1x16xf32>
    %cst_8 = arith.constant 0.000000e+00 : f32
    %10 = vector.broadcast %cst_8 : f32 to vector<1x16xf32>
    %11 = arith.maximumf %9, %10 : vector<1x16xf32>
    %cst_9 = arith.constant 9.99999974E-6 : f32
    %12 = vector.broadcast %cst_9 : f32 to vector<1x16xf32>
    %13 = arith.addf %11, %12 : vector<1x16xf32>
    %14 = math.rsqrt %13 : vector<1x16xf32>
    %15 = arith.mulf %2, %14 : vector<1x16xf32>
    %16 = arith.mulf %5, %15 : vector<1x16xf32>
    %17 = arith.subf %3, %16 : vector<1x16xf32>
    %c0_10 = arith.constant 0 : index
    %c0_11 = arith.constant 0 : index
    %18 = vector.load %arg1[%c0_10, %c0_11] : memref<32x16xf32, #tpu.memory_space<vmem>>, vector<32x16xf32>
    %19 = vector.broadcast %15 : vector<1x16xf32> to vector<32x16xf32>
    %20 = arith.mulf %18, %19 : vector<32x16xf32>
    %21 = vector.broadcast %17 : vector<1x16xf32> to vector<32x16xf32>
    %22 = arith.addf %20, %21 : vector<32x16xf32>
    %cst_12 = arith.constant 0.000000e+00 : f32
    %23 = vector.broadcast %cst_12 : f32 to vector<32x16xf32>
    %24 = arith.maximumf %22, %23 : vector<32x16xf32>
    %c0_13 = arith.constant 0 : index
    %c0_14 = arith.constant 0 : index
    %25 = vector.load %arg6[%c0_13, %c0_14] : memref<32x16xf32, #tpu.memory_space<vmem>>, vector<32x16xf32>
    tpu.vector_store %arg6[%c0_13, %c0_14], %24 {strides = array<i32>} : memref<32x16xf32, #tpu.memory_space<vmem>>, vector<32x16xf32>,
    return
  }
  func.func @transform_0(%arg0: i32) -> (i32, i32) {
    %c0_i32 = arith.constant 0 : i32
    %c0_i32_0 = arith.constant 0 : i32
    %c0_i32_1 = arith.constant 0 : i32
    return %c0_i32, %c0_i32_0 : i32, i32
  }
  func.func @transform_1(%arg0: i32) -> (i32, i32) {
    %c0_i32 = arith.constant 0 : i32
    %c0_i32_0 = arith.constant 0 : i32
    %c0_i32_1 = arith.constant 0 : i32
    return %c0_i32, %c0_i32_0 : i32, i32
  }
  func.func @transform_2(%arg0: i32) -> (i32, i32) {
    %c0_i32 = arith.constant 0 : i32
    %c0_i32_0 = arith.constant 0 : i32
    %c0_i32_1 = arith.constant 0 : i32
    return %c0_i32, %c0_i32_0 : i32, i32
  }
  func.func @transform_3(%arg0: i32) -> (i32, i32) {
    %c0_i32 = arith.constant 0 : i32
    %c0_i32_0 = arith.constant 0 : i32
    %c0_i32_1 = arith.constant 0 : i32
    return %c0_i32, %c0_i32_0 : i32, i32
  }
  func.func @transform_4(%arg0: i32) -> (i32, i32) {
    %c0_i32 = arith.constant 0 : i32
    %c0_i32_0 = arith.constant 0 : i32
    %c0_i32_1 = arith.constant 0 : i32
    return %c0_i32, %c0_i32_0 : i32, i32
  }
  func.func @transform_5(%arg0: i32) -> (i32, i32) {
    %c0_i32 = arith.constant 0 : i32
    %c0_i32_0 = arith.constant 0 : i32
    %c0_i32_1 = arith.constant 0 : i32
    return %c0_i32, %c0_i32_0 : i32, i32
  }
}

module attributes {stable_mosaic.version = 11 : i64} {
  func.func @_matmul_stats_kernel(%arg0: i32, %arg1: memref<32x144xf32, #tpu.memory_space<vmem>>, %arg2: memref<144x16xf32, #tpu.memory_space<vmem>>, %arg3: memref<32x16xf32, #tpu.memory_space<vmem>>, %arg4: memref<1x16xf32, #tpu.memory_space<vmem>>, %arg5: memref<1x16xf32, #tpu.memory_space<vmem>>) attributes {dimension_semantics = [#tpu.dimension_semantics<arbitrary>], iteration_bounds = array<i64: 1>, scalar_prefetch = 0 : i64, scratch_operands = 0 : i64, tpu.core_type = #tpu.core_type<tc>, window_params = [{pipeline_mode = #tpu.pipeline_mode<synchronous>, transform_indices = @transform_0, window_bounds = array<i64: 32, 144>}, {pipeline_mode = #tpu.pipeline_mode<synchronous>, transform_indices = @transform_1, window_bounds = array<i64: 144, 16>}, {pipeline_mode = #tpu.pipeline_mode<synchronous>, transform_indices = @transform_2, window_bounds = array<i64: 32, 16>}, {pipeline_mode = #tpu.pipeline_mode<synchronous>, transform_indices = @transform_3, window_bounds = array<i64: 1, 16>}, {pipeline_mode = #tpu.pipeline_mode<synchronous>, transform_indices = @transform_4, window_bounds = array<i64: 1, 16>}]} {
    %c0 = arith.constant 0 : index
    %c0_0 = arith.constant 0 : index
    %0 = vector.load %arg1[%c0, %c0_0] : memref<32x144xf32, #tpu.memory_space<vmem>>, vector<32x144xf32>
    %c0_1 = arith.constant 0 : index
    %c0_2 = arith.constant 0 : index
    %1 = vector.load %arg2[%c0_1, %c0_2] : memref<144x16xf32, #tpu.memory_space<vmem>>, vector<144x16xf32>
    %cst = arith.constant dense<0.000000e+00> : vector<32x16xf32>
    %2 = tpu.matmul %0, %1, %cst {dimension_numbers = #tpu.dot_dimension_numbers<[1], [0], [0], [1], [0, 0, 1, 1], [], []>} : vector<32x144xf32>, vector<144x16xf32>, vector<32x16xf32> -> vector<32x16xf32>
    %c0_3 = arith.constant 0 : index
    %c0_4 = arith.constant 0 : index
    %3 = vector.load %arg3[%c0_3, %c0_4] : memref<32x16xf32, #tpu.memory_space<vmem>>, vector<32x16xf32>
    tpu.vector_store %arg3[%c0_3, %c0_4], %2 {strides = array<i32>} : memref<32x16xf32, #tpu.memory_space<vmem>>, vector<32x16xf32>,
    %cst_5 = arith.constant dense<0.000000e+00> : vector<16xf32>
    %4 = vector.multi_reduction <add>, %2, %cst_5 [0] : vector<32x16xf32> to vector<16xf32>
    %5 = vector.shape_cast %4 : vector<16xf32> to vector<1x16xf32>
    %c0_6 = arith.constant 0 : index
    %c0_7 = arith.constant 0 : index
    %6 = vector.load %arg4[%c0_6, %c0_7] : memref<1x16xf32, #tpu.memory_space<vmem>>, vector<1x16xf32>
    tpu.vector_store %arg4[%c0_6, %c0_7], %5 {strides = array<i32>} : memref<1x16xf32, #tpu.memory_space<vmem>>, vector<1x16xf32>,
    %7 = arith.mulf %2, %2 : vector<32x16xf32>
    %cst_8 = arith.constant dense<0.000000e+00> : vector<16xf32>
    %8 = vector.multi_reduction <add>, %7, %cst_8 [0] : vector<32x16xf32> to vector<16xf32>
    %9 = vector.shape_cast %8 : vector<16xf32> to vector<1x16xf32>
    %c0_9 = arith.constant 0 : index
    %c0_10 = arith.constant 0 : index
    %10 = vector.load %arg5[%c0_9, %c0_10] : memref<1x16xf32, #tpu.memory_space<vmem>>, vector<1x16xf32>
    tpu.vector_store %arg5[%c0_9, %c0_10], %9 {strides = array<i32>} : memref<1x16xf32, #tpu.memory_space<vmem>>, vector<1x16xf32>,
    return
  }
  func.func @transform_0(%arg0: i32) -> (i32, i32) {
    %c0_i32 = arith.constant 0 : i32
    %c0_i32_0 = arith.constant 0 : i32
    %c0_i32_1 = arith.constant 0 : i32
    return %c0_i32, %c0_i32_0 : i32, i32
  }
  func.func @transform_1(%arg0: i32) -> (i32, i32) {
    %c0_i32 = arith.constant 0 : i32
    %c0_i32_0 = arith.constant 0 : i32
    %c0_i32_1 = arith.constant 0 : i32
    return %c0_i32, %c0_i32_0 : i32, i32
  }
  func.func @transform_2(%arg0: i32) -> (i32, i32) {
    %c0_i32 = arith.constant 0 : i32
    %c0_i32_0 = arith.constant 0 : i32
    %c0_i32_1 = arith.constant 0 : i32
    return %c0_i32, %c0_i32_0 : i32, i32
  }
  func.func @transform_3(%arg0: i32) -> (i32, i32) {
    %c0_i32 = arith.constant 0 : i32
    %c0_i32_0 = arith.constant 0 : i32
    %c0_i32_1 = arith.constant 0 : i32
    return %c0_i32, %c0_i32_0 : i32, i32
  }
  func.func @transform_4(%arg0: i32) -> (i32, i32) {
    %c0_i32 = arith.constant 0 : i32
    %c0_i32_0 = arith.constant 0 : i32
    %c0_i32_1 = arith.constant 0 : i32
    return %c0_i32, %c0_i32_0 : i32, i32
  }
}

module attributes {stable_mosaic.version = 11 : i64} {
  func.func @kernel(%arg0: i32, %arg1: memref<32x16xf32, #tpu.memory_space<vmem>>, %arg2: memref<1x16xf32, #tpu.memory_space<vmem>>, %arg3: memref<1x16xf32, #tpu.memory_space<vmem>>, %arg4: memref<1x16xf32, #tpu.memory_space<vmem>>, %arg5: memref<1x16xf32, #tpu.memory_space<vmem>>, %arg6: memref<32x16xf32, #tpu.memory_space<vmem>>, %arg7: memref<32x16xf32, #tpu.memory_space<vmem>>) attributes {dimension_semantics = [#tpu.dimension_semantics<parallel>], iteration_bounds = array<i64: 1>, scalar_prefetch = 0 : i64, scratch_operands = 0 : i64, tpu.core_type = #tpu.core_type<tc>, window_params = [{pipeline_mode = #tpu.pipeline_mode<synchronous>, transform_indices = @transform_0, window_bounds = array<i64: 32, 16>}, {pipeline_mode = #tpu.pipeline_mode<synchronous>, transform_indices = @transform_1, window_bounds = array<i64: 1, 16>}, {pipeline_mode = #tpu.pipeline_mode<synchronous>, transform_indices = @transform_2, window_bounds = array<i64: 1, 16>}, {pipeline_mode = #tpu.pipeline_mode<synchronous>, transform_indices = @transform_3, window_bounds = array<i64: 1, 16>}, {pipeline_mode = #tpu.pipeline_mode<synchronous>, transform_indices = @transform_4, window_bounds = array<i64: 1, 16>}, {pipeline_mode = #tpu.pipeline_mode<synchronous>, transform_indices = @transform_5, window_bounds = array<i64: 32, 16>}, {pipeline_mode = #tpu.pipeline_mode<synchronous>, transform_indices = @transform_6, window_bounds = array<i64: 32, 16>}]} {
    %c0 = arith.constant 0 : index
    %c0_0 = arith.constant 0 : index
    %0 = vector.load %arg2[%c0, %c0_0] : memref<1x16xf32, #tpu.memory_space<vmem>>, vector<1x16xf32>
    %c0_1 = arith.constant 0 : index
    %c0_2 = arith.constant 0 : index
    %1 = vector.load %arg3[%c0_1, %c0_2] : memref<1x16xf32, #tpu.memory_space<vmem>>, vector<1x16xf32>
    %c0_3 = arith.constant 0 : index
    %c0_4 = arith.constant 0 : index
    %2 = vector.load %arg4[%c0_3, %c0_4] : memref<1x16xf32, #tpu.memory_space<vmem>>, vector<1x16xf32>
    %c0_5 = arith.constant 0 : index
    %c0_6 = arith.constant 0 : index
    %3 = vector.load %arg5[%c0_5, %c0_6] : memref<1x16xf32, #tpu.memory_space<vmem>>, vector<1x16xf32>
    %cst = arith.constant 3.125000e-02 : f32
    %4 = vector.broadcast %cst : f32 to vector<1x16xf32>
    %5 = arith.mulf %0, %4 : vector<1x16xf32>
    %cst_7 = arith.constant 3.125000e-02 : f32
    %6 = vector.broadcast %cst_7 : f32 to vector<1x16xf32>
    %7 = arith.mulf %1, %6 : vector<1x16xf32>
    %8 = arith.mulf %5, %5 : vector<1x16xf32>
    %9 = arith.subf %7, %8 : vector<1x16xf32>
    %cst_8 = arith.constant 0.000000e+00 : f32
    %10 = vector.broadcast %cst_8 : f32 to vector<1x16xf32>
    %11 = arith.maximumf %9, %10 : vector<1x16xf32>
    %cst_9 = arith.constant 9.99999974E-6 : f32
    %12 = vector.broadcast %cst_9 : f32 to vector<1x16xf32>
    %13 = arith.addf %11, %12 : vector<1x16xf32>
    %14 = math.rsqrt %13 : vector<1x16xf32>
    %15 = arith.mulf %2, %14 : vector<1x16xf32>
    %16 = arith.mulf %5, %15 : vector<1x16xf32>
    %17 = arith.subf %3, %16 : vector<1x16xf32>
    %c0_10 = arith.constant 0 : index
    %c0_11 = arith.constant 0 : index
    %18 = vector.load %arg1[%c0_10, %c0_11] : memref<32x16xf32, #tpu.memory_space<vmem>>, vector<32x16xf32>
    %19 = vector.broadcast %15 : vector<1x16xf32> to vector<32x16xf32>
    %20 = arith.mulf %18, %19 : vector<32x16xf32>
    %21 = vector.broadcast %17 : vector<1x16xf32> to vector<32x16xf32>
    %22 = arith.addf %20, %21 : vector<32x16xf32>
    %c0_12 = arith.constant 0 : index
    %c0_13 = arith.constant 0 : index
    %23 = vector.load %arg6[%c0_12, %c0_13] : memref<32x16xf32, #tpu.memory_space<vmem>>, vector<32x16xf32>
    %24 = arith.addf %22, %23 : vector<32x16xf32>
    %cst_14 = arith.constant 0.000000e+00 : f32
    %25 = vector.broadcast %cst_14 : f32 to vector<32x16xf32>
    %26 = arith.maximumf %24, %25 : vector<32x16xf32>
    %c0_15 = arith.constant 0 : index
    %c0_16 = arith.constant 0 : index
    %27 = vector.load %arg7[%c0_15, %c0_16] : memref<32x16xf32, #tpu.memory_space<vmem>>, vector<32x16xf32>
    tpu.vector_store %arg7[%c0_15, %c0_16], %26 {strides = array<i32>} : memref<32x16xf32, #tpu.memory_space<vmem>>, vector<32x16xf32>,
    return
  }
  func.func @transform_0(%arg0: i32) -> (i32, i32) {
    %c0_i32 = arith.constant 0 : i32
    %c0_i32_0 = arith.constant 0 : i32
    %c0_i32_1 = arith.constant 0 : i32
    return %c0_i32, %c0_i32_0 : i32, i32
  }
  func.func @transform_1(%arg0: i32) -> (i32, i32) {
    %c0_i32 = arith.constant 0 : i32
    %c0_i32_0 = arith.constant 0 : i32
    %c0_i32_1 = arith.constant 0 : i32
    return %c0_i32, %c0_i32_0 : i32, i32
  }
  func.func @transform_2(%arg0: i32) -> (i32, i32) {
    %c0_i32 = arith.constant 0 : i32
    %c0_i32_0 = arith.constant 0 : i32
    %c0_i32_1 = arith.constant 0 : i32
    return %c0_i32, %c0_i32_0 : i32, i32
  }
  func.func @transform_3(%arg0: i32) -> (i32, i32) {
    %c0_i32 = arith.constant 0 : i32
    %c0_i32_0 = arith.constant 0 : i32
    %c0_i32_1 = arith.constant 0 : i32
    return %c0_i32, %c0_i32_0 : i32, i32
  }
  func.func @transform_4(%arg0: i32) -> (i32, i32) {
    %c0_i32 = arith.constant 0 : i32
    %c0_i32_0 = arith.constant 0 : i32
    %c0_i32_1 = arith.constant 0 : i32
    return %c0_i32, %c0_i32_0 : i32, i32
  }
  func.func @transform_5(%arg0: i32) -> (i32, i32) {
    %c0_i32 = arith.constant 0 : i32
    %c0_i32_0 = arith.constant 0 : i32
    %c0_i32_1 = arith.constant 0 : i32
    return %c0_i32, %c0_i32_0 : i32, i32
  }
  func.func @transform_6(%arg0: i32) -> (i32, i32) {
    %c0_i32 = arith.constant 0 : i32
    %c0_i32_0 = arith.constant 0 : i32
    %c0_i32_1 = arith.constant 0 : i32
    return %c0_i32, %c0_i32_0 : i32, i32
  }
}

module attributes {stable_mosaic.version = 11 : i64} {
  func.func @_matmul_stats_kernel(%arg0: i32, %arg1: memref<8x16xf32, #tpu.memory_space<vmem>>, %arg2: memref<16x32xf32, #tpu.memory_space<vmem>>, %arg3: memref<8x32xf32, #tpu.memory_space<vmem>>, %arg4: memref<1x32xf32, #tpu.memory_space<vmem>>, %arg5: memref<1x32xf32, #tpu.memory_space<vmem>>) attributes {dimension_semantics = [#tpu.dimension_semantics<arbitrary>], iteration_bounds = array<i64: 1>, scalar_prefetch = 0 : i64, scratch_operands = 0 : i64, tpu.core_type = #tpu.core_type<tc>, window_params = [{pipeline_mode = #tpu.pipeline_mode<synchronous>, transform_indices = @transform_0, window_bounds = array<i64: 8, 16>}, {pipeline_mode = #tpu.pipeline_mode<synchronous>, transform_indices = @transform_1, window_bounds = array<i64: 16, 32>}, {pipeline_mode = #tpu.pipeline_mode<synchronous>, transform_indices = @transform_2, window_bounds = array<i64: 8, 32>}, {pipeline_mode = #tpu.pipeline_mode<synchronous>, transform_indices = @transform_3, window_bounds = array<i64: 1, 32>}, {pipeline_mode = #tpu.pipeline_mode<synchronous>, transform_indices = @transform_4, window_bounds = array<i64: 1, 32>}]} {
    %c0 = arith.constant 0 : index
    %c0_0 = arith.constant 0 : index
    %0 = vector.load %arg1[%c0, %c0_0] : memref<8x16xf32, #tpu.memory_space<vmem>>, vector<8x16xf32>
    %c0_1 = arith.constant 0 : index
    %c0_2 = arith.constant 0 : index
    %1 = vector.load %arg2[%c0_1, %c0_2] : memref<16x32xf32, #tpu.memory_space<vmem>>, vector<16x32xf32>
    %cst = arith.constant dense<0.000000e+00> : vector<8x32xf32>
    %2 = tpu.matmul %0, %1, %cst {dimension_numbers = #tpu.dot_dimension_numbers<[1], [0], [0], [1], [0, 0, 1, 1], [], []>} : vector<8x16xf32>, vector<16x32xf32>, vector<8x32xf32> -> vector<8x32xf32>
    %c0_3 = arith.constant 0 : index
    %c0_4 = arith.constant 0 : index
    %3 = vector.load %arg3[%c0_3, %c0_4] : memref<8x32xf32, #tpu.memory_space<vmem>>, vector<8x32xf32>
    tpu.vector_store %arg3[%c0_3, %c0_4], %2 {strides = array<i32>} : memref<8x32xf32, #tpu.memory_space<vmem>>, vector<8x32xf32>,
    %cst_5 = arith.constant dense<0.000000e+00> : vector<32xf32>
    %4 = vector.multi_reduction <add>, %2, %cst_5 [0] : vector<8x32xf32> to vector<32xf32>
    %5 = vector.shape_cast %4 : vector<32xf32> to vector<1x32xf32>
    %c0_6 = arith.constant 0 : index
    %c0_7 = arith.constant 0 : index
    %6 = vector.load %arg4[%c0_6, %c0_7] : memref<1x32xf32, #tpu.memory_space<vmem>>, vector<1x32xf32>
    tpu.vector_store %arg4[%c0_6, %c0_7], %5 {strides = array<i32>} : memref<1x32xf32, #tpu.memory_space<vmem>>, vector<1x32xf32>,
    %7 = arith.mulf %2, %2 : vector<8x32xf32>
    %cst_8 = arith.constant dense<0.000000e+00> : vector<32xf32>
    %8 = vector.multi_reduction <add>, %7, %cst_8 [0] : vector<8x32xf32> to vector<32xf32>
    %9 = vector.shape_cast %8 : vector<32xf32> to vector<1x32xf32>
    %c0_9 = arith.constant 0 : index
    %c0_10 = arith.constant 0 : index
    %10 = vector.load %arg5[%c0_9, %c0_10] : memref<1x32xf32, #tpu.memory_space<vmem>>, vector<1x32xf32>
    tpu.vector_store %arg5[%c0_9, %c0_10], %9 {strides = array<i32>} : memref<1x32xf32, #tpu.memory_space<vmem>>, vector<1x32xf32>,
    return
  }
  func.func @transform_0(%arg0: i32) -> (i32, i32) {
    %c0_i32 = arith.constant 0 : i32
    %c0_i32_0 = arith.constant 0 : i32
    %c0_i32_1 = arith.constant 0 : i32
    return %c0_i32, %c0_i32_0 : i32, i32
  }
  func.func @transform_1(%arg0: i32) -> (i32, i32) {
    %c0_i32 = arith.constant 0 : i32
    %c0_i32_0 = arith.constant 0 : i32
    %c0_i32_1 = arith.constant 0 : i32
    return %c0_i32, %c0_i32_0 : i32, i32
  }
  func.func @transform_2(%arg0: i32) -> (i32, i32) {
    %c0_i32 = arith.constant 0 : i32
    %c0_i32_0 = arith.constant 0 : i32
    %c0_i32_1 = arith.constant 0 : i32
    return %c0_i32, %c0_i32_0 : i32, i32
  }
  func.func @transform_3(%arg0: i32) -> (i32, i32) {
    %c0_i32 = arith.constant 0 : i32
    %c0_i32_0 = arith.constant 0 : i32
    %c0_i32_1 = arith.constant 0 : i32
    return %c0_i32, %c0_i32_0 : i32, i32
  }
  func.func @transform_4(%arg0: i32) -> (i32, i32) {
    %c0_i32 = arith.constant 0 : i32
    %c0_i32_0 = arith.constant 0 : i32
    %c0_i32_1 = arith.constant 0 : i32
    return %c0_i32, %c0_i32_0 : i32, i32
  }
}

module attributes {stable_mosaic.version = 11 : i64} {
  func.func @kernel(%arg0: i32, %arg1: memref<8x32xf32, #tpu.memory_space<vmem>>, %arg2: memref<1x32xf32, #tpu.memory_space<vmem>>, %arg3: memref<1x32xf32, #tpu.memory_space<vmem>>, %arg4: memref<1x32xf32, #tpu.memory_space<vmem>>, %arg5: memref<1x32xf32, #tpu.memory_space<vmem>>, %arg6: memref<8x32xf32, #tpu.memory_space<vmem>>) attributes {dimension_semantics = [#tpu.dimension_semantics<parallel>], iteration_bounds = array<i64: 1>, scalar_prefetch = 0 : i64, scratch_operands = 0 : i64, tpu.core_type = #tpu.core_type<tc>, window_params = [{pipeline_mode = #tpu.pipeline_mode<synchronous>, transform_indices = @transform_0, window_bounds = array<i64: 8, 32>}, {pipeline_mode = #tpu.pipeline_mode<synchronous>, transform_indices = @transform_1, window_bounds = array<i64: 1, 32>}, {pipeline_mode = #tpu.pipeline_mode<synchronous>, transform_indices = @transform_2, window_bounds = array<i64: 1, 32>}, {pipeline_mode = #tpu.pipeline_mode<synchronous>, transform_indices = @transform_3, window_bounds = array<i64: 1, 32>}, {pipeline_mode = #tpu.pipeline_mode<synchronous>, transform_indices = @transform_4, window_bounds = array<i64: 1, 32>}, {pipeline_mode = #tpu.pipeline_mode<synchronous>, transform_indices = @transform_5, window_bounds = array<i64: 8, 32>}]} {
    %c0 = arith.constant 0 : index
    %c0_0 = arith.constant 0 : index
    %0 = vector.load %arg2[%c0, %c0_0] : memref<1x32xf32, #tpu.memory_space<vmem>>, vector<1x32xf32>
    %c0_1 = arith.constant 0 : index
    %c0_2 = arith.constant 0 : index
    %1 = vector.load %arg3[%c0_1, %c0_2] : memref<1x32xf32, #tpu.memory_space<vmem>>, vector<1x32xf32>
    %c0_3 = arith.constant 0 : index
    %c0_4 = arith.constant 0 : index
    %2 = vector.load %arg4[%c0_3, %c0_4] : memref<1x32xf32, #tpu.memory_space<vmem>>, vector<1x32xf32>
    %c0_5 = arith.constant 0 : index
    %c0_6 = arith.constant 0 : index
    %3 = vector.load %arg5[%c0_5, %c0_6] : memref<1x32xf32, #tpu.memory_space<vmem>>, vector<1x32xf32>
    %cst = arith.constant 1.250000e-01 : f32
    %4 = vector.broadcast %cst : f32 to vector<1x32xf32>
    %5 = arith.mulf %0, %4 : vector<1x32xf32>
    %cst_7 = arith.constant 1.250000e-01 : f32
    %6 = vector.broadcast %cst_7 : f32 to vector<1x32xf32>
    %7 = arith.mulf %1, %6 : vector<1x32xf32>
    %8 = arith.mulf %5, %5 : vector<1x32xf32>
    %9 = arith.subf %7, %8 : vector<1x32xf32>
    %cst_8 = arith.constant 0.000000e+00 : f32
    %10 = vector.broadcast %cst_8 : f32 to vector<1x32xf32>
    %11 = arith.maximumf %9, %10 : vector<1x32xf32>
    %cst_9 = arith.constant 9.99999974E-6 : f32
    %12 = vector.broadcast %cst_9 : f32 to vector<1x32xf32>
    %13 = arith.addf %11, %12 : vector<1x32xf32>
    %14 = math.rsqrt %13 : vector<1x32xf32>
    %15 = arith.mulf %2, %14 : vector<1x32xf32>
    %16 = arith.mulf %5, %15 : vector<1x32xf32>
    %17 = arith.subf %3, %16 : vector<1x32xf32>
    %c0_10 = arith.constant 0 : index
    %c0_11 = arith.constant 0 : index
    %18 = vector.load %arg1[%c0_10, %c0_11] : memref<8x32xf32, #tpu.memory_space<vmem>>, vector<8x32xf32>
    %19 = vector.broadcast %15 : vector<1x32xf32> to vector<8x32xf32>
    %20 = arith.mulf %18, %19 : vector<8x32xf32>
    %21 = vector.broadcast %17 : vector<1x32xf32> to vector<8x32xf32>
    %22 = arith.addf %20, %21 : vector<8x32xf32>
    %c0_12 = arith.constant 0 : index
    %c0_13 = arith.constant 0 : index
    %23 = vector.load %arg6[%c0_12, %c0_13] : memref<8x32xf32, #tpu.memory_space<vmem>>, vector<8x32xf32>
    tpu.vector_store %arg6[%c0_12, %c0_13], %22 {strides = array<i32>} : memref<8x32xf32, #tpu.memory_space<vmem>>, vector<8x32xf32>,
    return
  }
  func.func @transform_0(%arg0: i32) -> (i32, i32) {
    %c0_i32 = arith.constant 0 : i32
    %c0_i32_0 = arith.constant 0 : i32
    %c0_i32_1 = arith.constant 0 : i32
    return %c0_i32, %c0_i32_0 : i32, i32
  }
  func.func @transform_1(%arg0: i32) -> (i32, i32) {
    %c0_i32 = arith.constant 0 : i32
    %c0_i32_0 = arith.constant 0 : i32
    %c0_i32_1 = arith.constant 0 : i32
    return %c0_i32, %c0_i32_0 : i32, i32
  }
  func.func @transform_2(%arg0: i32) -> (i32, i32) {
    %c0_i32 = arith.constant 0 : i32
    %c0_i32_0 = arith.constant 0 : i32
    %c0_i32_1 = arith.constant 0 : i32
    return %c0_i32, %c0_i32_0 : i32, i32
  }
  func.func @transform_3(%arg0: i32) -> (i32, i32) {
    %c0_i32 = arith.constant 0 : i32
    %c0_i32_0 = arith.constant 0 : i32
    %c0_i32_1 = arith.constant 0 : i32
    return %c0_i32, %c0_i32_0 : i32, i32
  }
  func.func @transform_4(%arg0: i32) -> (i32, i32) {
    %c0_i32 = arith.constant 0 : i32
    %c0_i32_0 = arith.constant 0 : i32
    %c0_i32_1 = arith.constant 0 : i32
    return %c0_i32, %c0_i32_0 : i32, i32
  }
  func.func @transform_5(%arg0: i32) -> (i32, i32) {
    %c0_i32 = arith.constant 0 : i32
    %c0_i32_0 = arith.constant 0 : i32
    %c0_i32_1 = arith.constant 0 : i32
    return %c0_i32, %c0_i32_0 : i32, i32
  }
}

module attributes {stable_mosaic.version = 11 : i64} {
  func.func @kernel(%arg0: i32, %arg1: memref<8x32xf32, #tpu.memory_space<vmem>>, %arg2: memref<1x32xf32, #tpu.memory_space<vmem>>, %arg3: memref<1x32xf32, #tpu.memory_space<vmem>>, %arg4: memref<1x32xf32, #tpu.memory_space<vmem>>, %arg5: memref<1x32xf32, #tpu.memory_space<vmem>>, %arg6: memref<8x32xf32, #tpu.memory_space<vmem>>) attributes {dimension_semantics = [#tpu.dimension_semantics<parallel>], iteration_bounds = array<i64: 1>, scalar_prefetch = 0 : i64, scratch_operands = 0 : i64, tpu.core_type = #tpu.core_type<tc>, window_params = [{pipeline_mode = #tpu.pipeline_mode<synchronous>, transform_indices = @transform_0, window_bounds = array<i64: 8, 32>}, {pipeline_mode = #tpu.pipeline_mode<synchronous>, transform_indices = @transform_1, window_bounds = array<i64: 1, 32>}, {pipeline_mode = #tpu.pipeline_mode<synchronous>, transform_indices = @transform_2, window_bounds = array<i64: 1, 32>}, {pipeline_mode = #tpu.pipeline_mode<synchronous>, transform_indices = @transform_3, window_bounds = array<i64: 1, 32>}, {pipeline_mode = #tpu.pipeline_mode<synchronous>, transform_indices = @transform_4, window_bounds = array<i64: 1, 32>}, {pipeline_mode = #tpu.pipeline_mode<synchronous>, transform_indices = @transform_5, window_bounds = array<i64: 8, 32>}]} {
    %c0 = arith.constant 0 : index
    %c0_0 = arith.constant 0 : index
    %0 = vector.load %arg2[%c0, %c0_0] : memref<1x32xf32, #tpu.memory_space<vmem>>, vector<1x32xf32>
    %c0_1 = arith.constant 0 : index
    %c0_2 = arith.constant 0 : index
    %1 = vector.load %arg3[%c0_1, %c0_2] : memref<1x32xf32, #tpu.memory_space<vmem>>, vector<1x32xf32>
    %c0_3 = arith.constant 0 : index
    %c0_4 = arith.constant 0 : index
    %2 = vector.load %arg4[%c0_3, %c0_4] : memref<1x32xf32, #tpu.memory_space<vmem>>, vector<1x32xf32>
    %c0_5 = arith.constant 0 : index
    %c0_6 = arith.constant 0 : index
    %3 = vector.load %arg5[%c0_5, %c0_6] : memref<1x32xf32, #tpu.memory_space<vmem>>, vector<1x32xf32>
    %cst = arith.constant 1.250000e-01 : f32
    %4 = vector.broadcast %cst : f32 to vector<1x32xf32>
    %5 = arith.mulf %0, %4 : vector<1x32xf32>
    %cst_7 = arith.constant 1.250000e-01 : f32
    %6 = vector.broadcast %cst_7 : f32 to vector<1x32xf32>
    %7 = arith.mulf %1, %6 : vector<1x32xf32>
    %8 = arith.mulf %5, %5 : vector<1x32xf32>
    %9 = arith.subf %7, %8 : vector<1x32xf32>
    %cst_8 = arith.constant 0.000000e+00 : f32
    %10 = vector.broadcast %cst_8 : f32 to vector<1x32xf32>
    %11 = arith.maximumf %9, %10 : vector<1x32xf32>
    %cst_9 = arith.constant 9.99999974E-6 : f32
    %12 = vector.broadcast %cst_9 : f32 to vector<1x32xf32>
    %13 = arith.addf %11, %12 : vector<1x32xf32>
    %14 = math.rsqrt %13 : vector<1x32xf32>
    %15 = arith.mulf %2, %14 : vector<1x32xf32>
    %16 = arith.mulf %5, %15 : vector<1x32xf32>
    %17 = arith.subf %3, %16 : vector<1x32xf32>
    %c0_10 = arith.constant 0 : index
    %c0_11 = arith.constant 0 : index
    %18 = vector.load %arg1[%c0_10, %c0_11] : memref<8x32xf32, #tpu.memory_space<vmem>>, vector<8x32xf32>
    %19 = vector.broadcast %15 : vector<1x32xf32> to vector<8x32xf32>
    %20 = arith.mulf %18, %19 : vector<8x32xf32>
    %21 = vector.broadcast %17 : vector<1x32xf32> to vector<8x32xf32>
    %22 = arith.addf %20, %21 : vector<8x32xf32>
    %cst_12 = arith.constant 0.000000e+00 : f32
    %23 = vector.broadcast %cst_12 : f32 to vector<8x32xf32>
    %24 = arith.maximumf %22, %23 : vector<8x32xf32>
    %c0_13 = arith.constant 0 : index
    %c0_14 = arith.constant 0 : index
    %25 = vector.load %arg6[%c0_13, %c0_14] : memref<8x32xf32, #tpu.memory_space<vmem>>, vector<8x32xf32>
    tpu.vector_store %arg6[%c0_13, %c0_14], %24 {strides = array<i32>} : memref<8x32xf32, #tpu.memory_space<vmem>>, vector<8x32xf32>,
    return
  }
  func.func @transform_0(%arg0: i32) -> (i32, i32) {
    %c0_i32 = arith.constant 0 : i32
    %c0_i32_0 = arith.constant 0 : i32
    %c0_i32_1 = arith.constant 0 : i32
    return %c0_i32, %c0_i32_0 : i32, i32
  }
  func.func @transform_1(%arg0: i32) -> (i32, i32) {
    %c0_i32 = arith.constant 0 : i32
    %c0_i32_0 = arith.constant 0 : i32
    %c0_i32_1 = arith.constant 0 : i32
    return %c0_i32, %c0_i32_0 : i32, i32
  }
  func.func @transform_2(%arg0: i32) -> (i32, i32) {
    %c0_i32 = arith.constant 0 : i32
    %c0_i32_0 = arith.constant 0 : i32
    %c0_i32_1 = arith.constant 0 : i32
    return %c0_i32, %c0_i32_0 : i32, i32
  }
  func.func @transform_3(%arg0: i32) -> (i32, i32) {
    %c0_i32 = arith.constant 0 : i32
    %c0_i32_0 = arith.constant 0 : i32
    %c0_i32_1 = arith.constant 0 : i32
    return %c0_i32, %c0_i32_0 : i32, i32
  }
  func.func @transform_4(%arg0: i32) -> (i32, i32) {
    %c0_i32 = arith.constant 0 : i32
    %c0_i32_0 = arith.constant 0 : i32
    %c0_i32_1 = arith.constant 0 : i32
    return %c0_i32, %c0_i32_0 : i32, i32
  }
  func.func @transform_5(%arg0: i32) -> (i32, i32) {
    %c0_i32 = arith.constant 0 : i32
    %c0_i32_0 = arith.constant 0 : i32
    %c0_i32_1 = arith.constant 0 : i32
    return %c0_i32, %c0_i32_0 : i32, i32
  }
}

module attributes {stable_mosaic.version = 11 : i64} {
  func.func @_matmul_stats_kernel(%arg0: i32, %arg1: memref<8x144xf32, #tpu.memory_space<vmem>>, %arg2: memref<144x32xf32, #tpu.memory_space<vmem>>, %arg3: memref<8x32xf32, #tpu.memory_space<vmem>>, %arg4: memref<1x32xf32, #tpu.memory_space<vmem>>, %arg5: memref<1x32xf32, #tpu.memory_space<vmem>>) attributes {dimension_semantics = [#tpu.dimension_semantics<arbitrary>], iteration_bounds = array<i64: 1>, scalar_prefetch = 0 : i64, scratch_operands = 0 : i64, tpu.core_type = #tpu.core_type<tc>, window_params = [{pipeline_mode = #tpu.pipeline_mode<synchronous>, transform_indices = @transform_0, window_bounds = array<i64: 8, 144>}, {pipeline_mode = #tpu.pipeline_mode<synchronous>, transform_indices = @transform_1, window_bounds = array<i64: 144, 32>}, {pipeline_mode = #tpu.pipeline_mode<synchronous>, transform_indices = @transform_2, window_bounds = array<i64: 8, 32>}, {pipeline_mode = #tpu.pipeline_mode<synchronous>, transform_indices = @transform_3, window_bounds = array<i64: 1, 32>}, {pipeline_mode = #tpu.pipeline_mode<synchronous>, transform_indices = @transform_4, window_bounds = array<i64: 1, 32>}]} {
    %c0 = arith.constant 0 : index
    %c0_0 = arith.constant 0 : index
    %0 = vector.load %arg1[%c0, %c0_0] : memref<8x144xf32, #tpu.memory_space<vmem>>, vector<8x144xf32>
    %c0_1 = arith.constant 0 : index
    %c0_2 = arith.constant 0 : index
    %1 = vector.load %arg2[%c0_1, %c0_2] : memref<144x32xf32, #tpu.memory_space<vmem>>, vector<144x32xf32>
    %cst = arith.constant dense<0.000000e+00> : vector<8x32xf32>
    %2 = tpu.matmul %0, %1, %cst {dimension_numbers = #tpu.dot_dimension_numbers<[1], [0], [0], [1], [0, 0, 1, 1], [], []>} : vector<8x144xf32>, vector<144x32xf32>, vector<8x32xf32> -> vector<8x32xf32>
    %c0_3 = arith.constant 0 : index
    %c0_4 = arith.constant 0 : index
    %3 = vector.load %arg3[%c0_3, %c0_4] : memref<8x32xf32, #tpu.memory_space<vmem>>, vector<8x32xf32>
    tpu.vector_store %arg3[%c0_3, %c0_4], %2 {strides = array<i32>} : memref<8x32xf32, #tpu.memory_space<vmem>>, vector<8x32xf32>,
    %cst_5 = arith.constant dense<0.000000e+00> : vector<32xf32>
    %4 = vector.multi_reduction <add>, %2, %cst_5 [0] : vector<8x32xf32> to vector<32xf32>
    %5 = vector.shape_cast %4 : vector<32xf32> to vector<1x32xf32>
    %c0_6 = arith.constant 0 : index
    %c0_7 = arith.constant 0 : index
    %6 = vector.load %arg4[%c0_6, %c0_7] : memref<1x32xf32, #tpu.memory_space<vmem>>, vector<1x32xf32>
    tpu.vector_store %arg4[%c0_6, %c0_7], %5 {strides = array<i32>} : memref<1x32xf32, #tpu.memory_space<vmem>>, vector<1x32xf32>,
    %7 = arith.mulf %2, %2 : vector<8x32xf32>
    %cst_8 = arith.constant dense<0.000000e+00> : vector<32xf32>
    %8 = vector.multi_reduction <add>, %7, %cst_8 [0] : vector<8x32xf32> to vector<32xf32>
    %9 = vector.shape_cast %8 : vector<32xf32> to vector<1x32xf32>
    %c0_9 = arith.constant 0 : index
    %c0_10 = arith.constant 0 : index
    %10 = vector.load %arg5[%c0_9, %c0_10] : memref<1x32xf32, #tpu.memory_space<vmem>>, vector<1x32xf32>
    tpu.vector_store %arg5[%c0_9, %c0_10], %9 {strides = array<i32>} : memref<1x32xf32, #tpu.memory_space<vmem>>, vector<1x32xf32>,
    return
  }
  func.func @transform_0(%arg0: i32) -> (i32, i32) {
    %c0_i32 = arith.constant 0 : i32
    %c0_i32_0 = arith.constant 0 : i32
    %c0_i32_1 = arith.constant 0 : i32
    return %c0_i32, %c0_i32_0 : i32, i32
  }
  func.func @transform_1(%arg0: i32) -> (i32, i32) {
    %c0_i32 = arith.constant 0 : i32
    %c0_i32_0 = arith.constant 0 : i32
    %c0_i32_1 = arith.constant 0 : i32
    return %c0_i32, %c0_i32_0 : i32, i32
  }
  func.func @transform_2(%arg0: i32) -> (i32, i32) {
    %c0_i32 = arith.constant 0 : i32
    %c0_i32_0 = arith.constant 0 : i32
    %c0_i32_1 = arith.constant 0 : i32
    return %c0_i32, %c0_i32_0 : i32, i32
  }
  func.func @transform_3(%arg0: i32) -> (i32, i32) {
    %c0_i32 = arith.constant 0 : i32
    %c0_i32_0 = arith.constant 0 : i32
    %c0_i32_1 = arith.constant 0 : i32
    return %c0_i32, %c0_i32_0 : i32, i32
  }
  func.func @transform_4(%arg0: i32) -> (i32, i32) {
    %c0_i32 = arith.constant 0 : i32
    %c0_i32_0 = arith.constant 0 : i32
    %c0_i32_1 = arith.constant 0 : i32
    return %c0_i32, %c0_i32_0 : i32, i32
  }
}

module attributes {stable_mosaic.version = 11 : i64} {
  func.func @_matmul_stats_kernel(%arg0: i32, %arg1: memref<8x288xf32, #tpu.memory_space<vmem>>, %arg2: memref<288x32xf32, #tpu.memory_space<vmem>>, %arg3: memref<8x32xf32, #tpu.memory_space<vmem>>, %arg4: memref<1x32xf32, #tpu.memory_space<vmem>>, %arg5: memref<1x32xf32, #tpu.memory_space<vmem>>) attributes {dimension_semantics = [#tpu.dimension_semantics<arbitrary>], iteration_bounds = array<i64: 1>, scalar_prefetch = 0 : i64, scratch_operands = 0 : i64, tpu.core_type = #tpu.core_type<tc>, window_params = [{pipeline_mode = #tpu.pipeline_mode<synchronous>, transform_indices = @transform_0, window_bounds = array<i64: 8, 288>}, {pipeline_mode = #tpu.pipeline_mode<synchronous>, transform_indices = @transform_1, window_bounds = array<i64: 288, 32>}, {pipeline_mode = #tpu.pipeline_mode<synchronous>, transform_indices = @transform_2, window_bounds = array<i64: 8, 32>}, {pipeline_mode = #tpu.pipeline_mode<synchronous>, transform_indices = @transform_3, window_bounds = array<i64: 1, 32>}, {pipeline_mode = #tpu.pipeline_mode<synchronous>, transform_indices = @transform_4, window_bounds = array<i64: 1, 32>}]} {
    %c0 = arith.constant 0 : index
    %c0_0 = arith.constant 0 : index
    %0 = vector.load %arg1[%c0, %c0_0] : memref<8x288xf32, #tpu.memory_space<vmem>>, vector<8x288xf32>
    %c0_1 = arith.constant 0 : index
    %c0_2 = arith.constant 0 : index
    %1 = vector.load %arg2[%c0_1, %c0_2] : memref<288x32xf32, #tpu.memory_space<vmem>>, vector<288x32xf32>
    %cst = arith.constant dense<0.000000e+00> : vector<8x32xf32>
    %2 = tpu.matmul %0, %1, %cst {dimension_numbers = #tpu.dot_dimension_numbers<[1], [0], [0], [1], [0, 0, 1, 1], [], []>} : vector<8x288xf32>, vector<288x32xf32>, vector<8x32xf32> -> vector<8x32xf32>
    %c0_3 = arith.constant 0 : index
    %c0_4 = arith.constant 0 : index
    %3 = vector.load %arg3[%c0_3, %c0_4] : memref<8x32xf32, #tpu.memory_space<vmem>>, vector<8x32xf32>
    tpu.vector_store %arg3[%c0_3, %c0_4], %2 {strides = array<i32>} : memref<8x32xf32, #tpu.memory_space<vmem>>, vector<8x32xf32>,
    %cst_5 = arith.constant dense<0.000000e+00> : vector<32xf32>
    %4 = vector.multi_reduction <add>, %2, %cst_5 [0] : vector<8x32xf32> to vector<32xf32>
    %5 = vector.shape_cast %4 : vector<32xf32> to vector<1x32xf32>
    %c0_6 = arith.constant 0 : index
    %c0_7 = arith.constant 0 : index
    %6 = vector.load %arg4[%c0_6, %c0_7] : memref<1x32xf32, #tpu.memory_space<vmem>>, vector<1x32xf32>
    tpu.vector_store %arg4[%c0_6, %c0_7], %5 {strides = array<i32>} : memref<1x32xf32, #tpu.memory_space<vmem>>, vector<1x32xf32>,
    %7 = arith.mulf %2, %2 : vector<8x32xf32>
    %cst_8 = arith.constant dense<0.000000e+00> : vector<32xf32>
    %8 = vector.multi_reduction <add>, %7, %cst_8 [0] : vector<8x32xf32> to vector<32xf32>
    %9 = vector.shape_cast %8 : vector<32xf32> to vector<1x32xf32>
    %c0_9 = arith.constant 0 : index
    %c0_10 = arith.constant 0 : index
    %10 = vector.load %arg5[%c0_9, %c0_10] : memref<1x32xf32, #tpu.memory_space<vmem>>, vector<1x32xf32>
    tpu.vector_store %arg5[%c0_9, %c0_10], %9 {strides = array<i32>} : memref<1x32xf32, #tpu.memory_space<vmem>>, vector<1x32xf32>,
    return
  }
  func.func @transform_0(%arg0: i32) -> (i32, i32) {
    %c0_i32 = arith.constant 0 : i32
    %c0_i32_0 = arith.constant 0 : i32
    %c0_i32_1 = arith.constant 0 : i32
    return %c0_i32, %c0_i32_0 : i32, i32
  }
  func.func @transform_1(%arg0: i32) -> (i32, i32) {
    %c0_i32 = arith.constant 0 : i32
    %c0_i32_0 = arith.constant 0 : i32
    %c0_i32_1 = arith.constant 0 : i32
    return %c0_i32, %c0_i32_0 : i32, i32
  }
  func.func @transform_2(%arg0: i32) -> (i32, i32) {
    %c0_i32 = arith.constant 0 : i32
    %c0_i32_0 = arith.constant 0 : i32
    %c0_i32_1 = arith.constant 0 : i32
    return %c0_i32, %c0_i32_0 : i32, i32
  }
  func.func @transform_3(%arg0: i32) -> (i32, i32) {
    %c0_i32 = arith.constant 0 : i32
    %c0_i32_0 = arith.constant 0 : i32
    %c0_i32_1 = arith.constant 0 : i32
    return %c0_i32, %c0_i32_0 : i32, i32
  }
  func.func @transform_4(%arg0: i32) -> (i32, i32) {
    %c0_i32 = arith.constant 0 : i32
    %c0_i32_0 = arith.constant 0 : i32
    %c0_i32_1 = arith.constant 0 : i32
    return %c0_i32, %c0_i32_0 : i32, i32
  }
}

module attributes {stable_mosaic.version = 11 : i64} {
  func.func @kernel(%arg0: i32, %arg1: memref<8x32xf32, #tpu.memory_space<vmem>>, %arg2: memref<1x32xf32, #tpu.memory_space<vmem>>, %arg3: memref<1x32xf32, #tpu.memory_space<vmem>>, %arg4: memref<1x32xf32, #tpu.memory_space<vmem>>, %arg5: memref<1x32xf32, #tpu.memory_space<vmem>>, %arg6: memref<8x32xf32, #tpu.memory_space<vmem>>, %arg7: memref<8x32xf32, #tpu.memory_space<vmem>>) attributes {dimension_semantics = [#tpu.dimension_semantics<parallel>], iteration_bounds = array<i64: 1>, scalar_prefetch = 0 : i64, scratch_operands = 0 : i64, tpu.core_type = #tpu.core_type<tc>, window_params = [{pipeline_mode = #tpu.pipeline_mode<synchronous>, transform_indices = @transform_0, window_bounds = array<i64: 8, 32>}, {pipeline_mode = #tpu.pipeline_mode<synchronous>, transform_indices = @transform_1, window_bounds = array<i64: 1, 32>}, {pipeline_mode = #tpu.pipeline_mode<synchronous>, transform_indices = @transform_2, window_bounds = array<i64: 1, 32>}, {pipeline_mode = #tpu.pipeline_mode<synchronous>, transform_indices = @transform_3, window_bounds = array<i64: 1, 32>}, {pipeline_mode = #tpu.pipeline_mode<synchronous>, transform_indices = @transform_4, window_bounds = array<i64: 1, 32>}, {pipeline_mode = #tpu.pipeline_mode<synchronous>, transform_indices = @transform_5, window_bounds = array<i64: 8, 32>}, {pipeline_mode = #tpu.pipeline_mode<synchronous>, transform_indices = @transform_6, window_bounds = array<i64: 8, 32>}]} {
    %c0 = arith.constant 0 : index
    %c0_0 = arith.constant 0 : index
    %0 = vector.load %arg2[%c0, %c0_0] : memref<1x32xf32, #tpu.memory_space<vmem>>, vector<1x32xf32>
    %c0_1 = arith.constant 0 : index
    %c0_2 = arith.constant 0 : index
    %1 = vector.load %arg3[%c0_1, %c0_2] : memref<1x32xf32, #tpu.memory_space<vmem>>, vector<1x32xf32>
    %c0_3 = arith.constant 0 : index
    %c0_4 = arith.constant 0 : index
    %2 = vector.load %arg4[%c0_3, %c0_4] : memref<1x32xf32, #tpu.memory_space<vmem>>, vector<1x32xf32>
    %c0_5 = arith.constant 0 : index
    %c0_6 = arith.constant 0 : index
    %3 = vector.load %arg5[%c0_5, %c0_6] : memref<1x32xf32, #tpu.memory_space<vmem>>, vector<1x32xf32>
    %cst = arith.constant 1.250000e-01 : f32
    %4 = vector.broadcast %cst : f32 to vector<1x32xf32>
    %5 = arith.mulf %0, %4 : vector<1x32xf32>
    %cst_7 = arith.constant 1.250000e-01 : f32
    %6 = vector.broadcast %cst_7 : f32 to vector<1x32xf32>
    %7 = arith.mulf %1, %6 : vector<1x32xf32>
    %8 = arith.mulf %5, %5 : vector<1x32xf32>
    %9 = arith.subf %7, %8 : vector<1x32xf32>
    %cst_8 = arith.constant 0.000000e+00 : f32
    %10 = vector.broadcast %cst_8 : f32 to vector<1x32xf32>
    %11 = arith.maximumf %9, %10 : vector<1x32xf32>
    %cst_9 = arith.constant 9.99999974E-6 : f32
    %12 = vector.broadcast %cst_9 : f32 to vector<1x32xf32>
    %13 = arith.addf %11, %12 : vector<1x32xf32>
    %14 = math.rsqrt %13 : vector<1x32xf32>
    %15 = arith.mulf %2, %14 : vector<1x32xf32>
    %16 = arith.mulf %5, %15 : vector<1x32xf32>
    %17 = arith.subf %3, %16 : vector<1x32xf32>
    %c0_10 = arith.constant 0 : index
    %c0_11 = arith.constant 0 : index
    %18 = vector.load %arg1[%c0_10, %c0_11] : memref<8x32xf32, #tpu.memory_space<vmem>>, vector<8x32xf32>
    %19 = vector.broadcast %15 : vector<1x32xf32> to vector<8x32xf32>
    %20 = arith.mulf %18, %19 : vector<8x32xf32>
    %21 = vector.broadcast %17 : vector<1x32xf32> to vector<8x32xf32>
    %22 = arith.addf %20, %21 : vector<8x32xf32>
    %c0_12 = arith.constant 0 : index
    %c0_13 = arith.constant 0 : index
    %23 = vector.load %arg6[%c0_12, %c0_13] : memref<8x32xf32, #tpu.memory_space<vmem>>, vector<8x32xf32>
    %24 = arith.addf %22, %23 : vector<8x32xf32>
    %cst_14 = arith.constant 0.000000e+00 : f32
    %25 = vector.broadcast %cst_14 : f32 to vector<8x32xf32>
    %26 = arith.maximumf %24, %25 : vector<8x32xf32>
    %c0_15 = arith.constant 0 : index
    %c0_16 = arith.constant 0 : index
    %27 = vector.load %arg7[%c0_15, %c0_16] : memref<8x32xf32, #tpu.memory_space<vmem>>, vector<8x32xf32>
    tpu.vector_store %arg7[%c0_15, %c0_16], %26 {strides = array<i32>} : memref<8x32xf32, #tpu.memory_space<vmem>>, vector<8x32xf32>,
    return
  }
  func.func @transform_0(%arg0: i32) -> (i32, i32) {
    %c0_i32 = arith.constant 0 : i32
    %c0_i32_0 = arith.constant 0 : i32
    %c0_i32_1 = arith.constant 0 : i32
    return %c0_i32, %c0_i32_0 : i32, i32
  }
  func.func @transform_1(%arg0: i32) -> (i32, i32) {
    %c0_i32 = arith.constant 0 : i32
    %c0_i32_0 = arith.constant 0 : i32
    %c0_i32_1 = arith.constant 0 : i32
    return %c0_i32, %c0_i32_0 : i32, i32
  }
  func.func @transform_2(%arg0: i32) -> (i32, i32) {
    %c0_i32 = arith.constant 0 : i32
    %c0_i32_0 = arith.constant 0 : i32
    %c0_i32_1 = arith.constant 0 : i32
    return %c0_i32, %c0_i32_0 : i32, i32
  }
  func.func @transform_3(%arg0: i32) -> (i32, i32) {
    %c0_i32 = arith.constant 0 : i32
    %c0_i32_0 = arith.constant 0 : i32
    %c0_i32_1 = arith.constant 0 : i32
    return %c0_i32, %c0_i32_0 : i32, i32
  }
  func.func @transform_4(%arg0: i32) -> (i32, i32) {
    %c0_i32 = arith.constant 0 : i32
    %c0_i32_0 = arith.constant 0 : i32
    %c0_i32_1 = arith.constant 0 : i32
    return %c0_i32, %c0_i32_0 : i32, i32
  }
  func.func @transform_5(%arg0: i32) -> (i32, i32) {
    %c0_i32 = arith.constant 0 : i32
    %c0_i32_0 = arith.constant 0 : i32
    %c0_i32_1 = arith.constant 0 : i32
    return %c0_i32, %c0_i32_0 : i32, i32
  }
  func.func @transform_6(%arg0: i32) -> (i32, i32) {
    %c0_i32 = arith.constant 0 : i32
    %c0_i32_0 = arith.constant 0 : i32
    %c0_i32_1 = arith.constant 0 : i32
    return %c0_i32, %c0_i32_0 : i32, i32
  }
}

module attributes {stable_mosaic.version = 11 : i64} {
  func.func @_matmul_stats_kernel(%arg0: i32, %arg1: memref<2x32xf32, #tpu.memory_space<vmem>>, %arg2: memref<32x64xf32, #tpu.memory_space<vmem>>, %arg3: memref<2x64xf32, #tpu.memory_space<vmem>>, %arg4: memref<1x64xf32, #tpu.memory_space<vmem>>, %arg5: memref<1x64xf32, #tpu.memory_space<vmem>>) attributes {dimension_semantics = [#tpu.dimension_semantics<arbitrary>], iteration_bounds = array<i64: 1>, scalar_prefetch = 0 : i64, scratch_operands = 0 : i64, tpu.core_type = #tpu.core_type<tc>, window_params = [{pipeline_mode = #tpu.pipeline_mode<synchronous>, transform_indices = @transform_0, window_bounds = array<i64: 2, 32>}, {pipeline_mode = #tpu.pipeline_mode<synchronous>, transform_indices = @transform_1, window_bounds = array<i64: 32, 64>}, {pipeline_mode = #tpu.pipeline_mode<synchronous>, transform_indices = @transform_2, window_bounds = array<i64: 2, 64>}, {pipeline_mode = #tpu.pipeline_mode<synchronous>, transform_indices = @transform_3, window_bounds = array<i64: 1, 64>}, {pipeline_mode = #tpu.pipeline_mode<synchronous>, transform_indices = @transform_4, window_bounds = array<i64: 1, 64>}]} {
    %c0 = arith.constant 0 : index
    %c0_0 = arith.constant 0 : index
    %0 = vector.load %arg1[%c0, %c0_0] : memref<2x32xf32, #tpu.memory_space<vmem>>, vector<2x32xf32>
    %c0_1 = arith.constant 0 : index
    %c0_2 = arith.constant 0 : index
    %1 = vector.load %arg2[%c0_1, %c0_2] : memref<32x64xf32, #tpu.memory_space<vmem>>, vector<32x64xf32>
    %cst = arith.constant dense<0.000000e+00> : vector<2x64xf32>
    %2 = tpu.matmul %0, %1, %cst {dimension_numbers = #tpu.dot_dimension_numbers<[1], [0], [0], [1], [0, 0, 1, 1], [], []>} : vector<2x32xf32>, vector<32x64xf32>, vector<2x64xf32> -> vector<2x64xf32>
    %c0_3 = arith.constant 0 : index
    %c0_4 = arith.constant 0 : index
    %3 = vector.load %arg3[%c0_3, %c0_4] : memref<2x64xf32, #tpu.memory_space<vmem>>, vector<2x64xf32>
    tpu.vector_store %arg3[%c0_3, %c0_4], %2 {strides = array<i32>} : memref<2x64xf32, #tpu.memory_space<vmem>>, vector<2x64xf32>,
    %cst_5 = arith.constant dense<0.000000e+00> : vector<64xf32>
    %4 = vector.multi_reduction <add>, %2, %cst_5 [0] : vector<2x64xf32> to vector<64xf32>
    %5 = vector.shape_cast %4 : vector<64xf32> to vector<1x64xf32>
    %c0_6 = arith.constant 0 : index
    %c0_7 = arith.constant 0 : index
    %6 = vector.load %arg4[%c0_6, %c0_7] : memref<1x64xf32, #tpu.memory_space<vmem>>, vector<1x64xf32>
    tpu.vector_store %arg4[%c0_6, %c0_7], %5 {strides = array<i32>} : memref<1x64xf32, #tpu.memory_space<vmem>>, vector<1x64xf32>,
    %7 = arith.mulf %2, %2 : vector<2x64xf32>
    %cst_8 = arith.constant dense<0.000000e+00> : vector<64xf32>
    %8 = vector.multi_reduction <add>, %7, %cst_8 [0] : vector<2x64xf32> to vector<64xf32>
    %9 = vector.shape_cast %8 : vector<64xf32> to vector<1x64xf32>
    %c0_9 = arith.constant 0 : index
    %c0_10 = arith.constant 0 : index
    %10 = vector.load %arg5[%c0_9, %c0_10] : memref<1x64xf32, #tpu.memory_space<vmem>>, vector<1x64xf32>
    tpu.vector_store %arg5[%c0_9, %c0_10], %9 {strides = array<i32>} : memref<1x64xf32, #tpu.memory_space<vmem>>, vector<1x64xf32>,
    return
  }
  func.func @transform_0(%arg0: i32) -> (i32, i32) {
    %c0_i32 = arith.constant 0 : i32
    %c0_i32_0 = arith.constant 0 : i32
    %c0_i32_1 = arith.constant 0 : i32
    return %c0_i32, %c0_i32_0 : i32, i32
  }
  func.func @transform_1(%arg0: i32) -> (i32, i32) {
    %c0_i32 = arith.constant 0 : i32
    %c0_i32_0 = arith.constant 0 : i32
    %c0_i32_1 = arith.constant 0 : i32
    return %c0_i32, %c0_i32_0 : i32, i32
  }
  func.func @transform_2(%arg0: i32) -> (i32, i32) {
    %c0_i32 = arith.constant 0 : i32
    %c0_i32_0 = arith.constant 0 : i32
    %c0_i32_1 = arith.constant 0 : i32
    return %c0_i32, %c0_i32_0 : i32, i32
  }
  func.func @transform_3(%arg0: i32) -> (i32, i32) {
    %c0_i32 = arith.constant 0 : i32
    %c0_i32_0 = arith.constant 0 : i32
    %c0_i32_1 = arith.constant 0 : i32
    return %c0_i32, %c0_i32_0 : i32, i32
  }
  func.func @transform_4(%arg0: i32) -> (i32, i32) {
    %c0_i32 = arith.constant 0 : i32
    %c0_i32_0 = arith.constant 0 : i32
    %c0_i32_1 = arith.constant 0 : i32
    return %c0_i32, %c0_i32_0 : i32, i32
  }
}

module attributes {stable_mosaic.version = 11 : i64} {
  func.func @kernel(%arg0: i32, %arg1: memref<2x64xf32, #tpu.memory_space<vmem>>, %arg2: memref<1x64xf32, #tpu.memory_space<vmem>>, %arg3: memref<1x64xf32, #tpu.memory_space<vmem>>, %arg4: memref<1x64xf32, #tpu.memory_space<vmem>>, %arg5: memref<1x64xf32, #tpu.memory_space<vmem>>, %arg6: memref<2x64xf32, #tpu.memory_space<vmem>>) attributes {dimension_semantics = [#tpu.dimension_semantics<parallel>], iteration_bounds = array<i64: 1>, scalar_prefetch = 0 : i64, scratch_operands = 0 : i64, tpu.core_type = #tpu.core_type<tc>, window_params = [{pipeline_mode = #tpu.pipeline_mode<synchronous>, transform_indices = @transform_0, window_bounds = array<i64: 2, 64>}, {pipeline_mode = #tpu.pipeline_mode<synchronous>, transform_indices = @transform_1, window_bounds = array<i64: 1, 64>}, {pipeline_mode = #tpu.pipeline_mode<synchronous>, transform_indices = @transform_2, window_bounds = array<i64: 1, 64>}, {pipeline_mode = #tpu.pipeline_mode<synchronous>, transform_indices = @transform_3, window_bounds = array<i64: 1, 64>}, {pipeline_mode = #tpu.pipeline_mode<synchronous>, transform_indices = @transform_4, window_bounds = array<i64: 1, 64>}, {pipeline_mode = #tpu.pipeline_mode<synchronous>, transform_indices = @transform_5, window_bounds = array<i64: 2, 64>}]} {
    %c0 = arith.constant 0 : index
    %c0_0 = arith.constant 0 : index
    %0 = vector.load %arg2[%c0, %c0_0] : memref<1x64xf32, #tpu.memory_space<vmem>>, vector<1x64xf32>
    %c0_1 = arith.constant 0 : index
    %c0_2 = arith.constant 0 : index
    %1 = vector.load %arg3[%c0_1, %c0_2] : memref<1x64xf32, #tpu.memory_space<vmem>>, vector<1x64xf32>
    %c0_3 = arith.constant 0 : index
    %c0_4 = arith.constant 0 : index
    %2 = vector.load %arg4[%c0_3, %c0_4] : memref<1x64xf32, #tpu.memory_space<vmem>>, vector<1x64xf32>
    %c0_5 = arith.constant 0 : index
    %c0_6 = arith.constant 0 : index
    %3 = vector.load %arg5[%c0_5, %c0_6] : memref<1x64xf32, #tpu.memory_space<vmem>>, vector<1x64xf32>
    %cst = arith.constant 5.000000e-01 : f32
    %4 = vector.broadcast %cst : f32 to vector<1x64xf32>
    %5 = arith.mulf %0, %4 : vector<1x64xf32>
    %cst_7 = arith.constant 5.000000e-01 : f32
    %6 = vector.broadcast %cst_7 : f32 to vector<1x64xf32>
    %7 = arith.mulf %1, %6 : vector<1x64xf32>
    %8 = arith.mulf %5, %5 : vector<1x64xf32>
    %9 = arith.subf %7, %8 : vector<1x64xf32>
    %cst_8 = arith.constant 0.000000e+00 : f32
    %10 = vector.broadcast %cst_8 : f32 to vector<1x64xf32>
    %11 = arith.maximumf %9, %10 : vector<1x64xf32>
    %cst_9 = arith.constant 9.99999974E-6 : f32
    %12 = vector.broadcast %cst_9 : f32 to vector<1x64xf32>
    %13 = arith.addf %11, %12 : vector<1x64xf32>
    %14 = math.rsqrt %13 : vector<1x64xf32>
    %15 = arith.mulf %2, %14 : vector<1x64xf32>
    %16 = arith.mulf %5, %15 : vector<1x64xf32>
    %17 = arith.subf %3, %16 : vector<1x64xf32>
    %c0_10 = arith.constant 0 : index
    %c0_11 = arith.constant 0 : index
    %18 = vector.load %arg1[%c0_10, %c0_11] : memref<2x64xf32, #tpu.memory_space<vmem>>, vector<2x64xf32>
    %19 = vector.broadcast %15 : vector<1x64xf32> to vector<2x64xf32>
    %20 = arith.mulf %18, %19 : vector<2x64xf32>
    %21 = vector.broadcast %17 : vector<1x64xf32> to vector<2x64xf32>
    %22 = arith.addf %20, %21 : vector<2x64xf32>
    %c0_12 = arith.constant 0 : index
    %c0_13 = arith.constant 0 : index
    %23 = vector.load %arg6[%c0_12, %c0_13] : memref<2x64xf32, #tpu.memory_space<vmem>>, vector<2x64xf32>
    tpu.vector_store %arg6[%c0_12, %c0_13], %22 {strides = array<i32>} : memref<2x64xf32, #tpu.memory_space<vmem>>, vector<2x64xf32>,
    return
  }
  func.func @transform_0(%arg0: i32) -> (i32, i32) {
    %c0_i32 = arith.constant 0 : i32
    %c0_i32_0 = arith.constant 0 : i32
    %c0_i32_1 = arith.constant 0 : i32
    return %c0_i32, %c0_i32_0 : i32, i32
  }
  func.func @transform_1(%arg0: i32) -> (i32, i32) {
    %c0_i32 = arith.constant 0 : i32
    %c0_i32_0 = arith.constant 0 : i32
    %c0_i32_1 = arith.constant 0 : i32
    return %c0_i32, %c0_i32_0 : i32, i32
  }
  func.func @transform_2(%arg0: i32) -> (i32, i32) {
    %c0_i32 = arith.constant 0 : i32
    %c0_i32_0 = arith.constant 0 : i32
    %c0_i32_1 = arith.constant 0 : i32
    return %c0_i32, %c0_i32_0 : i32, i32
  }
  func.func @transform_3(%arg0: i32) -> (i32, i32) {
    %c0_i32 = arith.constant 0 : i32
    %c0_i32_0 = arith.constant 0 : i32
    %c0_i32_1 = arith.constant 0 : i32
    return %c0_i32, %c0_i32_0 : i32, i32
  }
  func.func @transform_4(%arg0: i32) -> (i32, i32) {
    %c0_i32 = arith.constant 0 : i32
    %c0_i32_0 = arith.constant 0 : i32
    %c0_i32_1 = arith.constant 0 : i32
    return %c0_i32, %c0_i32_0 : i32, i32
  }
  func.func @transform_5(%arg0: i32) -> (i32, i32) {
    %c0_i32 = arith.constant 0 : i32
    %c0_i32_0 = arith.constant 0 : i32
    %c0_i32_1 = arith.constant 0 : i32
    return %c0_i32, %c0_i32_0 : i32, i32
  }
}

module attributes {stable_mosaic.version = 11 : i64} {
  func.func @_matmul_stats_kernel(%arg0: i32, %arg1: memref<2x288xf32, #tpu.memory_space<vmem>>, %arg2: memref<288x64xf32, #tpu.memory_space<vmem>>, %arg3: memref<2x64xf32, #tpu.memory_space<vmem>>, %arg4: memref<1x64xf32, #tpu.memory_space<vmem>>, %arg5: memref<1x64xf32, #tpu.memory_space<vmem>>) attributes {dimension_semantics = [#tpu.dimension_semantics<arbitrary>], iteration_bounds = array<i64: 1>, scalar_prefetch = 0 : i64, scratch_operands = 0 : i64, tpu.core_type = #tpu.core_type<tc>, window_params = [{pipeline_mode = #tpu.pipeline_mode<synchronous>, transform_indices = @transform_0, window_bounds = array<i64: 2, 288>}, {pipeline_mode = #tpu.pipeline_mode<synchronous>, transform_indices = @transform_1, window_bounds = array<i64: 288, 64>}, {pipeline_mode = #tpu.pipeline_mode<synchronous>, transform_indices = @transform_2, window_bounds = array<i64: 2, 64>}, {pipeline_mode = #tpu.pipeline_mode<synchronous>, transform_indices = @transform_3, window_bounds = array<i64: 1, 64>}, {pipeline_mode = #tpu.pipeline_mode<synchronous>, transform_indices = @transform_4, window_bounds = array<i64: 1, 64>}]} {
    %c0 = arith.constant 0 : index
    %c0_0 = arith.constant 0 : index
    %0 = vector.load %arg1[%c0, %c0_0] : memref<2x288xf32, #tpu.memory_space<vmem>>, vector<2x288xf32>
    %c0_1 = arith.constant 0 : index
    %c0_2 = arith.constant 0 : index
    %1 = vector.load %arg2[%c0_1, %c0_2] : memref<288x64xf32, #tpu.memory_space<vmem>>, vector<288x64xf32>
    %cst = arith.constant dense<0.000000e+00> : vector<2x64xf32>
    %2 = tpu.matmul %0, %1, %cst {dimension_numbers = #tpu.dot_dimension_numbers<[1], [0], [0], [1], [0, 0, 1, 1], [], []>} : vector<2x288xf32>, vector<288x64xf32>, vector<2x64xf32> -> vector<2x64xf32>
    %c0_3 = arith.constant 0 : index
    %c0_4 = arith.constant 0 : index
    %3 = vector.load %arg3[%c0_3, %c0_4] : memref<2x64xf32, #tpu.memory_space<vmem>>, vector<2x64xf32>
    tpu.vector_store %arg3[%c0_3, %c0_4], %2 {strides = array<i32>} : memref<2x64xf32, #tpu.memory_space<vmem>>, vector<2x64xf32>,
    %cst_5 = arith.constant dense<0.000000e+00> : vector<64xf32>
    %4 = vector.multi_reduction <add>, %2, %cst_5 [0] : vector<2x64xf32> to vector<64xf32>
    %5 = vector.shape_cast %4 : vector<64xf32> to vector<1x64xf32>
    %c0_6 = arith.constant 0 : index
    %c0_7 = arith.constant 0 : index
    %6 = vector.load %arg4[%c0_6, %c0_7] : memref<1x64xf32, #tpu.memory_space<vmem>>, vector<1x64xf32>
    tpu.vector_store %arg4[%c0_6, %c0_7], %5 {strides = array<i32>} : memref<1x64xf32, #tpu.memory_space<vmem>>, vector<1x64xf32>,
    %7 = arith.mulf %2, %2 : vector<2x64xf32>
    %cst_8 = arith.constant dense<0.000000e+00> : vector<64xf32>
    %8 = vector.multi_reduction <add>, %7, %cst_8 [0] : vector<2x64xf32> to vector<64xf32>
    %9 = vector.shape_cast %8 : vector<64xf32> to vector<1x64xf32>
    %c0_9 = arith.constant 0 : index
    %c0_10 = arith.constant 0 : index
    %10 = vector.load %arg5[%c0_9, %c0_10] : memref<1x64xf32, #tpu.memory_space<vmem>>, vector<1x64xf32>
    tpu.vector_store %arg5[%c0_9, %c0_10], %9 {strides = array<i32>} : memref<1x64xf32, #tpu.memory_space<vmem>>, vector<1x64xf32>,
    return
  }
  func.func @transform_0(%arg0: i32) -> (i32, i32) {
    %c0_i32 = arith.constant 0 : i32
    %c0_i32_0 = arith.constant 0 : i32
    %c0_i32_1 = arith.constant 0 : i32
    return %c0_i32, %c0_i32_0 : i32, i32
  }
  func.func @transform_1(%arg0: i32) -> (i32, i32) {
    %c0_i32 = arith.constant 0 : i32
    %c0_i32_0 = arith.constant 0 : i32
    %c0_i32_1 = arith.constant 0 : i32
    return %c0_i32, %c0_i32_0 : i32, i32
  }
  func.func @transform_2(%arg0: i32) -> (i32, i32) {
    %c0_i32 = arith.constant 0 : i32
    %c0_i32_0 = arith.constant 0 : i32
    %c0_i32_1 = arith.constant 0 : i32
    return %c0_i32, %c0_i32_0 : i32, i32
  }
  func.func @transform_3(%arg0: i32) -> (i32, i32) {
    %c0_i32 = arith.constant 0 : i32
    %c0_i32_0 = arith.constant 0 : i32
    %c0_i32_1 = arith.constant 0 : i32
    return %c0_i32, %c0_i32_0 : i32, i32
  }
  func.func @transform_4(%arg0: i32) -> (i32, i32) {
    %c0_i32 = arith.constant 0 : i32
    %c0_i32_0 = arith.constant 0 : i32
    %c0_i32_1 = arith.constant 0 : i32
    return %c0_i32, %c0_i32_0 : i32, i32
  }
}

module attributes {stable_mosaic.version = 11 : i64} {
  func.func @kernel(%arg0: i32, %arg1: memref<2x64xf32, #tpu.memory_space<vmem>>, %arg2: memref<1x64xf32, #tpu.memory_space<vmem>>, %arg3: memref<1x64xf32, #tpu.memory_space<vmem>>, %arg4: memref<1x64xf32, #tpu.memory_space<vmem>>, %arg5: memref<1x64xf32, #tpu.memory_space<vmem>>, %arg6: memref<2x64xf32, #tpu.memory_space<vmem>>) attributes {dimension_semantics = [#tpu.dimension_semantics<parallel>], iteration_bounds = array<i64: 1>, scalar_prefetch = 0 : i64, scratch_operands = 0 : i64, tpu.core_type = #tpu.core_type<tc>, window_params = [{pipeline_mode = #tpu.pipeline_mode<synchronous>, transform_indices = @transform_0, window_bounds = array<i64: 2, 64>}, {pipeline_mode = #tpu.pipeline_mode<synchronous>, transform_indices = @transform_1, window_bounds = array<i64: 1, 64>}, {pipeline_mode = #tpu.pipeline_mode<synchronous>, transform_indices = @transform_2, window_bounds = array<i64: 1, 64>}, {pipeline_mode = #tpu.pipeline_mode<synchronous>, transform_indices = @transform_3, window_bounds = array<i64: 1, 64>}, {pipeline_mode = #tpu.pipeline_mode<synchronous>, transform_indices = @transform_4, window_bounds = array<i64: 1, 64>}, {pipeline_mode = #tpu.pipeline_mode<synchronous>, transform_indices = @transform_5, window_bounds = array<i64: 2, 64>}]} {
    %c0 = arith.constant 0 : index
    %c0_0 = arith.constant 0 : index
    %0 = vector.load %arg2[%c0, %c0_0] : memref<1x64xf32, #tpu.memory_space<vmem>>, vector<1x64xf32>
    %c0_1 = arith.constant 0 : index
    %c0_2 = arith.constant 0 : index
    %1 = vector.load %arg3[%c0_1, %c0_2] : memref<1x64xf32, #tpu.memory_space<vmem>>, vector<1x64xf32>
    %c0_3 = arith.constant 0 : index
    %c0_4 = arith.constant 0 : index
    %2 = vector.load %arg4[%c0_3, %c0_4] : memref<1x64xf32, #tpu.memory_space<vmem>>, vector<1x64xf32>
    %c0_5 = arith.constant 0 : index
    %c0_6 = arith.constant 0 : index
    %3 = vector.load %arg5[%c0_5, %c0_6] : memref<1x64xf32, #tpu.memory_space<vmem>>, vector<1x64xf32>
    %cst = arith.constant 5.000000e-01 : f32
    %4 = vector.broadcast %cst : f32 to vector<1x64xf32>
    %5 = arith.mulf %0, %4 : vector<1x64xf32>
    %cst_7 = arith.constant 5.000000e-01 : f32
    %6 = vector.broadcast %cst_7 : f32 to vector<1x64xf32>
    %7 = arith.mulf %1, %6 : vector<1x64xf32>
    %8 = arith.mulf %5, %5 : vector<1x64xf32>
    %9 = arith.subf %7, %8 : vector<1x64xf32>
    %cst_8 = arith.constant 0.000000e+00 : f32
    %10 = vector.broadcast %cst_8 : f32 to vector<1x64xf32>
    %11 = arith.maximumf %9, %10 : vector<1x64xf32>
    %cst_9 = arith.constant 9.99999974E-6 : f32
    %12 = vector.broadcast %cst_9 : f32 to vector<1x64xf32>
    %13 = arith.addf %11, %12 : vector<1x64xf32>
    %14 = math.rsqrt %13 : vector<1x64xf32>
    %15 = arith.mulf %2, %14 : vector<1x64xf32>
    %16 = arith.mulf %5, %15 : vector<1x64xf32>
    %17 = arith.subf %3, %16 : vector<1x64xf32>
    %c0_10 = arith.constant 0 : index
    %c0_11 = arith.constant 0 : index
    %18 = vector.load %arg1[%c0_10, %c0_11] : memref<2x64xf32, #tpu.memory_space<vmem>>, vector<2x64xf32>
    %19 = vector.broadcast %15 : vector<1x64xf32> to vector<2x64xf32>
    %20 = arith.mulf %18, %19 : vector<2x64xf32>
    %21 = vector.broadcast %17 : vector<1x64xf32> to vector<2x64xf32>
    %22 = arith.addf %20, %21 : vector<2x64xf32>
    %cst_12 = arith.constant 0.000000e+00 : f32
    %23 = vector.broadcast %cst_12 : f32 to vector<2x64xf32>
    %24 = arith.maximumf %22, %23 : vector<2x64xf32>
    %c0_13 = arith.constant 0 : index
    %c0_14 = arith.constant 0 : index
    %25 = vector.load %arg6[%c0_13, %c0_14] : memref<2x64xf32, #tpu.memory_space<vmem>>, vector<2x64xf32>
    tpu.vector_store %arg6[%c0_13, %c0_14], %24 {strides = array<i32>} : memref<2x64xf32, #tpu.memory_space<vmem>>, vector<2x64xf32>,
    return
  }
  func.func @transform_0(%arg0: i32) -> (i32, i32) {
    %c0_i32 = arith.constant 0 : i32
    %c0_i32_0 = arith.constant 0 : i32
    %c0_i32_1 = arith.constant 0 : i32
    return %c0_i32, %c0_i32_0 : i32, i32
  }
  func.func @transform_1(%arg0: i32) -> (i32, i32) {
    %c0_i32 = arith.constant 0 : i32
    %c0_i32_0 = arith.constant 0 : i32
    %c0_i32_1 = arith.constant 0 : i32
    return %c0_i32, %c0_i32_0 : i32, i32
  }
  func.func @transform_2(%arg0: i32) -> (i32, i32) {
    %c0_i32 = arith.constant 0 : i32
    %c0_i32_0 = arith.constant 0 : i32
    %c0_i32_1 = arith.constant 0 : i32
    return %c0_i32, %c0_i32_0 : i32, i32
  }
  func.func @transform_3(%arg0: i32) -> (i32, i32) {
    %c0_i32 = arith.constant 0 : i32
    %c0_i32_0 = arith.constant 0 : i32
    %c0_i32_1 = arith.constant 0 : i32
    return %c0_i32, %c0_i32_0 : i32, i32
  }
  func.func @transform_4(%arg0: i32) -> (i32, i32) {
    %c0_i32 = arith.constant 0 : i32
    %c0_i32_0 = arith.constant 0 : i32
    %c0_i32_1 = arith.constant 0 : i32
    return %c0_i32, %c0_i32_0 : i32, i32
  }
  func.func @transform_5(%arg0: i32) -> (i32, i32) {
    %c0_i32 = arith.constant 0 : i32
    %c0_i32_0 = arith.constant 0 : i32
    %c0_i32_1 = arith.constant 0 : i32
    return %c0_i32, %c0_i32_0 : i32, i32
  }
}

module attributes {stable_mosaic.version = 11 : i64} {
  func.func @_matmul_stats_kernel(%arg0: i32, %arg1: memref<2x576xf32, #tpu.memory_space<vmem>>, %arg2: memref<576x64xf32, #tpu.memory_space<vmem>>, %arg3: memref<2x64xf32, #tpu.memory_space<vmem>>, %arg4: memref<1x64xf32, #tpu.memory_space<vmem>>, %arg5: memref<1x64xf32, #tpu.memory_space<vmem>>) attributes {dimension_semantics = [#tpu.dimension_semantics<arbitrary>], iteration_bounds = array<i64: 1>, scalar_prefetch = 0 : i64, scratch_operands = 0 : i64, tpu.core_type = #tpu.core_type<tc>, window_params = [{pipeline_mode = #tpu.pipeline_mode<synchronous>, transform_indices = @transform_0, window_bounds = array<i64: 2, 576>}, {pipeline_mode = #tpu.pipeline_mode<synchronous>, transform_indices = @transform_1, window_bounds = array<i64: 576, 64>}, {pipeline_mode = #tpu.pipeline_mode<synchronous>, transform_indices = @transform_2, window_bounds = array<i64: 2, 64>}, {pipeline_mode = #tpu.pipeline_mode<synchronous>, transform_indices = @transform_3, window_bounds = array<i64: 1, 64>}, {pipeline_mode = #tpu.pipeline_mode<synchronous>, transform_indices = @transform_4, window_bounds = array<i64: 1, 64>}]} {
    %c0 = arith.constant 0 : index
    %c0_0 = arith.constant 0 : index
    %0 = vector.load %arg1[%c0, %c0_0] : memref<2x576xf32, #tpu.memory_space<vmem>>, vector<2x576xf32>
    %c0_1 = arith.constant 0 : index
    %c0_2 = arith.constant 0 : index
    %1 = vector.load %arg2[%c0_1, %c0_2] : memref<576x64xf32, #tpu.memory_space<vmem>>, vector<576x64xf32>
    %cst = arith.constant dense<0.000000e+00> : vector<2x64xf32>
    %2 = tpu.matmul %0, %1, %cst {dimension_numbers = #tpu.dot_dimension_numbers<[1], [0], [0], [1], [0, 0, 1, 1], [], []>} : vector<2x576xf32>, vector<576x64xf32>, vector<2x64xf32> -> vector<2x64xf32>
    %c0_3 = arith.constant 0 : index
    %c0_4 = arith.constant 0 : index
    %3 = vector.load %arg3[%c0_3, %c0_4] : memref<2x64xf32, #tpu.memory_space<vmem>>, vector<2x64xf32>
    tpu.vector_store %arg3[%c0_3, %c0_4], %2 {strides = array<i32>} : memref<2x64xf32, #tpu.memory_space<vmem>>, vector<2x64xf32>,
    %cst_5 = arith.constant dense<0.000000e+00> : vector<64xf32>
    %4 = vector.multi_reduction <add>, %2, %cst_5 [0] : vector<2x64xf32> to vector<64xf32>
    %5 = vector.shape_cast %4 : vector<64xf32> to vector<1x64xf32>
    %c0_6 = arith.constant 0 : index
    %c0_7 = arith.constant 0 : index
    %6 = vector.load %arg4[%c0_6, %c0_7] : memref<1x64xf32, #tpu.memory_space<vmem>>, vector<1x64xf32>
    tpu.vector_store %arg4[%c0_6, %c0_7], %5 {strides = array<i32>} : memref<1x64xf32, #tpu.memory_space<vmem>>, vector<1x64xf32>,
    %7 = arith.mulf %2, %2 : vector<2x64xf32>
    %cst_8 = arith.constant dense<0.000000e+00> : vector<64xf32>
    %8 = vector.multi_reduction <add>, %7, %cst_8 [0] : vector<2x64xf32> to vector<64xf32>
    %9 = vector.shape_cast %8 : vector<64xf32> to vector<1x64xf32>
    %c0_9 = arith.constant 0 : index
    %c0_10 = arith.constant 0 : index
    %10 = vector.load %arg5[%c0_9, %c0_10] : memref<1x64xf32, #tpu.memory_space<vmem>>, vector<1x64xf32>
    tpu.vector_store %arg5[%c0_9, %c0_10], %9 {strides = array<i32>} : memref<1x64xf32, #tpu.memory_space<vmem>>, vector<1x64xf32>,
    return
  }
  func.func @transform_0(%arg0: i32) -> (i32, i32) {
    %c0_i32 = arith.constant 0 : i32
    %c0_i32_0 = arith.constant 0 : i32
    %c0_i32_1 = arith.constant 0 : i32
    return %c0_i32, %c0_i32_0 : i32, i32
  }
  func.func @transform_1(%arg0: i32) -> (i32, i32) {
    %c0_i32 = arith.constant 0 : i32
    %c0_i32_0 = arith.constant 0 : i32
    %c0_i32_1 = arith.constant 0 : i32
    return %c0_i32, %c0_i32_0 : i32, i32
  }
  func.func @transform_2(%arg0: i32) -> (i32, i32) {
    %c0_i32 = arith.constant 0 : i32
    %c0_i32_0 = arith.constant 0 : i32
    %c0_i32_1 = arith.constant 0 : i32
    return %c0_i32, %c0_i32_0 : i32, i32
  }
  func.func @transform_3(%arg0: i32) -> (i32, i32) {
    %c0_i32 = arith.constant 0 : i32
    %c0_i32_0 = arith.constant 0 : i32
    %c0_i32_1 = arith.constant 0 : i32
    return %c0_i32, %c0_i32_0 : i32, i32
  }
  func.func @transform_4(%arg0: i32) -> (i32, i32) {
    %c0_i32 = arith.constant 0 : i32
    %c0_i32_0 = arith.constant 0 : i32
    %c0_i32_1 = arith.constant 0 : i32
    return %c0_i32, %c0_i32_0 : i32, i32
  }
}

module attributes {stable_mosaic.version = 11 : i64} {
  func.func @kernel(%arg0: i32, %arg1: memref<2x64xf32, #tpu.memory_space<vmem>>, %arg2: memref<1x64xf32, #tpu.memory_space<vmem>>, %arg3: memref<1x64xf32, #tpu.memory_space<vmem>>, %arg4: memref<1x64xf32, #tpu.memory_space<vmem>>, %arg5: memref<1x64xf32, #tpu.memory_space<vmem>>, %arg6: memref<2x64xf32, #tpu.memory_space<vmem>>, %arg7: memref<2x64xf32, #tpu.memory_space<vmem>>) attributes {dimension_semantics = [#tpu.dimension_semantics<parallel>], iteration_bounds = array<i64: 1>, scalar_prefetch = 0 : i64, scratch_operands = 0 : i64, tpu.core_type = #tpu.core_type<tc>, window_params = [{pipeline_mode = #tpu.pipeline_mode<synchronous>, transform_indices = @transform_0, window_bounds = array<i64: 2, 64>}, {pipeline_mode = #tpu.pipeline_mode<synchronous>, transform_indices = @transform_1, window_bounds = array<i64: 1, 64>}, {pipeline_mode = #tpu.pipeline_mode<synchronous>, transform_indices = @transform_2, window_bounds = array<i64: 1, 64>}, {pipeline_mode = #tpu.pipeline_mode<synchronous>, transform_indices = @transform_3, window_bounds = array<i64: 1, 64>}, {pipeline_mode = #tpu.pipeline_mode<synchronous>, transform_indices = @transform_4, window_bounds = array<i64: 1, 64>}, {pipeline_mode = #tpu.pipeline_mode<synchronous>, transform_indices = @transform_5, window_bounds = array<i64: 2, 64>}, {pipeline_mode = #tpu.pipeline_mode<synchronous>, transform_indices = @transform_6, window_bounds = array<i64: 2, 64>}]} {
    %c0 = arith.constant 0 : index
    %c0_0 = arith.constant 0 : index
    %0 = vector.load %arg2[%c0, %c0_0] : memref<1x64xf32, #tpu.memory_space<vmem>>, vector<1x64xf32>
    %c0_1 = arith.constant 0 : index
    %c0_2 = arith.constant 0 : index
    %1 = vector.load %arg3[%c0_1, %c0_2] : memref<1x64xf32, #tpu.memory_space<vmem>>, vector<1x64xf32>
    %c0_3 = arith.constant 0 : index
    %c0_4 = arith.constant 0 : index
    %2 = vector.load %arg4[%c0_3, %c0_4] : memref<1x64xf32, #tpu.memory_space<vmem>>, vector<1x64xf32>
    %c0_5 = arith.constant 0 : index
    %c0_6 = arith.constant 0 : index
    %3 = vector.load %arg5[%c0_5, %c0_6] : memref<1x64xf32, #tpu.memory_space<vmem>>, vector<1x64xf32>
    %cst = arith.constant 5.000000e-01 : f32
    %4 = vector.broadcast %cst : f32 to vector<1x64xf32>
    %5 = arith.mulf %0, %4 : vector<1x64xf32>
    %cst_7 = arith.constant 5.000000e-01 : f32
    %6 = vector.broadcast %cst_7 : f32 to vector<1x64xf32>
    %7 = arith.mulf %1, %6 : vector<1x64xf32>
    %8 = arith.mulf %5, %5 : vector<1x64xf32>
    %9 = arith.subf %7, %8 : vector<1x64xf32>
    %cst_8 = arith.constant 0.000000e+00 : f32
    %10 = vector.broadcast %cst_8 : f32 to vector<1x64xf32>
    %11 = arith.maximumf %9, %10 : vector<1x64xf32>
    %cst_9 = arith.constant 9.99999974E-6 : f32
    %12 = vector.broadcast %cst_9 : f32 to vector<1x64xf32>
    %13 = arith.addf %11, %12 : vector<1x64xf32>
    %14 = math.rsqrt %13 : vector<1x64xf32>
    %15 = arith.mulf %2, %14 : vector<1x64xf32>
    %16 = arith.mulf %5, %15 : vector<1x64xf32>
    %17 = arith.subf %3, %16 : vector<1x64xf32>
    %c0_10 = arith.constant 0 : index
    %c0_11 = arith.constant 0 : index
    %18 = vector.load %arg1[%c0_10, %c0_11] : memref<2x64xf32, #tpu.memory_space<vmem>>, vector<2x64xf32>
    %19 = vector.broadcast %15 : vector<1x64xf32> to vector<2x64xf32>
    %20 = arith.mulf %18, %19 : vector<2x64xf32>
    %21 = vector.broadcast %17 : vector<1x64xf32> to vector<2x64xf32>
    %22 = arith.addf %20, %21 : vector<2x64xf32>
    %c0_12 = arith.constant 0 : index
    %c0_13 = arith.constant 0 : index
    %23 = vector.load %arg6[%c0_12, %c0_13] : memref<2x64xf32, #tpu.memory_space<vmem>>, vector<2x64xf32>
    %24 = arith.addf %22, %23 : vector<2x64xf32>
    %cst_14 = arith.constant 0.000000e+00 : f32
    %25 = vector.broadcast %cst_14 : f32 to vector<2x64xf32>
    %26 = arith.maximumf %24, %25 : vector<2x64xf32>
    %c0_15 = arith.constant 0 : index
    %c0_16 = arith.constant 0 : index
    %27 = vector.load %arg7[%c0_15, %c0_16] : memref<2x64xf32, #tpu.memory_space<vmem>>, vector<2x64xf32>
    tpu.vector_store %arg7[%c0_15, %c0_16], %26 {strides = array<i32>} : memref<2x64xf32, #tpu.memory_space<vmem>>, vector<2x64xf32>,
    return
  }
  func.func @transform_0(%arg0: i32) -> (i32, i32) {
    %c0_i32 = arith.constant 0 : i32
    %c0_i32_0 = arith.constant 0 : i32
    %c0_i32_1 = arith.constant 0 : i32
    return %c0_i32, %c0_i32_0 : i32, i32
  }
  func.func @transform_1(%arg0: i32) -> (i32, i32) {
    %c0_i32 = arith.constant 0 : i32
    %c0_i32_0 = arith.constant 0 : i32
    %c0_i32_1 = arith.constant 0 : i32
    return %c0_i32, %c0_i32_0 : i32, i32
  }
  func.func @transform_2(%arg0: i32) -> (i32, i32) {
    %c0_i32 = arith.constant 0 : i32
    %c0_i32_0 = arith.constant 0 : i32
    %c0_i32_1 = arith.constant 0 : i32
    return %c0_i32, %c0_i32_0 : i32, i32
  }
  func.func @transform_3(%arg0: i32) -> (i32, i32) {
    %c0_i32 = arith.constant 0 : i32
    %c0_i32_0 = arith.constant 0 : i32
    %c0_i32_1 = arith.constant 0 : i32
    return %c0_i32, %c0_i32_0 : i32, i32
  }
  func.func @transform_4(%arg0: i32) -> (i32, i32) {
    %c0_i32 = arith.constant 0 : i32
    %c0_i32_0 = arith.constant 0 : i32
    %c0_i32_1 = arith.constant 0 : i32
    return %c0_i32, %c0_i32_0 : i32, i32
  }
  func.func @transform_5(%arg0: i32) -> (i32, i32) {
    %c0_i32 = arith.constant 0 : i32
    %c0_i32_0 = arith.constant 0 : i32
    %c0_i32_1 = arith.constant 0 : i32
    return %c0_i32, %c0_i32_0 : i32, i32
  }
  func.func @transform_6(%arg0: i32) -> (i32, i32) {
    %c0_i32 = arith.constant 0 : i32
    %c0_i32_0 = arith.constant 0 : i32
    %c0_i32_1 = arith.constant 0 : i32
    return %c0_i32, %c0_i32_0 : i32, i32
  }
}

module attributes {stable_mosaic.version = 11 : i64} {
  func.func @_head_kernel(%arg0: i32, %arg1: memref<2x1x64xf32, #tpu.memory_space<vmem>>, %arg2: memref<64x10xf32, #tpu.memory_space<vmem>>, %arg3: memref<1x10xf32, #tpu.memory_space<vmem>>, %arg4: memref<2x10xf32, #tpu.memory_space<vmem>>) attributes {dimension_semantics = [#tpu.dimension_semantics<parallel>], iteration_bounds = array<i64: 1>, scalar_prefetch = 0 : i64, scratch_operands = 0 : i64, tpu.core_type = #tpu.core_type<tc>, window_params = [{pipeline_mode = #tpu.pipeline_mode<synchronous>, transform_indices = @transform_0, window_bounds = array<i64: 2, 1, 64>}, {pipeline_mode = #tpu.pipeline_mode<synchronous>, transform_indices = @transform_1, window_bounds = array<i64: 64, 10>}, {pipeline_mode = #tpu.pipeline_mode<synchronous>, transform_indices = @transform_2, window_bounds = array<i64: 1, 10>}, {pipeline_mode = #tpu.pipeline_mode<synchronous>, transform_indices = @transform_3, window_bounds = array<i64: 2, 10>}]} {
    %c0 = arith.constant 0 : index
    %c0_0 = arith.constant 0 : index
    %c0_1 = arith.constant 0 : index
    %0 = vector.load %arg1[%c0, %c0_0, %c0_1] : memref<2x1x64xf32, #tpu.memory_space<vmem>>, vector<2x1x64xf32>
    %cst = arith.constant dense<0.000000e+00> : vector<2x64xf32>
    %1 = vector.multi_reduction <add>, %0, %cst [1] : vector<2x1x64xf32> to vector<2x64xf32>
    %cst_2 = arith.constant 1.000000e+00 : f32
    %2 = vector.broadcast %cst_2 : f32 to vector<2x64xf32>
    %3 = arith.divf %1, %2 : vector<2x64xf32>
    %c0_3 = arith.constant 0 : index
    %c0_4 = arith.constant 0 : index
    %4 = vector.load %arg2[%c0_3, %c0_4] : memref<64x10xf32, #tpu.memory_space<vmem>>, vector<64x10xf32>
    %cst_5 = arith.constant dense<0.000000e+00> : vector<2x10xf32>
    %5 = tpu.matmul %3, %4, %cst_5 {dimension_numbers = #tpu.dot_dimension_numbers<[1], [0], [0], [1], [0, 0, 1, 1], [], []>} : vector<2x64xf32>, vector<64x10xf32>, vector<2x10xf32> -> vector<2x10xf32>
    %c0_6 = arith.constant 0 : index
    %c0_7 = arith.constant 0 : index
    %6 = vector.load %arg3[%c0_6, %c0_7] : memref<1x10xf32, #tpu.memory_space<vmem>>, vector<1x10xf32>
    %7 = vector.broadcast %6 : vector<1x10xf32> to vector<2x10xf32>
    %8 = arith.addf %5, %7 : vector<2x10xf32>
    %c0_8 = arith.constant 0 : index
    %c0_9 = arith.constant 0 : index
    %9 = vector.load %arg4[%c0_8, %c0_9] : memref<2x10xf32, #tpu.memory_space<vmem>>, vector<2x10xf32>
    tpu.vector_store %arg4[%c0_8, %c0_9], %8 {strides = array<i32>} : memref<2x10xf32, #tpu.memory_space<vmem>>, vector<2x10xf32>,
    return
  }
  func.func @transform_0(%arg0: i32) -> (i32, i32, i32) {
    %c0_i32 = arith.constant 0 : i32
    %c0_i32_0 = arith.constant 0 : i32
    %c0_i32_1 = arith.constant 0 : i32
    %c0_i32_2 = arith.constant 0 : i32
    return %c0_i32, %c0_i32_0, %c0_i32_1 : i32, i32, i32
  }
  func.func @transform_1(%arg0: i32) -> (i32, i32) {
    %c0_i32 = arith.constant 0 : i32
    %c0_i32_0 = arith.constant 0 : i32
    %c0_i32_1 = arith.constant 0 : i32
    return %c0_i32, %c0_i32_0 : i32, i32
  }
  func.func @transform_2(%arg0: i32) -> (i32, i32) {
    %c0_i32 = arith.constant 0 : i32
    %c0_i32_0 = arith.constant 0 : i32
    %c0_i32_1 = arith.constant 0 : i32
    return %c0_i32, %c0_i32_0 : i32, i32
  }
  func.func @transform_3(%arg0: i32) -> (i32, i32) {
    %c0_i32 = arith.constant 0 : i32
    %c0_i32_0 = arith.constant 0 : i32
    %c0_i32_1 = arith.constant 0 : i32
    return %c0_i32, %c0_i32_0 : i32, i32
  }
}

</mosaic_0001>

<bundles_post_ra>
// kernel: tpu_custom_call.1
= control target key start
LH: loop header
LB: loop body
LE: loop exit
PB: predicated region body
PF: predicated region fallthrough
CT: control target
= control target key end

     0   :  { %10 = vsyncpa [#allocation3], 0  ;;  %vm35_vm0 = vcmask 64512   ;;  %s2237_s0 = inlined_call_operand.vmem [shape: f32[1,10,10,8], index: 0, kind: input, shape index: {}]   ;;  %s2238_s1 = inlined_call_operand.vmem [shape: f32[9,8,8], index: 1, kind: input, shape index: {}]   ;;  %s2239_s2 = inlined_call_operand.vmem [shape: f32[64,8], index: 2, kind: output, shape index: {0}]   ;;  %s2240_s3 = inlined_call_operand.hbm [shape: f32[1,8], index: 3, kind: output, shape index: {1}]   ;;  %s2241_s4 = inlined_call_operand.hbm [shape: f32[1,8], index: 4, kind: output, shape index: {2}]  }
   0x1   :  { %v1418_v0 = vld [vmem:[%s2238_s1 + $0x8] sm:$0xff]  ;;  %v1902_v1 = vld [vmem:[%s2238_s1 + $0x20] sm:$0xff]  ;;  %v1461_v3 = vld [vmem:[%s2237_s0 + $0x11] sm:$0xff] }
   0x2   :  { %v25_v2 = vld [vmem:[%s2237_s0 + $0x1] sm:$0xff]  ;;  %1627 = vmatprep.subr.mxu1 %v1418_v0  ;;  %1683 = vmatprep.subr.mxu0 %v1902_v1  ;;  %v1929_v7 = vld [vmem:[%s2237_s0 + $0x31] sm:$0xff] }
   0x3   :  { %v24_v4 = vld [vmem:[%s2238_s1] sm:$0xff]  ;;  %1628 = vmatpush3.msra.mxu1 %v1418_v0  ;;  %1629 = vmatprep.mubr.msk.f32.mxu1 %vm35_vm0, %v25_v2  ;;  %v1486_v6 = vld [vmem:[%s2238_s1 + $0x28] sm:$0xff]  ;;  %v1503_v8 = vld [vmem:[%s2238_s1 + $0x30] sm:$0xff] }
   0x4   :  { %v1918_v5 = vld [vmem:[%s2237_s0 + $0x21] sm:$0xff]  ;;  %1684 = vmatpush3.msra.mxu0 %v1902_v1  ;;  %1685 = vmatprep.mubr.msk.f32.mxu0 %vm35_vm0, %v1461_v3  ;;  %v1478_v10 = vld [vmem:[%s2237_s0 + $0x12] sm:$0xff] }
   0x5   :  { %1630 = vmatmul.mubr.msk.f32.vlgmr.msra.gmra.mrb[0].mxu1 %vm35_vm0, %v1461_v3  ;;  %1641 = vmatprep.subr.mxu1 %v24_v4  ;;  %v1939_v9 = vld [vmem:[%s2237_s0 + $0x41] sm:$0xff]  ;;  %v1435_v11 = vld [vmem:[%s2238_s1 + $0x10] sm:$0xff]  ;;  %v1520_v16 = vld [vmem:[%s2238_s1 + $0x38] sm:$0xff] }
   0x6   :  { %1686 = vmatmul.mubr.msk.f32.vlgmr.msra.gmra.mrb[0].mxu0 %vm35_vm0, %v1918_v5  ;;  %1697 = vmatprep.subr.mxu0 %v1486_v6  ;;  %v1960_v12 = vld [vmem:[%s2237_s0 + $0x51] sm:$0xff]  ;;  %v1966_v13 = vld [vmem:[%s2237_s0 + $0x22] sm:$0xff] }
   0x7   :  { %1642 = vmatpush3.msra.mxu1 %v24_v4  ;;  %1698 = vmatpush3.msra.mxu0 %v1486_v6  ;;  %v1971_v14 = vld [vmem:[%s2237_s0 + $0x61] sm:$0xff]  ;;  %v1976_v15 = vld [vmem:[%s2237_s0 + $0x32] sm:$0xff] }
   0x8   :  { %1632 = vmatprep.mubr.msk.f32.mxu1 %vm35_vm0, %v1918_v5  ;;  %1688 = vmatprep.mubr.msk.f32.mxu0 %vm35_vm0, %v1929_v7  ;;  %v1990_v17 = vld [vmem:[%s2237_s0 + $0x71] sm:$0xff] }
   0x9   :  { %1633 = vmatmul.mubr.msk.f32.gmra.mrb[2].mxu1 %vm35_vm0, %v1929_v7  ;;  %1711 = vmatprep.subr.mxu0 %v1503_v8 }
   0xa   :  { %1689 = vmatmul.mubr.msk.f32.gmra.mrb[2].mxu0 %vm35_vm0, %v1939_v9  ;;  %1635 = vmatprep.mubr.msk.f32.mxu1 %vm35_vm0, %v1939_v9 }
   0xb   :  { %1699 = vmatprep.mubr.msk.f32.mxu0 %vm35_vm0, %v1478_v10  ;;  %1655 = vmatprep.subr.mxu1 %v1435_v11 }
   0xd   :  { %1636 = vmatmul.mubr.msk.f32.gmra.mrb[4].mxu1 %vm35_vm0, %v1960_v12 }
   0xe   :  { %1700 = vmatmul.mubr.msk.f32.vlgmr.msra.gmra.mrb[0].mxu0 %vm35_vm0, %v1966_v13  ;;  %1638 = vmatprep.mubr.msk.f32.mxu1 %vm35_vm0, %v1971_v14 }
   0xf   :  { %11 = vsyncpa [#allocation5], 0  ;;  %1712 = vmatpush3.msra.mxu0 %v1503_v8  ;;  %1702 = vmatprep.mubr.msk.f32.mxu0 %vm35_vm0, %v1976_v15  ;;  %v1997_v18 = vld [vmem:[%s2237_s0 + $0x42] sm:$0xff]  ;;  %v2005_v20 = vld [vmem:[%s2237_s0 + $0x52] sm:$0xff]  ;;  %vm1354_vm1 = vcmask 57344   ;;  %s1870_s30 = smov [#allocation4]  }
  0x10   :  { %v16_v19 = vld [vmem:[%s2237_s0] sm:$0xff]  ;;  %1725 = vmatprep.subr.mxu0 %v1520_v16  ;;  %v17_v21 = vld [vmem:[%s2237_s0 + $0x10] sm:$0xff]  ;;  %v1452_v25 = vld [vmem:[%s2238_s1 + $0x18] sm:$0xff] }
  0x11   :  { %1639 = vmatmul.mubr.msk.f32.gmra.mrb[6].mxu1 %vm35_vm0, %v1990_v17  ;;  %v2020_v22 = vld [vmem:[%s2237_s0 + $0x62] sm:$0xff]  ;;  %v2028_v24 = vld [vmem:[%s2237_s0 + $0x72] sm:$0xff] }
  0x12   :  { %1703 = vmatmul.mubr.msk.f32.gmra.mrb[2].mxu0 %vm35_vm0, %v1997_v18  ;;  %1643 = vmatprep.mubr.msk.f32.mxu1 %vm35_vm0, %v16_v19  ;;  %v18_v23 = vld [vmem:[%s2237_s0 + $0x20] sm:$0xff]  ;;  %v19_v26 = vld [vmem:[%s2237_s0 + $0x30] sm:$0xff] }
  0x13   :  { %1705 = vmatprep.mubr.msk.f32.mxu0 %vm35_vm0, %v2005_v20  ;;  %v2045_v27 = vld [vmem:[%s2237_s0 + $0x82] sm:$0xff]  ;;  %v21_v29 = vld [vmem:[%s2237_s0 + $0x50] sm:$0xff] }
  0x14   :  { %v20_v28 = vld [vmem:[%s2237_s0 + $0x40] sm:$0xff]  ;;  %v23_v32 = vld [vmem:[%s2237_s0 + $0x70] sm:$0xff] }
  0x15   :  { %1644 = vmatmul.mubr.msk.f32.vlgmr.msra.gmra.mrb[0].mxu1 %vm35_vm0, %v17_v21  ;;  %v22_v30 = vld [vmem:[%s2237_s0 + $0x60] sm:$0xff]  ;;  %v1502_v35 = vld [vmem:[%s2237_s0 + $0x90] sm:$0xff] }
  0x16   :  { %1706 = vmatmul.mubr.msk.f32.gmra.mrb[4].mxu0 %vm35_vm0, %v2020_v22  ;;  %1656 = vmatpush3.msra.mxu1 %v1435_v11  ;;  %v1537_v31 = vld [vmem:[%s2238_s1 + $0x40] sm:$0xff]  ;;  %v1519_v37 = vld [vmem:[%s2237_s0 + $0x91] sm:$0xff]  ;;  %s1404_s1 = sshll.u32 %s1870_s30, 4  ;;  %s2204_s1 = int_to_ptr.vmem [resolvable:$true] %s1404_s1 }
  0x17   :  { %1646 = vmatprep.mubr.msk.f32.mxu1 %vm35_vm0, %v18_v23  ;;  %1708 = vmatprep.mubr.msk.f32.mxu0 %vm35_vm0, %v2028_v24  ;;  %v294_v33 = vld [vmem:[%s2237_s0 + $0x2] sm:$0xff]  ;;  %v1536_v38 = vld [vmem:[%s2237_s0 + $0x92] sm:$0xff] }
  0x18   :  { %1669 = vmatprep.subr.mxu1 %v1452_v25  ;;  %v1501_v34 = vld [vmem:[%s2237_s0 + $0x80] sm:$0xff] }
  0x19   :  { %1647 = vmatmul.mubr.msk.f32.gmra.mrb[2].mxu1 %vm35_vm0, %v19_v26  ;;  %v1518_v36 = vld [vmem:[%s2237_s0 + $0x81] sm:$0xff] }
  0x1a   :  { %1709 = vmatmul.mubr.msk.f32.gmra.mrb[6].mxu0 %vm35_vm0, %v2045_v27  ;;  %1649 = vmatprep.mubr.msk.f32.mxu1 %vm35_vm0, %v20_v28 }
  0x1b   :  { %1713 = vmatprep.mubr.msk.f32.mxu0 %vm35_vm0, %v18_v23 }
  0x1d   :  { %1650 = vmatmul.mubr.msk.f32.gmra.mrb[4].mxu1 %vm35_vm0, %v21_v29 }
  0x1e   :  { %1714 = vmatmul.mubr.msk.f32.vlgmr.msra.gmra.mrb[0].mxu0 %vm35_vm0, %v19_v26  ;;  %1652 = vmatprep.mubr.msk.f32.mxu1 %vm35_vm0, %v22_v30 }
  0x1f   :  { %1726 = vmatpush3.msra.mxu0 %v1520_v16  ;;  %1716 = vmatprep.mubr.msk.f32.mxu0 %vm35_vm0, %v20_v28 }
  0x20   :  { %1739 = vmatprep.subr.mxu0 %v1537_v31 }
  0x21   :  { %1653 = vmatmul.mubr.msk.f32.gmra.mrb[6].mxu1 %vm35_vm0, %v23_v32 }
  0x22   :  { %1717 = vmatmul.mubr.msk.f32.gmra.mrb[2].mxu0 %vm35_vm0, %v21_v29  ;;  %1657 = vmatprep.mubr.msk.f32.mxu1 %vm35_vm0, %v294_v33 }
  0x23   :  { %1719 = vmatprep.mubr.msk.f32.mxu0 %vm35_vm0, %v22_v30 }
  0x25   :  { %1658 = vmatmul.mubr.msk.f32.vlgmr.msra.gmra.mrb[0].mxu1 %vm35_vm0, %v1478_v10 }
  0x26   :  { %1720 = vmatmul.mubr.msk.f32.gmra.mrb[4].mxu0 %vm35_vm0, %v23_v32  ;;  %1670 = vmatpush3.msra.mxu1 %v1452_v25 }
  0x27   :  { %1660 = vmatprep.mubr.msk.f32.mxu1 %vm35_vm0, %v1966_v13  ;;  %1722 = vmatprep.mubr.msk.f32.mxu0 %vm35_vm0, %v1501_v34 }
  0x28   :  { %1753 = vmatprep.subr.mxu1 %v1902_v1 }
  0x29   :  { %1661 = vmatmul.mubr.msk.f32.gmra.mrb[2].mxu1 %vm35_vm0, %v1976_v15 }
  0x2a   :  { %1723 = vmatmul.mubr.msk.f32.gmra.mrb[6].mxu0 %vm35_vm0, %v1502_v35  ;;  %1663 = vmatprep.mubr.msk.f32.mxu1 %vm35_vm0, %v1997_v18 }
  0x2b   :  { %1727 = vmatprep.mubr.msk.f32.mxu0 %vm35_vm0, %v1918_v5 }
  0x2d   :  { %1664 = vmatmul.mubr.msk.f32.gmra.mrb[4].mxu1 %vm35_vm0, %v2005_v20 }
  0x2e   :  { %1728 = vmatmul.mubr.msk.f32.vlgmr.msra.gmra.mrb[0].mxu0 %vm35_vm0, %v1929_v7  ;;  %1666 = vmatprep.mubr.msk.f32.mxu1 %vm35_vm0, %v2020_v22 }
  0x2f   :  { %1740 = vmatpush3.msra.mxu0 %v1537_v31  ;;  %1730 = vmatprep.mubr.msk.f32.mxu0 %vm35_vm0, %v1939_v9 }
  0x31   :  { %1667 = vmatmul.mubr.msk.f32.gmra.mrb[6].mxu1 %vm35_vm0, %v2028_v24 }
  0x32   :  { %1731 = vmatmul.mubr.msk.f32.gmra.mrb[2].mxu0 %vm35_vm0, %v1960_v12  ;;  %1671 = vmatprep.mubr.msk.f32.mxu1 %vm35_vm0, %v17_v21 }
  0x33   :  { %1733 = vmatprep.mubr.msk.f32.mxu0 %vm35_vm0, %v1971_v14 }
  0x35   :  { %1672 = vmatmul.mubr.msk.f32.vlgmr.msra.gmra.mrb[0].mxu1 %vm35_vm0, %v18_v23 }
  0x36   :  { %1734 = vmatmul.mubr.msk.f32.gmra.mrb[4].mxu0 %vm35_vm0, %v1990_v17  ;;  %1754 = vmatpush3.msra.mxu1 %v1902_v1 }
  0x37   :  { %1674 = vmatprep.mubr.msk.f32.mxu1 %vm35_vm0, %v19_v26  ;;  %1736 = vmatprep.mubr.msk.f32.mxu0 %vm35_vm0, %v1518_v36 }
  0x39   :  { %1675 = vmatmul.mubr.msk.f32.gmra.mrb[2].mxu1 %vm35_vm0, %v20_v28 }
  0x3a   :  { %1737 = vmatmul.mubr.msk.f32.gmra.mrb[6].mxu0 %vm35_vm0, %v1519_v37  ;;  %1677 = vmatprep.mubr.msk.f32.mxu1 %vm35_vm0, %v21_v29 }
  0x3b   :  { %1741 = vmatprep.mubr.msk.f32.mxu0 %vm35_vm0, %v1966_v13 }
  0x3d   :  { %1678 = vmatmul.mubr.msk.f32.gmra.mrb[4].mxu1 %vm35_vm0, %v22_v30 }
  0x3e   :  { %1742 = vmatmul.mubr.msk.f32.vlgmr.msra.gmra.mrb[0].mxu0 %vm35_vm0, %v1976_v15  ;;  %1680 = vmatprep.mubr.msk.f32.mxu1 %vm35_vm0, %v23_v32 }
  0x3f   :  { %1744 = vmatprep.mubr.msk.f32.mxu0 %vm35_vm0, %v1997_v18 }
  0x41   :  { %1681 = vmatmul.mubr.msk.f32.gmra.mrb[6].mxu1 %vm35_vm0, %v1501_v34 }
  0x42   :  { %1745 = vmatmul.mubr.msk.f32.gmra.mrb[2].mxu0 %vm35_vm0, %v2005_v20  ;;  %1691 = vmatprep.mubr.msk.f32.mxu1 %vm35_vm0, %v1960_v12 }
  0x43   :  { %1747 = vmatprep.mubr.msk.f32.mxu0 %vm35_vm0, %v2020_v22 }
  0x45   :  { %1692 = vmatmul.mubr.msk.f32.vlgmr.msra.gmra.mrb[4].mxu1 %vm35_vm0, %v1971_v14 }
  0x46   :  { %1748 = vmatmul.mubr.msk.f32.gmra.mrb[4].mxu0 %vm35_vm0, %v2028_v24  ;;  %1694 = vmatprep.mubr.msk.f32.mxu1 %vm35_vm0, %v1990_v17 }
  0x47   :  { %1750 = vmatprep.mubr.msk.f32.mxu0 %vm35_vm0, %v2045_v27 }
  0x49   :  { %1695 = vmatmul.mubr.msk.f32.gmra.mrb[6].mxu1 %vm35_vm0, %v1518_v36 }
  0x4a   :  { %1751 = vmatmul.mubr.msk.f32.gmra.mrb[6].mxu0 %vm35_vm0, %v1536_v38 }
 0x108   :  { %v1673_v39 = vpop.f32.mrb[0].mxu1 }
 0x109   :  { %v542_v40 = vpop.f32.mrb[1].mxu1 }
 0x10c   :  { %v1676_v41 = vpop.f32.mrb[2].mxu1 }
 0x10d   :  { %v552_v42 = vpop.f32.mrb[3].mxu1 }
 0x111   :  { %v1743_v43 = vpop.f32.mrb[0].mxu0 }
 0x112   :  { %v1755_v44 = vadd.f32 %v1743_v43, %v1673_v39  ;;  %v1278_v45 = vpop.f32.mrb[1].mxu0 }
 0x113   :  { %v1756_v46 = vadd.f32 %v1278_v45, %v542_v40 }
 0x114   :  { %1326 = vst.msk [vmem:[%s2239_s2 + $0x8] sm:$0xff] %vm35_vm0, %v1755_v44  ;;  %v1334_v47 = vsel %vm35_vm0, %v1755_v44, 0.0  ;;  %v1357_v48 = vmul.f32 %v1755_v44, %v1755_v44 }
 0x115   :  { %1325 = vst.msk [vmem:[%s2239_s2] sm:$0xff] %vm35_vm0, %v1756_v46  ;;  %v1333_v49 = vsel %vm35_vm0, %v1756_v46, 0.0  ;;  %v1356_v50 = vmul.f32 %v1756_v46, %v1756_v46  ;;  %v1746_v51 = vpop.f32.mrb[2].mxu0 }
 0x116   :  { %v1365_v52 = vsel %vm35_vm0, %v1357_v48, 0.0  ;;  %v1335_v53 = vadd.f32 %v1334_v47, %v1333_v49  ;;  %v1757_v54 = vadd.f32 %v1746_v51, %v1676_v41  ;;  %v1288_v55 = vpop.f32.mrb[3].mxu0 }
 0x117   :  { %v1364_v56 = vsel %vm35_vm0, %v1356_v50, 0.0  ;;  %v1758_v57 = vadd.f32 %v1288_v55, %v552_v42 }
 0x118   :  { %v1366_v58 = vadd.f32 %v1365_v52, %v1364_v56  ;;  %1328 = vst.msk [vmem:[%s2239_s2 + $0x18] sm:$0xff] %vm35_vm0, %v1757_v54  ;;  %v1693_v59 = vpop.f32.mrb[4].mxu1  ;;  %v1359_v60 = vmul.f32 %v1757_v54, %v1757_v54  ;;  %v1338_v4 = vsel %vm35_vm0, %v1757_v54, 0.0 }
 0x119   :  { %1327 = vst.msk [vmem:[%s2239_s2 + $0x10] sm:$0xff] %vm35_vm0, %v1758_v57  ;;  %v1336_v61 = vsel %vm35_vm0, %v1758_v57, 0.0  ;;  %v1358_v62 = vmul.f32 %v1758_v57, %v1758_v57  ;;  %v1749_v63 = vpop.f32.mrb[4].mxu0  ;;  %v709_v0 = vpop.f32.mrb[5].mxu1 }
 0x11a   :  { %v1337_v1 = vadd.f32 %v1336_v61, %v1335_v53  ;;  %v1759_v2 = vadd.f32 %v1749_v63, %v1693_v59  ;;  %v1298_v3 = vpop.f32.mrb[5].mxu0  ;;  %v1369_v10 = vsel %vm35_vm0, %v1359_v60, 0.0 }
 0x11b   :  { %v1367_v5 = vsel %vm35_vm0, %v1358_v62, 0.0  ;;  %v1760_v6 = vadd.f32 %v1298_v3, %v709_v0 }
 0x11c   :  { %v1368_v7 = vadd.f32 %v1367_v5, %v1366_v58  ;;  %1330 = vst.msk [vmem:[%s2239_s2 + $0x28] sm:$0xff] %vm35_vm0, %v1759_v2  ;;  %v1339_v8 = vadd.f32 %v1338_v4, %v1337_v1  ;;  %v1696_v9 = vpop.f32.mrb[6].mxu1  ;;  %v1361_v11 = vmul.f32 %v1759_v2, %v1759_v2  ;;  %v1342_v20 = vsel %vm35_vm0, %v1759_v2, 0.0 }
 0x11d   :  { %1329 = vst.msk [vmem:[%s2239_s2 + $0x20] sm:$0xff] %vm35_vm0, %v1760_v6  ;;  %v1340_v12 = vsel %vm35_vm0, %v1760_v6, 0.0  ;;  %v1360_v13 = vmul.f32 %v1760_v6, %v1760_v6  ;;  %v1752_v14 = vpop.f32.mrb[6].mxu0  ;;  %v719_v15 = vpop.f32.mrb[7].mxu1 }
 0x11e   :  { %v1341_v16 = vadd.f32 %v1340_v12, %v1339_v8  ;;  %v1370_v17 = vadd.f32 %v1369_v10, %v1368_v7  ;;  %v1761_v18 = vadd.f32 %v1752_v14, %v1696_v9  ;;  %v1308_v19 = vpop.f32.mrb[7].mxu0  ;;  %v1373_v25 = vsel %vm35_vm0, %v1361_v11, 0.0 }
 0x11f   :  { %v1371_v21 = vsel %vm35_vm0, %v1360_v13, 0.0  ;;  %v1762_v22 = vadd.f32 %v1308_v19, %v719_v15 }
 0x120   :  { %v1372_v23 = vadd.f32 %v1371_v21, %v1370_v17  ;;  %1332 = vst.msk [vmem:[%s2239_s2 + $0x38] sm:$0xff] %vm35_vm0, %v1761_v18  ;;  %v1343_v24 = vadd.f32 %v1342_v20, %v1341_v16  ;;  %v1363_v26 = vmul.f32 %v1761_v18, %v1761_v18  ;;  %v1346_v31 = vsel %vm35_vm0, %v1761_v18, 0.0 }
 0x121   :  { %1331 = vst.msk [vmem:[%s2239_s2 + $0x30] sm:$0xff] %vm35_vm0, %v1762_v22  ;;  %v1344_v27 = vsel %vm35_vm0, %v1762_v22, 0.0  ;;  %v1362_v28 = vmul.f32 %v1762_v22, %v1762_v22  ;;  %s1869_s2 = smov [#allocation2]  }
 0x122   :  { %v1345_v29 = vadd.f32 %v1344_v27, %v1343_v24  ;;  %v1374_v30 = vadd.f32 %v1373_v25, %v1372_v23  ;;  %v1377_v35 = vsel %vm35_vm0, %v1363_v26, 0.0  ;;  %s1394_s29 = sshll.u32 %s1869_s2, 4  ;;  %s1395_s29 = int_to_ptr.vmem [resolvable:$true] %s1394_s29 }
 0x123   :  { %v1375_v32 = vsel %vm35_vm0, %v1362_v28, 0.0  ;;  %s1821_s5 = scalar_lea.vmem %s1395_s29, 16  ;;  %s1825_s6 = scalar_lea.vmem %s1395_s29, 32 }
 0x124   :  { %v1347_v33 = vadd.f32 %v1346_v31, %v1345_v29  ;;  %v1376_v34 = vadd.f32 %v1375_v32, %v1374_v30  ;;  %p1822_p0 = scmp.ne.s32.totalorder %s1395_s29, %s1821_s5  ;;  %p1826_p1 = scmp.lt.s32.totalorder %s1395_s29, %s1395_s29 }
 0x125   :  { %p1827_p2 = scmp.lt.s32.totalorder %s1825_s6, %s1821_s5 }
 0x126   :  { %v1348_v36 = vrot.slane %v1347_v33, 4  ;;  %v1378_v37 = vadd.f32 %v1377_v35, %v1376_v34 }
 0x127   :  { %p1828_p3 = por %p1827_p2, %p1826_p1 }
 0x128   :  { %v1349_v38 = vadd.f32 %v1348_v36, %v1347_v33  ;;  %v1379_v39 = vrot.slane %v1378_v37, 4 }
 0x129   :  { %p1829_p4 = pnand %p1828_p3, %p1822_p0 }
 0x12a   :  { %v1350_v40 = vrot.slane %v1349_v38, 2  ;;  %v1380_v41 = vadd.f32 %v1379_v39, %v1378_v37 }
 0x12c   :  { %v1351_v42 = vadd.f32 %v1350_v40, %v1349_v38  ;;  %v1381_v43 = vrot.slane %v1380_v41, 2 }
 0x12e   :  { %v1352_v44 = vrot.slane %v1351_v42, 1  ;;  %v1382_v45 = vadd.f32 %v1381_v43, %v1380_v41 }
 0x130   :  { %v1353_v46 = vadd.f32 %v1352_v44, %v1351_v42  ;;  %v1383_v47 = vrot.slane %v1382_v45, 1 }
 0x132   :  { %1355 = vst.msk [vmem:[#allocation2] sm:$0x1] %vm1354_vm1, %v1353_v46  ;;  %v1384_v48 = vadd.f32 %v1383_v47, %v1382_v45 }
 0x133   :  { %1832 = shalt.err (!%p1829_p4)
}
 0x134   :  { %s1833_s9 = scalar_lea.hbm %s2240_s3, 16 }
 0x135   :  { %p1834_p5 = scmp.ne.s32.totalorder %s2240_s3, %s1833_s9  ;;  %p1837_p6 = scmp.lt.u32.totalorder %s1833_s9, %s2240_s3 }
 0x137   :  { %p1839_p7 = pnand %p1837_p6, %p1834_p5 }
 0x139   :  { %1842 = shalt.err (!%p1839_p7)
}
 0x13a   :  { %1397 = dma.vmem_to_hbm [thread:$0]  %s1395_s29, 16, %s2240_s3, [#allocation3]   ;;  %1385 = vst.msk [vmem:[#allocation4] sm:$0x1] %vm1354_vm1, %v1384_v48 }
 0x13b   :  { %s1843_s0 = scalar_lea.vmem %s2204_s1, 16  ;;  %s1847_s16 = scalar_lea.vmem %s2204_s1, 32 }
 0x13c   :  { %p1844_p8 = scmp.ne.s32.totalorder %s2204_s1, %s1843_s0  ;;  %p1848_p9 = scmp.lt.s32.totalorder %s2204_s1, %s2204_s1 }
 0x13d   :  { %p1849_p10 = scmp.lt.s32.totalorder %s1847_s16, %s1843_s0 }
 0x13f   :  { %p1850_p11 = por %p1849_p10, %p1848_p9 }
 0x141   :  { %p1851_p12 = pnand %p1850_p11, %p1844_p8 }
 0x143   :  { %1854 = shalt.err (!%p1851_p12)
}
 0x144   :  { %s1855_s19 = scalar_lea.hbm %s2241_s4, 16 }
 0x145   :  { %p1856_p13 = scmp.ne.s32.totalorder %s2241_s4, %s1855_s19  ;;  %p1859_p0 = scmp.lt.u32.totalorder %s1855_s19, %s2241_s4 }
 0x147   :  { %p1861_p1 = pnand %p1859_p0, %p1856_p13 }
 0x149   :  { %1864 = shalt.err (!%p1861_p1)
}
 0x14a   :  { %1407 = dma.vmem_to_hbm [thread:$0]  %s2204_s1, 16, %s2241_s4, [#allocation5]  }
 0x14b   :  { %1865 = dma.done.wait [#allocation3], 16  }
 0x14c   :  { %1866 = vsyncadd [#allocation3], 4294967280 }
 0x14d   :  { %1867 = dma.done.wait [#allocation5], 16  }
 0x14e   :  { %1868 = vsyncadd [#allocation5], 4294967280 }
 0x14f   :  { %1416 = vsyncpa [#allocation3], 1 }
 0x150   :  { %1417 = vsyncpa [#allocation5], 1 }

// kernel: basic_resnet_forward.27
= control target key start
LH: loop header
LB: loop body
LE: loop exit
PB: predicated region body
PF: predicated region fallthrough
CT: control target
= control target key end

     0   :  { %vm291_vm0 = vcmask 64512   ;;  %s871_s0 = inlined_call_operand.vmem [shape: f32[2,9,9,8], index: 0, kind: input, shape index: {}]   ;;  %s872_s1 = inlined_call_operand.vmem [shape: f32[2,9,9,8], index: 1, kind: input, shape index: {}]   ;;  %s873_s2 = inlined_call_operand.vmem [shape: f32[2,9,9,8], index: 2, kind: input, shape index: {}]   ;;  %s874_s3 = inlined_call_operand.vmem [shape: f32[2,9,9,8], index: 3, kind: input, shape index: {}]   ;;  %s875_s4 = inlined_call_operand.vmem [shape: f32[2,8,8,8], index: 4, kind: output, shape index: {}]  }
   0x1   :  { %v17_v0 = vld [vmem:[%s871_s0] sm:$0xff]  ;;  %v312_v5 = vld [vmem:[%s871_s0 + $0x10] sm:$0xff] }
   0x2   :  { %v33_v1 = vld [vmem:[%s872_s1] sm:$0xff]  ;;  %v403_v6 = vld [vmem:[%s872_s1 + $0x10] sm:$0xff] }
   0x3   :  { %v65_v2 = vld [vmem:[%s871_s0 + $0x1] sm:$0xff]  ;;  %v49_v3 = vmax.f32 %v17_v0, %v33_v1  ;;  %v344_v7 = vld [vmem:[%s871_s0 + $0x11] sm:$0xff]  ;;  %v50_v10 = vmax.f32 %v312_v5, %v403_v6 }
   0x4   :  { %v97_v4 = vld [vmem:[%s873_s2] sm:$0xff]  ;;  %v98_v11 = vld [vmem:[%s873_s2 + $0x10] sm:$0xff] }
   0x5   :  { %v81_v8 = vmax.f32 %v49_v3, %v65_v2  ;;  %v129_v9 = vld [vmem:[%s874_s3] sm:$0xff]  ;;  %v82_v17 = vmax.f32 %v50_v10, %v344_v7  ;;  %v130_v18 = vld [vmem:[%s874_s3 + $0x10] sm:$0xff] }
   0x6   :  { %v313_v12 = vld [vmem:[%s871_s0 + $0x20] sm:$0xff]  ;;  %v314_v21 = vld [vmem:[%s871_s0 + $0x30] sm:$0xff] }
   0x7   :  { %v421_v13 = vld [vmem:[%s872_s1 + $0x20] sm:$0xff]  ;;  %v113_v15 = vmax.f32 %v81_v8, %v97_v4  ;;  %v444_v22 = vld [vmem:[%s872_s1 + $0x30] sm:$0xff]  ;;  %v114_v25 = vmax.f32 %v82_v17, %v98_v11 }
   0x8   :  { %v426_v14 = vld [vmem:[%s871_s0 + $0x21] sm:$0xff]  ;;  %v51_v19 = vmax.f32 %v313_v12, %v421_v13  ;;  %v449_v23 = vld [vmem:[%s871_s0 + $0x31] sm:$0xff]  ;;  %v52_v29 = vmax.f32 %v314_v21, %v444_v22 }
   0x9   :  { %v161_v16 = vld [vmem:[%s873_s2 + $0x1] sm:$0xff]  ;;  %v145_v24 = vmax.f32 %v113_v15, %v129_v9  ;;  %v162_v26 = vld [vmem:[%s873_s2 + $0x11] sm:$0xff]  ;;  %v146_v34 = vmax.f32 %v114_v25, %v130_v18 }
   0xa   :  { %v99_v20 = vld [vmem:[%s873_s2 + $0x20] sm:$0xff]  ;;  %v83_v27 = vmax.f32 %v51_v19, %v426_v14  ;;  %v100_v30 = vld [vmem:[%s873_s2 + $0x30] sm:$0xff]  ;;  %v84_v37 = vmax.f32 %v52_v29, %v449_v23 }
   0xb   :  { %v131_v28 = vld [vmem:[%s874_s3 + $0x20] sm:$0xff]  ;;  %v177_v33 = vmax.f32 %v145_v24, %v161_v16  ;;  %v132_v39 = vld [vmem:[%s874_s3 + $0x30] sm:$0xff]  ;;  %v178_v44 = vmax.f32 %v146_v34, %v162_v26 }
   0xc   :  { %v315_v31 = vld [vmem:[%s871_s0 + $0x40] sm:$0xff]  ;;  %v115_v35 = vmax.f32 %v83_v27, %v99_v20  ;;  %v316_v41 = vld [vmem:[%s871_s0 + $0x50] sm:$0xff]  ;;  %v116_v46 = vmax.f32 %v84_v37, %v100_v30 }
   0xd   :  { %v468_v32 = vld [vmem:[%s872_s1 + $0x40] sm:$0xff]  ;;  %v489_v42 = vld [vmem:[%s872_s1 + $0x50] sm:$0xff]  ;;  %v210_v43 = vmax.f32 %v177_v33, %v312_v5  ;;  %v211_v55 = vmax.f32 %v178_v44, %v313_v12 }
   0xe   :  { %v163_v36 = vld [vmem:[%s873_s2 + $0x21] sm:$0xff]  ;;  %v53_v40 = vmax.f32 %v315_v31, %v468_v32  ;;  %v147_v45 = vmax.f32 %v115_v35, %v131_v28  ;;  %v497_v48 = vld [vmem:[%s871_s0 + $0x51] sm:$0xff]  ;;  %v54_v51 = vmax.f32 %v316_v41, %v489_v42  ;;  %v148_v57 = vmax.f32 %v116_v46, %v132_v39 }
   0xf   :  { %v477_v38 = vld [vmem:[%s871_s0 + $0x41] sm:$0xff]  ;;  %v164_v49 = vld [vmem:[%s873_s2 + $0x31] sm:$0xff]  ;;  %v243_v54 = vmax.f32 %v210_v43, %v403_v6  ;;  %v244_v4 = vmax.f32 %v211_v55, %v421_v13 }
  0x10   :  { %v101_v47 = vld [vmem:[%s873_s2 + $0x40] sm:$0xff]  ;;  %v85_v50 = vmax.f32 %v53_v40, %v477_v38  ;;  %v179_v56 = vmax.f32 %v147_v45, %v163_v36  ;;  %v102_v59 = vld [vmem:[%s873_s2 + $0x50] sm:$0xff]  ;;  %v86_v63 = vmax.f32 %v54_v51, %v497_v48  ;;  %v180_v6 = vmax.f32 %v148_v57, %v164_v49 }
  0x11   :  { %v507_v52 = vld [vmem:[%s871_s0 + $0x60] sm:$0xff]  ;;  %v535_v1 = vld [vmem:[%s871_s0 + $0x70] sm:$0xff]  ;;  %v275_v3 = vmax.f32 %v243_v54, %v344_v7  ;;  %v276_v17 = vmax.f32 %v244_v4, %v426_v14 }
  0x12   :  { %v512_v53 = vld [vmem:[%s872_s1 + $0x60] sm:$0xff]  ;;  %v117_v61 = vmax.f32 %v85_v50, %v101_v47  ;;  %v540_v2 = vld [vmem:[%s872_s1 + $0x70] sm:$0xff]  ;;  %v212_v5 = vmax.f32 %v179_v56, %v314_v21  ;;  %v118_v12 = vmax.f32 %v86_v63, %v102_v59  ;;  %v213_v19 = vmax.f32 %v180_v6, %v315_v31 }
  0x13   :  { %v133_v58 = vld [vmem:[%s874_s3 + $0x40] sm:$0xff]  ;;  %v55_v0 = vmax.f32 %v507_v52, %v512_v53  ;;  %v134_v8 = vld [vmem:[%s874_s3 + $0x50] sm:$0xff]  ;;  %v56_v16 = vmax.f32 %v535_v1, %v540_v2  ;;  %292 = vst.msk [vmem:[%s875_s4] sm:$0xff] %vm291_vm0, %v275_v3  ;;  %293 = vst.msk [vmem:[%s875_s4 + $0x8] sm:$0xff] %vm291_vm0, %v276_v17 }
  0x14   :  { %v524_v60 = vld [vmem:[%s871_s0 + $0x61] sm:$0xff]  ;;  %v552_v10 = vld [vmem:[%s871_s0 + $0x71] sm:$0xff]  ;;  %v149_v11 = vmax.f32 %v117_v61, %v133_v58  ;;  %v245_v18 = vmax.f32 %v212_v5, %v444_v22  ;;  %v150_v26 = vmax.f32 %v118_v12, %v134_v8  ;;  %v246_v30 = vmax.f32 %v213_v19, %v468_v32 }
  0x15   :  { %v165_v62 = vld [vmem:[%s873_s2 + $0x41] sm:$0xff]  ;;  %v166_v7 = vld [vmem:[%s873_s2 + $0x51] sm:$0xff]  ;;  %v87_v13 = vmax.f32 %v55_v0, %v524_v60  ;;  %v88_v22 = vmax.f32 %v56_v16, %v552_v10 }
  0x16   :  { %v103_v9 = vld [vmem:[%s873_s2 + $0x60] sm:$0xff]  ;;  %v104_v20 = vld [vmem:[%s873_s2 + $0x70] sm:$0xff]  ;;  %v181_v25 = vmax.f32 %v149_v11, %v165_v62  ;;  %v277_v29 = vmax.f32 %v245_v18, %v449_v23  ;;  %v182_v37 = vmax.f32 %v150_v26, %v166_v7 }
  0x17   :  { %v135_v15 = vld [vmem:[%s874_s3 + $0x60] sm:$0xff]  ;;  %v25_v21 = vld [vmem:[%s871_s0 + $0x90] sm:$0xff]  ;;  %v119_v27 = vmax.f32 %v87_v13, %v103_v9  ;;  %v120_v39 = vmax.f32 %v88_v22, %v104_v20 }
  0x18   :  { %v41_v24 = vld [vmem:[%s872_s1 + $0x90] sm:$0xff]  ;;  %v167_v14 = vld [vmem:[%s873_s2 + $0x61] sm:$0xff]  ;;  %v214_v36 = vmax.f32 %v181_v25, %v316_v41  ;;  %294 = vst.msk [vmem:[%s875_s4 + $0x10] sm:$0xff] %vm291_vm0, %v277_v29  ;;  %v278_v41 = vmax.f32 %v246_v30, %v477_v38  ;;  %v215_v51 = vmax.f32 %v182_v37, %v507_v52 }
  0x19   :  { %v73_v28 = vld [vmem:[%s871_s0 + $0x91] sm:$0xff]  ;;  %v57_v33 = vmax.f32 %v25_v21, %v41_v24  ;;  %v597_v34 = vld [vmem:[%s871_s0 + $0xa0] sm:$0xff]  ;;  %v151_v23 = vmax.f32 %v119_v27, %v135_v15 }
  0x1a   :  { %v136_v31 = vld [vmem:[%s874_s3 + $0x70] sm:$0xff]  ;;  %v602_v35 = vld [vmem:[%s872_s1 + $0xa0] sm:$0xff]  ;;  %v247_v50 = vmax.f32 %v214_v36, %v489_v42  ;;  %295 = vst.msk [vmem:[%s875_s4 + $0x18] sm:$0xff] %vm291_vm0, %v278_v41  ;;  %v248_v4 = vmax.f32 %v215_v51, %v512_v53 }
  0x1b   :  { %v168_v32 = vld [vmem:[%s873_s2 + $0x71] sm:$0xff]  ;;  %v613_v43 = vld [vmem:[%s871_s0 + $0xa1] sm:$0xff]  ;;  %v89_v45 = vmax.f32 %v57_v33, %v73_v28  ;;  %v58_v47 = vmax.f32 %v597_v34, %v602_v35  ;;  %v183_v54 = vmax.f32 %v151_v23, %v167_v14  ;;  %v152_v55 = vmax.f32 %v120_v39, %v136_v31 }
  0x1c   :  { %v105_v40 = vld [vmem:[%s873_s2 + $0x90] sm:$0xff]  ;;  %v319_v44 = vld [vmem:[%s871_s0 + $0x80] sm:$0xff]  ;;  %v279_v3 = vmax.f32 %v247_v50, %v497_v48  ;;  %v280_v18 = vmax.f32 %v248_v4, %v524_v60 }
  0x1d   :  { %v137_v46 = vld [vmem:[%s874_s3 + $0x90] sm:$0xff]  ;;  %v106_v57 = vld [vmem:[%s873_s2 + $0xa0] sm:$0xff]  ;;  %v121_v52 = vmax.f32 %v89_v45, %v105_v40  ;;  %v90_v59 = vmax.f32 %v58_v47, %v613_v43  ;;  %v216_v5 = vmax.f32 %v183_v54, %v535_v1  ;;  %v184_v6 = vmax.f32 %v152_v55, %v168_v32 }
  0x1e   :  { %v631_v49 = vld [vmem:[%s871_s0 + $0xb0] sm:$0xff]  ;;  %v335_v42 = vld [vmem:[%s872_s1 + $0x80] sm:$0xff]  ;;  %296 = vst.msk [vmem:[%s875_s4 + $0x20] sm:$0xff] %vm291_vm0, %v279_v3  ;;  %297 = vst.msk [vmem:[%s875_s4 + $0x28] sm:$0xff] %vm291_vm0, %v280_v18 }
  0x1f   :  { %v636_v38 = vld [vmem:[%s872_s1 + $0xb0] sm:$0xff]  ;;  %v138_v61 = vld [vmem:[%s874_s3 + $0xa0] sm:$0xff]  ;;  %v153_v1 = vmax.f32 %v121_v52, %v137_v46  ;;  %v122_v12 = vmax.f32 %v90_v59, %v106_v57  ;;  %v249_v19 = vmax.f32 %v216_v5, %v540_v2  ;;  %v217_v20 = vmax.f32 %v184_v6, %v319_v44 }
  0x20   :  { %v169_v56 = vld [vmem:[%s873_s2 + $0x91] sm:$0xff]  ;;  %v59_v62 = vmax.f32 %v631_v49, %v636_v38  ;;  %v667_v63 = vld [vmem:[%s871_s0 + $0xc0] sm:$0xff] }
  0x21   :  { %v649_v58 = vld [vmem:[%s871_s0 + $0xb1] sm:$0xff]  ;;  %v672_v0 = vld [vmem:[%s872_s1 + $0xc0] sm:$0xff]  ;;  %v185_v2 = vmax.f32 %v153_v1, %v169_v56  ;;  %v154_v27 = vmax.f32 %v122_v12, %v138_v61  ;;  %v281_v31 = vmax.f32 %v249_v19, %v552_v10  ;;  %v250_v33 = vmax.f32 %v217_v20, %v335_v42 }
  0x22   :  { %v170_v8 = vld [vmem:[%s873_s2 + $0xa1] sm:$0xff]  ;;  %v107_v9 = vld [vmem:[%s873_s2 + $0xb0] sm:$0xff]  ;;  %v91_v7 = vmax.f32 %v59_v62, %v649_v58  ;;  %v60_v13 = vmax.f32 %v667_v63, %v672_v0 }
  0x23   :  { %v139_v11 = vld [vmem:[%s874_s3 + $0xb0] sm:$0xff]  ;;  %v689_v48 = vld [vmem:[%s871_s0 + $0xc1] sm:$0xff]  ;;  %v218_v40 = vmax.f32 %v185_v2, %v597_v34  ;;  %v186_v10 = vmax.f32 %v154_v27, %v170_v8  ;;  %298 = vst.msk [vmem:[%s875_s4 + $0x30] sm:$0xff] %vm291_vm0, %v281_v31 }
  0x24   :  { %v351_v53 = vld [vmem:[%s871_s0 + $0x81] sm:$0xff]  ;;  %v700_v15 = vld [vmem:[%s871_s0 + $0xd0] sm:$0xff]  ;;  %v123_v14 = vmax.f32 %v91_v7, %v107_v9  ;;  %v92_v22 = vmax.f32 %v60_v13, %v689_v48 }
  0x25   :  { %v705_v16 = vld [vmem:[%s872_s1 + $0xd0] sm:$0xff]  ;;  %v108_v24 = vld [vmem:[%s873_s2 + $0xc0] sm:$0xff]  ;;  %v282_v34 = vmax.f32 %v250_v33, %v351_v53  ;;  %v251_v42 = vmax.f32 %v218_v40, %v602_v35  ;;  %v219_v52 = vmax.f32 %v186_v10, %v631_v49 }
  0x26   :  { %v710_v17 = vld [vmem:[%s871_s0 + $0xd1] sm:$0xff]  ;;  %v140_v25 = vld [vmem:[%s874_s3 + $0xc0] sm:$0xff]  ;;  %v61_v26 = vmax.f32 %v700_v15, %v705_v16  ;;  %v155_v41 = vmax.f32 %v123_v14, %v139_v11  ;;  %v124_v44 = vmax.f32 %v92_v22, %v108_v24 }
  0x27   :  { %v171_v21 = vld [vmem:[%s873_s2 + $0xb1] sm:$0xff]  ;;  %v324_v28 = vld [vmem:[%s871_s0 + $0xe0] sm:$0xff]  ;;  %299 = vst.msk [vmem:[%s875_s4 + $0x38] sm:$0xff] %vm291_vm0, %v282_v34  ;;  %v283_v8 = vmax.f32 %v251_v42, %v613_v43  ;;  %v252_v9 = vmax.f32 %v219_v52, %v636_v38 }
  0x28   :  { %v109_v60 = vld [vmem:[%s873_s2 + $0xd0] sm:$0xff]  ;;  %v739_v29 = vld [vmem:[%s872_s1 + $0xe0] sm:$0xff]  ;;  %v93_v37 = vmax.f32 %v61_v26, %v710_v17  ;;  %v187_v59 = vmax.f32 %v155_v41, %v171_v21  ;;  %v156_v61 = vmax.f32 %v124_v44, %v140_v25 }
  0x29   :  { %v744_v30 = vld [vmem:[%s871_s0 + $0xe1] sm:$0xff]  ;;  %v141_v23 = vld [vmem:[%s874_s3 + $0xd0] sm:$0xff]  ;;  %v62_v39 = vmax.f32 %v324_v28, %v739_v29  ;;  %300 = vst.msk [vmem:[%s875_s4 + $0x40] sm:$0xff] %vm291_vm0, %v283_v8  ;;  %v284_v38 = vmax.f32 %v252_v9, %v649_v58 }
  0x2a   :  { %v172_v36 = vld [vmem:[%s873_s2 + $0xc1] sm:$0xff]  ;;  %v325_v45 = vld [vmem:[%s871_s0 + $0xf0] sm:$0xff]  ;;  %v125_v50 = vmax.f32 %v93_v37, %v109_v60  ;;  %v220_v11 = vmax.f32 %v187_v59, %v667_v63 }
  0x2b   :  { %v110_v32 = vld [vmem:[%s873_s2 + $0xe0] sm:$0xff]  ;;  %v341_v46 = vld [vmem:[%s872_s1 + $0xf0] sm:$0xff]  ;;  %v94_v54 = vmax.f32 %v62_v39, %v744_v30  ;;  %v188_v53 = vmax.f32 %v156_v61, %v172_v36  ;;  %301 = vst.msk [vmem:[%s875_s4 + $0x48] sm:$0xff] %vm291_vm0, %v284_v38 }
  0x2c   :  { %v357_v47 = vld [vmem:[%s871_s0 + $0xf1] sm:$0xff]  ;;  %v142_v55 = vld [vmem:[%s874_s3 + $0xe0] sm:$0xff]  ;;  %v63_v56 = vmax.f32 %v325_v45, %v341_v46  ;;  %v157_v35 = vmax.f32 %v125_v50, %v141_v23  ;;  %v253_v63 = vmax.f32 %v220_v11, %v672_v0 }
  0x2d   :  { %v173_v51 = vld [vmem:[%s873_s2 + $0xd1] sm:$0xff]  ;;  %v326_v62 = vld [vmem:[%s871_s0 + $0x100] sm:$0xff]  ;;  %v126_v49 = vmax.f32 %v94_v54, %v110_v32  ;;  %v221_v20 = vmax.f32 %v188_v53, %v700_v15 }
  0x2e   :  { %v111_v57 = vld [vmem:[%s873_s2 + $0xf0] sm:$0xff]  ;;  %v342_v3 = vld [vmem:[%s872_s1 + $0x100] sm:$0xff]  ;;  %v95_v5 = vmax.f32 %v63_v56, %v357_v47  ;;  %v189_v13 = vmax.f32 %v157_v35, %v173_v51  ;;  %v285_v58 = vmax.f32 %v253_v63, %v689_v48 }
  0x2f   :  { %v358_v4 = vld [vmem:[%s871_s0 + $0x101] sm:$0xff]  ;;  %v64_v6 = vmax.f32 %v326_v62, %v342_v3  ;;  %v143_v12 = vld [vmem:[%s874_s3 + $0xf0] sm:$0xff]  ;;  %v158_v18 = vmax.f32 %v126_v49, %v142_v55  ;;  %v254_v0 = vmax.f32 %v221_v20, %v705_v16 }
  0x30   :  { %v174_v1 = vld [vmem:[%s873_s2 + $0xe1] sm:$0xff]  ;;  %v127_v43 = vmax.f32 %v95_v5, %v111_v57  ;;  %v175_v21 = vld [vmem:[%s873_s2 + $0xf1] sm:$0xff]  ;;  %v222_v25 = vmax.f32 %v189_v13, %v324_v28  ;;  %302 = vst.msk [vmem:[%s875_s4 + $0x50] sm:$0xff] %vm291_vm0, %v285_v58 }
  0x31   :  { %v112_v7 = vld [vmem:[%s873_s2 + $0x100] sm:$0xff]  ;;  %v96_v19 = vmax.f32 %v64_v6, %v358_v4  ;;  %v190_v26 = vmax.f32 %v158_v18, %v174_v1  ;;  %v286_v31 = vmax.f32 %v254_v0, %v710_v17  ;;  %v327_v48 = vld [vmem:[%s871_s0 + $0x110] sm:$0xff] }
  0x32   :  { %v144_v24 = vld [vmem:[%s874_s3 + $0x100] sm:$0xff]  ;;  %v159_v60 = vmax.f32 %v127_v43, %v143_v12  ;;  %v255_v27 = vmax.f32 %v222_v25, %v739_v29  ;;  %v343_v29 = vld [vmem:[%s872_s1 + $0x110] sm:$0xff] }
  0x33   :  { %v128_v2 = vmax.f32 %v96_v19, %v112_v7  ;;  %v176_v15 = vld [vmem:[%s873_s2 + $0x101] sm:$0xff]  ;;  %v223_v14 = vmax.f32 %v190_v26, %v325_v45  ;;  %303 = vst.msk [vmem:[%s875_s4 + $0x58] sm:$0xff] %vm291_vm0, %v286_v31  ;;  %v359_v39 = vld [vmem:[%s871_s0 + $0x111] sm:$0xff] }
  0x34   :  { %v191_v22 = vmax.f32 %v159_v60, %v175_v21  ;;  %v287_v16 = vmax.f32 %v255_v27, %v744_v30 }
  0x35   :  { %v160_v28 = vmax.f32 %v128_v2, %v144_v24  ;;  %v256_v33 = vmax.f32 %v223_v14, %v341_v46 }
  0x36   :  { %v224_v36 = vmax.f32 %v191_v22, %v326_v62  ;;  %304 = vst.msk [vmem:[%s875_s4 + $0x60] sm:$0xff] %vm291_vm0, %v287_v16 }
  0x37   :  { %v192_v37 = vmax.f32 %v160_v28, %v176_v15  ;;  %v288_v17 = vmax.f32 %v256_v33, %v357_v47 }
  0x38   :  { %v257_v23 = vmax.f32 %v224_v36, %v342_v3 }
  0x39   :  { %v225_v30 = vmax.f32 %v192_v37, %v327_v48  ;;  %305 = vst.msk [vmem:[%s875_s4 + $0x68] sm:$0xff] %vm291_vm0, %v288_v17 }
  0x3a   :  { %v289_v32 = vmax.f32 %v257_v23, %v358_v4 }
  0x3b   :  { %v258_v40 = vmax.f32 %v225_v30, %v343_v29 }
  0x3c   :  { %306 = vst.msk [vmem:[%s875_s4 + $0x70] sm:$0xff] %vm291_vm0, %v289_v32 }
  0x3d   :  { %v290_v10 = vmax.f32 %v258_v40, %v359_v39 }
  0x3f   :  { %307 = vst.msk [vmem:[%s875_s4 + $0x78] sm:$0xff] %vm291_vm0, %v290_v10 }

// kernel: basic_resnet_forward.26
= control target key start
LH: loop header
LB: loop body
LE: loop exit
PB: predicated region body
PF: predicated region fallthrough
CT: control target
= control target key end

     0   :  { %10 = vsyncpa [#allocation3], 0  ;;  %vm277_vm0 = vcmask 1042432   ;;  %vm84_vm1 = vcmask 220160   ;;  %vm1398_vm2 = vmmov 1   ;;  %s2304_s0 = inlined_call_operand.vmem [shape: f32[512,27], index: 0, kind: input, shape index: {}]   ;;  %s2305_s1 = inlined_call_operand.vmem [shape: f32[27,8], index: 1, kind: input, shape index: {}]   ;;  %s2306_s2 = inlined_call_operand.vmem [shape: f32[512,8], index: 2, kind: output, shape index: {0}]   ;;  %s2307_s3 = inlined_call_operand.hbm [shape: f32[1,8], index: 3, kind: output, shape index: {1}]   ;;  %s2308_s4 = inlined_call_operand.hbm [shape: f32[1,8], index: 4, kind: output, shape index: {2}]  }
   0x1   :  { %v80_v0 = vld [vmem:[%s2305_s1] sm:$0xff]  ;;  %v81_v1 = vld [vmem:[%s2305_s1 + $0x8] sm:$0xff]  ;;  %v82_v2 = vld [vmem:[%s2305_s1 + $0x10] sm:$0xff] }
   0x2   :  { %v1333_v3 = vpack.c.bf16 %v81_v1, %v80_v0  ;;  %v83_v4 = vld [vmem:[%s2305_s1 + $0x18] sm:$0x7]  ;;  %v16_v5 = vld [vmem:[%s2304_s0] sm:$0xff]  ;;  %vm1338_vm3 = vmpackc.low %vm277_vm0, %vm1398_vm2 }
   0x3   :  { %v1337_v6 = vpack.c.bf16 %v83_v4, %v82_v2  ;;  %1237 = vmatprep.mubr.msk.f32.mxu0 %vm84_vm1, %v16_v5  ;;  %v17_v7 = vld [vmem:[%s2304_s0 + $0x8] sm:$0xff]  ;;  %v18_v8 = vld [vmem:[%s2304_s0 + $0x10] sm:$0xff]  ;;  %v19_v9 = vld [vmem:[%s2304_s0 + $0x18] sm:$0xff] }
   0x4   :  { %1334 = vmatprep.subr.bf16.mxu0 %v1333_v3  ;;  %1343 = vmatprep.subr.bf16.mxu1 %v1333_v3  ;;  %v48_v10 = vld [vmem:[%s2304_s0 + $0x100] sm:$0xff]  ;;  %v49_v11 = vld [vmem:[%s2304_s0 + $0x108] sm:$0xff]  ;;  %v50_v13 = vld [vmem:[%s2304_s0 + $0x110] sm:$0xff] }
   0x5   :  { %1336 = vmatpush3.bf16.msra.mxu0 %v1333_v3  ;;  %1345 = vmatpush3.bf16.msra.mxu1 %v1333_v3  ;;  %v20_v12 = vld [vmem:[%s2304_s0 + $0x20] sm:$0xff]  ;;  %v51_v14 = vld [vmem:[%s2304_s0 + $0x118] sm:$0xff]  ;;  %v21_v15 = vld [vmem:[%s2304_s0 + $0x28] sm:$0xff] }
   0x6   :  { %1339 = vmatprep.subr.msk.bf16.mxu0 %vm1338_vm3, %v1337_v6  ;;  %1344 = vmatprep.subr.msk.bf16.mxu1 %vm1338_vm3, %v1337_v6  ;;  %v52_v16 = vld [vmem:[%s2304_s0 + $0x120] sm:$0xff]  ;;  %v22_v17 = vld [vmem:[%s2304_s0 + $0x30] sm:$0xff]  ;;  %v53_v18 = vld [vmem:[%s2304_s0 + $0x128] sm:$0xff] }
   0x7   :  { %1285 = vmatprep.mubr.msk.f32.mxu1 %vm84_vm1, %v48_v10  ;;  %v23_v19 = vld [vmem:[%s2304_s0 + $0x38] sm:$0xff]  ;;  %v54_v20 = vld [vmem:[%s2304_s0 + $0x130] sm:$0xff]  ;;  %v24_v21 = vld [vmem:[%s2304_s0 + $0x40] sm:$0xff] }
   0x8   :  { %v55_v22 = vld [vmem:[%s2304_s0 + $0x138] sm:$0xff] }
   0x9   :  { %1342 = vmatpush3.bf16.msk.msra.mxu0 %vm1338_vm3, %v1337_v6  ;;  %1346 = vmatpush3.bf16.msk.msra.mxu1 %vm1338_vm3, %v1337_v6 }
   0xc   :  { %1238 = vmatmul.mubr.msk.f32.vlgmr.msra.gmra.mrb[0].mxu0 %vm84_vm1, %v17_v7  ;;  %1286 = vmatmul.mubr.msk.f32.vlgmr.msra.gmra.mrb[0].mxu1 %vm84_vm1, %v49_v11 }
   0xd   :  { %1240 = vmatprep.mubr.msk.f32.mxu0 %vm84_vm1, %v18_v8  ;;  %1288 = vmatprep.mubr.msk.f32.mxu1 %vm84_vm1, %v50_v13 }
  0x10   :  { %1241 = vmatmul.mubr.msk.f32.gmra.mrb[2].mxu0 %vm84_vm1, %v19_v9  ;;  %1289 = vmatmul.mubr.msk.f32.gmra.mrb[2].mxu1 %vm84_vm1, %v51_v14 }
  0x11   :  { %1243 = vmatprep.mubr.msk.f32.mxu0 %vm84_vm1, %v20_v12  ;;  %1291 = vmatprep.mubr.msk.f32.mxu1 %vm84_vm1, %v52_v16 }
  0x14   :  { %1244 = vmatmul.mubr.msk.f32.gmra.mrb[4].mxu0 %vm84_vm1, %v21_v15  ;;  %1292 = vmatmul.mubr.msk.f32.gmra.mrb[4].mxu1 %vm84_vm1, %v53_v18 }
  0x15   :  { %1246 = vmatprep.mubr.msk.f32.mxu0 %vm84_vm1, %v22_v17  ;;  %1294 = vmatprep.mubr.msk.f32.mxu1 %vm84_vm1, %v54_v20 }
  0x18   :  { %1247 = vmatmul.mubr.msk.f32.gmra.mrb[6].mxu0 %vm84_vm1, %v23_v19 }
  0x19   :  { %11 = vsyncpa [#allocation5], 0  ;;  %1249 = vmatprep.mubr.msk.f32.mxu0 %vm84_vm1, %v24_v21  ;;  %v25_v23 = vld [vmem:[%s2304_s0 + $0x48] sm:$0xff]  ;;  %v56_v24 = vld [vmem:[%s2304_s0 + $0x140] sm:$0xff]  ;;  %1295 = vmatmul.mubr.msk.f32.gmra.mrb[6].mxu1 %vm84_vm1, %v55_v22  ;;  %vm666_vm4 = vcmask 64512   ;;  %vm864_vm5 = vcmask 57344  }
  0x1a   :  { %v26_v25 = vld [vmem:[%s2304_s0 + $0x50] sm:$0xff]  ;;  %1297 = vmatprep.mubr.msk.f32.mxu1 %vm84_vm1, %v56_v24  ;;  %v57_v26 = vld [vmem:[%s2304_s0 + $0x148] sm:$0xff]  ;;  %v27_v27 = vld [vmem:[%s2304_s0 + $0x58] sm:$0xff]  ;;  %s1400_s5 = smov [#allocation4]  }
  0x1b   :  { %v58_v28 = vld [vmem:[%s2304_s0 + $0x150] sm:$0xff]  ;;  %v28_v29 = vld [vmem:[%s2304_s0 + $0x60] sm:$0xff]  ;;  %v59_v30 = vld [vmem:[%s2304_s0 + $0x158] sm:$0xff]  ;;  %s1082_s6 = sshll.u32 %s1400_s5, 4  ;;  %s2271_s6 = int_to_ptr.vmem [resolvable:$true] %s1082_s6 }
  0x1c   :  { %1250 = vmatmul.mubr.msk.f32.gmra.mrb[8].mxu0 %vm84_vm1, %v25_v23  ;;  %v29_v31 = vld [vmem:[%s2304_s0 + $0x68] sm:$0xff]  ;;  %v60_v32 = vld [vmem:[%s2304_s0 + $0x160] sm:$0xff]  ;;  %v30_v33 = vld [vmem:[%s2304_s0 + $0x70] sm:$0xff] }
  0x1d   :  { %1252 = vmatprep.mubr.msk.f32.mxu0 %vm84_vm1, %v26_v25  ;;  %1298 = vmatmul.mubr.msk.f32.gmra.mrb[8].mxu1 %vm84_vm1, %v57_v26  ;;  %v61_v34 = vld [vmem:[%s2304_s0 + $0x168] sm:$0xff]  ;;  %v31_v35 = vld [vmem:[%s2304_s0 + $0x78] sm:$0xff]  ;;  %v62_v36 = vld [vmem:[%s2304_s0 + $0x170] sm:$0xff] }
  0x1e   :  { %1300 = vmatprep.mubr.msk.f32.mxu1 %vm84_vm1, %v58_v28  ;;  %v32_v37 = vld [vmem:[%s2304_s0 + $0x80] sm:$0xff]  ;;  %v63_v38 = vld [vmem:[%s2304_s0 + $0x178] sm:$0xff]  ;;  %v33_v39 = vld [vmem:[%s2304_s0 + $0x88] sm:$0xff] }
  0x1f   :  { %v64_v40 = vld [vmem:[%s2304_s0 + $0x180] sm:$0xff]  ;;  %v34_v41 = vld [vmem:[%s2304_s0 + $0x90] sm:$0xff]  ;;  %v65_v42 = vld [vmem:[%s2304_s0 + $0x188] sm:$0xff] }
  0x20   :  { %1253 = vmatmul.mubr.msk.f32.gmra.mrb[10].mxu0 %vm84_vm1, %v27_v27  ;;  %v35_v43 = vld [vmem:[%s2304_s0 + $0x98] sm:$0xff]  ;;  %v66_v44 = vld [vmem:[%s2304_s0 + $0x190] sm:$0xff]  ;;  %v36_v45 = vld [vmem:[%s2304_s0 + $0xa0] sm:$0xff] }
  0x21   :  { %1255 = vmatprep.mubr.msk.f32.mxu0 %vm84_vm1, %v28_v29  ;;  %1301 = vmatmul.mubr.msk.f32.gmra.mrb[10].mxu1 %vm84_vm1, %v59_v30  ;;  %v67_v46 = vld [vmem:[%s2304_s0 + $0x198] sm:$0xff]  ;;  %v37_v47 = vld [vmem:[%s2304_s0 + $0xa8] sm:$0xff]  ;;  %v68_v48 = vld [vmem:[%s2304_s0 + $0x1a0] sm:$0xff] }
  0x22   :  { %1303 = vmatprep.mubr.msk.f32.mxu1 %vm84_vm1, %v60_v32  ;;  %v38_v49 = vld [vmem:[%s2304_s0 + $0xb0] sm:$0xff]  ;;  %v69_v50 = vld [vmem:[%s2304_s0 + $0x1a8] sm:$0xff]  ;;  %v39_v51 = vld [vmem:[%s2304_s0 + $0xb8] sm:$0xff] }
  0x23   :  { %v70_v52 = vld [vmem:[%s2304_s0 + $0x1b0] sm:$0xff]  ;;  %v40_v53 = vld [vmem:[%s2304_s0 + $0xc0] sm:$0xff]  ;;  %v71_v54 = vld [vmem:[%s2304_s0 + $0x1b8] sm:$0xff] }
  0x24   :  { %1256 = vmatmul.mubr.msk.f32.gmra.mrb[12].mxu0 %vm84_vm1, %v29_v31  ;;  %v41_v55 = vld [vmem:[%s2304_s0 + $0xc8] sm:$0xff]  ;;  %v72_v56 = vld [vmem:[%s2304_s0 + $0x1c0] sm:$0xff]  ;;  %v42_v57 = vld [vmem:[%s2304_s0 + $0xd0] sm:$0xff] }
  0x25   :  { %1258 = vmatprep.mubr.msk.f32.mxu0 %vm84_vm1, %v30_v33  ;;  %1304 = vmatmul.mubr.msk.f32.gmra.mrb[12].mxu1 %vm84_vm1, %v61_v34  ;;  %v73_v58 = vld [vmem:[%s2304_s0 + $0x1c8] sm:$0xff]  ;;  %v43_v59 = vld [vmem:[%s2304_s0 + $0xd8] sm:$0xff]  ;;  %v74_v60 = vld [vmem:[%s2304_s0 + $0x1d0] sm:$0xff] }
  0x26   :  { %1306 = vmatprep.mubr.msk.f32.mxu1 %vm84_vm1, %v62_v36  ;;  %v44_v61 = vld [vmem:[%s2304_s0 + $0xe0] sm:$0xff]  ;;  %v75_v62 = vld [vmem:[%s2304_s0 + $0x1d8] sm:$0xff]  ;;  %v45_v63 = vld [vmem:[%s2304_s0 + $0xe8] sm:$0xff] }
  0x27   :  { %v76_v0 = vld [vmem:[%s2304_s0 + $0x1e0] sm:$0xff]  ;;  %v46_v1 = vld [vmem:[%s2304_s0 + $0xf0] sm:$0xff]  ;;  %v77_v2 = vld [vmem:[%s2304_s0 + $0x1e8] sm:$0xff] }
  0x28   :  { %1259 = vmatmul.mubr.msk.f32.gmra.mrb[14].mxu0 %vm84_vm1, %v31_v35  ;;  %v47_v3 = vld [vmem:[%s2304_s0 + $0xf8] sm:$0xff]  ;;  %v78_v4 = vld [vmem:[%s2304_s0 + $0x1f0] sm:$0xff] }
  0x29   :  { %1261 = vmatprep.mubr.msk.f32.mxu0 %vm84_vm1, %v32_v37  ;;  %1307 = vmatmul.mubr.msk.f32.gmra.mrb[14].mxu1 %vm84_vm1, %v63_v38  ;;  %v79_v5 = vld [vmem:[%s2304_s0 + $0x1f8] sm:$0xff] }
  0x2a   :  { %1309 = vmatprep.mubr.msk.f32.mxu1 %vm84_vm1, %v64_v40 }
  0x2c   :  { %1262 = vmatmul.mubr.msk.f32.gmra.mrb[16].mxu0 %vm84_vm1, %v33_v39 }
  0x2d   :  { %1264 = vmatprep.mubr.msk.f32.mxu0 %vm84_vm1, %v34_v41  ;;  %1310 = vmatmul.mubr.msk.f32.gmra.mrb[16].mxu1 %vm84_vm1, %v65_v42 }
  0x2e   :  { %1312 = vmatprep.mubr.msk.f32.mxu1 %vm84_vm1, %v66_v44 }
  0x30   :  { %1265 = vmatmul.mubr.msk.f32.gmra.mrb[18].mxu0 %vm84_vm1, %v35_v43 }
  0x31   :  { %1267 = vmatprep.mubr.msk.f32.mxu0 %vm84_vm1, %v36_v45  ;;  %1313 = vmatmul.mubr.msk.f32.gmra.mrb[18].mxu1 %vm84_vm1, %v67_v46 }
  0x32   :  { %1315 = vmatprep.mubr.msk.f32.mxu1 %vm84_vm1, %v68_v48 }
  0x34   :  { %1268 = vmatmul.mubr.msk.f32.gmra.mrb[20].mxu0 %vm84_vm1, %v37_v47 }
  0x35   :  { %1270 = vmatprep.mubr.msk.f32.mxu0 %vm84_vm1, %v38_v49  ;;  %1316 = vmatmul.mubr.msk.f32.gmra.mrb[20].mxu1 %vm84_vm1, %v69_v50 }
  0x36   :  { %1318 = vmatprep.mubr.msk.f32.mxu1 %vm84_vm1, %v70_v52 }
  0x38   :  { %1271 = vmatmul.mubr.msk.f32.gmra.mrb[22].mxu0 %vm84_vm1, %v39_v51 }
  0x39   :  { %1273 = vmatprep.mubr.msk.f32.mxu0 %vm84_vm1, %v40_v53  ;;  %1319 = vmatmul.mubr.msk.f32.gmra.mrb[22].mxu1 %vm84_vm1, %v71_v54 }
  0x3a   :  { %1321 = vmatprep.mubr.msk.f32.mxu1 %vm84_vm1, %v72_v56 }
  0x3c   :  { %1274 = vmatmul.mubr.msk.f32.gmra.mrb[24].mxu0 %vm84_vm1, %v41_v55 }
  0x3d   :  { %1276 = vmatprep.mubr.msk.f32.mxu0 %vm84_vm1, %v42_v57  ;;  %1322 = vmatmul.mubr.msk.f32.gmra.mrb[24].mxu1 %vm84_vm1, %v73_v58 }
  0x3e   :  { %1324 = vmatprep.mubr.msk.f32.mxu1 %vm84_vm1, %v74_v60 }
  0x40   :  { %1277 = vmatmul.mubr.msk.f32.gmra.mrb[26].mxu0 %vm84_vm1, %v43_v59 }
  0x41   :  { %1279 = vmatprep.mubr.msk.f32.mxu0 %vm84_vm1, %v44_v61  ;;  %1325 = vmatmul.mubr.msk.f32.gmra.mrb[26].mxu1 %vm84_vm1, %v75_v62 }
  0x42   :  { %1327 = vmatprep.mubr.msk.f32.mxu1 %vm84_vm1, %v76_v0 }
  0x44   :  { %1280 = vmatmul.mubr.msk.f32.gmra.mrb[28].mxu0 %vm84_vm1, %v45_v63 }
  0x45   :  { %1282 = vmatprep.mubr.msk.f32.mxu0 %vm84_vm1, %v46_v1  ;;  %1328 = vmatmul.mubr.msk.f32.gmra.mrb[28].mxu1 %vm84_vm1, %v77_v2 }
  0x46   :  { %1330 = vmatprep.mubr.msk.f32.mxu1 %vm84_vm1, %v78_v4 }
  0x48   :  { %1283 = vmatmul.mubr.msk.f32.gmra.mrb[30].mxu0 %vm84_vm1, %v47_v3 }
  0x49   :  { %1331 = vmatmul.mubr.msk.f32.gmra.mrb[30].mxu1 %vm84_vm1, %v79_v5 }
  0xdf   :  { %v1239_v6 = vpop.f32.mrb[0].mxu0  ;;  %v1705_v14 = vpop.f32.mrb[0].mxu1 }
  0xe0   :  { %668 = vst.msk [vmem:[%s2306_s2 + $0x8] sm:$0xff] %vm666_vm4, %v1239_v6  ;;  %v732_v7 = vsel %vm666_vm4, %v1239_v6, 0.0  ;;  %v867_v8 = vmul.f32 %v1239_v6, %v1239_v6  ;;  %v347_v9 = vpop.f32.mrb[1].mxu0  ;;  %700 = vst.msk [vmem:[%s2306_s2 + $0x108] sm:$0xff] %vm666_vm4, %v1705_v14  ;;  %v1713_v17 = vpop.f32.mrb[1].mxu1 }
  0xe1   :  { %667 = vst.msk [vmem:[%s2306_s2] sm:$0xff] %vm666_vm4, %v347_v9  ;;  %v731_v10 = vsel %vm666_vm4, %v347_v9, 0.0  ;;  %v866_v11 = vmul.f32 %v347_v9, %v347_v9  ;;  %699 = vst.msk [vmem:[%s2306_s2 + $0x100] sm:$0xff] %vm666_vm4, %v1713_v17 }
  0xe2   :  { %v931_v12 = vsel %vm666_vm4, %v867_v8, 0.0  ;;  %v733_v13 = vadd.f32 %v732_v7, %v731_v10 }
  0xe3   :  { %v930_v15 = vsel %vm666_vm4, %v866_v11, 0.0  ;;  %v1242_v16 = vpop.f32.mrb[2].mxu0  ;;  %v1729_v24 = vpop.f32.mrb[2].mxu1 }
  0xe4   :  { %v932_v18 = vadd.f32 %v931_v12, %v930_v15  ;;  %670 = vst.msk [vmem:[%s2306_s2 + $0x18] sm:$0xff] %vm666_vm4, %v1242_v16  ;;  %v357_v19 = vpop.f32.mrb[3].mxu0  ;;  %v869_v20 = vmul.f32 %v1242_v16, %v1242_v16  ;;  %v736_v25 = vsel %vm666_vm4, %v1242_v16, 0.0  ;;  %702 = vst.msk [vmem:[%s2306_s2 + $0x118] sm:$0xff] %vm666_vm4, %v1729_v24  ;;  %v1738_v28 = vpop.f32.mrb[3].mxu1 }
  0xe5   :  { %669 = vst.msk [vmem:[%s2306_s2 + $0x10] sm:$0xff] %vm666_vm4, %v357_v19  ;;  %v734_v21 = vsel %vm666_vm4, %v357_v19, 0.0  ;;  %v868_v22 = vmul.f32 %v357_v19, %v357_v19  ;;  %701 = vst.msk [vmem:[%s2306_s2 + $0x110] sm:$0xff] %vm666_vm4, %v1738_v28 }
  0xe6   :  { %v735_v23 = vadd.f32 %v734_v21, %v733_v13  ;;  %v935_v32 = vsel %vm666_vm4, %v869_v20, 0.0 }
  0xe7   :  { %v933_v26 = vsel %vm666_vm4, %v868_v22, 0.0  ;;  %v1245_v27 = vpop.f32.mrb[4].mxu0  ;;  %v1755_v38 = vpop.f32.mrb[4].mxu1 }
  0xe8   :  { %v934_v29 = vadd.f32 %v933_v26, %v932_v18  ;;  %672 = vst.msk [vmem:[%s2306_s2 + $0x28] sm:$0xff] %vm666_vm4, %v1245_v27  ;;  %v367_v30 = vpop.f32.mrb[5].mxu0  ;;  %v737_v31 = vadd.f32 %v736_v25, %v735_v23  ;;  %v871_v33 = vmul.f32 %v1245_v27, %v1245_v27  ;;  %v740_v39 = vsel %vm666_vm4, %v1245_v27, 0.0  ;;  %704 = vst.msk [vmem:[%s2306_s2 + $0x128] sm:$0xff] %vm666_vm4, %v1755_v38  ;;  %v1764_v42 = vpop.f32.mrb[5].mxu1 }
  0xe9   :  { %671 = vst.msk [vmem:[%s2306_s2 + $0x20] sm:$0xff] %vm666_vm4, %v367_v30  ;;  %v738_v34 = vsel %vm666_vm4, %v367_v30, 0.0  ;;  %v870_v35 = vmul.f32 %v367_v30, %v367_v30  ;;  %703 = vst.msk [vmem:[%s2306_s2 + $0x120] sm:$0xff] %vm666_vm4, %v1764_v42 }
  0xea   :  { %v739_v36 = vadd.f32 %v738_v34, %v737_v31  ;;  %v936_v37 = vadd.f32 %v935_v32, %v934_v29  ;;  %v939_v46 = vsel %vm666_vm4, %v871_v33, 0.0 }
  0xeb   :  { %v937_v40 = vsel %vm666_vm4, %v870_v35, 0.0  ;;  %v1248_v41 = vpop.f32.mrb[6].mxu0 }
  0xec   :  { %v938_v43 = vadd.f32 %v937_v40, %v936_v37  ;;  %674 = vst.msk [vmem:[%s2306_s2 + $0x38] sm:$0xff] %vm666_vm4, %v1248_v41  ;;  %v377_v44 = vpop.f32.mrb[7].mxu0  ;;  %v741_v45 = vadd.f32 %v740_v39, %v739_v36  ;;  %v873_v47 = vmul.f32 %v1248_v41, %v1248_v41  ;;  %v1781_v52 = vpop.f32.mrb[6].mxu1  ;;  %v744_v53 = vsel %vm666_vm4, %v1248_v41, 0.0 }
  0xed   :  { %673 = vst.msk [vmem:[%s2306_s2 + $0x30] sm:$0xff] %vm666_vm4, %v377_v44  ;;  %v742_v48 = vsel %vm666_vm4, %v377_v44, 0.0  ;;  %v872_v49 = vmul.f32 %v377_v44, %v377_v44  ;;  %706 = vst.msk [vmem:[%s2306_s2 + $0x138] sm:$0xff] %vm666_vm4, %v1781_v52  ;;  %v1790_v56 = vpop.f32.mrb[7].mxu1 }
  0xee   :  { %v743_v50 = vadd.f32 %v742_v48, %v741_v45  ;;  %v940_v51 = vadd.f32 %v939_v46, %v938_v43  ;;  %705 = vst.msk [vmem:[%s2306_s2 + $0x130] sm:$0xff] %vm666_vm4, %v1790_v56  ;;  %v943_v60 = vsel %vm666_vm4, %v873_v47, 0.0 }
  0xef   :  { %v941_v54 = vsel %vm666_vm4, %v872_v49, 0.0  ;;  %v1251_v55 = vpop.f32.mrb[8].mxu0 }
  0xf0   :  { %v942_v57 = vadd.f32 %v941_v54, %v940_v51  ;;  %676 = vst.msk [vmem:[%s2306_s2 + $0x48] sm:$0xff] %vm666_vm4, %v1251_v55  ;;  %v387_v58 = vpop.f32.mrb[9].mxu0  ;;  %v745_v59 = vadd.f32 %v744_v53, %v743_v50  ;;  %v875_v61 = vmul.f32 %v1251_v55, %v1251_v55  ;;  %v1807_v2 = vpop.f32.mrb[8].mxu1  ;;  %v748_v3 = vsel %vm666_vm4, %v1251_v55, 0.0 }
  0xf1   :  { %675 = vst.msk [vmem:[%s2306_s2 + $0x40] sm:$0xff] %vm666_vm4, %v387_v58  ;;  %v746_v62 = vsel %vm666_vm4, %v387_v58, 0.0  ;;  %v874_v63 = vmul.f32 %v387_v58, %v387_v58  ;;  %708 = vst.msk [vmem:[%s2306_s2 + $0x148] sm:$0xff] %vm666_vm4, %v1807_v2  ;;  %v1816_v6 = vpop.f32.mrb[9].mxu1 }
  0xf2   :  { %v747_v0 = vadd.f32 %v746_v62, %v745_v59  ;;  %v944_v1 = vadd.f32 %v943_v60, %v942_v57  ;;  %707 = vst.msk [vmem:[%s2306_s2 + $0x140] sm:$0xff] %vm666_vm4, %v1816_v6  ;;  %v947_v10 = vsel %vm666_vm4, %v875_v61, 0.0 }
  0xf3   :  { %v945_v4 = vsel %vm666_vm4, %v874_v63, 0.0  ;;  %v1254_v5 = vpop.f32.mrb[10].mxu0 }
  0xf4   :  { %v946_v7 = vadd.f32 %v945_v4, %v944_v1  ;;  %678 = vst.msk [vmem:[%s2306_s2 + $0x58] sm:$0xff] %vm666_vm4, %v1254_v5  ;;  %v397_v8 = vpop.f32.mrb[11].mxu0  ;;  %v749_v9 = vadd.f32 %v748_v3, %v747_v0  ;;  %v877_v11 = vmul.f32 %v1254_v5, %v1254_v5  ;;  %v1833_v18 = vpop.f32.mrb[10].mxu1  ;;  %v752_v19 = vsel %vm666_vm4, %v1254_v5, 0.0 }
  0xf5   :  { %677 = vst.msk [vmem:[%s2306_s2 + $0x50] sm:$0xff] %vm666_vm4, %v397_v8  ;;  %v750_v12 = vsel %vm666_vm4, %v397_v8, 0.0  ;;  %v876_v13 = vmul.f32 %v397_v8, %v397_v8  ;;  %710 = vst.msk [vmem:[%s2306_s2 + $0x158] sm:$0xff] %vm666_vm4, %v1833_v18  ;;  %v1842_v22 = vpop.f32.mrb[11].mxu1 }
  0xf6   :  { %v751_v15 = vadd.f32 %v750_v12, %v749_v9  ;;  %v948_v16 = vadd.f32 %v947_v10, %v946_v7  ;;  %709 = vst.msk [vmem:[%s2306_s2 + $0x150] sm:$0xff] %vm666_vm4, %v1842_v22  ;;  %v951_v27 = vsel %vm666_vm4, %v877_v11, 0.0 }
  0xf7   :  { %v949_v20 = vsel %vm666_vm4, %v876_v13, 0.0  ;;  %v1257_v21 = vpop.f32.mrb[12].mxu0 }
  0xf8   :  { %v950_v23 = vadd.f32 %v949_v20, %v948_v16  ;;  %680 = vst.msk [vmem:[%s2306_s2 + $0x68] sm:$0xff] %vm666_vm4, %v1257_v21  ;;  %v407_v25 = vpop.f32.mrb[13].mxu0  ;;  %v753_v26 = vadd.f32 %v752_v19, %v751_v15  ;;  %v879_v29 = vmul.f32 %v1257_v21, %v1257_v21  ;;  %v1859_v34 = vpop.f32.mrb[12].mxu1  ;;  %v756_v35 = vsel %vm666_vm4, %v1257_v21, 0.0 }
  0xf9   :  { %679 = vst.msk [vmem:[%s2306_s2 + $0x60] sm:$0xff] %vm666_vm4, %v407_v25  ;;  %v754_v30 = vsel %vm666_vm4, %v407_v25, 0.0  ;;  %v878_v31 = vmul.f32 %v407_v25, %v407_v25  ;;  %712 = vst.msk [vmem:[%s2306_s2 + $0x168] sm:$0xff] %vm666_vm4, %v1859_v34  ;;  %v1868_v39 = vpop.f32.mrb[13].mxu1 }
  0xfa   :  { %v755_v32 = vadd.f32 %v754_v30, %v753_v26  ;;  %v952_v33 = vadd.f32 %v951_v27, %v950_v23  ;;  %711 = vst.msk [vmem:[%s2306_s2 + $0x160] sm:$0xff] %vm666_vm4, %v1868_v39  ;;  %v955_v44 = vsel %vm666_vm4, %v879_v29, 0.0 }
  0xfb   :  { %v953_v36 = vsel %vm666_vm4, %v878_v31, 0.0  ;;  %v1260_v37 = vpop.f32.mrb[14].mxu0 }
  0xfc   :  { %v954_v40 = vadd.f32 %v953_v36, %v952_v33  ;;  %682 = vst.msk [vmem:[%s2306_s2 + $0x78] sm:$0xff] %vm666_vm4, %v1260_v37  ;;  %v417_v41 = vpop.f32.mrb[15].mxu0  ;;  %v757_v43 = vadd.f32 %v756_v35, %v755_v32  ;;  %v881_v45 = vmul.f32 %v1260_v37, %v1260_v37  ;;  %v1885_v50 = vpop.f32.mrb[14].mxu1  ;;  %v760_v51 = vsel %vm666_vm4, %v1260_v37, 0.0 }
  0xfd   :  { %681 = vst.msk [vmem:[%s2306_s2 + $0x70] sm:$0xff] %vm666_vm4, %v417_v41  ;;  %v758_v46 = vsel %vm666_vm4, %v417_v41, 0.0  ;;  %v880_v47 = vmul.f32 %v417_v41, %v417_v41  ;;  %714 = vst.msk [vmem:[%s2306_s2 + $0x178] sm:$0xff] %vm666_vm4, %v1885_v50  ;;  %v1894_v55 = vpop.f32.mrb[15].mxu1 }
  0xfe   :  { %v759_v48 = vadd.f32 %v758_v46, %v757_v43  ;;  %v956_v49 = vadd.f32 %v955_v44, %v954_v40  ;;  %713 = vst.msk [vmem:[%s2306_s2 + $0x170] sm:$0xff] %vm666_vm4, %v1894_v55  ;;  %v959_v60 = vsel %vm666_vm4, %v881_v45, 0.0 }
  0xff   :  { %v957_v53 = vsel %vm666_vm4, %v880_v47, 0.0  ;;  %v1263_v54 = vpop.f32.mrb[16].mxu0 }
 0x100   :  { %v958_v57 = vadd.f32 %v957_v53, %v956_v49  ;;  %684 = vst.msk [vmem:[%s2306_s2 + $0x88] sm:$0xff] %vm666_vm4, %v1263_v54  ;;  %v427_v58 = vpop.f32.mrb[17].mxu0  ;;  %v761_v59 = vadd.f32 %v760_v51, %v759_v48  ;;  %v883_v61 = vmul.f32 %v1263_v54, %v1263_v54  ;;  %v1911_v3 = vpop.f32.mrb[16].mxu1  ;;  %v764_v4 = vsel %vm666_vm4, %v1263_v54, 0.0 }
 0x101   :  { %683 = vst.msk [vmem:[%s2306_s2 + $0x80] sm:$0xff] %vm666_vm4, %v427_v58  ;;  %v762_v62 = vsel %vm666_vm4, %v427_v58, 0.0  ;;  %v882_v63 = vmul.f32 %v427_v58, %v427_v58  ;;  %716 = vst.msk [vmem:[%s2306_s2 + $0x188] sm:$0xff] %vm666_vm4, %v1911_v3  ;;  %v1920_v8 = vpop.f32.mrb[17].mxu1 }
 0x102   :  { %v763_v0 = vadd.f32 %v762_v62, %v761_v59  ;;  %v960_v1 = vadd.f32 %v959_v60, %v958_v57  ;;  %715 = vst.msk [vmem:[%s2306_s2 + $0x180] sm:$0xff] %vm666_vm4, %v1920_v8  ;;  %v963_v12 = vsel %vm666_vm4, %v883_v61, 0.0 }
 0x103   :  { %v961_v5 = vsel %vm666_vm4, %v882_v63, 0.0  ;;  %v1266_v7 = vpop.f32.mrb[18].mxu0 }
 0x104   :  { %v962_v9 = vadd.f32 %v961_v5, %v960_v1  ;;  %686 = vst.msk [vmem:[%s2306_s2 + $0x98] sm:$0xff] %vm666_vm4, %v1266_v7  ;;  %v437_v10 = vpop.f32.mrb[19].mxu0  ;;  %v765_v11 = vadd.f32 %v764_v4, %v763_v0  ;;  %v885_v13 = vmul.f32 %v1266_v7, %v1266_v7  ;;  %v1937_v21 = vpop.f32.mrb[18].mxu1  ;;  %v768_v23 = vsel %vm666_vm4, %v1266_v7, 0.0 }
 0x105   :  { %685 = vst.msk [vmem:[%s2306_s2 + $0x90] sm:$0xff] %vm666_vm4, %v437_v10  ;;  %v766_v15 = vsel %vm666_vm4, %v437_v10, 0.0  ;;  %v884_v16 = vmul.f32 %v437_v10, %v437_v10  ;;  %718 = vst.msk [vmem:[%s2306_s2 + $0x198] sm:$0xff] %vm666_vm4, %v1937_v21  ;;  %v1946_v27 = vpop.f32.mrb[19].mxu1 }
 0x106   :  { %v767_v19 = vadd.f32 %v766_v15, %v765_v11  ;;  %v964_v20 = vadd.f32 %v963_v12, %v962_v9  ;;  %717 = vst.msk [vmem:[%s2306_s2 + $0x190] sm:$0xff] %vm666_vm4, %v1946_v27  ;;  %v967_v32 = vsel %vm666_vm4, %v885_v13, 0.0 }
 0x107   :  { %v965_v25 = vsel %vm666_vm4, %v884_v16, 0.0  ;;  %v1269_v26 = vpop.f32.mrb[20].mxu0 }
 0x108   :  { %v966_v29 = vadd.f32 %v965_v25, %v964_v20  ;;  %688 = vst.msk [vmem:[%s2306_s2 + $0xa8] sm:$0xff] %vm666_vm4, %v1269_v26  ;;  %v447_v30 = vpop.f32.mrb[21].mxu0  ;;  %v769_v31 = vadd.f32 %v768_v23, %v767_v19  ;;  %v887_v33 = vmul.f32 %v1269_v26, %v1269_v26  ;;  %v1963_v41 = vpop.f32.mrb[20].mxu1  ;;  %v772_v43 = vsel %vm666_vm4, %v1269_v26, 0.0 }
 0x109   :  { %687 = vst.msk [vmem:[%s2306_s2 + $0xa0] sm:$0xff] %vm666_vm4, %v447_v30  ;;  %v770_v35 = vsel %vm666_vm4, %v447_v30, 0.0  ;;  %v886_v36 = vmul.f32 %v447_v30, %v447_v30  ;;  %720 = vst.msk [vmem:[%s2306_s2 + $0x1a8] sm:$0xff] %vm666_vm4, %v1963_v41  ;;  %v1972_v46 = vpop.f32.mrb[21].mxu1 }
 0x10a   :  { %v771_v37 = vadd.f32 %v770_v35, %v769_v31  ;;  %v968_v40 = vadd.f32 %v967_v32, %v966_v29  ;;  %719 = vst.msk [vmem:[%s2306_s2 + $0x1a0] sm:$0xff] %vm666_vm4, %v1972_v46  ;;  %v971_v51 = vsel %vm666_vm4, %v887_v33, 0.0 }
 0x10b   :  { %v969_v44 = vsel %vm666_vm4, %v886_v36, 0.0  ;;  %v1272_v45 = vpop.f32.mrb[22].mxu0 }
 0x10c   :  { %v970_v47 = vadd.f32 %v969_v44, %v968_v40  ;;  %690 = vst.msk [vmem:[%s2306_s2 + $0xb8] sm:$0xff] %vm666_vm4, %v1272_v45  ;;  %v457_v48 = vpop.f32.mrb[23].mxu0  ;;  %v773_v49 = vadd.f32 %v772_v43, %v771_v37  ;;  %v889_v53 = vmul.f32 %v1272_v45, %v1272_v45  ;;  %v1989_v60 = vpop.f32.mrb[22].mxu1  ;;  %v776_v61 = vsel %vm666_vm4, %v1272_v45, 0.0 }
 0x10d   :  { %689 = vst.msk [vmem:[%s2306_s2 + $0xb0] sm:$0xff] %vm666_vm4, %v457_v48  ;;  %v774_v54 = vsel %vm666_vm4, %v457_v48, 0.0  ;;  %v888_v57 = vmul.f32 %v457_v48, %v457_v48  ;;  %722 = vst.msk [vmem:[%s2306_s2 + $0x1b8] sm:$0xff] %vm666_vm4, %v1989_v60  ;;  %v1998_v0 = vpop.f32.mrb[23].mxu1 }
 0x10e   :  { %v775_v58 = vadd.f32 %v774_v54, %v773_v49  ;;  %v972_v59 = vadd.f32 %v971_v51, %v970_v47  ;;  %721 = vst.msk [vmem:[%s2306_s2 + $0x1b0] sm:$0xff] %vm666_vm4, %v1998_v0  ;;  %v975_v7 = vsel %vm666_vm4, %v889_v53, 0.0 }
 0x10f   :  { %v973_v62 = vsel %vm666_vm4, %v888_v57, 0.0  ;;  %v1275_v63 = vpop.f32.mrb[24].mxu0 }
 0x110   :  { %v974_v1 = vadd.f32 %v973_v62, %v972_v59  ;;  %692 = vst.msk [vmem:[%s2306_s2 + $0xc8] sm:$0xff] %vm666_vm4, %v1275_v63  ;;  %v467_v4 = vpop.f32.mrb[25].mxu0  ;;  %v777_v5 = vadd.f32 %v776_v61, %v775_v58  ;;  %v891_v9 = vmul.f32 %v1275_v63, %v1275_v63  ;;  %v2015_v15 = vpop.f32.mrb[24].mxu1  ;;  %v780_v16 = vsel %vm666_vm4, %v1275_v63, 0.0 }
 0x111   :  { %691 = vst.msk [vmem:[%s2306_s2 + $0xc0] sm:$0xff] %vm666_vm4, %v467_v4  ;;  %v778_v10 = vsel %vm666_vm4, %v467_v4, 0.0  ;;  %v890_v11 = vmul.f32 %v467_v4, %v467_v4  ;;  %724 = vst.msk [vmem:[%s2306_s2 + $0x1c8] sm:$0xff] %vm666_vm4, %v2015_v15  ;;  %v2024_v23 = vpop.f32.mrb[25].mxu1 }
 0x112   :  { %v779_v12 = vadd.f32 %v778_v10, %v777_v5  ;;  %v976_v13 = vadd.f32 %v975_v7, %v974_v1  ;;  %723 = vst.msk [vmem:[%s2306_s2 + $0x1c0] sm:$0xff] %vm666_vm4, %v2024_v23  ;;  %v979_v30 = vsel %vm666_vm4, %v891_v9, 0.0  ;;  %v898_v10 = vmul.f32 %v1713_v17, %v1713_v17 }
 0x113   :  { %v977_v19 = vsel %vm666_vm4, %v890_v11, 0.0  ;;  %v1278_v20 = vpop.f32.mrb[26].mxu0 }
 0x114   :  { %v978_v25 = vadd.f32 %v977_v19, %v976_v13  ;;  %694 = vst.msk [vmem:[%s2306_s2 + $0xd8] sm:$0xff] %vm666_vm4, %v1278_v20  ;;  %v477_v26 = vpop.f32.mrb[27].mxu0  ;;  %v781_v29 = vadd.f32 %v780_v16, %v779_v12  ;;  %v893_v31 = vmul.f32 %v1278_v20, %v1278_v20  ;;  %v2041_v37 = vpop.f32.mrb[26].mxu1  ;;  %v784_v40 = vsel %vm666_vm4, %v1278_v20, 0.0 }
 0x115   :  { %693 = vst.msk [vmem:[%s2306_s2 + $0xd0] sm:$0xff] %vm666_vm4, %v477_v26  ;;  %v782_v32 = vsel %vm666_vm4, %v477_v26, 0.0  ;;  %v892_v33 = vmul.f32 %v477_v26, %v477_v26  ;;  %726 = vst.msk [vmem:[%s2306_s2 + $0x1d8] sm:$0xff] %vm666_vm4, %v2041_v37  ;;  %v2050_v45 = vpop.f32.mrb[27].mxu1 }
 0x116   :  { %v783_v35 = vadd.f32 %v782_v32, %v781_v29  ;;  %v980_v36 = vadd.f32 %v979_v30, %v978_v25  ;;  %725 = vst.msk [vmem:[%s2306_s2 + $0x1d0] sm:$0xff] %vm666_vm4, %v2050_v45  ;;  %v983_v51 = vsel %vm666_vm4, %v893_v31, 0.0  ;;  %v794_v30 = vsel %vm666_vm4, %v1713_v17, 0.0 }
 0x117   :  { %v981_v43 = vsel %vm666_vm4, %v892_v33, 0.0  ;;  %v1281_v44 = vpop.f32.mrb[28].mxu0  ;;  %v899_v17 = vmul.f32 %v1705_v14, %v1705_v14 }
 0x118   :  { %v982_v47 = vadd.f32 %v981_v43, %v980_v36  ;;  %696 = vst.msk [vmem:[%s2306_s2 + $0xe8] sm:$0xff] %vm666_vm4, %v1281_v44  ;;  %v487_v48 = vpop.f32.mrb[29].mxu0  ;;  %v785_v49 = vadd.f32 %v784_v40, %v783_v35  ;;  %v895_v53 = vmul.f32 %v1281_v44, %v1281_v44  ;;  %v2067_v61 = vpop.f32.mrb[28].mxu1  ;;  %v788_v62 = vsel %vm666_vm4, %v1281_v44, 0.0 }
 0x119   :  { %695 = vst.msk [vmem:[%s2306_s2 + $0xe0] sm:$0xff] %vm666_vm4, %v487_v48  ;;  %v786_v54 = vsel %vm666_vm4, %v487_v48, 0.0  ;;  %v894_v57 = vmul.f32 %v487_v48, %v487_v48  ;;  %728 = vst.msk [vmem:[%s2306_s2 + $0x1e8] sm:$0xff] %vm666_vm4, %v2067_v61  ;;  %v2076_v4 = vpop.f32.mrb[29].mxu1  ;;  %v993_v36 = vsel %vm666_vm4, %v898_v10, 0.0  ;;  %v900_v40 = vmul.f32 %v1738_v28, %v1738_v28 }
 0x11a   :  { %v787_v58 = vadd.f32 %v786_v54, %v785_v49  ;;  %v984_v59 = vadd.f32 %v983_v51, %v982_v47  ;;  %727 = vst.msk [vmem:[%s2306_s2 + $0x1e0] sm:$0xff] %vm666_vm4, %v2076_v4  ;;  %v987_v11 = vsel %vm666_vm4, %v895_v53, 0.0  ;;  %v796_v47 = vsel %vm666_vm4, %v1705_v14, 0.0 }
 0x11b   :  { %v985_v63 = vsel %vm666_vm4, %v894_v57, 0.0  ;;  %v1284_v1 = vpop.f32.mrb[30].mxu0  ;;  %v798_v48 = vsel %vm666_vm4, %v1738_v28, 0.0  ;;  %v995_v53 = vsel %vm666_vm4, %v899_v17, 0.0  ;;  %v901_v54 = vmul.f32 %v1729_v24, %v1729_v24 }
 0x11c   :  { %v986_v5 = vadd.f32 %v985_v63, %v984_v59  ;;  %698 = vst.msk [vmem:[%s2306_s2 + $0xf8] sm:$0xff] %vm666_vm4, %v1284_v1  ;;  %v497_v7 = vpop.f32.mrb[31].mxu0  ;;  %v789_v9 = vadd.f32 %v788_v62, %v787_v58  ;;  %v897_v12 = vmul.f32 %v1284_v1, %v1284_v1  ;;  %v2095_v25 = vpop.f32.mrb[30].mxu1  ;;  %v792_v26 = vsel %vm666_vm4, %v1284_v1, 0.0 }
 0x11d   :  { %697 = vst.msk [vmem:[%s2306_s2 + $0xf0] sm:$0xff] %vm666_vm4, %v497_v7  ;;  %v790_v13 = vsel %vm666_vm4, %v497_v7, 0.0  ;;  %v896_v16 = vmul.f32 %v497_v7, %v497_v7  ;;  %730 = vst.msk [vmem:[%s2306_s2 + $0x1f8] sm:$0xff] %vm666_vm4, %v2095_v25  ;;  %v2106_v31 = vpop.f32.mrb[31].mxu1  ;;  %v997_v57 = vsel %vm666_vm4, %v900_v40, 0.0  ;;  %v902_v58 = vmul.f32 %v1764_v42, %v1764_v42 }
 0x11e   :  { %v791_v19 = vadd.f32 %v790_v13, %v789_v9  ;;  %v988_v20 = vadd.f32 %v987_v11, %v986_v5  ;;  %729 = vst.msk [vmem:[%s2306_s2 + $0x1f0] sm:$0xff] %vm666_vm4, %v2106_v31  ;;  %v991_v35 = vsel %vm666_vm4, %v897_v12, 0.0  ;;  %v800_v14 = vsel %vm666_vm4, %v1729_v24, 0.0  ;;  %s1399_s2 = smov [#allocation2]  }
 0x11f   :  { %v989_v29 = vsel %vm666_vm4, %v896_v16, 0.0  ;;  %v802_v28 = vsel %vm666_vm4, %v1764_v42, 0.0  ;;  %v999_v5 = vsel %vm666_vm4, %v901_v54, 0.0  ;;  %v903_v7 = vmul.f32 %v1755_v38, %v1755_v38  ;;  %s1072_s30 = sshll.u32 %s1399_s2, 4  ;;  %s1073_s30 = int_to_ptr.vmem [resolvable:$true] %s1072_s30 }
 0x120   :  { %v793_v32 = vadd.f32 %v792_v26, %v791_v19  ;;  %v990_v33 = vadd.f32 %v989_v29, %v988_v20  ;;  %v1001_v9 = vsel %vm666_vm4, %v902_v58, 0.0  ;;  %v904_v10 = vmul.f32 %v1790_v56, %v1790_v56  ;;  %s1350_s7 = scalar_lea.vmem %s1073_s30, 16  ;;  %s1354_s8 = scalar_lea.vmem %s1073_s30, 32 }
 0x121   :  { %v804_v24 = vsel %vm666_vm4, %v1755_v38, 0.0  ;;  %v806_v42 = vsel %vm666_vm4, %v1790_v56, 0.0  ;;  %v1003_v19 = vsel %vm666_vm4, %v903_v7, 0.0  ;;  %v905_v20 = vmul.f32 %v1781_v52, %v1781_v52  ;;  %p1351_p0 = scmp.ne.s32.totalorder %s1073_s30, %s1350_s7  ;;  %p1355_p1 = scmp.lt.s32.totalorder %s1073_s30, %s1073_s30 }
 0x122   :  { %v992_v43 = vadd.f32 %v991_v35, %v990_v33  ;;  %v795_v44 = vadd.f32 %v794_v30, %v793_v32  ;;  %v1005_v26 = vsel %vm666_vm4, %v904_v10, 0.0  ;;  %v906_v29 = vmul.f32 %v1816_v6, %v1816_v6  ;;  %p1356_p2 = scmp.lt.s32.totalorder %s1354_s8, %s1350_s7 }
 0x123   :  { %v808_v38 = vsel %vm666_vm4, %v1781_v52, 0.0  ;;  %v810_v56 = vsel %vm666_vm4, %v1816_v6, 0.0  ;;  %v1007_v17 = vsel %vm666_vm4, %v905_v20, 0.0  ;;  %v812_v52 = vsel %vm666_vm4, %v1807_v2, 0.0 }
 0x124   :  { %v994_v49 = vadd.f32 %v993_v36, %v992_v43  ;;  %v797_v51 = vadd.f32 %v796_v47, %v795_v44  ;;  %v907_v36 = vmul.f32 %v1807_v2, %v1807_v2  ;;  %v1009_v40 = vsel %vm666_vm4, %v906_v29, 0.0  ;;  %p1357_p3 = por %p1356_p2, %p1355_p1 }
 0x125   :  { %v908_v43 = vmul.f32 %v1842_v22, %v1842_v22  ;;  %v814_v6 = vsel %vm666_vm4, %v1842_v22, 0.0  ;;  %v816_v2 = vsel %vm666_vm4, %v1833_v18, 0.0  ;;  %v818_v22 = vsel %vm666_vm4, %v1868_v39, 0.0 }
 0x126   :  { %v799_v59 = vadd.f32 %v798_v48, %v797_v51  ;;  %v996_v62 = vadd.f32 %v995_v53, %v994_v49  ;;  %v1011_v51 = vsel %vm666_vm4, %v907_v36, 0.0  ;;  %v909_v53 = vmul.f32 %v1833_v18, %v1833_v18  ;;  %p1358_p4 = pnand %p1357_p3, %p1351_p0 }
 0x127   :  { %v1013_v54 = vsel %vm666_vm4, %v908_v43, 0.0  ;;  %v820_v18 = vsel %vm666_vm4, %v1859_v34, 0.0 }
 0x128   :  { %v998_v63 = vadd.f32 %v997_v57, %v996_v62  ;;  %v801_v1 = vadd.f32 %v800_v14, %v799_v59  ;;  %v910_v57 = vmul.f32 %v1868_v39, %v1868_v39  ;;  %v822_v39 = vsel %vm666_vm4, %v1894_v55, 0.0 }
 0x12a   :  { %v803_v11 = vadd.f32 %v802_v28, %v801_v1  ;;  %v1000_v12 = vadd.f32 %v999_v5, %v998_v63  ;;  %v1015_v28 = vsel %vm666_vm4, %v909_v53, 0.0  ;;  %v911_v63 = vmul.f32 %v1859_v34, %v1859_v34 }
 0x12b   :  { %v1017_v1 = vsel %vm666_vm4, %v910_v57, 0.0  ;;  %v912_v5 = vmul.f32 %v1894_v55, %v1894_v55  ;;  %v824_v34 = vsel %vm666_vm4, %v1885_v50, 0.0  ;;  %v826_v55 = vsel %vm666_vm4, %v1920_v8, 0.0 }
 0x12c   :  { %v1002_v13 = vadd.f32 %v1001_v9, %v1000_v12  ;;  %v805_v16 = vadd.f32 %v804_v24, %v803_v11  ;;  %v1019_v12 = vsel %vm666_vm4, %v911_v63, 0.0  ;;  %v913_v24 = vmul.f32 %v1885_v50, %v1885_v50 }
 0x12d   :  { %v828_v50 = vsel %vm666_vm4, %v1911_v3, 0.0 }
 0x12e   :  { %v807_v30 = vadd.f32 %v806_v42, %v805_v16  ;;  %v1004_v32 = vadd.f32 %v1003_v19, %v1002_v13  ;;  %v1021_v42 = vsel %vm666_vm4, %v912_v5, 0.0  ;;  %v914_v13 = vmul.f32 %v1920_v8, %v1920_v8 }
 0x12f   :  { %v1023_v29 = vsel %vm666_vm4, %v913_v24, 0.0  ;;  %v830_v8 = vsel %vm666_vm4, %v1946_v27, 0.0 }
 0x130   :  { %v1006_v33 = vadd.f32 %v1005_v26, %v1004_v32  ;;  %v809_v35 = vadd.f32 %v808_v38, %v807_v30  ;;  %v915_v30 = vmul.f32 %v1911_v3, %v1911_v3  ;;  %v1025_v32 = vsel %vm666_vm4, %v914_v13, 0.0 }
 0x131   :  { %v916_v38 = vmul.f32 %v1946_v27, %v1946_v27  ;;  %v832_v3 = vsel %vm666_vm4, %v1937_v21, 0.0  ;;  %v834_v27 = vsel %vm666_vm4, %v1972_v46, 0.0 }
 0x132   :  { %v811_v44 = vadd.f32 %v810_v56, %v809_v35  ;;  %v1008_v47 = vadd.f32 %v1007_v17, %v1006_v33  ;;  %v1027_v36 = vsel %vm666_vm4, %v915_v30, 0.0 }
 0x133   :  { %v1029_v43 = vsel %vm666_vm4, %v916_v38, 0.0 }
 0x134   :  { %v1010_v48 = vadd.f32 %v1009_v40, %v1008_v47  ;;  %v813_v49 = vadd.f32 %v812_v52, %v811_v44  ;;  %v917_v40 = vmul.f32 %v1937_v21, %v1937_v21  ;;  %v918_v44 = vmul.f32 %v1972_v46, %v1972_v46 }
 0x135   :  { %v836_v21 = vsel %vm666_vm4, %v1963_v41, 0.0  ;;  %v838_v46 = vsel %vm666_vm4, %v1998_v0, 0.0 }
 0x136   :  { %v815_v58 = vadd.f32 %v814_v6, %v813_v49  ;;  %v1012_v59 = vadd.f32 %v1011_v51, %v1010_v48  ;;  %v1031_v49 = vsel %vm666_vm4, %v917_v40, 0.0  ;;  %v919_v51 = vmul.f32 %v1963_v41, %v1963_v41 }
 0x137   :  { %v1033_v53 = vsel %vm666_vm4, %v918_v44, 0.0  ;;  %v840_v41 = vsel %vm666_vm4, %v1989_v60, 0.0 }
 0x138   :  { %v1014_v62 = vadd.f32 %v1013_v54, %v1012_v59  ;;  %v817_v14 = vadd.f32 %v816_v2, %v815_v58  ;;  %v920_v54 = vmul.f32 %v1998_v0, %v1998_v0  ;;  %v842_v0 = vsel %vm666_vm4, %v2024_v23, 0.0 }
 0x13a   :  { %v819_v7 = vadd.f32 %v818_v22, %v817_v14  ;;  %v1016_v9 = vadd.f32 %v1015_v28, %v1014_v62  ;;  %v1035_v22 = vsel %vm666_vm4, %v919_v51, 0.0  ;;  %v921_v62 = vmul.f32 %v1989_v60, %v1989_v60 }
 0x13b   :  { %v1037_v14 = vsel %vm666_vm4, %v920_v54, 0.0  ;;  %v922_v28 = vmul.f32 %v2024_v23, %v2024_v23  ;;  %v844_v60 = vsel %vm666_vm4, %v2015_v15, 0.0  ;;  %v846_v23 = vsel %vm666_vm4, %v2050_v45, 0.0 }
 0x13c   :  { %v1018_v10 = vadd.f32 %v1017_v1, %v1016_v9  ;;  %v821_v11 = vadd.f32 %v820_v18, %v819_v7  ;;  %v1039_v9 = vsel %vm666_vm4, %v921_v62, 0.0  ;;  %v923_v18 = vmul.f32 %v2015_v15, %v2015_v15 }
 0x13d   :  { %v848_v15 = vsel %vm666_vm4, %v2041_v37, 0.0 }
 0x13e   :  { %v823_v16 = vadd.f32 %v822_v39, %v821_v11  ;;  %v1020_v19 = vadd.f32 %v1019_v12, %v1018_v10  ;;  %v1041_v39 = vsel %vm666_vm4, %v922_v28, 0.0  ;;  %v924_v10 = vmul.f32 %v2050_v45, %v2050_v45 }
 0x13f   :  { %v1043_v13 = vsel %vm666_vm4, %v923_v18, 0.0  ;;  %v850_v45 = vsel %vm666_vm4, %v2076_v4, 0.0 }
 0x140   :  { %v1022_v20 = vadd.f32 %v1021_v42, %v1020_v19  ;;  %v825_v26 = vadd.f32 %v824_v34, %v823_v16  ;;  %v925_v16 = vmul.f32 %v2041_v37, %v2041_v37  ;;  %v1045_v19 = vsel %vm666_vm4, %v924_v10, 0.0 }
 0x141   :  { %v926_v34 = vmul.f32 %v2076_v4, %v2076_v4  ;;  %v852_v37 = vsel %vm666_vm4, %v2067_v61, 0.0  ;;  %v854_v4 = vsel %vm666_vm4, %v2106_v31, 0.0 }
 0x142   :  { %v827_v56 = vadd.f32 %v826_v55, %v825_v26  ;;  %v1024_v33 = vadd.f32 %v1023_v29, %v1022_v20  ;;  %v1047_v30 = vsel %vm666_vm4, %v925_v16, 0.0 }
 0x143   :  { %v1049_v38 = vsel %vm666_vm4, %v926_v34, 0.0 }
 0x144   :  { %v1026_v35 = vadd.f32 %v1025_v32, %v1024_v33  ;;  %v829_v17 = vadd.f32 %v828_v50, %v827_v56  ;;  %v927_v32 = vmul.f32 %v2067_v61, %v2067_v61  ;;  %v928_v56 = vmul.f32 %v2106_v31, %v2106_v31 }
 0x146   :  { %v831_v47 = vadd.f32 %v830_v8, %v829_v17  ;;  %v1028_v52 = vadd.f32 %v1027_v36, %v1026_v35  ;;  %v1051_v17 = vsel %vm666_vm4, %v927_v32, 0.0  ;;  %v929_v36 = vmul.f32 %v2095_v25, %v2095_v25 }
 0x147   :  { %v1053_v40 = vsel %vm666_vm4, %v928_v56, 0.0 }
 0x148   :  { %v1030_v6 = vadd.f32 %v1029_v43, %v1028_v52  ;;  %v833_v48 = vadd.f32 %v832_v3, %v831_v47  ;;  %v856_v47 = vsel %vm666_vm4, %v2095_v25, 0.0  ;;  %v1055_v61 = vsel %vm666_vm4, %v929_v36, 0.0 }
 0x14a   :  { %v835_v57 = vadd.f32 %v834_v27, %v833_v48  ;;  %v1032_v58 = vadd.f32 %v1031_v49, %v1030_v6 }
 0x14c   :  { %v1034_v59 = vadd.f32 %v1033_v53, %v1032_v58  ;;  %v837_v2 = vadd.f32 %v836_v21, %v835_v57 }
 0x14e   :  { %v839_v63 = vadd.f32 %v838_v46, %v837_v2  ;;  %v1036_v1 = vadd.f32 %v1035_v22, %v1034_v59 }
 0x150   :  { %v1038_v5 = vadd.f32 %v1037_v14, %v1036_v1  ;;  %v841_v7 = vadd.f32 %v840_v41, %v839_v63 }
 0x152   :  { %v843_v11 = vadd.f32 %v842_v0, %v841_v7  ;;  %v1040_v12 = vadd.f32 %v1039_v9, %v1038_v5 }
 0x154   :  { %v1042_v24 = vadd.f32 %v1041_v39, %v1040_v12  ;;  %v845_v42 = vadd.f32 %v844_v60, %v843_v11 }
 0x156   :  { %v847_v55 = vadd.f32 %v846_v23, %v845_v42  ;;  %v1044_v20 = vadd.f32 %v1043_v13, %v1042_v24 }
 0x158   :  { %v1046_v26 = vadd.f32 %v1045_v19, %v1044_v20  ;;  %v849_v29 = vadd.f32 %v848_v15, %v847_v55 }
 0x15a   :  { %v851_v33 = vadd.f32 %v850_v45, %v849_v29  ;;  %v1048_v50 = vadd.f32 %v1047_v30, %v1046_v26 }
 0x15c   :  { %v1050_v8 = vadd.f32 %v1049_v38, %v1048_v50  ;;  %v853_v35 = vadd.f32 %v852_v37, %v851_v33 }
 0x15e   :  { %v855_v43 = vadd.f32 %v854_v4, %v853_v35  ;;  %v1052_v44 = vadd.f32 %v1051_v17, %v1050_v8 }
 0x160   :  { %v857_v52 = vadd.f32 %v856_v47, %v855_v43  ;;  %v1054_v3 = vadd.f32 %v1053_v40, %v1052_v44 }
 0x162   :  { %v858_v27 = vrot.slane %v857_v52, 4  ;;  %v1056_v31 = vadd.f32 %v1055_v61, %v1054_v3 }
 0x164   :  { %v1057_v6 = vrot.slane %v1056_v31, 4  ;;  %v859_v48 = vadd.f32 %v858_v27, %v857_v52 }
 0x166   :  { %v860_v49 = vrot.slane %v859_v48, 2  ;;  %v1058_v51 = vadd.f32 %v1057_v6, %v1056_v31 }
 0x168   :  { %v861_v53 = vadd.f32 %v860_v49, %v859_v48  ;;  %v1059_v54 = vrot.slane %v1058_v51, 2 }
 0x16a   :  { %v862_v57 = vrot.slane %v861_v53, 1  ;;  %v1060_v58 = vadd.f32 %v1059_v54, %v1058_v51 }
 0x16c   :  { %v863_v25 = vadd.f32 %v862_v57, %v861_v53  ;;  %v1061_v21 = vrot.slane %v1060_v58, 1 }
 0x16e   :  { %865 = vst.msk [vmem:[#allocation2] sm:$0x1] %vm864_vm5, %v863_v25  ;;  %v1062_v46 = vadd.f32 %v1061_v21, %v1060_v58 }
 0x16f   :  { %1361 = shalt.err (!%p1358_p4)
}
 0x170   :  { %s1362_s11 = scalar_lea.hbm %s2307_s3, 16 }
 0x171   :  { %p1363_p5 = scmp.ne.s32.totalorder %s2307_s3, %s1362_s11  ;;  %p1366_p6 = scmp.lt.u32.totalorder %s1362_s11, %s2307_s3 }
 0x173   :  { %p1368_p7 = pnand %p1366_p6, %p1363_p5 }
 0x175   :  { %1371 = shalt.err (!%p1368_p7)
}
 0x176   :  { %1075 = dma.vmem_to_hbm [thread:$0]  %s1073_s30, 16, %s2307_s3, [#allocation3]   ;;  %1063 = vst.msk [vmem:[#allocation4] sm:$0x1] %vm864_vm5, %v1062_v46 }
 0x177   :  { %s1372_s18 = scalar_lea.vmem %s2271_s6, 16  ;;  %s1376_s19 = scalar_lea.vmem %s2271_s6, 32 }
 0x178   :  { %p1373_p8 = scmp.ne.s32.totalorder %s2271_s6, %s1372_s18  ;;  %p1377_p9 = scmp.lt.s32.totalorder %s2271_s6, %s2271_s6 }
 0x179   :  { %p1378_p10 = scmp.lt.s32.totalorder %s1376_s19, %s1372_s18 }
 0x17b   :  { %p1379_p11 = por %p1378_p10, %p1377_p9 }
 0x17d   :  { %p1380_p12 = pnand %p1379_p11, %p1373_p8 }
 0x17f   :  { %1383 = shalt.err (!%p1380_p12)
}
 0x180   :  { %s1384_s21 = scalar_lea.hbm %s2308_s4, 16 }
 0x181   :  { %p1385_p13 = scmp.ne.s32.totalorder %s2308_s4, %s1384_s21  ;;  %p1388_p0 = scmp.lt.u32.totalorder %s1384_s21, %s2308_s4 }
 0x183   :  { %p1390_p1 = pnand %p1388_p0, %p1385_p13 }
 0x185   :  { %1393 = shalt.err (!%p1390_p1)
}
 0x186   :  { %1085 = dma.vmem_to_hbm [thread:$0]  %s2271_s6, 16, %s2308_s4, [#allocation5]  }
 0x187   :  { %1394 = dma.done.wait [#allocation3], 16  }
 0x188   :  { %1395 = vsyncadd [#allocation3], 4294967280 }
 0x189   :  { %1396 = dma.done.wait [#allocation5], 16  }
 0x18a   :  { %1397 = vsyncadd [#allocation5], 4294967280 }
 0x18b   :  { %1094 = vsyncpa [#allocation3], 1 }
 0x18c   :  { %1095 = vsyncpa [#allocation5], 1 }

// kernel: basic_resnet_forward.28
= control target key start
LH: loop header
LB: loop body
LE: loop exit
PB: predicated region body
PF: predicated region fallthrough
CT: control target
= control target key end

     0   :  { %vm39_vm0 = vcmask 588800   ;;  %vm233_vm1 = vcmask 64512   ;;  %vm287_vm2 = vcmask 57344   ;;  %s700_s1 = inlined_call_operand.vmem [shape: f32[72,8], index: 1, kind: input, shape index: {}]   ;;  %s701_s0 = inlined_call_operand.vmem [shape: f32[128,72], index: 0, kind: input, shape index: {}]   ;;  %s702_s2 = inlined_call_operand.vmem [shape: f32[128,8], index: 2, kind: output, shape index: {0}]   ;;  %s703_s3 = inlined_call_operand.vmem [shape: f32[1,8], index: 3, kind: output, shape index: {1}]   ;;  %s704_s4 = inlined_call_operand.vmem [shape: f32[1,8], index: 4, kind: output, shape index: {2}]  }
   0x1   :  { %v30_v0 = vld [vmem:[%s700_s1] sm:$0xff]  ;;  %v31_v1 = vld [vmem:[%s700_s1 + $0x8] sm:$0xff]  ;;  %v32_v2 = vld [vmem:[%s700_s1 + $0x10] sm:$0xff] }
   0x2   :  { %v438_v3 = vpack.c.bf16 %v31_v1, %v30_v0  ;;  %v33_v4 = vld [vmem:[%s700_s1 + $0x18] sm:$0xff]  ;;  %v34_v6 = vld [vmem:[%s700_s1 + $0x20] sm:$0xff]  ;;  %v35_v7 = vld [vmem:[%s700_s1 + $0x28] sm:$0xff] }
   0x3   :  { %v442_v5 = vpack.c.bf16 %v33_v4, %v32_v2  ;;  %v14_v8 = vld [vmem:[%s701_s0] sm:$0xff]  ;;  %v446_v9 = vpack.c.bf16 %v35_v7, %v34_v6  ;;  %v36_v11 = vld [vmem:[%s700_s1 + $0x30] sm:$0xff]  ;;  %v37_v12 = vld [vmem:[%s700_s1 + $0x38] sm:$0xff] }
   0x4   :  { %439 = vmatprep.subr.bf16.mxu0 %v438_v3  ;;  %454 = vmatprep.subr.bf16.mxu1 %v438_v3  ;;  %v22_v10 = vld [vmem:[%s701_s0 + $0x40] sm:$0xff]  ;;  %v450_v13 = vpack.c.bf16 %v37_v12, %v36_v11  ;;  %v15_v15 = vld [vmem:[%s701_s0 + $0x8] sm:$0xff]  ;;  %v16_v17 = vld [vmem:[%s701_s0 + $0x10] sm:$0xff] }
   0x5   :  { %441 = vmatpush3.bf16.msra.mxu0 %v438_v3  ;;  %459 = vmatpush3.bf16.msra.mxu1 %v438_v3  ;;  %v38_v14 = vld [vmem:[%s700_s1 + $0x40] sm:$0xff]  ;;  %v23_v16 = vld [vmem:[%s701_s0 + $0x48] sm:$0xff]  ;;  %v24_v18 = vld [vmem:[%s701_s0 + $0x50] sm:$0xff] }
   0x6   :  { %443 = vmatprep.subr.bf16.mxu0 %v442_v5  ;;  %414 = vmatprep.mubr.msk.f32.mxu0 %vm39_vm0, %v14_v8  ;;  %v17_v19 = vld [vmem:[%s701_s0 + $0x18] sm:$0xff]  ;;  %v18_v21 = vld [vmem:[%s701_s0 + $0x20] sm:$0xff]  ;;  %v19_v23 = vld [vmem:[%s701_s0 + $0x28] sm:$0xff] }
   0x7   :  { %455 = vmatprep.subr.bf16.mxu1 %v442_v5  ;;  %426 = vmatprep.mubr.msk.f32.mxu1 %vm39_vm0, %v22_v10  ;;  %v25_v20 = vld [vmem:[%s701_s0 + $0x58] sm:$0xff]  ;;  %v26_v22 = vld [vmem:[%s701_s0 + $0x60] sm:$0xff]  ;;  %v27_v24 = vld [vmem:[%s701_s0 + $0x68] sm:$0xff] }
   0x8   :  { %v20_v25 = vld [vmem:[%s701_s0 + $0x30] sm:$0xff]  ;;  %v21_v27 = vld [vmem:[%s701_s0 + $0x38] sm:$0xff] }
   0x9   :  { %445 = vmatpush3.bf16.msra.mxu0 %v442_v5  ;;  %460 = vmatpush3.bf16.msra.mxu1 %v442_v5  ;;  %v28_v26 = vld [vmem:[%s701_s0 + $0x70] sm:$0xff]  ;;  %v29_v28 = vld [vmem:[%s701_s0 + $0x78] sm:$0xff] }
   0xa   :  { %447 = vmatprep.subr.bf16.mxu0 %v446_v9  ;;  %456 = vmatprep.subr.bf16.mxu1 %v446_v9 }
   0xd   :  { %449 = vmatpush3.bf16.msra.mxu0 %v446_v9  ;;  %461 = vmatpush3.bf16.msra.mxu1 %v446_v9 }
   0xe   :  { %451 = vmatprep.subr.bf16.mxu0 %v450_v13  ;;  %457 = vmatprep.subr.bf16.mxu1 %v450_v13 }
  0x11   :  { %453 = vmatpush3.bf16.msra.mxu0 %v450_v13  ;;  %462 = vmatpush3.bf16.msra.mxu1 %v450_v13 }
  0x12   :  { %412 = vmatprep.subr.mxu0 %v38_v14  ;;  %458 = vmatprep.subr.mxu1 %v38_v14 }
  0x15   :  { %413 = vmatpush3.msra.mxu0 %v38_v14  ;;  %463 = vmatpush3.msra.mxu1 %v38_v14 }
  0x16   :  { %415 = vmatmul.mubr.msk.f32.vlgmr.msra.gmra.mrb[0].mxu0 %vm39_vm0, %v15_v15  ;;  %427 = vmatmul.mubr.msk.f32.vlgmr.msra.gmra.mrb[0].mxu1 %vm39_vm0, %v23_v16 }
  0x17   :  { %417 = vmatprep.mubr.msk.f32.mxu0 %vm39_vm0, %v16_v17  ;;  %429 = vmatprep.mubr.msk.f32.mxu1 %vm39_vm0, %v24_v18 }
  0x1a   :  { %418 = vmatmul.mubr.msk.f32.gmra.mrb[2].mxu0 %vm39_vm0, %v17_v19  ;;  %430 = vmatmul.mubr.msk.f32.gmra.mrb[2].mxu1 %vm39_vm0, %v25_v20 }
  0x1b   :  { %420 = vmatprep.mubr.msk.f32.mxu0 %vm39_vm0, %v18_v21  ;;  %432 = vmatprep.mubr.msk.f32.mxu1 %vm39_vm0, %v26_v22 }
  0x1e   :  { %421 = vmatmul.mubr.msk.f32.gmra.mrb[4].mxu0 %vm39_vm0, %v19_v23  ;;  %433 = vmatmul.mubr.msk.f32.gmra.mrb[4].mxu1 %vm39_vm0, %v27_v24 }
  0x1f   :  { %423 = vmatprep.mubr.msk.f32.mxu0 %vm39_vm0, %v20_v25  ;;  %435 = vmatprep.mubr.msk.f32.mxu1 %vm39_vm0, %v28_v26 }
  0x22   :  { %424 = vmatmul.mubr.msk.f32.gmra.mrb[6].mxu0 %vm39_vm0, %v21_v27  ;;  %436 = vmatmul.mubr.msk.f32.gmra.mrb[6].mxu1 %vm39_vm0, %v29_v28 }
  0xe9   :  { %v416_v29 = vpop.f32.mrb[0].mxu0  ;;  %v580_v30 = vpop.f32.mrb[0].mxu1 }
  0xea   :  { %235 = vst.msk [vmem:[%s702_s2 + $0x8] sm:$0xff] %vm233_vm1, %v416_v29  ;;  %v251_v31 = vsel %vm233_vm1, %v416_v29, 0.0  ;;  %v290_v32 = vmul.f32 %v416_v29, %v416_v29  ;;  %v154_v33 = vpop.f32.mrb[1].mxu0  ;;  %243 = vst.msk [vmem:[%s702_s2 + $0x48] sm:$0xff] %vm233_vm1, %v580_v30  ;;  %v194_v34 = vpop.f32.mrb[1].mxu1  ;;  %v298_v20 = vmul.f32 %v580_v30, %v580_v30  ;;  %v267_v25 = vsel %vm233_vm1, %v580_v30, 0.0 }
  0xeb   :  { %234 = vst.msk [vmem:[%s702_s2] sm:$0xff] %vm233_vm1, %v154_v33  ;;  %v250_v35 = vsel %vm233_vm1, %v154_v33, 0.0  ;;  %v289_v36 = vmul.f32 %v154_v33, %v154_v33  ;;  %242 = vst.msk [vmem:[%s702_s2 + $0x40] sm:$0xff] %vm233_vm1, %v194_v34  ;;  %v297_v6 = vmul.f32 %v194_v34, %v194_v34  ;;  %v265_v16 = vsel %vm233_vm1, %v194_v34, 0.0 }
  0xec   :  { %v306_v37 = vsel %vm233_vm1, %v290_v32, 0.0  ;;  %v252_v38 = vadd.f32 %v251_v31, %v250_v35  ;;  %v322_v29 = vsel %vm233_vm1, %v298_v20, 0.0 }
  0xed   :  { %v305_v39 = vsel %vm233_vm1, %v289_v36, 0.0  ;;  %v419_v40 = vpop.f32.mrb[2].mxu0  ;;  %v603_v41 = vpop.f32.mrb[2].mxu1  ;;  %v320_v21 = vsel %vm233_vm1, %v297_v6, 0.0 }
  0xee   :  { %v307_v42 = vadd.f32 %v306_v37, %v305_v39  ;;  %237 = vst.msk [vmem:[%s702_s2 + $0x18] sm:$0xff] %vm233_vm1, %v419_v40  ;;  %v164_v43 = vpop.f32.mrb[3].mxu0  ;;  %245 = vst.msk [vmem:[%s702_s2 + $0x58] sm:$0xff] %vm233_vm1, %v603_v41  ;;  %v204_v44 = vpop.f32.mrb[3].mxu1  ;;  %v292_v45 = vmul.f32 %v419_v40, %v419_v40  ;;  %v255_v49 = vsel %vm233_vm1, %v419_v40, 0.0  ;;  %v300_v31 = vmul.f32 %v603_v41, %v603_v41 }
  0xef   :  { %236 = vst.msk [vmem:[%s702_s2 + $0x10] sm:$0xff] %vm233_vm1, %v164_v43  ;;  %v253_v46 = vsel %vm233_vm1, %v164_v43, 0.0  ;;  %v291_v47 = vmul.f32 %v164_v43, %v164_v43  ;;  %244 = vst.msk [vmem:[%s702_s2 + $0x50] sm:$0xff] %vm233_vm1, %v204_v44  ;;  %v299_v22 = vmul.f32 %v204_v44, %v204_v44  ;;  %v269_v26 = vsel %vm233_vm1, %v204_v44, 0.0 }
  0xf0   :  { %v254_v48 = vadd.f32 %v253_v46, %v252_v38  ;;  %v310_v57 = vsel %vm233_vm1, %v292_v45, 0.0  ;;  %v271_v36 = vsel %vm233_vm1, %v603_v41, 0.0  ;;  %v326_v39 = vsel %vm233_vm1, %v300_v31, 0.0 }
  0xf1   :  { %v308_v50 = vsel %vm233_vm1, %v291_v47, 0.0  ;;  %v422_v51 = vpop.f32.mrb[4].mxu0  ;;  %v625_v52 = vpop.f32.mrb[4].mxu1  ;;  %v324_v32 = vsel %vm233_vm1, %v299_v22, 0.0 }
  0xf2   :  { %v309_v53 = vadd.f32 %v308_v50, %v307_v42  ;;  %239 = vst.msk [vmem:[%s702_s2 + $0x28] sm:$0xff] %vm233_vm1, %v422_v51  ;;  %v174_v54 = vpop.f32.mrb[5].mxu0  ;;  %v256_v55 = vadd.f32 %v255_v49, %v254_v48  ;;  %247 = vst.msk [vmem:[%s702_s2 + $0x68] sm:$0xff] %vm233_vm1, %v625_v52  ;;  %v214_v56 = vpop.f32.mrb[5].mxu1  ;;  %v294_v58 = vmul.f32 %v422_v51, %v422_v51  ;;  %v259_v63 = vsel %vm233_vm1, %v422_v51, 0.0 }
  0xf3   :  { %238 = vst.msk [vmem:[%s702_s2 + $0x20] sm:$0xff] %vm233_vm1, %v174_v54  ;;  %v257_v59 = vsel %vm233_vm1, %v174_v54, 0.0  ;;  %v293_v60 = vmul.f32 %v174_v54, %v174_v54  ;;  %246 = vst.msk [vmem:[%s702_s2 + $0x60] sm:$0xff] %vm233_vm1, %v214_v56  ;;  %v301_v33 = vmul.f32 %v214_v56, %v214_v56  ;;  %v273_v37 = vsel %vm233_vm1, %v214_v56, 0.0 }
  0xf4   :  { %v258_v61 = vadd.f32 %v257_v59, %v256_v55  ;;  %v311_v62 = vadd.f32 %v310_v57, %v309_v53  ;;  %v314_v8 = vsel %vm233_vm1, %v294_v58, 0.0  ;;  %v302_v40 = vmul.f32 %v625_v52, %v625_v52 }
  0xf5   :  { %v312_v0 = vsel %vm233_vm1, %v293_v60, 0.0  ;;  %v425_v1 = vpop.f32.mrb[6].mxu0  ;;  %v437_v2 = vpop.f32.mrb[6].mxu1  ;;  %v328_v42 = vsel %vm233_vm1, %v301_v33, 0.0  ;;  %v275_v46 = vsel %vm233_vm1, %v625_v52, 0.0 }
  0xf6   :  { %v313_v3 = vadd.f32 %v312_v0, %v311_v62  ;;  %241 = vst.msk [vmem:[%s702_s2 + $0x38] sm:$0xff] %vm233_vm1, %v425_v1  ;;  %v184_v4 = vpop.f32.mrb[7].mxu0  ;;  %v260_v5 = vadd.f32 %v259_v63, %v258_v61  ;;  %249 = vst.msk [vmem:[%s702_s2 + $0x78] sm:$0xff] %vm233_vm1, %v437_v2  ;;  %v224_v7 = vpop.f32.mrb[7].mxu1  ;;  %v296_v9 = vmul.f32 %v425_v1, %v425_v1  ;;  %v263_v14 = vsel %vm233_vm1, %v425_v1, 0.0 }
  0xf7   :  { %240 = vst.msk [vmem:[%s702_s2 + $0x30] sm:$0xff] %vm233_vm1, %v184_v4  ;;  %v261_v10 = vsel %vm233_vm1, %v184_v4, 0.0  ;;  %v295_v11 = vmul.f32 %v184_v4, %v184_v4  ;;  %248 = vst.msk [vmem:[%s702_s2 + $0x70] sm:$0xff] %vm233_vm1, %v224_v7  ;;  %v303_v43 = vmul.f32 %v224_v7, %v224_v7  ;;  %v277_v47 = vsel %vm233_vm1, %v224_v7, 0.0 }
  0xf8   :  { %v262_v12 = vadd.f32 %v261_v10, %v260_v5  ;;  %v315_v13 = vadd.f32 %v314_v8, %v313_v3  ;;  %v318_v19 = vsel %vm233_vm1, %v296_v9, 0.0  ;;  %v330_v49 = vsel %vm233_vm1, %v302_v40, 0.0 }
  0xf9   :  { %v316_v15 = vsel %vm233_vm1, %v295_v11, 0.0  ;;  %v304_v50 = vmul.f32 %v437_v2, %v437_v2  ;;  %v332_v51 = vsel %vm233_vm1, %v303_v43, 0.0  ;;  %v279_v55 = vsel %vm233_vm1, %v437_v2, 0.0 }
  0xfa   :  { %v264_v17 = vadd.f32 %v263_v14, %v262_v12  ;;  %v317_v18 = vadd.f32 %v316_v15, %v315_v13 }
  0xfb   :  { %v334_v58 = vsel %vm233_vm1, %v304_v50, 0.0 }
  0xfc   :  { %v319_v23 = vadd.f32 %v318_v19, %v317_v18  ;;  %v266_v24 = vadd.f32 %v265_v16, %v264_v17 }
  0xfe   :  { %v321_v27 = vadd.f32 %v320_v21, %v319_v23  ;;  %v268_v28 = vadd.f32 %v267_v25, %v266_v24 }
 0x100   :  { %v270_v34 = vadd.f32 %v269_v26, %v268_v28  ;;  %v323_v35 = vadd.f32 %v322_v29, %v321_v27 }
 0x102   :  { %v325_v30 = vadd.f32 %v324_v32, %v323_v35  ;;  %v272_v38 = vadd.f32 %v271_v36, %v270_v34 }
 0x104   :  { %v274_v44 = vadd.f32 %v273_v37, %v272_v38  ;;  %v327_v45 = vadd.f32 %v326_v39, %v325_v30 }
 0x106   :  { %v329_v41 = vadd.f32 %v328_v42, %v327_v45  ;;  %v276_v48 = vadd.f32 %v275_v46, %v274_v44 }
 0x108   :  { %v278_v53 = vadd.f32 %v277_v47, %v276_v48  ;;  %v331_v54 = vadd.f32 %v330_v49, %v329_v41 }
 0x10a   :  { %v280_v56 = vadd.f32 %v279_v55, %v278_v53  ;;  %v333_v57 = vadd.f32 %v332_v51, %v331_v54 }
 0x10c   :  { %v281_v59 = vrot.slane %v280_v56, 4  ;;  %v335_v60 = vadd.f32 %v334_v58, %v333_v57 }
 0x10e   :  { %v282_v52 = vadd.f32 %v281_v59, %v280_v56  ;;  %v336_v61 = vrot.slane %v335_v60, 4 }
 0x110   :  { %v283_v62 = vrot.slane %v282_v52, 2  ;;  %v337_v63 = vadd.f32 %v336_v61, %v335_v60 }
 0x112   :  { %v284_v0 = vadd.f32 %v283_v62, %v282_v52  ;;  %v338_v1 = vrot.slane %v337_v63, 2 }
 0x114   :  { %v285_v3 = vrot.slane %v284_v0, 1  ;;  %v339_v4 = vadd.f32 %v338_v1, %v337_v63 }
 0x116   :  { %v286_v5 = vadd.f32 %v285_v3, %v284_v0  ;;  %v340_v6 = vrot.slane %v339_v4, 1 }
 0x118   :  { %288 = vst.msk [vmem:[%s703_s3] sm:$0x1] %vm287_vm2, %v286_v5  ;;  %v341_v2 = vadd.f32 %v340_v6, %v339_v4 }
 0x11a   :  { %342 = vst.msk [vmem:[%s704_s4] sm:$0x1] %vm287_vm2, %v341_v2 }

// kernel: basic_resnet_forward.29
= control target key start
LH: loop header
LB: loop body
LE: loop exit
PB: predicated region body
PF: predicated region fallthrough
CT: control target
= control target key end

     0   :  { %v51_v8 = vlaneseq  ;;  %vm110_vm0 = vcmask 64512   ;;  %s287_s1 = inlined_call_operand.vmem [shape: f32[1,8], index: 1, kind: input, shape index: {}]   ;;  %s288_s2 = inlined_call_operand.vmem [shape: f32[1,8], index: 2, kind: input, shape index: {}]   ;;  %s289_s3 = inlined_call_operand.vmem [shape: f32[1,8], index: 3, kind: input, shape index: {}]   ;;  %s290_s0 = inlined_call_operand.vmem [shape: f32[128,8], index: 0, kind: input, shape index: {}]   ;;  %s291_s4 = inlined_call_operand.vmem [shape: f32[1,8], index: 4, kind: input, shape index: {}]   ;;  %s292_s5 = inlined_call_operand.vmem [shape: f32[128,8], index: 5, kind: output, shape index: {}]  }
   0x1   :  { %v20_v0 = vld [vmem:[%s287_s1] sm:$0x1]  ;;  %v35_v16 = vld [vmem:[%s290_s0 + $0x8] sm:$0xff]  ;;  %v36_v17 = vld [vmem:[%s290_s0 + $0x10] sm:$0xff] }
   0x2   :  { %v21_v1 = vld [vmem:[%s288_s2] sm:$0x1]  ;;  %v24_v2 = vmul.f32 0.0078125, %v20_v0  ;;  %v52_v9 = vshrl.u32 %v51_v8, 7  ;;  %v37_v18 = vld [vmem:[%s290_s0 + $0x18] sm:$0xff]  ;;  %v39_v22 = vld [vmem:[%s290_s0 + $0x28] sm:$0xff] }
   0x3   :  { %v25_v3 = vmul.f32 0.0078125, %v21_v1  ;;  %v22_v10 = vld [vmem:[%s289_s3] sm:$0x1]  ;;  %v40_v23 = vld [vmem:[%s290_s0 + $0x30] sm:$0xff]  ;;  %v41_v24 = vld [vmem:[%s290_s0 + $0x38] sm:$0xff] }
   0x4   :  { %v26_v4 = vmul.f32 %v24_v2, %v24_v2  ;;  %v53_v11 = vsub.s32 0, %v52_v9  ;;  %v23_v13 = vld [vmem:[%s291_s4] sm:$0x1]  ;;  %v43_v26 = vld [vmem:[%s290_s0 + $0x48] sm:$0xff]  ;;  %v44_v27 = vld [vmem:[%s290_s0 + $0x50] sm:$0xff] }
   0x5   :  { %v34_v15 = vld [vmem:[%s290_s0] sm:$0xff]  ;;  %v45_v32 = vld [vmem:[%s290_s0 + $0x58] sm:$0xff]  ;;  %v47_v34 = vld [vmem:[%s290_s0 + $0x68] sm:$0xff] }
   0x6   :  { %v27_v5 = vsub.f32 %v25_v3, %v26_v4  ;;  %v38_v19 = vld [vmem:[%s290_s0 + $0x20] sm:$0xff]  ;;  %v48_v59 = vld [vmem:[%s290_s0 + $0x70] sm:$0xff]  ;;  %v49_v60 = vld [vmem:[%s290_s0 + $0x78] sm:$0xff] }
   0x7   :  { %v42_v25 = vld [vmem:[%s290_s0 + $0x40] sm:$0xff] }
   0x8   :  { %v28_v6 = vmax.f32 %v27_v5, 0.0  ;;  %v46_v33 = vld [vmem:[%s290_s0 + $0x60] sm:$0xff] }
   0xa   :  { %v29_v7 = vadd.f32 1e-05, %v28_v6 }
   0xc   :  { %131 = vrsqrt.f32 %v29_v7 }
  0x16   :  { %v132_v12 = vpop.eup %131 }
  0x17   :  { %v31_v14 = vmul.f32 %v132_v12, %v22_v10 }
  0x19   :  { %v32_v20 = vmul.f32 %v31_v14, %v24_v2  ;;  %v54_v21 = vrot.slane %v31_v14, %v53_v11 }
  0x1b   :  { %v33_v28 = vsub.f32 %v23_v13, %v32_v20  ;;  %v56_v29 = vmul.f32 %v54_v21, %v34_v15  ;;  %v57_v30 = vmul.f32 %v54_v21, %v35_v16  ;;  %v58_v31 = vmul.f32 %v54_v21, %v36_v17 }
  0x1c   :  { %v59_v35 = vmul.f32 %v54_v21, %v37_v18  ;;  %v60_v36 = vmul.f32 %v54_v21, %v38_v19  ;;  %v61_v37 = vmul.f32 %v54_v21, %v39_v22  ;;  %v62_v38 = vmul.f32 %v54_v21, %v40_v23 }
  0x1d   :  { %v76_v39 = vrot.slane %v33_v28, %v53_v11  ;;  %v63_v40 = vmul.f32 %v54_v21, %v41_v24  ;;  %v64_v41 = vmul.f32 %v54_v21, %v42_v25  ;;  %v65_v42 = vmul.f32 %v54_v21, %v43_v26 }
  0x1e   :  { %v66_v43 = vmul.f32 %v54_v21, %v44_v27  ;;  %v67_v44 = vmul.f32 %v54_v21, %v45_v32  ;;  %v68_v45 = vmul.f32 %v54_v21, %v46_v33  ;;  %v69_v46 = vmul.f32 %v54_v21, %v47_v34 }
  0x1f   :  { %v78_v47 = vadd.f32 %v76_v39, %v56_v29  ;;  %v79_v48 = vadd.f32 %v76_v39, %v57_v30  ;;  %v80_v49 = vadd.f32 %v76_v39, %v58_v31  ;;  %v81_v50 = vadd.f32 %v76_v39, %v59_v35 }
  0x20   :  { %v82_v51 = vadd.f32 %v76_v39, %v60_v36  ;;  %v83_v52 = vadd.f32 %v76_v39, %v61_v37  ;;  %v84_v53 = vadd.f32 %v76_v39, %v62_v38  ;;  %v85_v54 = vadd.f32 %v76_v39, %v63_v40 }
  0x21   :  { %v94_v55 = vmax.f32 %v78_v47, 0.0  ;;  %v95_v56 = vmax.f32 %v79_v48, 0.0  ;;  %v96_v57 = vmax.f32 %v80_v49, 0.0  ;;  %v97_v58 = vmax.f32 %v81_v50, 0.0 }
  0x22   :  { %v98_v61 = vmax.f32 %v82_v51, 0.0  ;;  %v99_v62 = vmax.f32 %v83_v52, 0.0  ;;  %v100_v63 = vmax.f32 %v84_v53, 0.0  ;;  %v101_v0 = vmax.f32 %v85_v54, 0.0 }
  0x23   :  { %111 = vst.msk [vmem:[%s292_s5] sm:$0xff] %vm110_vm0, %v94_v55  ;;  %112 = vst.msk [vmem:[%s292_s5 + $0x8] sm:$0xff] %vm110_vm0, %v95_v56  ;;  %v86_v1 = vadd.f32 %v76_v39, %v64_v41  ;;  %v87_v2 = vadd.f32 %v76_v39, %v65_v42  ;;  %v88_v3 = vadd.f32 %v76_v39, %v66_v43 }
  0x24   :  { %113 = vst.msk [vmem:[%s292_s5 + $0x10] sm:$0xff] %vm110_vm0, %v96_v57  ;;  %114 = vst.msk [vmem:[%s292_s5 + $0x18] sm:$0xff] %vm110_vm0, %v97_v58  ;;  %v89_v4 = vadd.f32 %v76_v39, %v67_v44  ;;  %v90_v5 = vadd.f32 %v76_v39, %v68_v45  ;;  %v91_v6 = vadd.f32 %v76_v39, %v69_v46 }
  0x25   :  { %115 = vst.msk [vmem:[%s292_s5 + $0x20] sm:$0xff] %vm110_vm0, %v98_v61  ;;  %116 = vst.msk [vmem:[%s292_s5 + $0x28] sm:$0xff] %vm110_vm0, %v99_v62  ;;  %v70_v7 = vmul.f32 %v54_v21, %v48_v59  ;;  %v71_v8 = vmul.f32 %v54_v21, %v49_v60  ;;  %v102_v9 = vmax.f32 %v86_v1, 0.0  ;;  %v103_v10 = vmax.f32 %v87_v2, 0.0 }
  0x26   :  { %117 = vst.msk [vmem:[%s292_s5 + $0x30] sm:$0xff] %vm110_vm0, %v100_v63  ;;  %118 = vst.msk [vmem:[%s292_s5 + $0x38] sm:$0xff] %vm110_vm0, %v101_v0  ;;  %v104_v11 = vmax.f32 %v88_v3, 0.0  ;;  %v105_v12 = vmax.f32 %v89_v4, 0.0  ;;  %v106_v13 = vmax.f32 %v90_v5, 0.0  ;;  %v107_v14 = vmax.f32 %v91_v6, 0.0 }
  0x27   :  { %v92_v15 = vadd.f32 %v76_v39, %v70_v7  ;;  %v93_v16 = vadd.f32 %v76_v39, %v71_v8  ;;  %119 = vst.msk [vmem:[%s292_s5 + $0x40] sm:$0xff] %vm110_vm0, %v102_v9  ;;  %120 = vst.msk [vmem:[%s292_s5 + $0x48] sm:$0xff] %vm110_vm0, %v103_v10 }
  0x28   :  { %121 = vst.msk [vmem:[%s292_s5 + $0x50] sm:$0xff] %vm110_vm0, %v104_v11  ;;  %122 = vst.msk [vmem:[%s292_s5 + $0x58] sm:$0xff] %vm110_vm0, %v105_v12 }
  0x29   :  { %123 = vst.msk [vmem:[%s292_s5 + $0x60] sm:$0xff] %vm110_vm0, %v106_v13  ;;  %124 = vst.msk [vmem:[%s292_s5 + $0x68] sm:$0xff] %vm110_vm0, %v107_v14  ;;  %v108_v17 = vmax.f32 %v92_v15, 0.0  ;;  %v109_v18 = vmax.f32 %v93_v16, 0.0 }
  0x2b   :  { %125 = vst.msk [vmem:[%s292_s5 + $0x70] sm:$0xff] %vm110_vm0, %v108_v17  ;;  %126 = vst.msk [vmem:[%s292_s5 + $0x78] sm:$0xff] %vm110_vm0, %v109_v18 }

// kernel: basic_resnet_forward.32
= control target key start
LH: loop header
LB: loop body
LE: loop exit
PB: predicated region body
PF: predicated region fallthrough
CT: control target
= control target key end

     0   :  { %vm19_vm0 = vcmask 64512   ;;  %vm117_vm1 = vcmask 130048   ;;  %vm135_vm2 = vcmask 122880   ;;  %s256_s1 = inlined_call_operand.vmem [shape: f32[8,16], index: 1, kind: input, shape index: {}]   ;;  %s257_s0 = inlined_call_operand.vmem [shape: f32[32,8], index: 0, kind: input, shape index: {}]   ;;  %s258_s2 = inlined_call_operand.vmem [shape: f32[32,16], index: 2, kind: output, shape index: {0}]   ;;  %s259_s3 = inlined_call_operand.vmem [shape: f32[1,16], index: 3, kind: output, shape index: {1}]   ;;  %s260_s4 = inlined_call_operand.vmem [shape: f32[1,16], index: 4, kind: output, shape index: {2}]  }
   0x1   :  { %v18_v0 = vld [vmem:[%s256_s1] sm:$0xff]  ;;  %v15_v2 = vld [vmem:[%s257_s0 + $0x8] sm:$0xff]  ;;  %v16_v3 = vld [vmem:[%s257_s0 + $0x10] sm:$0xff] }
   0x2   :  { %v14_v1 = vld [vmem:[%s257_s0] sm:$0xff]  ;;  %176 = vmatprep.subr.mxu0 %v18_v0  ;;  %184 = vmatprep.subr.mxu1 %v18_v0  ;;  %v17_v4 = vld [vmem:[%s257_s0 + $0x18] sm:$0xff] }
   0x3   :  { %177 = vmatpush3.msra.mxu0 %v18_v0  ;;  %178 = vmatprep.mubr.msk.f32.mxu0 %vm19_vm0, %v14_v1 }
   0x4   :  { %185 = vmatpush3.msra.mxu1 %v18_v0  ;;  %179 = vmatmul.mubr.msk.f32.vlgmr.msra.gmra.mrb[0].mxu0 %vm19_vm0, %v15_v2 }
   0x5   :  { %181 = vmatprep.mubr.msk.f32.mxu1 %vm19_vm0, %v16_v3 }
   0x6   :  { %182 = vmatmul.mubr.msk.f32.vlgmr.msra.gmra.mrb[0].mxu1 %vm19_vm0, %v17_v4 }
  0xd7   :  { %v180_v5 = vpop.f32.mrb[0].mxu0 }
  0xd8   :  { %119 = vst.msk [vmem:[%s258_s2 + $0x8] sm:$0xff] %vm117_vm1, %v180_v5  ;;  %v123_v6 = vsel %vm117_vm1, %v180_v5, 0.0  ;;  %v138_v7 = vmul.f32 %v180_v5, %v180_v5  ;;  %v98_v8 = vpop.f32.mrb[1].mxu0 }
  0xd9   :  { %118 = vst.msk [vmem:[%s258_s2] sm:$0xff] %vm117_vm1, %v98_v8  ;;  %v122_v9 = vsel %vm117_vm1, %v98_v8, 0.0  ;;  %v137_v10 = vmul.f32 %v98_v8, %v98_v8  ;;  %v183_v11 = vpop.f32.mrb[0].mxu1 }
  0xda   :  { %v142_v12 = vsel %vm117_vm1, %v138_v7, 0.0  ;;  %v124_v13 = vadd.f32 %v123_v6, %v122_v9  ;;  %121 = vst.msk [vmem:[%s258_s2 + $0x18] sm:$0xff] %vm117_vm1, %v183_v11  ;;  %v108_v14 = vpop.f32.mrb[1].mxu1  ;;  %v140_v16 = vmul.f32 %v183_v11, %v183_v11  ;;  %v127_v21 = vsel %vm117_vm1, %v183_v11, 0.0 }
  0xdb   :  { %v141_v15 = vsel %vm117_vm1, %v137_v10, 0.0  ;;  %120 = vst.msk [vmem:[%s258_s2 + $0x10] sm:$0xff] %vm117_vm1, %v108_v14  ;;  %v125_v17 = vsel %vm117_vm1, %v108_v14, 0.0  ;;  %v139_v18 = vmul.f32 %v108_v14, %v108_v14 }
  0xdc   :  { %v143_v19 = vadd.f32 %v142_v12, %v141_v15  ;;  %v126_v20 = vadd.f32 %v125_v17, %v124_v13  ;;  %v146_v25 = vsel %vm117_vm1, %v140_v16, 0.0 }
  0xdd   :  { %v144_v22 = vsel %vm117_vm1, %v139_v18, 0.0 }
  0xde   :  { %v128_v23 = vadd.f32 %v127_v21, %v126_v20  ;;  %v145_v24 = vadd.f32 %v144_v22, %v143_v19 }
  0xe0   :  { %v129_v26 = vrot.slane %v128_v23, 4  ;;  %v147_v27 = vadd.f32 %v146_v25, %v145_v24 }
  0xe2   :  { %v130_v28 = vadd.f32 %v129_v26, %v128_v23  ;;  %v148_v29 = vrot.slane %v147_v27, 4 }
  0xe4   :  { %v131_v30 = vrot.slane %v130_v28, 2  ;;  %v149_v31 = vadd.f32 %v148_v29, %v147_v27 }
  0xe6   :  { %v132_v32 = vadd.f32 %v131_v30, %v130_v28  ;;  %v150_v33 = vrot.slane %v149_v31, 2 }
  0xe8   :  { %v133_v34 = vrot.slane %v132_v32, 1  ;;  %v151_v35 = vadd.f32 %v150_v33, %v149_v31 }
  0xea   :  { %v134_v36 = vadd.f32 %v133_v34, %v132_v32  ;;  %v152_v37 = vrot.slane %v151_v35, 1 }
  0xec   :  { %136 = vst.msk [vmem:[%s259_s3] sm:$0x1] %vm135_vm2, %v134_v36  ;;  %v153_v38 = vadd.f32 %v152_v37, %v151_v35 }
  0xee   :  { %154 = vst.msk [vmem:[%s260_s4] sm:$0x1] %vm135_vm2, %v153_v38 }

// kernel: basic_resnet_forward.31
= control target key start
LH: loop header
LB: loop body
LE: loop exit
PB: predicated region body
PF: predicated region fallthrough
CT: control target
= control target key end

     0   :  { %v54_v8 = vlaneseq  ;;  %vm145_vm0 = vcmask 64512   ;;  %s411_s1 = inlined_call_operand.vmem [shape: f32[1,8], index: 1, kind: input, shape index: {}]   ;;  %s412_s2 = inlined_call_operand.vmem [shape: f32[1,8], index: 2, kind: input, shape index: {}]   ;;  %s413_s3 = inlined_call_operand.vmem [shape: f32[1,8], index: 3, kind: input, shape index: {}]   ;;  %s414_s0 = inlined_call_operand.vmem [shape: f32[128,8], index: 0, kind: input, shape index: {}]   ;;  %s415_s4 = inlined_call_operand.vmem [shape: f32[1,8], index: 4, kind: input, shape index: {}]   ;;  %s416_s5 = inlined_call_operand.vmem [shape: f32[128,8], index: 5, kind: input, shape index: {}]   ;;  %s417_s6 = inlined_call_operand.vmem [shape: f32[128,8], index: 6, kind: output, shape index: {}]  }
   0x1   :  { %v23_v0 = vld [vmem:[%s411_s1] sm:$0x1]  ;;  %v38_v16 = vld [vmem:[%s414_s0 + $0x8] sm:$0xff]  ;;  %v39_v17 = vld [vmem:[%s414_s0 + $0x10] sm:$0xff] }
   0x2   :  { %v24_v1 = vld [vmem:[%s412_s2] sm:$0x1]  ;;  %v27_v2 = vmul.f32 0.0078125, %v23_v0  ;;  %v55_v9 = vshrl.u32 %v54_v8, 7  ;;  %v40_v18 = vld [vmem:[%s414_s0 + $0x18] sm:$0xff]  ;;  %v42_v22 = vld [vmem:[%s414_s0 + $0x28] sm:$0xff] }
   0x3   :  { %v28_v3 = vmul.f32 0.0078125, %v24_v1  ;;  %v25_v10 = vld [vmem:[%s413_s3] sm:$0x1]  ;;  %v43_v23 = vld [vmem:[%s414_s0 + $0x30] sm:$0xff]  ;;  %v44_v24 = vld [vmem:[%s414_s0 + $0x38] sm:$0xff] }
   0x4   :  { %v29_v4 = vmul.f32 %v27_v2, %v27_v2  ;;  %v56_v11 = vsub.s32 0, %v55_v9  ;;  %v26_v13 = vld [vmem:[%s415_s4] sm:$0x1]  ;;  %v46_v26 = vld [vmem:[%s414_s0 + $0x48] sm:$0xff]  ;;  %v47_v27 = vld [vmem:[%s414_s0 + $0x50] sm:$0xff] }
   0x5   :  { %v37_v15 = vld [vmem:[%s414_s0] sm:$0xff]  ;;  %v48_v32 = vld [vmem:[%s414_s0 + $0x58] sm:$0xff]  ;;  %v50_v34 = vld [vmem:[%s414_s0 + $0x68] sm:$0xff] }
   0x6   :  { %v30_v5 = vsub.f32 %v28_v3, %v29_v4  ;;  %v41_v19 = vld [vmem:[%s414_s0 + $0x20] sm:$0xff]  ;;  %v98_v41 = vld [vmem:[%s416_s5 + $0x8] sm:$0xff]  ;;  %v99_v45 = vld [vmem:[%s416_s5 + $0x10] sm:$0xff] }
   0x7   :  { %v45_v25 = vld [vmem:[%s414_s0 + $0x40] sm:$0xff]  ;;  %v100_v46 = vld [vmem:[%s416_s5 + $0x18] sm:$0xff]  ;;  %v102_v56 = vld [vmem:[%s416_s5 + $0x28] sm:$0xff] }
   0x8   :  { %v31_v6 = vmax.f32 %v30_v5, 0.0  ;;  %v49_v33 = vld [vmem:[%s414_s0 + $0x60] sm:$0xff]  ;;  %v103_v57 = vld [vmem:[%s416_s5 + $0x30] sm:$0xff]  ;;  %v104_v58 = vld [vmem:[%s416_s5 + $0x38] sm:$0xff] }
   0x9   :  { %v97_v40 = vld [vmem:[%s416_s5] sm:$0xff]  ;;  %v106_v8 = vld [vmem:[%s416_s5 + $0x48] sm:$0xff] }
   0xa   :  { %v32_v7 = vadd.f32 1e-05, %v31_v6  ;;  %v101_v47 = vld [vmem:[%s416_s5 + $0x20] sm:$0xff] }
   0xc   :  { %166 = vrsqrt.f32 %v32_v7  ;;  %v105_v7 = vld [vmem:[%s416_s5 + $0x40] sm:$0xff] }
  0x16   :  { %v167_v12 = vpop.eup %166 }
  0x17   :  { %v34_v14 = vmul.f32 %v167_v12, %v25_v10 }
  0x19   :  { %v35_v20 = vmul.f32 %v34_v14, %v27_v2  ;;  %v230_v21 = vrot.slane %v34_v14, %v56_v11  ;;  %v52_v14 = vld [vmem:[%s414_s0 + $0x78] sm:$0xff] }
  0x1b   :  { %v36_v28 = vsub.f32 %v26_v13, %v35_v20  ;;  %v59_v29 = vmul.f32 %v230_v21, %v37_v15  ;;  %v60_v30 = vmul.f32 %v230_v21, %v38_v16  ;;  %v61_v31 = vmul.f32 %v230_v21, %v39_v17  ;;  %v51_v13 = vld [vmem:[%s414_s0 + $0x70] sm:$0xff]  ;;  %v108_v20 = vld [vmem:[%s416_s5 + $0x58] sm:$0xff] }
  0x1c   :  { %v62_v35 = vmul.f32 %v230_v21, %v40_v18  ;;  %v63_v36 = vmul.f32 %v230_v21, %v41_v19  ;;  %v64_v37 = vmul.f32 %v230_v21, %v42_v22  ;;  %v65_v38 = vmul.f32 %v230_v21, %v43_v23  ;;  %v107_v19 = vld [vmem:[%s416_s5 + $0x50] sm:$0xff] }
  0x1d   :  { %v266_v39 = vrot.slane %v36_v28, %v56_v11  ;;  %v66_v42 = vmul.f32 %v230_v21, %v44_v24  ;;  %v67_v43 = vmul.f32 %v230_v21, %v45_v25  ;;  %v68_v44 = vmul.f32 %v230_v21, %v46_v26  ;;  %v109_v26 = vld [vmem:[%s416_s5 + $0x60] sm:$0xff] }
  0x1e   :  { %v69_v48 = vmul.f32 %v230_v21, %v47_v27  ;;  %v70_v49 = vmul.f32 %v230_v21, %v48_v32  ;;  %v71_v50 = vmul.f32 %v230_v21, %v49_v33  ;;  %v72_v51 = vmul.f32 %v230_v21, %v50_v34  ;;  %v110_v27 = vld [vmem:[%s416_s5 + $0x68] sm:$0xff] }
  0x1f   :  { %v81_v52 = vadd.f32 %v266_v39, %v59_v29  ;;  %v82_v53 = vadd.f32 %v266_v39, %v60_v30  ;;  %v83_v54 = vadd.f32 %v266_v39, %v61_v31  ;;  %v84_v55 = vadd.f32 %v266_v39, %v62_v35 }
  0x20   :  { %v85_v59 = vadd.f32 %v266_v39, %v63_v36  ;;  %v86_v60 = vadd.f32 %v266_v39, %v64_v37  ;;  %v87_v61 = vadd.f32 %v266_v39, %v65_v38  ;;  %v88_v62 = vadd.f32 %v266_v39, %v66_v42  ;;  %v111_v36 = vld [vmem:[%s416_s5 + $0x70] sm:$0xff]  ;;  %v112_v37 = vld [vmem:[%s416_s5 + $0x78] sm:$0xff] }
  0x21   :  { %v113_v63 = vadd.f32 %v97_v40, %v81_v52  ;;  %v114_v0 = vadd.f32 %v98_v41, %v82_v53  ;;  %v115_v1 = vadd.f32 %v99_v45, %v83_v54  ;;  %v116_v2 = vadd.f32 %v100_v46, %v84_v55 }
  0x22   :  { %v117_v3 = vadd.f32 %v101_v47, %v85_v59  ;;  %v118_v4 = vadd.f32 %v102_v56, %v86_v60  ;;  %v119_v5 = vadd.f32 %v103_v57, %v87_v61  ;;  %v120_v6 = vadd.f32 %v104_v58, %v88_v62 }
  0x23   :  { %v129_v9 = vmax.f32 %v113_v63, 0.0  ;;  %v130_v10 = vmax.f32 %v114_v0, 0.0  ;;  %v131_v11 = vmax.f32 %v115_v1, 0.0  ;;  %v132_v12 = vmax.f32 %v116_v2, 0.0 }
  0x24   :  { %v133_v15 = vmax.f32 %v117_v3, 0.0  ;;  %v134_v16 = vmax.f32 %v118_v4, 0.0  ;;  %v135_v17 = vmax.f32 %v119_v5, 0.0  ;;  %v136_v18 = vmax.f32 %v120_v6, 0.0 }
  0x25   :  { %146 = vst.msk [vmem:[%s417_s6] sm:$0xff] %vm145_vm0, %v129_v9  ;;  %147 = vst.msk [vmem:[%s417_s6 + $0x8] sm:$0xff] %vm145_vm0, %v130_v10  ;;  %v89_v22 = vadd.f32 %v266_v39, %v67_v43  ;;  %v90_v23 = vadd.f32 %v266_v39, %v68_v44  ;;  %v91_v24 = vadd.f32 %v266_v39, %v69_v48 }
  0x26   :  { %148 = vst.msk [vmem:[%s417_s6 + $0x10] sm:$0xff] %vm145_vm0, %v131_v11  ;;  %149 = vst.msk [vmem:[%s417_s6 + $0x18] sm:$0xff] %vm145_vm0, %v132_v12  ;;  %v92_v25 = vadd.f32 %v266_v39, %v70_v49  ;;  %v93_v28 = vadd.f32 %v266_v39, %v71_v50  ;;  %v94_v29 = vadd.f32 %v266_v39, %v72_v51 }
  0x27   :  { %150 = vst.msk [vmem:[%s417_s6 + $0x20] sm:$0xff] %vm145_vm0, %v133_v15  ;;  %151 = vst.msk [vmem:[%s417_s6 + $0x28] sm:$0xff] %vm145_vm0, %v134_v16  ;;  %v73_v30 = vmul.f32 %v230_v21, %v51_v13  ;;  %v74_v31 = vmul.f32 %v230_v21, %v52_v14  ;;  %v121_v32 = vadd.f32 %v105_v7, %v89_v22 }
  0x28   :  { %152 = vst.msk [vmem:[%s417_s6 + $0x30] sm:$0xff] %vm145_vm0, %v135_v17  ;;  %153 = vst.msk [vmem:[%s417_s6 + $0x38] sm:$0xff] %vm145_vm0, %v136_v18  ;;  %v122_v33 = vadd.f32 %v106_v8, %v90_v23  ;;  %v123_v34 = vadd.f32 %v107_v19, %v91_v24  ;;  %v124_v35 = vadd.f32 %v108_v20, %v92_v25 }
  0x29   :  { %v125_v38 = vadd.f32 %v109_v26, %v93_v28  ;;  %v126_v40 = vadd.f32 %v110_v27, %v94_v29  ;;  %v95_v41 = vadd.f32 %v266_v39, %v73_v30  ;;  %v96_v42 = vadd.f32 %v266_v39, %v74_v31 }
  0x2a   :  { %v137_v43 = vmax.f32 %v121_v32, 0.0  ;;  %v138_v21 = vmax.f32 %v122_v33, 0.0  ;;  %v139_v44 = vmax.f32 %v123_v34, 0.0  ;;  %v140_v45 = vmax.f32 %v124_v35, 0.0 }
  0x2b   :  { %v141_v46 = vmax.f32 %v125_v38, 0.0  ;;  %v142_v47 = vmax.f32 %v126_v40, 0.0  ;;  %v127_v48 = vadd.f32 %v111_v36, %v95_v41  ;;  %v128_v49 = vadd.f32 %v112_v37, %v96_v42 }
  0x2c   :  { %154 = vst.msk [vmem:[%s417_s6 + $0x40] sm:$0xff] %vm145_vm0, %v137_v43  ;;  %155 = vst.msk [vmem:[%s417_s6 + $0x48] sm:$0xff] %vm145_vm0, %v138_v21 }
  0x2d   :  { %156 = vst.msk [vmem:[%s417_s6 + $0x50] sm:$0xff] %vm145_vm0, %v139_v44  ;;  %157 = vst.msk [vmem:[%s417_s6 + $0x58] sm:$0xff] %vm145_vm0, %v140_v45  ;;  %v143_v39 = vmax.f32 %v127_v48, 0.0  ;;  %v144_v50 = vmax.f32 %v128_v49, 0.0 }
  0x2e   :  { %158 = vst.msk [vmem:[%s417_s6 + $0x60] sm:$0xff] %vm145_vm0, %v141_v46  ;;  %159 = vst.msk [vmem:[%s417_s6 + $0x68] sm:$0xff] %vm145_vm0, %v142_v47 }
  0x2f   :  { %160 = vst.msk [vmem:[%s417_s6 + $0x70] sm:$0xff] %vm145_vm0, %v143_v39  ;;  %161 = vst.msk [vmem:[%s417_s6 + $0x78] sm:$0xff] %vm145_vm0, %v144_v50 }

// kernel: basic_resnet_forward.33
= control target key start
LH: loop header
LB: loop body
LE: loop exit
PB: predicated region body
PF: predicated region fallthrough
CT: control target
= control target key end

     0   :  { %v39_v8 = vlaneseq  ;;  %vm58_vm0 = vcmask 130048   ;;  %s135_s1 = inlined_call_operand.vmem [shape: f32[1,16], index: 1, kind: input, shape index: {}]   ;;  %s136_s2 = inlined_call_operand.vmem [shape: f32[1,16], index: 2, kind: input, shape index: {}]   ;;  %s137_s3 = inlined_call_operand.vmem [shape: f32[1,16], index: 3, kind: input, shape index: {}]   ;;  %s138_s4 = inlined_call_operand.vmem [shape: f32[1,16], index: 4, kind: input, shape index: {}]   ;;  %s139_s0 = inlined_call_operand.vmem [shape: f32[32,16], index: 0, kind: input, shape index: {}]   ;;  %s140_s5 = inlined_call_operand.vmem [shape: f32[32,16], index: 5, kind: output, shape index: {}]  }
   0x1   :  { %v20_v0 = vld [vmem:[%s135_s1] sm:$0x1]  ;;  %v35_v16 = vld [vmem:[%s139_s0 + $0x8] sm:$0xff]  ;;  %v36_v17 = vld [vmem:[%s139_s0 + $0x10] sm:$0xff] }
   0x2   :  { %v21_v1 = vld [vmem:[%s136_s2] sm:$0x1]  ;;  %v24_v2 = vmul.f32 0.03125, %v20_v0  ;;  %v40_v9 = vshrl.u32 %v39_v8, 7  ;;  %v37_v20 = vld [vmem:[%s139_s0 + $0x18] sm:$0xff] }
   0x3   :  { %v25_v3 = vmul.f32 0.03125, %v21_v1  ;;  %v22_v10 = vld [vmem:[%s137_s3] sm:$0x1] }
   0x4   :  { %v26_v4 = vmul.f32 %v24_v2, %v24_v2  ;;  %v41_v11 = vsub.s32 0, %v40_v9  ;;  %v23_v13 = vld [vmem:[%s138_s4] sm:$0x1] }
   0x5   :  { %v34_v15 = vld [vmem:[%s139_s0] sm:$0xff] }
   0x6   :  { %v27_v5 = vsub.f32 %v25_v3, %v26_v4 }
   0x8   :  { %v28_v6 = vmax.f32 %v27_v5, 0.0 }
   0xa   :  { %v29_v7 = vadd.f32 1e-05, %v28_v6 }
   0xc   :  { %67 = vrsqrt.f32 %v29_v7 }
  0x16   :  { %v68_v12 = vpop.eup %67 }
  0x17   :  { %v31_v14 = vmul.f32 %v68_v12, %v22_v10 }
  0x19   :  { %v32_v18 = vmul.f32 %v31_v14, %v24_v2  ;;  %v42_v19 = vrot.slane %v31_v14, %v41_v11 }
  0x1b   :  { %v33_v21 = vsub.f32 %v23_v13, %v32_v18  ;;  %v44_v22 = vmul.f32 %v42_v19, %v34_v15  ;;  %v45_v23 = vmul.f32 %v42_v19, %v35_v16  ;;  %v46_v24 = vmul.f32 %v42_v19, %v36_v17 }
  0x1c   :  { %v47_v25 = vmul.f32 %v42_v19, %v37_v20 }
  0x1d   :  { %v52_v26 = vrot.slane %v33_v21, %v41_v11 }
  0x1f   :  { %v54_v27 = vadd.f32 %v52_v26, %v44_v22  ;;  %v55_v28 = vadd.f32 %v52_v26, %v45_v23  ;;  %v56_v29 = vadd.f32 %v52_v26, %v46_v24  ;;  %v57_v30 = vadd.f32 %v52_v26, %v47_v25 }
  0x21   :  { %59 = vst.msk [vmem:[%s140_s5] sm:$0xff] %vm58_vm0, %v54_v27  ;;  %60 = vst.msk [vmem:[%s140_s5 + $0x8] sm:$0xff] %vm58_vm0, %v55_v28 }
  0x22   :  { %61 = vst.msk [vmem:[%s140_s5 + $0x10] sm:$0xff] %vm58_vm0, %v56_v29  ;;  %62 = vst.msk [vmem:[%s140_s5 + $0x18] sm:$0xff] %vm58_vm0, %v57_v30 }

// kernel: basic_resnet_forward.35
= control target key start
LH: loop header
LB: loop body
LE: loop exit
PB: predicated region body
PF: predicated region fallthrough
CT: control target
= control target key end

     0   :  { %v39_v8 = vlaneseq  ;;  %vm62_vm0 = vcmask 130048   ;;  %s139_s1 = inlined_call_operand.vmem [shape: f32[1,16], index: 1, kind: input, shape index: {}]   ;;  %s140_s2 = inlined_call_operand.vmem [shape: f32[1,16], index: 2, kind: input, shape index: {}]   ;;  %s141_s3 = inlined_call_operand.vmem [shape: f32[1,16], index: 3, kind: input, shape index: {}]   ;;  %s142_s4 = inlined_call_operand.vmem [shape: f32[1,16], index: 4, kind: input, shape index: {}]   ;;  %s143_s0 = inlined_call_operand.vmem [shape: f32[32,16], index: 0, kind: input, shape index: {}]   ;;  %s144_s5 = inlined_call_operand.vmem [shape: f32[32,16], index: 5, kind: output, shape index: {}]  }
   0x1   :  { %v20_v0 = vld [vmem:[%s139_s1] sm:$0x1]  ;;  %v35_v16 = vld [vmem:[%s143_s0 + $0x8] sm:$0xff]  ;;  %v36_v17 = vld [vmem:[%s143_s0 + $0x10] sm:$0xff] }
   0x2   :  { %v21_v1 = vld [vmem:[%s140_s2] sm:$0x1]  ;;  %v24_v2 = vmul.f32 0.03125, %v20_v0  ;;  %v40_v9 = vshrl.u32 %v39_v8, 7  ;;  %v37_v20 = vld [vmem:[%s143_s0 + $0x18] sm:$0xff] }
   0x3   :  { %v25_v3 = vmul.f32 0.03125, %v21_v1  ;;  %v22_v10 = vld [vmem:[%s141_s3] sm:$0x1] }
   0x4   :  { %v26_v4 = vmul.f32 %v24_v2, %v24_v2  ;;  %v41_v11 = vsub.s32 0, %v40_v9  ;;  %v23_v13 = vld [vmem:[%s142_s4] sm:$0x1] }
   0x5   :  { %v34_v15 = vld [vmem:[%s143_s0] sm:$0xff] }
   0x6   :  { %v27_v5 = vsub.f32 %v25_v3, %v26_v4 }
   0x8   :  { %v28_v6 = vmax.f32 %v27_v5, 0.0 }
   0xa   :  { %v29_v7 = vadd.f32 1e-05, %v28_v6 }
   0xc   :  { %71 = vrsqrt.f32 %v29_v7 }
  0x16   :  { %v72_v12 = vpop.eup %71 }
  0x17   :  { %v31_v14 = vmul.f32 %v72_v12, %v22_v10 }
  0x19   :  { %v32_v18 = vmul.f32 %v31_v14, %v24_v2  ;;  %v42_v19 = vrot.slane %v31_v14, %v41_v11 }
  0x1b   :  { %v33_v21 = vsub.f32 %v23_v13, %v32_v18  ;;  %v44_v22 = vmul.f32 %v42_v19, %v34_v15  ;;  %v45_v23 = vmul.f32 %v42_v19, %v35_v16  ;;  %v46_v24 = vmul.f32 %v42_v19, %v36_v17 }
  0x1c   :  { %v47_v25 = vmul.f32 %v42_v19, %v37_v20 }
  0x1d   :  { %v52_v26 = vrot.slane %v33_v21, %v41_v11 }
  0x1f   :  { %v54_v27 = vadd.f32 %v52_v26, %v44_v22  ;;  %v55_v28 = vadd.f32 %v52_v26, %v45_v23  ;;  %v56_v29 = vadd.f32 %v52_v26, %v46_v24  ;;  %v57_v30 = vadd.f32 %v52_v26, %v47_v25 }
  0x21   :  { %v58_v31 = vmax.f32 %v54_v27, 0.0  ;;  %v59_v32 = vmax.f32 %v55_v28, 0.0  ;;  %v60_v33 = vmax.f32 %v56_v29, 0.0  ;;  %v61_v34 = vmax.f32 %v57_v30, 0.0 }
  0x23   :  { %63 = vst.msk [vmem:[%s144_s5] sm:$0xff] %vm62_vm0, %v58_v31  ;;  %64 = vst.msk [vmem:[%s144_s5 + $0x8] sm:$0xff] %vm62_vm0, %v59_v32 }
  0x24   :  { %65 = vst.msk [vmem:[%s144_s5 + $0x10] sm:$0xff] %vm62_vm0, %v60_v33  ;;  %66 = vst.msk [vmem:[%s144_s5 + $0x18] sm:$0xff] %vm62_vm0, %v61_v34 }

// kernel: basic_resnet_forward.34
= control target key start
LH: loop header
LB: loop body
LE: loop exit
PB: predicated region body
PF: predicated region fallthrough
CT: control target
= control target key end

     0   :  { %vm27_vm0 = vcmask 588800   ;;  %vm125_vm1 = vcmask 130048   ;;  %vm143_vm2 = vcmask 122880   ;;  %s340_s1 = inlined_call_operand.vmem [shape: f32[72,16], index: 1, kind: input, shape index: {}]   ;;  %s341_s0 = inlined_call_operand.vmem [shape: f32[32,72], index: 0, kind: input, shape index: {}]   ;;  %s342_s2 = inlined_call_operand.vmem [shape: f32[32,16], index: 2, kind: output, shape index: {0}]   ;;  %s343_s3 = inlined_call_operand.vmem [shape: f32[1,16], index: 3, kind: output, shape index: {1}]   ;;  %s344_s4 = inlined_call_operand.vmem [shape: f32[1,16], index: 4, kind: output, shape index: {2}]  }
   0x1   :  { %v18_v0 = vld [vmem:[%s340_s1] sm:$0xff]  ;;  %v19_v1 = vld [vmem:[%s340_s1 + $0x8] sm:$0xff]  ;;  %v20_v2 = vld [vmem:[%s340_s1 + $0x10] sm:$0xff] }
   0x2   :  { %v216_v3 = vpack.c.bf16 %v19_v1, %v18_v0  ;;  %v21_v4 = vld [vmem:[%s340_s1 + $0x18] sm:$0xff]  ;;  %v22_v6 = vld [vmem:[%s340_s1 + $0x20] sm:$0xff]  ;;  %v23_v7 = vld [vmem:[%s340_s1 + $0x28] sm:$0xff] }
   0x3   :  { %v220_v5 = vpack.c.bf16 %v21_v4, %v20_v2  ;;  %v14_v8 = vld [vmem:[%s341_s0] sm:$0xff]  ;;  %v16_v9 = vld [vmem:[%s341_s0 + $0x10] sm:$0xff]  ;;  %v224_v10 = vpack.c.bf16 %v23_v7, %v22_v6  ;;  %v25_v12 = vld [vmem:[%s340_s1 + $0x38] sm:$0xff] }
   0x4   :  { %217 = vmatprep.subr.bf16.mxu0 %v216_v3  ;;  %232 = vmatprep.subr.bf16.mxu1 %v216_v3  ;;  %v24_v11 = vld [vmem:[%s340_s1 + $0x30] sm:$0xff]  ;;  %v26_v14 = vld [vmem:[%s340_s1 + $0x40] sm:$0xff]  ;;  %v15_v15 = vld [vmem:[%s341_s0 + $0x8] sm:$0xff] }
   0x5   :  { %219 = vmatpush3.bf16.msra.mxu0 %v216_v3  ;;  %237 = vmatpush3.bf16.msra.mxu1 %v216_v3  ;;  %v228_v13 = vpack.c.bf16 %v25_v12, %v24_v11  ;;  %v17_v16 = vld [vmem:[%s341_s0 + $0x18] sm:$0xff] }
   0x6   :  { %221 = vmatprep.subr.bf16.mxu0 %v220_v5  ;;  %233 = vmatprep.subr.bf16.mxu1 %v220_v5 }
   0x7   :  { %210 = vmatprep.mubr.msk.f32.mxu0 %vm27_vm0, %v14_v8  ;;  %213 = vmatprep.mubr.msk.f32.mxu1 %vm27_vm0, %v16_v9 }
   0x9   :  { %223 = vmatpush3.bf16.msra.mxu0 %v220_v5  ;;  %238 = vmatpush3.bf16.msra.mxu1 %v220_v5 }
   0xa   :  { %225 = vmatprep.subr.bf16.mxu0 %v224_v10  ;;  %234 = vmatprep.subr.bf16.mxu1 %v224_v10 }
   0xd   :  { %227 = vmatpush3.bf16.msra.mxu0 %v224_v10  ;;  %239 = vmatpush3.bf16.msra.mxu1 %v224_v10 }
   0xe   :  { %229 = vmatprep.subr.bf16.mxu0 %v228_v13  ;;  %235 = vmatprep.subr.bf16.mxu1 %v228_v13 }
  0x11   :  { %231 = vmatpush3.bf16.msra.mxu0 %v228_v13  ;;  %240 = vmatpush3.bf16.msra.mxu1 %v228_v13 }
  0x12   :  { %208 = vmatprep.subr.mxu0 %v26_v14  ;;  %236 = vmatprep.subr.mxu1 %v26_v14 }
  0x15   :  { %209 = vmatpush3.msra.mxu0 %v26_v14  ;;  %241 = vmatpush3.msra.mxu1 %v26_v14 }
  0x16   :  { %211 = vmatmul.mubr.msk.f32.vlgmr.msra.gmra.mrb[0].mxu0 %vm27_vm0, %v15_v15  ;;  %214 = vmatmul.mubr.msk.f32.vlgmr.msra.gmra.mrb[0].mxu1 %vm27_vm0, %v17_v16 }
  0xe9   :  { %v212_v17 = vpop.f32.mrb[0].mxu0  ;;  %v215_v18 = vpop.f32.mrb[0].mxu1 }
  0xea   :  { %127 = vst.msk [vmem:[%s342_s2 + $0x8] sm:$0xff] %vm125_vm1, %v212_v17  ;;  %v131_v19 = vsel %vm125_vm1, %v212_v17, 0.0  ;;  %v146_v20 = vmul.f32 %v212_v17, %v212_v17  ;;  %v106_v21 = vpop.f32.mrb[1].mxu0  ;;  %129 = vst.msk [vmem:[%s342_s2 + $0x18] sm:$0xff] %vm125_vm1, %v215_v18  ;;  %v116_v22 = vpop.f32.mrb[1].mxu1  ;;  %v148_v30 = vmul.f32 %v215_v18, %v215_v18  ;;  %v135_v34 = vsel %vm125_vm1, %v215_v18, 0.0 }
  0xeb   :  { %126 = vst.msk [vmem:[%s342_s2] sm:$0xff] %vm125_vm1, %v106_v21  ;;  %v130_v23 = vsel %vm125_vm1, %v106_v21, 0.0  ;;  %v145_v24 = vmul.f32 %v106_v21, %v106_v21  ;;  %128 = vst.msk [vmem:[%s342_s2 + $0x10] sm:$0xff] %vm125_vm1, %v116_v22  ;;  %v133_v25 = vsel %vm125_vm1, %v116_v22, 0.0  ;;  %v147_v26 = vmul.f32 %v116_v22, %v116_v22 }
  0xec   :  { %v150_v27 = vsel %vm125_vm1, %v146_v20, 0.0  ;;  %v132_v28 = vadd.f32 %v131_v19, %v130_v23  ;;  %v154_v37 = vsel %vm125_vm1, %v148_v30, 0.0 }
  0xed   :  { %v149_v29 = vsel %vm125_vm1, %v145_v24, 0.0  ;;  %v152_v31 = vsel %vm125_vm1, %v147_v26, 0.0 }
  0xee   :  { %v151_v32 = vadd.f32 %v150_v27, %v149_v29  ;;  %v134_v33 = vadd.f32 %v133_v25, %v132_v28 }
  0xf0   :  { %v136_v35 = vadd.f32 %v135_v34, %v134_v33  ;;  %v153_v36 = vadd.f32 %v152_v31, %v151_v32 }
  0xf2   :  { %v137_v38 = vrot.slane %v136_v35, 4  ;;  %v155_v39 = vadd.f32 %v154_v37, %v153_v36 }
  0xf4   :  { %v138_v40 = vadd.f32 %v137_v38, %v136_v35  ;;  %v156_v41 = vrot.slane %v155_v39, 4 }
  0xf6   :  { %v139_v42 = vrot.slane %v138_v40, 2  ;;  %v157_v43 = vadd.f32 %v156_v41, %v155_v39 }
  0xf8   :  { %v140_v44 = vadd.f32 %v139_v42, %v138_v40  ;;  %v158_v45 = vrot.slane %v157_v43, 2 }
  0xfa   :  { %v141_v46 = vrot.slane %v140_v44, 1  ;;  %v159_v47 = vadd.f32 %v158_v45, %v157_v43 }
  0xfc   :  { %v142_v48 = vadd.f32 %v141_v46, %v140_v44  ;;  %v160_v49 = vrot.slane %v159_v47, 1 }
  0xfe   :  { %144 = vst.msk [vmem:[%s343_s3] sm:$0x1] %vm143_vm2, %v142_v48  ;;  %v161_v50 = vadd.f32 %v160_v49, %v159_v47 }
 0x100   :  { %162 = vst.msk [vmem:[%s344_s4] sm:$0x1] %vm143_vm2, %v161_v50 }

// kernel: basic_resnet_forward.36
= control target key start
LH: loop header
LB: loop body
LE: loop exit
PB: predicated region body
PF: predicated region fallthrough
CT: control target
= control target key end

     0   :  { %v237_v0 = vmov 0.0|0.0   ;;  %vm40_vm0 = vcmask 130048   ;;  %vm155_vm1 = vcmask 122880   ;;  %s393_s1 = inlined_call_operand.vmem [shape: f32[144,16], index: 1, kind: input, shape index: {}]   ;;  %s394_s0 = inlined_call_operand.vmem [shape: f32[32,144], index: 0, kind: input, shape index: {}]   ;;  %s395_s2 = inlined_call_operand.vmem [shape: f32[32,16], index: 2, kind: output, shape index: {0}]   ;;  %s396_s3 = inlined_call_operand.vmem [shape: f32[1,16], index: 3, kind: output, shape index: {1}]   ;;  %s397_s4 = inlined_call_operand.vmem [shape: f32[1,16], index: 4, kind: output, shape index: {2}]  }
   0x1   :  { %191 = vmatprep.subr.bf16.mxu0 %v237_v0  ;;  %v22_v1 = vld [vmem:[%s393_s1] sm:$0xff]  ;;  %v23_v2 = vld [vmem:[%s393_s1 + $0x8] sm:$0xff]  ;;  %218 = vmatprep.subr.bf16.mxu1 %v237_v0  ;;  %v24_v3 = vld [vmem:[%s393_s1 + $0x10] sm:$0xff] }
   0x2   :  { %v192_v4 = vpack.c.bf16 %v23_v2, %v22_v1  ;;  %v25_v5 = vld [vmem:[%s393_s1 + $0x18] sm:$0xff]  ;;  %v26_v7 = vld [vmem:[%s393_s1 + $0x20] sm:$0xff]  ;;  %v27_v8 = vld [vmem:[%s393_s1 + $0x28] sm:$0xff] }
   0x3   :  { %v195_v6 = vpack.c.bf16 %v25_v5, %v24_v3  ;;  %v15_v9 = vld [vmem:[%s394_s0 + $0x8] sm:$0xff]  ;;  %v198_v11 = vpack.c.bf16 %v27_v8, %v26_v7  ;;  %v28_v12 = vld [vmem:[%s393_s1 + $0x30] sm:$0xff]  ;;  %v29_v13 = vld [vmem:[%s393_s1 + $0x38] sm:$0xff] }
   0x4   :  { %193 = vmatpush1.bf16.msra.mxu0 %v192_v4  ;;  %227 = vmatpush1.bf16.msra.mxu1 %v192_v4  ;;  %v19_v10 = vld [vmem:[%s394_s0 + $0x28] sm:$0xff]  ;;  %v201_v14 = vpack.c.bf16 %v29_v13, %v28_v12  ;;  %v30_v15 = vld [vmem:[%s393_s1 + $0x40] sm:$0xff]  ;;  %v32_v18 = vld [vmem:[%s393_s1 + $0x50] sm:$0xff] }
   0x5   :  { %194 = vmatprep.subr.bf16.mxu0 %v237_v0  ;;  %219 = vmatprep.subr.bf16.mxu1 %v237_v0  ;;  %v31_v16 = vld [vmem:[%s393_s1 + $0x48] sm:$0xff]  ;;  %v33_v19 = vld [vmem:[%s393_s1 + $0x58] sm:$0xff]  ;;  %v34_v21 = vld [vmem:[%s393_s1 + $0x60] sm:$0xff] }
   0x6   :  { %187 = vmatprep.mubr.msk.f32.mxu0 %vm40_vm0, %v15_v9  ;;  %189 = vmatprep.mubr.msk.f32.mxu1 %vm40_vm0, %v19_v10  ;;  %v204_v17 = vpack.c.bf16 %v31_v16, %v30_v15  ;;  %v207_v20 = vpack.c.bf16 %v33_v19, %v32_v18  ;;  %v35_v22 = vld [vmem:[%s393_s1 + $0x68] sm:$0xff]  ;;  %v36_v24 = vld [vmem:[%s393_s1 + $0x70] sm:$0xff]  ;;  %v37_v25 = vld [vmem:[%s393_s1 + $0x78] sm:$0xff] }
   0x7   :  { %v210_v23 = vpack.c.bf16 %v35_v22, %v34_v21  ;;  %v213_v26 = vpack.c.bf16 %v37_v25, %v36_v24  ;;  %v38_v27 = vld [vmem:[%s393_s1 + $0x80] sm:$0xff]  ;;  %v39_v28 = vld [vmem:[%s393_s1 + $0x88] sm:$0xff]  ;;  %v17_v32 = vld [vmem:[%s394_s0 + $0x18] sm:$0xff] }
   0x8   :  { %196 = vmatpush1.bf16.msra.mxu0 %v195_v6  ;;  %228 = vmatpush1.bf16.msra.mxu1 %v195_v6  ;;  %v216_v29 = vpack.c.bf16 %v39_v28, %v38_v27  ;;  %v14_v30 = vld [vmem:[%s394_s0] sm:$0xff]  ;;  %v21_v33 = vld [vmem:[%s394_s0 + $0x38] sm:$0xff]  ;;  %v16_v34 = vld [vmem:[%s394_s0 + $0x10] sm:$0xff] }
   0x9   :  { %197 = vmatprep.subr.bf16.mxu0 %v237_v0  ;;  %220 = vmatprep.subr.bf16.mxu1 %v237_v0  ;;  %v18_v31 = vld [vmem:[%s394_s0 + $0x20] sm:$0xff]  ;;  %v20_v35 = vld [vmem:[%s394_s0 + $0x30] sm:$0xff] }
   0xc   :  { %199 = vmatpush1.bf16.msra.mxu0 %v198_v11  ;;  %229 = vmatpush1.bf16.msra.mxu1 %v198_v11 }
   0xd   :  { %200 = vmatprep.subr.bf16.mxu0 %v237_v0  ;;  %221 = vmatprep.subr.bf16.mxu1 %v237_v0 }
  0x10   :  { %202 = vmatpush1.bf16.msra.mxu0 %v201_v14  ;;  %230 = vmatpush1.bf16.msra.mxu1 %v201_v14 }
  0x11   :  { %203 = vmatprep.subr.bf16.mxu0 %v237_v0  ;;  %222 = vmatprep.subr.bf16.mxu1 %v237_v0 }
  0x14   :  { %205 = vmatpush1.bf16.msra.mxu0 %v204_v17  ;;  %231 = vmatpush1.bf16.msra.mxu1 %v204_v17 }
  0x15   :  { %206 = vmatprep.subr.bf16.mxu0 %v237_v0  ;;  %223 = vmatprep.subr.bf16.mxu1 %v237_v0 }
  0x18   :  { %208 = vmatpush1.bf16.msra.mxu0 %v207_v20  ;;  %232 = vmatpush1.bf16.msra.mxu1 %v207_v20 }
  0x19   :  { %209 = vmatprep.subr.bf16.mxu0 %v237_v0  ;;  %224 = vmatprep.subr.bf16.mxu1 %v237_v0 }
  0x1c   :  { %211 = vmatpush1.bf16.msra.mxu0 %v210_v23  ;;  %233 = vmatpush1.bf16.msra.mxu1 %v210_v23 }
  0x1d   :  { %212 = vmatprep.subr.bf16.mxu0 %v237_v0  ;;  %225 = vmatprep.subr.bf16.mxu1 %v237_v0 }
  0x20   :  { %214 = vmatpush1.bf16.msra.mxu0 %v213_v26  ;;  %234 = vmatpush1.bf16.msra.mxu1 %v213_v26 }
  0x21   :  { %215 = vmatprep.subr.bf16.mxu0 %v237_v0  ;;  %226 = vmatprep.subr.bf16.mxu1 %v237_v0 }
  0x24   :  { %217 = vmatpush1.bf16.msra.mxu0 %v216_v29  ;;  %235 = vmatpush1.bf16.msra.mxu1 %v216_v29 }
  0x27   :  { %118 = vmatmul.mubr.f32.vlgmr.msra.gmra.mrb[0].mxu0 %v14_v30  ;;  %128 = vmatmul.mubr.f32.vlgmr.msra.gmra.mrb[0].mxu1 %v18_v31 }
  0x28   :  { %188 = vmatprep.mubr.msk.f32.mxu0 %vm40_vm0, %v17_v32  ;;  %190 = vmatprep.mubr.msk.f32.mxu1 %vm40_vm0, %v21_v33 }
  0x2b   :  { %123 = vmatmul.mubr.f32.gmra.mrb[2].mxu0 %v16_v34  ;;  %133 = vmatmul.mubr.f32.gmra.mrb[2].mxu1 %v20_v35 }
  0xfa   :  { %v119_v36 = vpop.f32.mrb[0].mxu0  ;;  %v129_v37 = vpop.f32.mrb[0].mxu1 }
  0xfb   :  { %138 = vst.msk [vmem:[%s395_s2] sm:$0xff] %vm40_vm0, %v119_v36  ;;  %v121_v38 = vpop.f32.mrb[1].mxu0  ;;  %140 = vst.msk [vmem:[%s395_s2 + $0x10] sm:$0xff] %vm40_vm0, %v129_v37  ;;  %v131_v39 = vpop.f32.mrb[1].mxu1  ;;  %v157_v40 = vmul.f32 %v119_v36, %v119_v36  ;;  %v142_v41 = vsel %vm40_vm0, %v119_v36, 0.0  ;;  %v159_v44 = vmul.f32 %v129_v37, %v129_v37  ;;  %v145_v52 = vsel %vm40_vm0, %v129_v37, 0.0 }
  0xfd   :  { %v161_v51 = vsel %vm40_vm0, %v157_v40, 0.0  ;;  %v164_v57 = vsel %vm40_vm0, %v159_v44, 0.0 }
  0xfe   :  { %v124_v42 = vpop.f32.mrb[2].mxu0  ;;  %v134_v43 = vpop.f32.mrb[2].mxu1 }
  0xff   :  { %139 = vst.msk [vmem:[%s395_s2 + $0x8] sm:$0xff] %vm40_vm0, %v124_v42  ;;  %v143_v45 = vsel %vm40_vm0, %v124_v42, 0.0  ;;  %v158_v46 = vmul.f32 %v124_v42, %v124_v42  ;;  %v126_v47 = vpop.f32.mrb[3].mxu0  ;;  %141 = vst.msk [vmem:[%s395_s2 + $0x18] sm:$0xff] %vm40_vm0, %v134_v43  ;;  %v160_v48 = vmul.f32 %v134_v43, %v134_v43  ;;  %v136_v49 = vpop.f32.mrb[3].mxu1  ;;  %v147_v54 = vsel %vm40_vm0, %v134_v43, 0.0 }
 0x100   :  { %v144_v50 = vadd.f32 %v143_v45, %v142_v41 }
 0x101   :  { %v162_v53 = vsel %vm40_vm0, %v158_v46, 0.0  ;;  %v166_v58 = vsel %vm40_vm0, %v160_v48, 0.0 }
 0x102   :  { %v163_v55 = vadd.f32 %v162_v53, %v161_v51  ;;  %v146_v56 = vadd.f32 %v145_v52, %v144_v50 }
 0x104   :  { %v148_v59 = vadd.f32 %v147_v54, %v146_v56  ;;  %v165_v60 = vadd.f32 %v164_v57, %v163_v55 }
 0x106   :  { %v149_v61 = vrot.slane %v148_v59, 4  ;;  %v167_v62 = vadd.f32 %v166_v58, %v165_v60 }
 0x108   :  { %v150_v63 = vadd.f32 %v149_v61, %v148_v59  ;;  %v168_v0 = vrot.slane %v167_v62, 4 }
 0x10a   :  { %v151_v1 = vrot.slane %v150_v63, 2  ;;  %v169_v2 = vadd.f32 %v168_v0, %v167_v62 }
 0x10c   :  { %v152_v3 = vadd.f32 %v151_v1, %v150_v63  ;;  %v170_v4 = vrot.slane %v169_v2, 2 }
 0x10e   :  { %v153_v5 = vrot.slane %v152_v3, 1  ;;  %v171_v6 = vadd.f32 %v170_v4, %v169_v2 }
 0x110   :  { %v154_v7 = vadd.f32 %v153_v5, %v152_v3  ;;  %v172_v8 = vrot.slane %v171_v6, 1 }
 0x112   :  { %156 = vst.msk [vmem:[%s396_s3] sm:$0x1] %vm155_vm1, %v154_v7  ;;  %v173_v9 = vadd.f32 %v172_v8, %v171_v6 }
 0x114   :  { %174 = vst.msk [vmem:[%s397_s4] sm:$0x1] %vm155_vm1, %v173_v9 }

// kernel: basic_resnet_forward.37
= control target key start
LH: loop header
LB: loop body
LE: loop exit
PB: predicated region body
PF: predicated region fallthrough
CT: control target
= control target key end

     0   :  { %v42_v8 = vlaneseq  ;;  %vm73_vm0 = vcmask 130048   ;;  %s167_s1 = inlined_call_operand.vmem [shape: f32[1,16], index: 1, kind: input, shape index: {}]   ;;  %s168_s2 = inlined_call_operand.vmem [shape: f32[1,16], index: 2, kind: input, shape index: {}]   ;;  %s169_s3 = inlined_call_operand.vmem [shape: f32[1,16], index: 3, kind: input, shape index: {}]   ;;  %s170_s4 = inlined_call_operand.vmem [shape: f32[1,16], index: 4, kind: input, shape index: {}]   ;;  %s171_s0 = inlined_call_operand.vmem [shape: f32[32,16], index: 0, kind: input, shape index: {}]   ;;  %s172_s5 = inlined_call_operand.vmem [shape: f32[32,16], index: 5, kind: input, shape index: {}]   ;;  %s173_s6 = inlined_call_operand.vmem [shape: f32[32,16], index: 6, kind: output, shape index: {}]  }
   0x1   :  { %v23_v0 = vld [vmem:[%s167_s1] sm:$0x1]  ;;  %v38_v16 = vld [vmem:[%s171_s0 + $0x8] sm:$0xff]  ;;  %v39_v17 = vld [vmem:[%s171_s0 + $0x10] sm:$0xff] }
   0x2   :  { %v24_v1 = vld [vmem:[%s168_s2] sm:$0x1]  ;;  %v27_v2 = vmul.f32 0.03125, %v23_v0  ;;  %v43_v9 = vshrl.u32 %v42_v8, 7  ;;  %v40_v20 = vld [vmem:[%s171_s0 + $0x18] sm:$0xff]  ;;  %v62_v28 = vld [vmem:[%s172_s5 + $0x8] sm:$0xff] }
   0x3   :  { %v28_v3 = vmul.f32 0.03125, %v24_v1  ;;  %v25_v10 = vld [vmem:[%s169_s3] sm:$0x1]  ;;  %v63_v29 = vld [vmem:[%s172_s5 + $0x10] sm:$0xff]  ;;  %v64_v30 = vld [vmem:[%s172_s5 + $0x18] sm:$0xff] }
   0x4   :  { %v29_v4 = vmul.f32 %v27_v2, %v27_v2  ;;  %v44_v11 = vsub.s32 0, %v43_v9  ;;  %v26_v13 = vld [vmem:[%s170_s4] sm:$0x1] }
   0x5   :  { %v37_v15 = vld [vmem:[%s171_s0] sm:$0xff] }
   0x6   :  { %v30_v5 = vsub.f32 %v28_v3, %v29_v4  ;;  %v61_v27 = vld [vmem:[%s172_s5] sm:$0xff] }
   0x8   :  { %v31_v6 = vmax.f32 %v30_v5, 0.0 }
   0xa   :  { %v32_v7 = vadd.f32 1e-05, %v31_v6 }
   0xc   :  { %82 = vrsqrt.f32 %v32_v7 }
  0x16   :  { %v83_v12 = vpop.eup %82 }
  0x17   :  { %v34_v14 = vmul.f32 %v83_v12, %v25_v10 }
  0x19   :  { %v35_v18 = vmul.f32 %v34_v14, %v27_v2  ;;  %v45_v19 = vrot.slane %v34_v14, %v44_v11 }
  0x1b   :  { %v36_v21 = vsub.f32 %v26_v13, %v35_v18  ;;  %v47_v22 = vmul.f32 %v45_v19, %v37_v15  ;;  %v48_v23 = vmul.f32 %v45_v19, %v38_v16  ;;  %v49_v24 = vmul.f32 %v45_v19, %v39_v17 }
  0x1c   :  { %v50_v25 = vmul.f32 %v45_v19, %v40_v20 }
  0x1d   :  { %v55_v26 = vrot.slane %v36_v21, %v44_v11 }
  0x1f   :  { %v57_v31 = vadd.f32 %v55_v26, %v47_v22  ;;  %v58_v32 = vadd.f32 %v55_v26, %v48_v23  ;;  %v59_v33 = vadd.f32 %v55_v26, %v49_v24  ;;  %v60_v34 = vadd.f32 %v55_v26, %v50_v25 }
  0x21   :  { %v65_v35 = vadd.f32 %v61_v27, %v57_v31  ;;  %v66_v36 = vadd.f32 %v62_v28, %v58_v32  ;;  %v67_v37 = vadd.f32 %v63_v29, %v59_v33  ;;  %v68_v38 = vadd.f32 %v64_v30, %v60_v34 }
  0x23   :  { %v69_v39 = vmax.f32 %v65_v35, 0.0  ;;  %v70_v40 = vmax.f32 %v66_v36, 0.0  ;;  %v71_v41 = vmax.f32 %v67_v37, 0.0  ;;  %v72_v42 = vmax.f32 %v68_v38, 0.0 }
  0x25   :  { %74 = vst.msk [vmem:[%s173_s6] sm:$0xff] %vm73_vm0, %v69_v39  ;;  %75 = vst.msk [vmem:[%s173_s6 + $0x8] sm:$0xff] %vm73_vm0, %v70_v40 }
  0x26   :  { %76 = vst.msk [vmem:[%s173_s6 + $0x10] sm:$0xff] %vm73_vm0, %v71_v41  ;;  %77 = vst.msk [vmem:[%s173_s6 + $0x18] sm:$0xff] %vm73_vm0, %v72_v42 }

// kernel: basic_resnet_forward.38
= control target key start
LH: loop header
LB: loop body
LE: loop exit
PB: predicated region body
PF: predicated region fallthrough
CT: control target
= control target key end

     0   :  { %v140_v0 = vmov 0.0|0.0   ;;  %vm141_vm0 = vmmov 0   ;;  %v142_v3 = vmov 0.0   ;;  %vm17_vm1 = vcmask 130048   ;;  %s186_s1 = inlined_call_operand.vmem [shape: f32[16,32], index: 1, kind: input, shape index: {}]   ;;  %s187_s0 = inlined_call_operand.vmem [shape: f32[8,16], index: 0, kind: input, shape index: {}]   ;;  %s188_s2 = inlined_call_operand.vmem [shape: f32[8,32], index: 2, kind: output, shape index: {0}]   ;;  %s189_s3 = inlined_call_operand.vmem [shape: f32[1,32], index: 3, kind: output, shape index: {1}]   ;;  %s190_s4 = inlined_call_operand.vmem [shape: f32[1,32], index: 4, kind: output, shape index: {2}]  }
   0x1   :  { %134 = vmatprep.subr.bf16.mxu0 %v140_v0  ;;  %v15_v1 = vld [vmem:[%s186_s1] sm:$0xff]  ;;  %v16_v2 = vld [vmem:[%s186_s1 + $0x8] sm:$0xff]  ;;  %131 = vmatprep.mubr.msk.f32.mxu0 %vm141_vm0, %v142_v3  ;;  %vm91_vm2 = vcmask 261120   ;;  %vm100_vm3 = vcmask 253952  }
   0x2   :  { %v135_v4 = vpack.c.bf16 %v16_v2, %v15_v1  ;;  %v14_v5 = vld [vmem:[%s187_s0] sm:$0xff] }
   0x4   :  { %136 = vmatpush3.bf16.msra.mxu0 %v135_v4 }
   0x7   :  { %132 = vmatmul.mubr.msk.f32.vlgmr.msra.gmra.mrb[0].mxu0 %vm17_vm1, %v14_v5 }
  0xda   :  { %v87_v6 = vpop.f32.mrb[0].mxu0 }
  0xdb   :  { %92 = vst.msk [vmem:[%s188_s2] sm:$0xff] %vm91_vm2, %v87_v6  ;;  %v93_v7 = vsel %vm91_vm2, %v87_v6, 0.0  ;;  %v102_v8 = vmul.f32 %v87_v6, %v87_v6  ;;  %v133_v9 = vpop.f32.mrb[1].mxu0 }
  0xdc   :  { %v94_v10 = vrot.slane %v93_v7, 4 }
  0xdd   :  { %v103_v11 = vsel %vm91_vm2, %v102_v8, 0.0 }
  0xde   :  { %v95_v12 = vadd.f32 %v94_v10, %v93_v7  ;;  %v104_v13 = vrot.slane %v103_v11, 4 }
  0xe0   :  { %v96_v14 = vrot.slane %v95_v12, 2  ;;  %v105_v15 = vadd.f32 %v104_v13, %v103_v11 }
  0xe2   :  { %v97_v16 = vadd.f32 %v96_v14, %v95_v12  ;;  %v106_v17 = vrot.slane %v105_v15, 2 }
  0xe4   :  { %v98_v18 = vrot.slane %v97_v16, 1  ;;  %v107_v19 = vadd.f32 %v106_v17, %v105_v15 }
  0xe6   :  { %v99_v20 = vadd.f32 %v98_v18, %v97_v16  ;;  %v108_v21 = vrot.slane %v107_v19, 1 }
  0xe8   :  { %101 = vst.msk [vmem:[%s189_s3] sm:$0x1] %vm100_vm3, %v99_v20  ;;  %v109_v22 = vadd.f32 %v108_v21, %v107_v19 }
  0xea   :  { %110 = vst.msk [vmem:[%s190_s4] sm:$0x1] %vm100_vm3, %v109_v22 }

// kernel: basic_resnet_forward.39
= control target key start
LH: loop header
LB: loop body
LE: loop exit
PB: predicated region body
PF: predicated region fallthrough
CT: control target
= control target key end

     0   :  { %v36_v8 = vlaneseq  ;;  %vm49_vm0 = vcmask 261120   ;;  %s105_s1 = inlined_call_operand.vmem [shape: f32[1,32], index: 1, kind: input, shape index: {}]   ;;  %s106_s2 = inlined_call_operand.vmem [shape: f32[1,32], index: 2, kind: input, shape index: {}]   ;;  %s107_s3 = inlined_call_operand.vmem [shape: f32[1,32], index: 3, kind: input, shape index: {}]   ;;  %s108_s0 = inlined_call_operand.vmem [shape: f32[8,32], index: 0, kind: input, shape index: {}]   ;;  %s109_s4 = inlined_call_operand.vmem [shape: f32[1,32], index: 4, kind: input, shape index: {}]   ;;  %s110_s5 = inlined_call_operand.vmem [shape: f32[8,32], index: 5, kind: output, shape index: {}]  }
   0x1   :  { %v20_v0 = vld [vmem:[%s105_s1] sm:$0x1] }
   0x2   :  { %v21_v1 = vld [vmem:[%s106_s2] sm:$0x1]  ;;  %v24_v2 = vmul.f32 0.125, %v20_v0  ;;  %v37_v9 = vshrl.u32 %v36_v8, 7 }
   0x3   :  { %v25_v3 = vmul.f32 0.125, %v21_v1  ;;  %v22_v10 = vld [vmem:[%s107_s3] sm:$0x1] }
   0x4   :  { %v26_v4 = vmul.f32 %v24_v2, %v24_v2  ;;  %v38_v11 = vsub.s32 0, %v37_v9  ;;  %v23_v14 = vld [vmem:[%s109_s4] sm:$0x1] }
   0x5   :  { %v34_v15 = vld [vmem:[%s108_s0] sm:$0xff] }
   0x6   :  { %v27_v5 = vsub.f32 %v25_v3, %v26_v4 }
   0x8   :  { %v28_v6 = vmax.f32 %v27_v5, 0.0 }
   0xa   :  { %v29_v7 = vadd.f32 1e-05, %v28_v6 }
   0xc   :  { %55 = vrsqrt.f32 %v29_v7 }
  0x16   :  { %v56_v12 = vpop.eup %55 }
  0x17   :  { %v31_v13 = vmul.f32 %v56_v12, %v22_v10 }
  0x19   :  { %v32_v16 = vmul.f32 %v31_v13, %v24_v2  ;;  %v39_v17 = vrot.slane %v31_v13, %v38_v11 }
  0x1b   :  { %v33_v18 = vsub.f32 %v23_v14, %v32_v16  ;;  %v41_v19 = vmul.f32 %v39_v17, %v34_v15 }
  0x1d   :  { %v46_v20 = vrot.slane %v33_v18, %v38_v11 }
  0x1f   :  { %v48_v21 = vadd.f32 %v46_v20, %v41_v19 }
  0x21   :  { %50 = vst.msk [vmem:[%s110_s5] sm:$0xff] %vm49_vm0, %v48_v21 }

// kernel: basic_resnet_forward.41
= control target key start
LH: loop header
LB: loop body
LE: loop exit
PB: predicated region body
PF: predicated region fallthrough
CT: control target
= control target key end

     0   :  { %v36_v8 = vlaneseq  ;;  %vm50_vm0 = vcmask 261120   ;;  %s106_s1 = inlined_call_operand.vmem [shape: f32[1,32], index: 1, kind: input, shape index: {}]   ;;  %s107_s2 = inlined_call_operand.vmem [shape: f32[1,32], index: 2, kind: input, shape index: {}]   ;;  %s108_s3 = inlined_call_operand.vmem [shape: f32[1,32], index: 3, kind: input, shape index: {}]   ;;  %s109_s0 = inlined_call_operand.vmem [shape: f32[8,32], index: 0, kind: input, shape index: {}]   ;;  %s110_s4 = inlined_call_operand.vmem [shape: f32[1,32], index: 4, kind: input, shape index: {}]   ;;  %s111_s5 = inlined_call_operand.vmem [shape: f32[8,32], index: 5, kind: output, shape index: {}]  }
   0x1   :  { %v20_v0 = vld [vmem:[%s106_s1] sm:$0x1] }
   0x2   :  { %v21_v1 = vld [vmem:[%s107_s2] sm:$0x1]  ;;  %v24_v2 = vmul.f32 0.125, %v20_v0  ;;  %v37_v9 = vshrl.u32 %v36_v8, 7 }
   0x3   :  { %v25_v3 = vmul.f32 0.125, %v21_v1  ;;  %v22_v10 = vld [vmem:[%s108_s3] sm:$0x1] }
   0x4   :  { %v26_v4 = vmul.f32 %v24_v2, %v24_v2  ;;  %v38_v11 = vsub.s32 0, %v37_v9  ;;  %v23_v14 = vld [vmem:[%s110_s4] sm:$0x1] }
   0x5   :  { %v34_v15 = vld [vmem:[%s109_s0] sm:$0xff] }
   0x6   :  { %v27_v5 = vsub.f32 %v25_v3, %v26_v4 }
   0x8   :  { %v28_v6 = vmax.f32 %v27_v5, 0.0 }
   0xa   :  { %v29_v7 = vadd.f32 1e-05, %v28_v6 }
   0xc   :  { %56 = vrsqrt.f32 %v29_v7 }
  0x16   :  { %v57_v12 = vpop.eup %56 }
  0x17   :  { %v31_v13 = vmul.f32 %v57_v12, %v22_v10 }
  0x19   :  { %v32_v16 = vmul.f32 %v31_v13, %v24_v2  ;;  %v39_v17 = vrot.slane %v31_v13, %v38_v11 }
  0x1b   :  { %v33_v18 = vsub.f32 %v23_v14, %v32_v16  ;;  %v41_v19 = vmul.f32 %v39_v17, %v34_v15 }
  0x1d   :  { %v46_v20 = vrot.slane %v33_v18, %v38_v11 }
  0x1f   :  { %v48_v21 = vadd.f32 %v46_v20, %v41_v19 }
  0x21   :  { %v49_v22 = vmax.f32 %v48_v21, 0.0 }
  0x23   :  { %51 = vst.msk [vmem:[%s111_s5] sm:$0xff] %vm50_vm0, %v49_v22 }

// kernel: basic_resnet_forward.40
= control target key start
LH: loop header
LB: loop body
LE: loop exit
PB: predicated region body
PF: predicated region fallthrough
CT: control target
= control target key end

     0   :  { %v169_v0 = vmov 0.0|0.0   ;;  %vm34_vm0 = vcmask 130048   ;;  %vm108_vm1 = vcmask 261120   ;;  %vm117_vm2 = vcmask 253952   ;;  %s264_s1 = inlined_call_operand.vmem [shape: f32[144,32], index: 1, kind: input, shape index: {}]   ;;  %s265_s0 = inlined_call_operand.vmem [shape: f32[8,144], index: 0, kind: input, shape index: {}]   ;;  %s266_s2 = inlined_call_operand.vmem [shape: f32[8,32], index: 2, kind: output, shape index: {0}]   ;;  %s267_s3 = inlined_call_operand.vmem [shape: f32[1,32], index: 3, kind: output, shape index: {1}]   ;;  %s268_s4 = inlined_call_operand.vmem [shape: f32[1,32], index: 4, kind: output, shape index: {2}]  }
   0x1   :  { %141 = vmatprep.subr.bf16.mxu0 %v169_v0  ;;  %v16_v1 = vld [vmem:[%s264_s1] sm:$0xff]  ;;  %v17_v2 = vld [vmem:[%s264_s1 + $0x8] sm:$0xff]  ;;  %v18_v3 = vld [vmem:[%s264_s1 + $0x10] sm:$0xff] }
   0x2   :  { %v142_v4 = vpack.c.bf16 %v17_v2, %v16_v1  ;;  %v19_v5 = vld [vmem:[%s264_s1 + $0x18] sm:$0xff]  ;;  %v20_v7 = vld [vmem:[%s264_s1 + $0x20] sm:$0xff]  ;;  %v21_v8 = vld [vmem:[%s264_s1 + $0x28] sm:$0xff] }
   0x3   :  { %v145_v6 = vpack.c.bf16 %v19_v5, %v18_v3  ;;  %v15_v9 = vld [vmem:[%s265_s0 + $0x8] sm:$0xff]  ;;  %v148_v10 = vpack.c.bf16 %v21_v8, %v20_v7  ;;  %v22_v11 = vld [vmem:[%s264_s1 + $0x30] sm:$0xff]  ;;  %v23_v12 = vld [vmem:[%s264_s1 + $0x38] sm:$0xff] }
   0x4   :  { %143 = vmatpush1.bf16.msra.mxu0 %v142_v4  ;;  %140 = vmatprep.mubr.msk.f32.mxu0 %vm34_vm0, %v15_v9  ;;  %v151_v13 = vpack.c.bf16 %v23_v12, %v22_v11  ;;  %v24_v14 = vld [vmem:[%s264_s1 + $0x40] sm:$0xff]  ;;  %v25_v15 = vld [vmem:[%s264_s1 + $0x48] sm:$0xff]  ;;  %v26_v17 = vld [vmem:[%s264_s1 + $0x50] sm:$0xff] }
   0x5   :  { %144 = vmatprep.subr.bf16.mxu0 %v169_v0  ;;  %v154_v16 = vpack.c.bf16 %v25_v15, %v24_v14  ;;  %v27_v18 = vld [vmem:[%s264_s1 + $0x58] sm:$0xff]  ;;  %v28_v20 = vld [vmem:[%s264_s1 + $0x60] sm:$0xff]  ;;  %v29_v21 = vld [vmem:[%s264_s1 + $0x68] sm:$0xff] }
   0x6   :  { %v157_v19 = vpack.c.bf16 %v27_v18, %v26_v17  ;;  %v160_v22 = vpack.c.bf16 %v29_v21, %v28_v20  ;;  %v30_v23 = vld [vmem:[%s264_s1 + $0x70] sm:$0xff]  ;;  %v31_v24 = vld [vmem:[%s264_s1 + $0x78] sm:$0xff]  ;;  %v32_v26 = vld [vmem:[%s264_s1 + $0x80] sm:$0xff] }
   0x7   :  { %v163_v25 = vpack.c.bf16 %v31_v24, %v30_v23  ;;  %v33_v27 = vld [vmem:[%s264_s1 + $0x88] sm:$0xff]  ;;  %v14_v29 = vld [vmem:[%s265_s0] sm:$0xff] }
   0x8   :  { %146 = vmatpush1.bf16.msra.mxu0 %v145_v6  ;;  %v166_v28 = vpack.c.bf16 %v33_v27, %v32_v26 }
   0x9   :  { %147 = vmatprep.subr.bf16.mxu0 %v169_v0 }
   0xc   :  { %149 = vmatpush1.bf16.msra.mxu0 %v148_v10 }
   0xd   :  { %150 = vmatprep.subr.bf16.mxu0 %v169_v0 }
  0x10   :  { %152 = vmatpush1.bf16.msra.mxu0 %v151_v13 }
  0x11   :  { %153 = vmatprep.subr.bf16.mxu0 %v169_v0 }
  0x14   :  { %155 = vmatpush1.bf16.msra.mxu0 %v154_v16 }
  0x15   :  { %156 = vmatprep.subr.bf16.mxu0 %v169_v0 }
  0x18   :  { %158 = vmatpush1.bf16.msra.mxu0 %v157_v19 }
  0x19   :  { %159 = vmatprep.subr.bf16.mxu0 %v169_v0 }
  0x1c   :  { %161 = vmatpush1.bf16.msra.mxu0 %v160_v22 }
  0x1d   :  { %162 = vmatprep.subr.bf16.mxu0 %v169_v0 }
  0x20   :  { %164 = vmatpush1.bf16.msra.mxu0 %v163_v25 }
  0x21   :  { %165 = vmatprep.subr.bf16.mxu0 %v169_v0 }
  0x24   :  { %167 = vmatpush1.bf16.msra.mxu0 %v166_v28 }
  0x27   :  { %103 = vmatmul.mubr.f32.vlgmr.msra.gmra.mrb[0].mxu0 %v14_v29 }
  0xfa   :  { %v104_v30 = vpop.f32.mrb[0].mxu0 }
  0xfb   :  { %109 = vst.msk [vmem:[%s266_s2] sm:$0xff] %vm108_vm1, %v104_v30  ;;  %v110_v31 = vsel %vm108_vm1, %v104_v30, 0.0  ;;  %v119_v32 = vmul.f32 %v104_v30, %v104_v30  ;;  %v106_v33 = vpop.f32.mrb[1].mxu0 }
  0xfc   :  { %v111_v34 = vrot.slane %v110_v31, 4 }
  0xfd   :  { %v120_v35 = vsel %vm108_vm1, %v119_v32, 0.0 }
  0xfe   :  { %v112_v36 = vadd.f32 %v111_v34, %v110_v31  ;;  %v121_v37 = vrot.slane %v120_v35, 4 }
 0x100   :  { %v113_v38 = vrot.slane %v112_v36, 2  ;;  %v122_v39 = vadd.f32 %v121_v37, %v120_v35 }
 0x102   :  { %v114_v40 = vadd.f32 %v113_v38, %v112_v36  ;;  %v123_v41 = vrot.slane %v122_v39, 2 }
 0x104   :  { %v115_v42 = vrot.slane %v114_v40, 1  ;;  %v124_v43 = vadd.f32 %v123_v41, %v122_v39 }
 0x106   :  { %v116_v44 = vadd.f32 %v115_v42, %v114_v40  ;;  %v125_v45 = vrot.slane %v124_v43, 1 }
 0x108   :  { %118 = vst.msk [vmem:[%s267_s3] sm:$0x1] %vm117_vm2, %v116_v44  ;;  %v126_v46 = vadd.f32 %v125_v45, %v124_v43 }
 0x10a   :  { %127 = vst.msk [vmem:[%s268_s4] sm:$0x1] %vm117_vm2, %v126_v46 }

// kernel: basic_resnet_forward.42
= control target key start
LH: loop header
LB: loop body
LE: loop exit
PB: predicated region body
PF: predicated region fallthrough
CT: control target
= control target key end

     0   :  { %v321_v3 = vmov 0.0|0.0   ;;  %vm322_vm0 = vmmov 0   ;;  %v323_v4 = vmov 0.0   ;;  %vm53_vm1 = vcmask 261120   ;;  %s479_s1 = inlined_call_operand.vmem [shape: f32[288,32], index: 1, kind: input, shape index: {}]   ;;  %s480_s0 = inlined_call_operand.vmem [shape: f32[8,288], index: 0, kind: input, shape index: {}]   ;;  %s481_s2 = inlined_call_operand.vmem [shape: f32[8,32], index: 2, kind: output, shape index: {0}]   ;;  %s482_s3 = inlined_call_operand.vmem [shape: f32[1,32], index: 3, kind: output, shape index: {1}]   ;;  %s483_s4 = inlined_call_operand.vmem [shape: f32[1,32], index: 4, kind: output, shape index: {2}]  }
   0x1   :  { %v33_v0 = vld [vmem:[%s479_s1 + $0x80] sm:$0xff]  ;;  %v34_v1 = vld [vmem:[%s479_s1 + $0x88] sm:$0xff]  ;;  %312 = vmatprep.subr.bf16.mxu1 %v321_v3  ;;  %277 = vmatprep.mubr.msk.f32.mxu1 %vm322_vm0, %v323_v4  ;;  %v35_v7 = vld [vmem:[%s479_s1 + $0x90] sm:$0xff]  ;;  %vm205_vm2 = vcmask 253952  }
   0x2   :  { %v17_v2 = vld [vmem:[%s479_s1] sm:$0xff]  ;;  %v280_v5 = vpack.c.bf16 %v34_v1, %v33_v0  ;;  %v18_v6 = vld [vmem:[%s479_s1 + $0x8] sm:$0xff]  ;;  %v36_v8 = vld [vmem:[%s479_s1 + $0x98] sm:$0xff] }
   0x3   :  { %v282_v9 = vpack.c.bf16 %v18_v6, %v17_v2  ;;  %v284_v10 = vpack.c.bf16 %v36_v8, %v35_v7  ;;  %v19_v11 = vld [vmem:[%s479_s1 + $0x10] sm:$0xff]  ;;  %v20_v12 = vld [vmem:[%s479_s1 + $0x18] sm:$0xff]  ;;  %v37_v13 = vld [vmem:[%s479_s1 + $0xa0] sm:$0xff] }
   0x4   :  { %281 = vmatprep.subr.bf16.mxu0 %v280_v5  ;;  %v38_v14 = vld [vmem:[%s479_s1 + $0xa8] sm:$0xff]  ;;  %v286_v15 = vpack.c.bf16 %v20_v12, %v19_v11  ;;  %v21_v17 = vld [vmem:[%s479_s1 + $0x20] sm:$0xff]  ;;  %v39_v19 = vld [vmem:[%s479_s1 + $0xb0] sm:$0xff] }
   0x5   :  { %283 = vmatpush3.bf16.msra.mxu0 %v282_v9  ;;  %v288_v16 = vpack.c.bf16 %v38_v14, %v37_v13  ;;  %v22_v18 = vld [vmem:[%s479_s1 + $0x28] sm:$0xff]  ;;  %v40_v20 = vld [vmem:[%s479_s1 + $0xb8] sm:$0xff]  ;;  %v23_v22 = vld [vmem:[%s479_s1 + $0x30] sm:$0xff] }
   0x6   :  { %285 = vmatprep.subr.bf16.mxu0 %v284_v10  ;;  %v290_v21 = vpack.c.bf16 %v22_v18, %v21_v17  ;;  %v292_v23 = vpack.c.bf16 %v40_v20, %v39_v19  ;;  %v24_v24 = vld [vmem:[%s479_s1 + $0x38] sm:$0xff]  ;;  %v49_v25 = vld [vmem:[%s479_s1 + $0x100] sm:$0xff]  ;;  %v50_v26 = vld [vmem:[%s479_s1 + $0x108] sm:$0xff] }
   0x7   :  { %v41_v27 = vld [vmem:[%s479_s1 + $0xc0] sm:$0xff]  ;;  %v42_v28 = vld [vmem:[%s479_s1 + $0xc8] sm:$0xff]  ;;  %v313_v29 = vpack.c.bf16 %v50_v26, %v49_v25  ;;  %v51_v31 = vld [vmem:[%s479_s1 + $0x110] sm:$0xff]  ;;  %v294_v32 = vpack.c.bf16 %v24_v24, %v23_v22 }
   0x8   :  { %v15_v30 = vld [vmem:[%s480_s0 + $0x8] sm:$0xff]  ;;  %v52_v33 = vld [vmem:[%s479_s1 + $0x118] sm:$0xff]  ;;  %v296_v34 = vpack.c.bf16 %v42_v28, %v41_v27  ;;  %v25_v35 = vld [vmem:[%s479_s1 + $0x40] sm:$0xff] }
   0x9   :  { %287 = vmatpush3.bf16.msra.mxu0 %v286_v15  ;;  %314 = vmatpush3.bf16.msra.mxu1 %v313_v29  ;;  %v26_v36 = vld [vmem:[%s479_s1 + $0x48] sm:$0xff]  ;;  %v316_v37 = vpack.c.bf16 %v52_v33, %v51_v31  ;;  %v43_v38 = vld [vmem:[%s479_s1 + $0xd0] sm:$0xff]  ;;  %v44_v39 = vld [vmem:[%s479_s1 + $0xd8] sm:$0xff] }
   0xa   :  { %289 = vmatprep.subr.bf16.mxu0 %v288_v16  ;;  %315 = vmatprep.subr.bf16.mxu1 %v321_v3  ;;  %v298_v40 = vpack.c.bf16 %v26_v36, %v25_v35  ;;  %v16_v41 = vld [vmem:[%s480_s0 + $0x10] sm:$0xff]  ;;  %v300_v42 = vpack.c.bf16 %v44_v39, %v43_v38  ;;  %v28_v44 = vld [vmem:[%s479_s1 + $0x58] sm:$0xff]  ;;  %v45_v45 = vld [vmem:[%s479_s1 + $0xe0] sm:$0xff] }
   0xb   :  { %121 = vmatprep.mubr.f32.mxu0 %v15_v30  ;;  %v27_v43 = vld [vmem:[%s479_s1 + $0x50] sm:$0xff]  ;;  %v46_v46 = vld [vmem:[%s479_s1 + $0xe8] sm:$0xff]  ;;  %v29_v49 = vld [vmem:[%s479_s1 + $0x60] sm:$0xff] }
   0xc   :  { %v302_v47 = vpack.c.bf16 %v28_v44, %v27_v43  ;;  %v304_v48 = vpack.c.bf16 %v46_v46, %v45_v45  ;;  %v30_v50 = vld [vmem:[%s479_s1 + $0x68] sm:$0xff]  ;;  %v47_v51 = vld [vmem:[%s479_s1 + $0xf0] sm:$0xff]  ;;  %v48_v52 = vld [vmem:[%s479_s1 + $0xf8] sm:$0xff] }
   0xd   :  { %291 = vmatpush3.bf16.msra.mxu0 %v290_v21  ;;  %317 = vmatpush3.bf16.msra.mxu1 %v316_v37  ;;  %v306_v53 = vpack.c.bf16 %v30_v50, %v29_v49  ;;  %v308_v54 = vpack.c.bf16 %v48_v52, %v47_v51  ;;  %v31_v55 = vld [vmem:[%s479_s1 + $0x70] sm:$0xff]  ;;  %v32_v56 = vld [vmem:[%s479_s1 + $0x78] sm:$0xff]  ;;  %v14_v58 = vld [vmem:[%s480_s0] sm:$0xff] }
   0xe   :  { %293 = vmatprep.subr.bf16.mxu0 %v292_v23  ;;  %v310_v57 = vpack.c.bf16 %v32_v56, %v31_v55 }
  0x10   :  { %278 = vmatmul.mubr.msk.f32.vlgmr.msra.gmra.mrb[0].mxu1 %vm53_vm1, %v16_v41 }
  0x11   :  { %295 = vmatpush3.bf16.msra.mxu0 %v294_v32 }
  0x12   :  { %297 = vmatprep.subr.bf16.mxu0 %v296_v34 }
  0x15   :  { %299 = vmatpush3.bf16.msra.mxu0 %v298_v40 }
  0x16   :  { %301 = vmatprep.subr.bf16.mxu0 %v300_v42 }
  0x19   :  { %303 = vmatpush3.bf16.msra.mxu0 %v302_v47 }
  0x1a   :  { %305 = vmatprep.subr.bf16.mxu0 %v304_v48 }
  0x1d   :  { %307 = vmatpush3.bf16.msra.mxu0 %v306_v53 }
  0x1e   :  { %309 = vmatprep.subr.bf16.mxu0 %v308_v54 }
  0x21   :  { %311 = vmatpush3.bf16.msra.mxu0 %v310_v57 }
  0x24   :  { %122 = vmatmul.mubr.f32.vlgmr.msra.gmra.mrb[0].mxu0 %v14_v58 }
  0xe3   :  { %v193_v59 = vpop.f32.mrb[0].mxu1 }
  0xe4   :  { %v279_v60 = vpop.f32.mrb[1].mxu1 }
  0xf7   :  { %v261_v61 = vpop.f32.mrb[0].mxu0 }
  0xf8   :  { %v262_v62 = vpop.f32.mrb[1].mxu0 }
  0xf9   :  { %v263_v63 = vadd.f32 %v262_v62, %v261_v61 }
  0xfb   :  { %v194_v0 = vadd.f32 %v263_v63, %v193_v59 }
  0xfd   :  { %197 = vst.msk [vmem:[%s481_s2] sm:$0xff] %vm53_vm1, %v194_v0  ;;  %v198_v1 = vsel %vm53_vm1, %v194_v0, 0.0  ;;  %v207_v2 = vmul.f32 %v194_v0, %v194_v0 }
  0xfe   :  { %v199_v3 = vrot.slane %v198_v1, 4 }
  0xff   :  { %v208_v4 = vsel %vm53_vm1, %v207_v2, 0.0 }
 0x100   :  { %v200_v5 = vadd.f32 %v199_v3, %v198_v1  ;;  %v209_v6 = vrot.slane %v208_v4, 4 }
 0x102   :  { %v201_v7 = vrot.slane %v200_v5, 2  ;;  %v210_v8 = vadd.f32 %v209_v6, %v208_v4 }
 0x104   :  { %v202_v9 = vadd.f32 %v201_v7, %v200_v5  ;;  %v211_v10 = vrot.slane %v210_v8, 2 }
 0x106   :  { %v203_v11 = vrot.slane %v202_v9, 1  ;;  %v212_v12 = vadd.f32 %v211_v10, %v210_v8 }
 0x108   :  { %v204_v13 = vadd.f32 %v203_v11, %v202_v9  ;;  %v213_v14 = vrot.slane %v212_v12, 1 }
 0x10a   :  { %206 = vst.msk [vmem:[%s482_s3] sm:$0x1] %vm205_vm2, %v204_v13  ;;  %v214_v15 = vadd.f32 %v213_v14, %v212_v12 }
 0x10c   :  { %215 = vst.msk [vmem:[%s483_s4] sm:$0x1] %vm205_vm2, %v214_v15 }

// kernel: basic_resnet_forward.43
= control target key start
LH: loop header
LB: loop body
LE: loop exit
PB: predicated region body
PF: predicated region fallthrough
CT: control target
= control target key end

     0   :  { %v39_v8 = vlaneseq  ;;  %vm55_vm0 = vcmask 261120   ;;  %s119_s1 = inlined_call_operand.vmem [shape: f32[1,32], index: 1, kind: input, shape index: {}]   ;;  %s120_s2 = inlined_call_operand.vmem [shape: f32[1,32], index: 2, kind: input, shape index: {}]   ;;  %s121_s3 = inlined_call_operand.vmem [shape: f32[1,32], index: 3, kind: input, shape index: {}]   ;;  %s122_s0 = inlined_call_operand.vmem [shape: f32[8,32], index: 0, kind: input, shape index: {}]   ;;  %s123_s4 = inlined_call_operand.vmem [shape: f32[1,32], index: 4, kind: input, shape index: {}]   ;;  %s124_s5 = inlined_call_operand.vmem [shape: f32[8,32], index: 5, kind: input, shape index: {}]   ;;  %s125_s6 = inlined_call_operand.vmem [shape: f32[8,32], index: 6, kind: output, shape index: {}]  }
   0x1   :  { %v23_v0 = vld [vmem:[%s119_s1] sm:$0x1] }
   0x2   :  { %v24_v1 = vld [vmem:[%s120_s2] sm:$0x1]  ;;  %v27_v2 = vmul.f32 0.125, %v23_v0  ;;  %v40_v9 = vshrl.u32 %v39_v8, 7 }
   0x3   :  { %v28_v3 = vmul.f32 0.125, %v24_v1  ;;  %v25_v10 = vld [vmem:[%s121_s3] sm:$0x1] }
   0x4   :  { %v29_v4 = vmul.f32 %v27_v2, %v27_v2  ;;  %v41_v11 = vsub.s32 0, %v40_v9  ;;  %v26_v14 = vld [vmem:[%s123_s4] sm:$0x1] }
   0x5   :  { %v37_v15 = vld [vmem:[%s122_s0] sm:$0xff] }
   0x6   :  { %v30_v5 = vsub.f32 %v28_v3, %v29_v4  ;;  %v52_v21 = vld [vmem:[%s124_s5] sm:$0xff] }
   0x8   :  { %v31_v6 = vmax.f32 %v30_v5, 0.0 }
   0xa   :  { %v32_v7 = vadd.f32 1e-05, %v31_v6 }
   0xc   :  { %61 = vrsqrt.f32 %v32_v7 }
  0x16   :  { %v62_v12 = vpop.eup %61 }
  0x17   :  { %v34_v13 = vmul.f32 %v62_v12, %v25_v10 }
  0x19   :  { %v35_v16 = vmul.f32 %v34_v13, %v27_v2  ;;  %v42_v17 = vrot.slane %v34_v13, %v41_v11 }
  0x1b   :  { %v36_v18 = vsub.f32 %v26_v14, %v35_v16  ;;  %v44_v19 = vmul.f32 %v42_v17, %v37_v15 }
  0x1d   :  { %v49_v20 = vrot.slane %v36_v18, %v41_v11 }
  0x1f   :  { %v51_v22 = vadd.f32 %v49_v20, %v44_v19 }
  0x21   :  { %v53_v23 = vadd.f32 %v52_v21, %v51_v22 }
  0x23   :  { %v54_v24 = vmax.f32 %v53_v23, 0.0 }
  0x25   :  { %56 = vst.msk [vmem:[%s125_s6] sm:$0xff] %vm55_vm0, %v54_v24 }

// kernel: basic_resnet_forward.44
= control target key start
LH: loop header
LB: loop body
LE: loop exit
PB: predicated region body
PF: predicated region fallthrough
CT: control target
= control target key end

     0   :  { %v151_v0 = vmov 0.0|0.0   ;;  %vm152_vm0 = vmmov 0   ;;  %v153_v4 = vmov 0.0   ;;  %vm19_vm1 = vcmask 261120   ;;  %s203_s1 = inlined_call_operand.vmem [shape: f32[32,64], index: 1, kind: input, shape index: {}]   ;;  %s204_s0 = inlined_call_operand.vmem [shape: f32[2,32], index: 0, kind: input, shape index: {}]   ;;  %s205_s2 = inlined_call_operand.vmem [shape: f32[2,64], index: 2, kind: output, shape index: {0}]   ;;  %s206_s3 = inlined_call_operand.vmem [shape: f32[1,64], index: 3, kind: output, shape index: {1}]   ;;  %s207_s4 = inlined_call_operand.vmem [shape: f32[1,64], index: 4, kind: output, shape index: {2}]  }
   0x1   :  { %142 = vmatprep.subr.bf16.mxu0 %v151_v0  ;;  %v15_v1 = vld [vmem:[%s203_s1] sm:$0xff]  ;;  %v16_v2 = vld [vmem:[%s203_s1 + $0x8] sm:$0xff]  ;;  %v17_v3 = vld [vmem:[%s203_s1 + $0x10] sm:$0xff]  ;;  %139 = vmatprep.mubr.msk.f32.mxu0 %vm152_vm0, %v153_v4  ;;  %vm93_vm2 = vcmask 517120   ;;  %vm102_vm3 = vcmask 516096  }
   0x2   :  { %v143_v5 = vpack.c.bf16 %v16_v2, %v15_v1  ;;  %v18_v6 = vld [vmem:[%s203_s1 + $0x18] sm:$0xff]  ;;  %v14_v8 = vld [vmem:[%s204_s0] sm:$0x3] }
   0x3   :  { %v146_v7 = vpack.c.bf16 %v18_v6, %v17_v3 }
   0x4   :  { %144 = vmatpush3.bf16.msra.mxu0 %v143_v5 }
   0x5   :  { %145 = vmatprep.subr.bf16.mxu0 %v151_v0 }
   0x8   :  { %147 = vmatpush3.bf16.msra.mxu0 %v146_v7 }
   0xb   :  { %140 = vmatmul.mubr.msk.f32.vlgmr.msra.gmra.mrb[0].mxu0 %vm19_vm1, %v14_v8 }
  0xde   :  { %v89_v9 = vpop.f32.mrb[0].mxu0 }
  0xdf   :  { %94 = vst.msk [vmem:[%s205_s2] sm:$0x3] %vm93_vm2, %v89_v9  ;;  %v95_v10 = vsel %vm93_vm2, %v89_v9, 0.0  ;;  %v104_v11 = vmul.f32 %v89_v9, %v89_v9  ;;  %v141_v12 = vpop.f32.mrb[1].mxu0 }
  0xe0   :  { %v96_v13 = vrot.slane %v95_v10, 4 }
  0xe1   :  { %v105_v14 = vsel %vm93_vm2, %v104_v11, 0.0 }
  0xe2   :  { %v97_v15 = vadd.f32 %v96_v13, %v95_v10  ;;  %v106_v16 = vrot.slane %v105_v14, 4 }
  0xe4   :  { %v98_v17 = vrot.slane %v97_v15, 2  ;;  %v107_v18 = vadd.f32 %v106_v16, %v105_v14 }
  0xe6   :  { %v99_v19 = vadd.f32 %v98_v17, %v97_v15  ;;  %v108_v20 = vrot.slane %v107_v18, 2 }
  0xe8   :  { %v100_v21 = vrot.slane %v99_v19, 1  ;;  %v109_v22 = vadd.f32 %v108_v20, %v107_v18 }
  0xea   :  { %v101_v23 = vadd.f32 %v100_v21, %v99_v19  ;;  %v110_v24 = vrot.slane %v109_v22, 1 }
  0xec   :  { %103 = vst.msk [vmem:[%s206_s3] sm:$0x1] %vm102_vm3, %v101_v23  ;;  %v111_v25 = vadd.f32 %v110_v24, %v109_v22 }
  0xee   :  { %112 = vst.msk [vmem:[%s207_s4] sm:$0x1] %vm102_vm3, %v111_v25 }

// kernel: basic_resnet_forward.45
= control target key start
LH: loop header
LB: loop body
LE: loop exit
PB: predicated region body
PF: predicated region fallthrough
CT: control target
= control target key end

     0   :  { %v36_v8 = vlaneseq  ;;  %vm49_vm0 = vcmask 517120   ;;  %s105_s1 = inlined_call_operand.vmem [shape: f32[1,64], index: 1, kind: input, shape index: {}]   ;;  %s106_s2 = inlined_call_operand.vmem [shape: f32[1,64], index: 2, kind: input, shape index: {}]   ;;  %s107_s3 = inlined_call_operand.vmem [shape: f32[1,64], index: 3, kind: input, shape index: {}]   ;;  %s108_s0 = inlined_call_operand.vmem [shape: f32[2,64], index: 0, kind: input, shape index: {}]   ;;  %s109_s4 = inlined_call_operand.vmem [shape: f32[1,64], index: 4, kind: input, shape index: {}]   ;;  %s110_s5 = inlined_call_operand.vmem [shape: f32[2,64], index: 5, kind: output, shape index: {}]  }
   0x1   :  { %v20_v0 = vld [vmem:[%s105_s1] sm:$0x1] }
   0x2   :  { %v21_v1 = vld [vmem:[%s106_s2] sm:$0x1]  ;;  %v24_v2 = vmul.f32 0.5, %v20_v0  ;;  %v37_v9 = vshrl.u32 %v36_v8, 7 }
   0x3   :  { %v25_v3 = vmul.f32 0.5, %v21_v1  ;;  %v22_v10 = vld [vmem:[%s107_s3] sm:$0x1] }
   0x4   :  { %v26_v4 = vmul.f32 %v24_v2, %v24_v2  ;;  %v38_v11 = vsub.s32 0, %v37_v9  ;;  %v23_v14 = vld [vmem:[%s109_s4] sm:$0x1] }
   0x5   :  { %v34_v15 = vld [vmem:[%s108_s0] sm:$0x3] }
   0x6   :  { %v27_v5 = vsub.f32 %v25_v3, %v26_v4 }
   0x8   :  { %v28_v6 = vmax.f32 %v27_v5, 0.0 }
   0xa   :  { %v29_v7 = vadd.f32 1e-05, %v28_v6 }
   0xc   :  { %55 = vrsqrt.f32 %v29_v7 }
  0x16   :  { %v56_v12 = vpop.eup %55 }
  0x17   :  { %v31_v13 = vmul.f32 %v56_v12, %v22_v10 }
  0x19   :  { %v32_v16 = vmul.f32 %v31_v13, %v24_v2  ;;  %v39_v17 = vrot.slane %v31_v13, %v38_v11 }
  0x1b   :  { %v33_v18 = vsub.f32 %v23_v14, %v32_v16  ;;  %v41_v19 = vmul.f32 %v39_v17, %v34_v15 }
  0x1d   :  { %v46_v20 = vrot.slane %v33_v18, %v38_v11 }
  0x1f   :  { %v48_v21 = vadd.f32 %v46_v20, %v41_v19 }
  0x21   :  { %50 = vst.msk [vmem:[%s110_s5] sm:$0x3] %vm49_vm0, %v48_v21 }

// kernel: basic_resnet_forward.50
= control target key start
LH: loop header
LB: loop body
LE: loop exit
PB: predicated region body
PF: predicated region fallthrough
CT: control target
= control target key end

     0   :  { %v38_v8 = vlaneseq  ;;  %vm52_vm0 = vcmask 517120   ;;  %s149_s0 = inlined_call_operand.vmem [shape: f32[2,1,1,9,64], index: 0, kind: input, shape index: {}, may-alias: {0,6}]   ;;  %s150_s1 = inlined_call_operand.vmem [shape: f32[2,64], index: 1, kind: input, shape index: {}]   ;;  %s151_s2 = inlined_call_operand.vmem [shape: f32[1,64], index: 2, kind: input, shape index: {}]   ;;  %s152_s3 = inlined_call_operand.vmem [shape: f32[1,64], index: 3, kind: input, shape index: {}]   ;;  %s153_s4 = inlined_call_operand.vmem [shape: f32[1,64], index: 4, kind: input, shape index: {}]   ;;  %s154_s5 = inlined_call_operand.vmem [shape: f32[1,64], index: 5, kind: input, shape index: {}]   ;;  %s155_s6 = inlined_call_operand.vmem [shape: f32[2,1,1,9,64], index: 6, kind: output, shape index: {}, may-alias: {0,6}]  }
   0x1   :  { %v22_v0 = vld [vmem:[%s151_s2] sm:$0x1] }
   0x2   :  { %v23_v1 = vld [vmem:[%s152_s3] sm:$0x1]  ;;  %v26_v2 = vmul.f32 0.5, %v22_v0  ;;  %v39_v9 = vshrl.u32 %v38_v8, 7 }
   0x3   :  { %v27_v3 = vmul.f32 0.5, %v23_v1  ;;  %v24_v10 = vld [vmem:[%s153_s4] sm:$0x1] }
   0x4   :  { %v28_v4 = vmul.f32 %v26_v2, %v26_v2  ;;  %v40_v11 = vsub.s32 0, %v39_v9  ;;  %v25_v14 = vld [vmem:[%s154_s5] sm:$0x1] }
   0x5   :  { %v36_v15 = vld [vmem:[%s150_s1] sm:$0x3] }
   0x6   :  { %v29_v5 = vsub.f32 %v27_v3, %v28_v4 }
   0x8   :  { %v30_v6 = vmax.f32 %v29_v5, 0.0 }
   0xa   :  { %v31_v7 = vadd.f32 1e-05, %v30_v6 }
   0xc   :  { %94 = vrsqrt.f32 %v31_v7 }
  0x16   :  { %v95_v12 = vpop.eup %94 }
  0x17   :  { %v33_v13 = vmul.f32 %v95_v12, %v24_v10 }
  0x19   :  { %v34_v16 = vmul.f32 %v33_v13, %v26_v2  ;;  %v41_v17 = vrot.slane %v33_v13, %v40_v11 }
  0x1b   :  { %v35_v18 = vsub.f32 %v25_v14, %v34_v16  ;;  %v43_v19 = vmul.f32 %v41_v17, %v36_v15 }
  0x1d   :  { %v48_v20 = vrot.slane %v35_v18, %v40_v11 }
  0x1f   :  { %v50_v21 = vadd.f32 %v48_v20, %v43_v19 }
  0x21   :  { %v51_v22 = vmax.f32 %v50_v21, 0.0 }
  0x23   :  { %53 = vst.msk [vmem:[#allocation2] sm:$0x3] %vm52_vm0, %v51_v22 }
  0x2a   :  { %v71_v23 = vld [vmem:[#allocation2] sm:$0x3] }
  0x2b   :  { %93 = vst [vmem:[%s155_s6 + $0x8] sm:$0x3] %v71_v23 }

// kernel: basic_resnet_forward.46
= control target key start
LH: loop header
LB: loop body
LE: loop exit
PB: predicated region body
PF: predicated region fallthrough
CT: control target
= control target key end

     0   :  { %v340_v3 = vmov 0.0|0.0   ;;  %v341_v4 = vmov 1983009808   ;;  %v56_v6 = vlaneseq  ;;  %vm342_vm0 = vmmov 0   ;;  %s489_s1 = inlined_call_operand.vmem [shape: f32[288,64], index: 1, kind: input, shape index: {}]   ;;  %s490_s0 = inlined_call_operand.vmem [shape: f32[2,288], index: 0, kind: input, shape index: {}]   ;;  %s491_s2 = inlined_call_operand.vmem [shape: f32[2,64], index: 2, kind: output, shape index: {0}]   ;;  %s492_s3 = inlined_call_operand.vmem [shape: f32[1,64], index: 3, kind: output, shape index: {1}]   ;;  %s493_s4 = inlined_call_operand.vmem [shape: f32[1,64], index: 4, kind: output, shape index: {2}]  }
   0x1   :  { %v31_v0 = vld [vmem:[%s489_s1 + $0x80] sm:$0xff]  ;;  %v32_v1 = vld [vmem:[%s489_s1 + $0x88] sm:$0xff]  ;;  %329 = vmatprep.subr.bf16.mxu1 %v340_v3  ;;  %v54_v5 = vunpack.c.l.s4 %v341_v4  ;;  %v33_v9 = vld [vmem:[%s489_s1 + $0x90] sm:$0xff]  ;;  %v343_v11 = vmov 0.0   ;;  %vm70_vm1 = vcmask 261120   ;;  %vm213_vm2 = vcmask 517120  }
   0x2   :  { %v15_v2 = vld [vmem:[%s489_s1] sm:$0xff]  ;;  %v297_v7 = vpack.c.bf16 %v32_v1, %v31_v0  ;;  %v16_v8 = vld [vmem:[%s489_s1 + $0x8] sm:$0xff]  ;;  %v34_v10 = vld [vmem:[%s489_s1 + $0x98] sm:$0xff]  ;;  %294 = vmatprep.mubr.msk.f32.mxu1 %vm342_vm0, %v343_v11  ;;  %v57_v20 = vshrl.u32 %v56_v6, 7  ;;  %vm222_vm3 = vcmask 516096  }
   0x3   :  { %v299_v12 = vpack.c.bf16 %v16_v8, %v15_v2  ;;  %v301_v13 = vpack.c.bf16 %v34_v10, %v33_v9  ;;  %v17_v14 = vld [vmem:[%s489_s1 + $0x10] sm:$0xff]  ;;  %v18_v15 = vld [vmem:[%s489_s1 + $0x18] sm:$0xff]  ;;  %v35_v16 = vld [vmem:[%s489_s1 + $0xa0] sm:$0xff]  ;;  %v55_v19 = vunpack.c.0.s8 %v54_v5 }
   0x4   :  { %298 = vmatprep.subr.bf16.mxu0 %v297_v7  ;;  %v36_v17 = vld [vmem:[%s489_s1 + $0xa8] sm:$0xff]  ;;  %v303_v18 = vpack.c.bf16 %v18_v15, %v17_v14  ;;  %v19_v22 = vld [vmem:[%s489_s1 + $0x20] sm:$0xff]  ;;  %v37_v24 = vld [vmem:[%s489_s1 + $0xb0] sm:$0xff] }
   0x5   :  { %300 = vmatpush3.bf16.msra.mxu0 %v299_v12  ;;  %v305_v21 = vpack.c.bf16 %v36_v17, %v35_v16  ;;  %v20_v23 = vld [vmem:[%s489_s1 + $0x28] sm:$0xff]  ;;  %v38_v25 = vld [vmem:[%s489_s1 + $0xb8] sm:$0xff]  ;;  %v21_v27 = vld [vmem:[%s489_s1 + $0x30] sm:$0xff]  ;;  %v58_v28 = vsub.s32 %v55_v19, %v57_v20 }
   0x6   :  { %302 = vmatprep.subr.bf16.mxu0 %v301_v13  ;;  %v307_v26 = vpack.c.bf16 %v20_v23, %v19_v22  ;;  %v309_v29 = vpack.c.bf16 %v38_v25, %v37_v24  ;;  %v22_v30 = vld [vmem:[%s489_s1 + $0x38] sm:$0xff]  ;;  %v47_v31 = vld [vmem:[%s489_s1 + $0x100] sm:$0xff]  ;;  %v48_v32 = vld [vmem:[%s489_s1 + $0x108] sm:$0xff] }
   0x7   :  { %v39_v33 = vld [vmem:[%s489_s1 + $0xc0] sm:$0xff]  ;;  %v40_v34 = vld [vmem:[%s489_s1 + $0xc8] sm:$0xff]  ;;  %v330_v35 = vpack.c.bf16 %v48_v32, %v47_v31  ;;  %v49_v37 = vld [vmem:[%s489_s1 + $0x110] sm:$0xff]  ;;  %v311_v38 = vpack.c.bf16 %v22_v30, %v21_v27 }
   0x8   :  { %v14_v36 = vld [vmem:[%s490_s0] sm:$0x3f]  ;;  %v50_v41 = vld [vmem:[%s489_s1 + $0x118] sm:$0xff]  ;;  %v313_v42 = vpack.c.bf16 %v40_v34, %v39_v33  ;;  %v24_v44 = vld [vmem:[%s489_s1 + $0x48] sm:$0xff] }
   0x9   :  { %304 = vmatpush3.bf16.msra.mxu0 %v303_v18  ;;  %331 = vmatpush3.bf16.msra.mxu1 %v330_v35  ;;  %v52_v39 = vcombine.high %v14_v36, %v14_v36  ;;  %v59_v40 = vrot.slane %v14_v36, %v58_v28  ;;  %v23_v43 = vld [vmem:[%s489_s1 + $0x40] sm:$0xff]  ;;  %v333_v45 = vpack.c.bf16 %v50_v41, %v49_v37  ;;  %v41_v46 = vld [vmem:[%s489_s1 + $0xd0] sm:$0xff]  ;;  %v42_v47 = vld [vmem:[%s489_s1 + $0xd8] sm:$0xff] }
   0xa   :  { %306 = vmatprep.subr.bf16.mxu0 %v305_v21  ;;  %332 = vmatprep.subr.bf16.mxu1 %v340_v3  ;;  %v315_v49 = vpack.c.bf16 %v24_v44, %v23_v43  ;;  %v317_v51 = vpack.c.bf16 %v42_v47, %v41_v46  ;;  %v25_v52 = vld [vmem:[%s489_s1 + $0x50] sm:$0xff]  ;;  %v26_v53 = vld [vmem:[%s489_s1 + $0x58] sm:$0xff]  ;;  %v43_v54 = vld [vmem:[%s489_s1 + $0xe0] sm:$0xff] }
   0xb   :  { %v67_v48 = vcombine.high %v59_v40, %v59_v40  ;;  %v66_v50 = vrot.slane %v52_v39, %v58_v28  ;;  %v44_v55 = vld [vmem:[%s489_s1 + $0xe8] sm:$0xff]  ;;  %v319_v56 = vpack.c.bf16 %v26_v53, %v25_v52  ;;  %v27_v58 = vld [vmem:[%s489_s1 + $0x60] sm:$0xff]  ;;  %v45_v60 = vld [vmem:[%s489_s1 + $0xf0] sm:$0xff] }
   0xc   :  { %v321_v57 = vpack.c.bf16 %v44_v55, %v43_v54  ;;  %v28_v59 = vld [vmem:[%s489_s1 + $0x68] sm:$0xff]  ;;  %v46_v61 = vld [vmem:[%s489_s1 + $0xf8] sm:$0xff]  ;;  %v29_v0 = vld [vmem:[%s489_s1 + $0x70] sm:$0xff] }
   0xd   :  { %308 = vmatpush3.bf16.msra.mxu0 %v307_v26  ;;  %137 = vmatprep.mubr.f32.mxu0 %v67_v48  ;;  %v323_v62 = vpack.c.bf16 %v28_v59, %v27_v58  ;;  %v325_v63 = vpack.c.bf16 %v46_v61, %v45_v60  ;;  %v30_v1 = vld [vmem:[%s489_s1 + $0x78] sm:$0xff] }
   0xe   :  { %310 = vmatprep.subr.bf16.mxu0 %v309_v29  ;;  %334 = vmatpush3.bf16.msra.mxu1 %v333_v45  ;;  %v327_v2 = vpack.c.bf16 %v30_v1, %v29_v0 }
  0x11   :  { %312 = vmatpush3.bf16.msra.mxu0 %v311_v38  ;;  %295 = vmatmul.mubr.msk.f32.vlgmr.msra.gmra.mrb[0].mxu1 %vm70_vm1, %v66_v50 }
  0x12   :  { %314 = vmatprep.subr.bf16.mxu0 %v313_v42 }
  0x15   :  { %316 = vmatpush3.bf16.msra.mxu0 %v315_v49 }
  0x16   :  { %318 = vmatprep.subr.bf16.mxu0 %v317_v51 }
  0x19   :  { %320 = vmatpush3.bf16.msra.mxu0 %v319_v56 }
  0x1a   :  { %322 = vmatprep.subr.bf16.mxu0 %v321_v57 }
  0x1d   :  { %324 = vmatpush3.bf16.msra.mxu0 %v323_v62 }
  0x1e   :  { %326 = vmatprep.subr.bf16.mxu0 %v325_v63 }
  0x21   :  { %328 = vmatpush3.bf16.msra.mxu0 %v327_v2 }
  0x24   :  { %138 = vmatmul.mubr.f32.vlgmr.msra.gmra.mrb[0].mxu0 %v59_v40 }
  0xe4   :  { %v209_v3 = vpop.f32.mrb[0].mxu1 }
  0xe5   :  { %v296_v4 = vpop.f32.mrb[1].mxu1 }
  0xf7   :  { %v278_v5 = vpop.f32.mrb[0].mxu0 }
  0xf8   :  { %v279_v6 = vpop.f32.mrb[1].mxu0 }
  0xf9   :  { %v280_v7 = vadd.f32 %v279_v6, %v278_v5 }
  0xfb   :  { %v210_v8 = vadd.f32 %v280_v7, %v209_v3 }
  0xfd   :  { %214 = vst.msk [vmem:[%s491_s2] sm:$0x3] %vm213_vm2, %v210_v8  ;;  %v215_v9 = vsel %vm213_vm2, %v210_v8, 0.0  ;;  %v224_v10 = vmul.f32 %v210_v8, %v210_v8 }
  0xfe   :  { %v216_v11 = vrot.slane %v215_v9, 4 }
  0xff   :  { %v225_v12 = vsel %vm213_vm2, %v224_v10, 0.0 }
 0x100   :  { %v217_v13 = vadd.f32 %v216_v11, %v215_v9  ;;  %v226_v14 = vrot.slane %v225_v12, 4 }
 0x102   :  { %v218_v15 = vrot.slane %v217_v13, 2  ;;  %v227_v16 = vadd.f32 %v226_v14, %v225_v12 }
 0x104   :  { %v219_v17 = vadd.f32 %v218_v15, %v217_v13  ;;  %v228_v18 = vrot.slane %v227_v16, 2 }
 0x106   :  { %v220_v19 = vrot.slane %v219_v17, 1  ;;  %v229_v20 = vadd.f32 %v228_v18, %v227_v16 }
 0x108   :  { %v221_v21 = vadd.f32 %v220_v19, %v219_v17  ;;  %v230_v22 = vrot.slane %v229_v20, 1 }
 0x10a   :  { %223 = vst.msk [vmem:[%s492_s3] sm:$0x1] %vm222_vm3, %v221_v21  ;;  %v231_v23 = vadd.f32 %v230_v22, %v229_v20 }
 0x10c   :  { %232 = vst.msk [vmem:[%s493_s4] sm:$0x1] %vm222_vm3, %v231_v23 }

// kernel: basic_resnet_forward.48
= control target key start
LH: loop header
LB: loop body
LE: loop exit
PB: predicated region body
PF: predicated region fallthrough
CT: control target
= control target key end

     0   :  { %v39_v8 = vlaneseq  ;;  %vm55_vm0 = vcmask 517120   ;;  %s119_s1 = inlined_call_operand.vmem [shape: f32[1,64], index: 1, kind: input, shape index: {}]   ;;  %s120_s2 = inlined_call_operand.vmem [shape: f32[1,64], index: 2, kind: input, shape index: {}]   ;;  %s121_s3 = inlined_call_operand.vmem [shape: f32[1,64], index: 3, kind: input, shape index: {}]   ;;  %s122_s0 = inlined_call_operand.vmem [shape: f32[2,64], index: 0, kind: input, shape index: {}]   ;;  %s123_s4 = inlined_call_operand.vmem [shape: f32[1,64], index: 4, kind: input, shape index: {}]   ;;  %s124_s5 = inlined_call_operand.vmem [shape: f32[2,64], index: 5, kind: input, shape index: {}]   ;;  %s125_s6 = inlined_call_operand.vmem [shape: f32[2,64], index: 6, kind: output, shape index: {}]  }
   0x1   :  { %v23_v0 = vld [vmem:[%s119_s1] sm:$0x1] }
   0x2   :  { %v24_v1 = vld [vmem:[%s120_s2] sm:$0x1]  ;;  %v27_v2 = vmul.f32 0.5, %v23_v0  ;;  %v40_v9 = vshrl.u32 %v39_v8, 7 }
   0x3   :  { %v28_v3 = vmul.f32 0.5, %v24_v1  ;;  %v25_v10 = vld [vmem:[%s121_s3] sm:$0x1] }
   0x4   :  { %v29_v4 = vmul.f32 %v27_v2, %v27_v2  ;;  %v41_v11 = vsub.s32 0, %v40_v9  ;;  %v26_v14 = vld [vmem:[%s123_s4] sm:$0x1] }
   0x5   :  { %v37_v15 = vld [vmem:[%s122_s0] sm:$0x3] }
   0x6   :  { %v30_v5 = vsub.f32 %v28_v3, %v29_v4  ;;  %v52_v21 = vld [vmem:[%s124_s5] sm:$0x3] }
   0x8   :  { %v31_v6 = vmax.f32 %v30_v5, 0.0 }
   0xa   :  { %v32_v7 = vadd.f32 1e-05, %v31_v6 }
   0xc   :  { %61 = vrsqrt.f32 %v32_v7 }
  0x16   :  { %v62_v12 = vpop.eup %61 }
  0x17   :  { %v34_v13 = vmul.f32 %v62_v12, %v25_v10 }
  0x19   :  { %v35_v16 = vmul.f32 %v34_v13, %v27_v2  ;;  %v42_v17 = vrot.slane %v34_v13, %v41_v11 }
  0x1b   :  { %v36_v18 = vsub.f32 %v26_v14, %v35_v16  ;;  %v44_v19 = vmul.f32 %v42_v17, %v37_v15 }
  0x1d   :  { %v49_v20 = vrot.slane %v36_v18, %v41_v11 }
  0x1f   :  { %v51_v22 = vadd.f32 %v49_v20, %v44_v19 }
  0x21   :  { %v53_v23 = vadd.f32 %v52_v21, %v51_v22 }
  0x23   :  { %v54_v24 = vmax.f32 %v53_v23, 0.0 }
  0x25   :  { %56 = vst.msk [vmem:[%s125_s6] sm:$0x3] %vm55_vm0, %v54_v24 }

// kernel: basic_resnet_forward.47
= control target key start
LH: loop header
LB: loop body
LE: loop exit
PB: predicated region body
PF: predicated region fallthrough
CT: control target
= control target key end

     0   :  { %v544_v47 = vmov 1983009808   ;;  %v94_v49 = vlaneseq  ;;  %vm546_vm0 = vmmov 0   ;;  %vm118_vm1 = vcmask 523264   ;;  %s804_s1 = inlined_call_operand.vmem [shape: f32[576,64], index: 1, kind: input, shape index: {}]   ;;  %s805_s0 = inlined_call_operand.vmem [shape: f32[2,576], index: 0, kind: input, shape index: {}]   ;;  %s806_s2 = inlined_call_operand.vmem [shape: f32[2,64], index: 2, kind: output, shape index: {0}]   ;;  %s807_s3 = inlined_call_operand.vmem [shape: f32[1,64], index: 3, kind: output, shape index: {1}]   ;;  %s808_s4 = inlined_call_operand.vmem [shape: f32[1,64], index: 4, kind: output, shape index: {2}]  }
   0x1   :  { %v32_v0 = vld [vmem:[%s804_s1 + $0x80] sm:$0xff]  ;;  %v33_v1 = vld [vmem:[%s804_s1 + $0x88] sm:$0xff]  ;;  %v34_v11 = vld [vmem:[%s804_s1 + $0x90] sm:$0xff]  ;;  %v92_v48 = vunpack.c.l.s4 %v544_v47  ;;  %v545_v47 = vmov 0.0|0.0   ;;  %vm331_vm2 = vcmask 517120   ;;  %vm340_vm3 = vcmask 516096  }
   0x2   :  { %v64_v2 = vld [vmem:[%s804_s1 + $0x180] sm:$0xff]  ;;  %v463_v3 = vpack.c.bf16 %v33_v1, %v32_v0  ;;  %v65_v4 = vld [vmem:[%s804_s1 + $0x188] sm:$0xff]  ;;  %v35_v13 = vld [vmem:[%s804_s1 + $0x98] sm:$0xff]  ;;  %v95_v0 = vshrl.u32 %v94_v49, 7 }
   0x3   :  { %v16_v5 = vld [vmem:[%s804_s1] sm:$0xff]  ;;  %v17_v6 = vld [vmem:[%s804_s1 + $0x8] sm:$0xff]  ;;  %v495_v7 = vpack.c.bf16 %v65_v4, %v64_v2  ;;  %v66_v14 = vld [vmem:[%s804_s1 + $0x190] sm:$0xff]  ;;  %v467_v16 = vpack.c.bf16 %v35_v13, %v34_v11  ;;  %v93_v63 = vunpack.c.0.s8 %v92_v48 }
   0x4   :  { %v465_v8 = vpack.c.bf16 %v17_v6, %v16_v5  ;;  %v48_v9 = vld [vmem:[%s804_s1 + $0x100] sm:$0xff]  ;;  %v49_v10 = vld [vmem:[%s804_s1 + $0x108] sm:$0xff]  ;;  %464 = vmatprep.subr.bf16.mxu0 %v463_v3  ;;  %v67_v15 = vld [vmem:[%s804_s1 + $0x198] sm:$0xff] }
   0x5   :  { %v497_v12 = vpack.c.bf16 %v49_v10, %v48_v9  ;;  %496 = vmatprep.subr.bf16.mxu1 %v495_v7  ;;  %v499_v17 = vpack.c.bf16 %v67_v15, %v66_v14  ;;  %v18_v18 = vld [vmem:[%s804_s1 + $0x10] sm:$0xff]  ;;  %v19_v19 = vld [vmem:[%s804_s1 + $0x18] sm:$0xff]  ;;  %v36_v23 = vld [vmem:[%s804_s1 + $0xa0] sm:$0xff]  ;;  %v96_v13 = vsub.s32 %v93_v63, %v95_v0 }
   0x6   :  { %466 = vmatpush3.bf16.msra.mxu0 %v465_v8  ;;  %v50_v20 = vld [vmem:[%s804_s1 + $0x110] sm:$0xff]  ;;  %v469_v21 = vpack.c.bf16 %v19_v19, %v18_v18  ;;  %v51_v22 = vld [vmem:[%s804_s1 + $0x118] sm:$0xff]  ;;  %v37_v24 = vld [vmem:[%s804_s1 + $0xa8] sm:$0xff] }
   0x7   :  { %498 = vmatpush3.bf16.msra.mxu1 %v497_v12  ;;  %468 = vmatprep.subr.bf16.mxu0 %v467_v16  ;;  %v501_v25 = vpack.c.bf16 %v51_v22, %v50_v20  ;;  %v471_v26 = vpack.c.bf16 %v37_v24, %v36_v23  ;;  %v68_v27 = vld [vmem:[%s804_s1 + $0x1a0] sm:$0xff]  ;;  %v69_v28 = vld [vmem:[%s804_s1 + $0x1a8] sm:$0xff]  ;;  %v38_v35 = vld [vmem:[%s804_s1 + $0xb0] sm:$0xff] }
   0x8   :  { %500 = vmatprep.subr.bf16.mxu1 %v499_v17  ;;  %v20_v29 = vld [vmem:[%s804_s1 + $0x20] sm:$0xff]  ;;  %v503_v30 = vpack.c.bf16 %v69_v28, %v68_v27  ;;  %v21_v31 = vld [vmem:[%s804_s1 + $0x28] sm:$0xff]  ;;  %v39_v36 = vld [vmem:[%s804_s1 + $0xb8] sm:$0xff] }
   0x9   :  { %v52_v32 = vld [vmem:[%s804_s1 + $0x120] sm:$0xff]  ;;  %v53_v33 = vld [vmem:[%s804_s1 + $0x128] sm:$0xff]  ;;  %v473_v34 = vpack.c.bf16 %v21_v31, %v20_v29  ;;  %v70_v37 = vld [vmem:[%s804_s1 + $0x1b0] sm:$0xff]  ;;  %v475_v39 = vpack.c.bf16 %v39_v36, %v38_v35 }
   0xa   :  { %470 = vmatpush3.bf16.msra.mxu0 %v469_v21  ;;  %v505_v38 = vpack.c.bf16 %v53_v33, %v52_v32  ;;  %v71_v40 = vld [vmem:[%s804_s1 + $0x1b8] sm:$0xff]  ;;  %v22_v41 = vld [vmem:[%s804_s1 + $0x30] sm:$0xff]  ;;  %v40_v46 = vld [vmem:[%s804_s1 + $0xc0] sm:$0xff] }
   0xb   :  { %502 = vmatpush3.bf16.msra.mxu1 %v501_v25  ;;  %472 = vmatprep.subr.bf16.mxu0 %v471_v26  ;;  %v23_v42 = vld [vmem:[%s804_s1 + $0x38] sm:$0xff]  ;;  %v507_v43 = vpack.c.bf16 %v71_v40, %v70_v37  ;;  %v54_v44 = vld [vmem:[%s804_s1 + $0x130] sm:$0xff]  ;;  %v41_v50 = vld [vmem:[%s804_s1 + $0xc8] sm:$0xff] }
   0xc   :  { %504 = vmatprep.subr.bf16.mxu1 %v503_v30  ;;  %v55_v45 = vld [vmem:[%s804_s1 + $0x138] sm:$0xff]  ;;  %v72_v51 = vld [vmem:[%s804_s1 + $0x1c0] sm:$0xff]  ;;  %v73_v52 = vld [vmem:[%s804_s1 + $0x1c8] sm:$0xff]  ;;  %v477_v53 = vpack.c.bf16 %v23_v42, %v22_v41  ;;  %v479_v55 = vpack.c.bf16 %v41_v50, %v40_v46 }
   0xd   :  { %v509_v54 = vpack.c.bf16 %v55_v45, %v54_v44  ;;  %v24_v56 = vld [vmem:[%s804_s1 + $0x40] sm:$0xff]  ;;  %v25_v57 = vld [vmem:[%s804_s1 + $0x48] sm:$0xff]  ;;  %v511_v59 = vpack.c.bf16 %v73_v52, %v72_v51  ;;  %v42_v61 = vld [vmem:[%s804_s1 + $0xd0] sm:$0xff] }
   0xe   :  { %474 = vmatpush3.bf16.msra.mxu0 %v473_v34  ;;  %v56_v58 = vld [vmem:[%s804_s1 + $0x140] sm:$0xff]  ;;  %v57_v60 = vld [vmem:[%s804_s1 + $0x148] sm:$0xff]  ;;  %v43_v62 = vld [vmem:[%s804_s1 + $0xd8] sm:$0xff]  ;;  %v481_v3 = vpack.c.bf16 %v25_v57, %v24_v56 }
   0xf   :  { %506 = vmatpush3.bf16.msra.mxu1 %v505_v38  ;;  %476 = vmatprep.subr.bf16.mxu0 %v475_v39  ;;  %v74_v1 = vld [vmem:[%s804_s1 + $0x1d0] sm:$0xff]  ;;  %v75_v2 = vld [vmem:[%s804_s1 + $0x1d8] sm:$0xff]  ;;  %v513_v4 = vpack.c.bf16 %v57_v60, %v56_v58  ;;  %v483_v5 = vpack.c.bf16 %v43_v62, %v42_v61  ;;  %v44_v11 = vld [vmem:[%s804_s1 + $0xe0] sm:$0xff] }
  0x10   :  { %508 = vmatprep.subr.bf16.mxu1 %v507_v43  ;;  %v26_v6 = vld [vmem:[%s804_s1 + $0x50] sm:$0xff]  ;;  %v27_v7 = vld [vmem:[%s804_s1 + $0x58] sm:$0xff]  ;;  %v515_v9 = vpack.c.bf16 %v75_v2, %v74_v1  ;;  %v45_v12 = vld [vmem:[%s804_s1 + $0xe8] sm:$0xff] }
  0x11   :  { %v58_v8 = vld [vmem:[%s804_s1 + $0x150] sm:$0xff]  ;;  %v59_v10 = vld [vmem:[%s804_s1 + $0x158] sm:$0xff]  ;;  %v76_v14 = vld [vmem:[%s804_s1 + $0x1e0] sm:$0xff]  ;;  %v485_v16 = vpack.c.bf16 %v27_v7, %v26_v6  ;;  %v487_v19 = vpack.c.bf16 %v45_v12, %v44_v11 }
  0x12   :  { %478 = vmatpush3.bf16.msra.mxu0 %v477_v53  ;;  %v77_v15 = vld [vmem:[%s804_s1 + $0x1e8] sm:$0xff]  ;;  %v28_v17 = vld [vmem:[%s804_s1 + $0x60] sm:$0xff]  ;;  %v517_v18 = vpack.c.bf16 %v59_v10, %v58_v8  ;;  %v46_v25 = vld [vmem:[%s804_s1 + $0xf0] sm:$0xff]  ;;  %v547_v53 = vmov 0.0  }
  0x13   :  { %510 = vmatpush3.bf16.msra.mxu1 %v509_v54  ;;  %480 = vmatprep.subr.bf16.mxu0 %v479_v55  ;;  %v29_v20 = vld [vmem:[%s804_s1 + $0x68] sm:$0xff]  ;;  %v60_v21 = vld [vmem:[%s804_s1 + $0x160] sm:$0xff]  ;;  %v519_v23 = vpack.c.bf16 %v77_v15, %v76_v14  ;;  %v47_v26 = vld [vmem:[%s804_s1 + $0xf8] sm:$0xff] }
  0x14   :  { %512 = vmatprep.subr.bf16.mxu1 %v511_v59  ;;  %v14_v22 = vld [vmem:[%s805_s0] sm:$0xff]  ;;  %v61_v24 = vld [vmem:[%s804_s1 + $0x168] sm:$0xff]  ;;  %v78_v29 = vld [vmem:[%s804_s1 + $0x1f0] sm:$0xff]  ;;  %v489_v31 = vpack.c.bf16 %v29_v20, %v28_v17  ;;  %v491_v35 = vpack.c.bf16 %v47_v26, %v46_v25 }
  0x15   :  { %v97_v27 = vrot.slane %v14_v22, %v96_v13  ;;  %v90_v28 = vcombine.high %v14_v22, %v14_v22  ;;  %v79_v30 = vld [vmem:[%s804_s1 + $0x1f8] sm:$0xff]  ;;  %v521_v34 = vpack.c.bf16 %v61_v24, %v60_v21  ;;  %v30_v36 = vld [vmem:[%s804_s1 + $0x70] sm:$0xff]  ;;  %v80_v44 = vld [vmem:[%s804_s1 + $0x200] sm:$0xff] }
  0x16   :  { %482 = vmatpush3.bf16.msra.mxu0 %v481_v3  ;;  %v31_v37 = vld [vmem:[%s804_s1 + $0x78] sm:$0xff]  ;;  %v523_v38 = vpack.c.bf16 %v79_v30, %v78_v29  ;;  %v62_v39 = vld [vmem:[%s804_s1 + $0x170] sm:$0xff]  ;;  %v81_v45 = vld [vmem:[%s804_s1 + $0x208] sm:$0xff] }
  0x17   :  { %514 = vmatpush3.bf16.msra.mxu1 %v513_v4  ;;  %484 = vmatprep.subr.bf16.mxu0 %v483_v5  ;;  %v105_v32 = vcombine.high %v97_v27, %v97_v27  ;;  %v104_v33 = vrot.slane %v90_v28, %v96_v13  ;;  %v63_v40 = vld [vmem:[%s804_s1 + $0x178] sm:$0xff]  ;;  %v493_v42 = vpack.c.bf16 %v31_v37, %v30_v36  ;;  %v82_v48 = vld [vmem:[%s804_s1 + $0x210] sm:$0xff]  ;;  %v84_v51 = vld [vmem:[%s804_s1 + $0x220] sm:$0xff] }
  0x18   :  { %516 = vmatprep.subr.bf16.mxu1 %v515_v9  ;;  %v525_v43 = vpack.c.bf16 %v63_v40, %v62_v39  ;;  %v528_v46 = vpack.c.bf16 %v81_v45, %v80_v44  ;;  %v83_v49 = vld [vmem:[%s804_s1 + $0x218] sm:$0xff]  ;;  %v85_v52 = vld [vmem:[%s804_s1 + $0x228] sm:$0xff]  ;;  %v86_v55 = vld [vmem:[%s804_s1 + $0x230] sm:$0xff] }
  0x19   :  { %185 = vmatprep.mubr.f32.mxu0 %v105_v32  ;;  %v106_v41 = vcombine.high %v104_v33, %v104_v33  ;;  %v531_v50 = vpack.c.bf16 %v83_v49, %v82_v48  ;;  %v534_v54 = vpack.c.bf16 %v85_v52, %v84_v51  ;;  %v87_v56 = vld [vmem:[%s804_s1 + $0x238] sm:$0xff]  ;;  %v363_v58 = vld.sshfl [vmem:[%s805_s0 + $0x8] sm:$0x3 pattern:$0x76325410] }
  0x1a   :  { %486 = vmatpush3.bf16.msra.mxu0 %v485_v16  ;;  %v537_v57 = vpack.c.bf16 %v87_v56, %v86_v55 }
  0x1b   :  { %518 = vmatpush3.bf16.msra.mxu1 %v517_v18  ;;  %488 = vmatprep.subr.bf16.mxu0 %v487_v19 }
  0x1c   :  { %520 = vmatprep.subr.bf16.mxu1 %v519_v23  ;;  %255 = vmatprep.mubr.f32.mxu1 %v106_v41 }
  0x1e   :  { %490 = vmatpush3.bf16.msra.mxu0 %v489_v31 }
  0x1f   :  { %522 = vmatpush3.bf16.msra.mxu1 %v521_v34  ;;  %492 = vmatprep.subr.bf16.mxu0 %v491_v35 }
  0x20   :  { %524 = vmatprep.subr.bf16.mxu1 %v523_v38 }
  0x22   :  { %494 = vmatpush3.bf16.msra.mxu0 %v493_v42 }
  0x23   :  { %526 = vmatpush3.bf16.msra.mxu1 %v525_v43  ;;  %527 = vmatprep.subr.bf16.mxu0 %v545_v47 }
  0x25   :  { %186 = vmatmul.mubr.f32.vlgmr.msra.gmra.mrb[0].mxu0 %v97_v27 }
  0x26   :  { %256 = vmatmul.mubr.f32.vlgmr.msra.gmra.mrb[0].mxu1 %v104_v33  ;;  %529 = vmatpush3.bf16.msra.mxu0 %v528_v46 }
  0x27   :  { %530 = vmatprep.subr.bf16.mxu0 %v545_v47  ;;  %460 = vmatprep.mubr.msk.f32.mxu0 %vm546_vm0, %v547_v53 }
  0x2a   :  { %532 = vmatpush3.bf16.msra.mxu0 %v531_v50 }
  0x2b   :  { %533 = vmatprep.subr.bf16.mxu0 %v545_v47 }
  0x2e   :  { %535 = vmatpush3.bf16.msra.mxu0 %v534_v54 }
  0x2f   :  { %536 = vmatprep.subr.bf16.mxu0 %v545_v47 }
  0x32   :  { %538 = vmatpush3.bf16.msra.mxu0 %v537_v57 }
  0x35   :  { %461 = vmatmul.mubr.msk.f32.vlgmr.msra.gmra.mrb[2].mxu0 %vm118_vm1, %v363_v58 }
  0xf8   :  { %v397_v59 = vpop.f32.mrb[0].mxu0 }
  0xf9   :  { %v432_v60 = vpop.f32.mrb[0].mxu1  ;;  %v398_v61 = vpop.f32.mrb[1].mxu0 }
  0xfa   :  { %v399_v62 = vadd.f32 %v398_v61, %v397_v59  ;;  %v433_v63 = vpop.f32.mrb[1].mxu1 }
  0xfb   :  { %v434_v0 = vadd.f32 %v433_v63, %v432_v60 }
  0xfd   :  { %v258_v1 = vadd.f32 %v434_v0, %v399_v62 }
 0x108   :  { %v327_v2 = vpop.f32.mrb[2].mxu0 }
 0x109   :  { %v328_v3 = vadd.f32 %v327_v2, %v258_v1  ;;  %v462_v4 = vpop.f32.mrb[3].mxu0 }
 0x10b   :  { %332 = vst.msk [vmem:[%s806_s2] sm:$0x3] %vm331_vm2, %v328_v3  ;;  %v333_v5 = vsel %vm331_vm2, %v328_v3, 0.0  ;;  %v342_v6 = vmul.f32 %v328_v3, %v328_v3 }
 0x10c   :  { %v334_v7 = vrot.slane %v333_v5, 4 }
 0x10d   :  { %v343_v8 = vsel %vm331_vm2, %v342_v6, 0.0 }
 0x10e   :  { %v335_v9 = vadd.f32 %v334_v7, %v333_v5  ;;  %v344_v10 = vrot.slane %v343_v8, 4 }
 0x110   :  { %v336_v11 = vrot.slane %v335_v9, 2  ;;  %v345_v12 = vadd.f32 %v344_v10, %v343_v8 }
 0x112   :  { %v337_v13 = vadd.f32 %v336_v11, %v335_v9  ;;  %v346_v14 = vrot.slane %v345_v12, 2 }
 0x114   :  { %v338_v15 = vrot.slane %v337_v13, 1  ;;  %v347_v16 = vadd.f32 %v346_v14, %v345_v12 }
 0x116   :  { %v339_v17 = vadd.f32 %v338_v15, %v337_v13  ;;  %v348_v18 = vrot.slane %v347_v16, 1 }
 0x118   :  { %341 = vst.msk [vmem:[%s807_s3] sm:$0x1] %vm340_vm3, %v339_v17  ;;  %v349_v19 = vadd.f32 %v348_v18, %v347_v16 }
 0x11a   :  { %350 = vst.msk [vmem:[%s808_s4] sm:$0x1] %vm340_vm3, %v349_v19 }

// kernel: basic_resnet_forward.49
= control target key start
LH: loop header
LB: loop body
LE: loop exit
PB: predicated region body
PF: predicated region fallthrough
CT: control target
= control target key end

     0   :  { %v40_v3 = vlaneseq  ;;  %v211_v4 = vmov 0.0|0.0   ;;  %vm212_vm0 = vmmov 0   ;;  %v213_v7 = vmov 0.0   ;;  %s281_s0 = inlined_call_operand.vmem [shape: f32[2,1,64], index: 0, kind: input, shape index: {}]   ;;  %s282_s1 = inlined_call_operand.vmem [shape: f32[64,10], index: 1, kind: input, shape index: {}]   ;;  %s283_s2 = inlined_call_operand.vmem [shape: f32[1,10], index: 2, kind: input, shape index: {}]   ;;  %s284_s3 = inlined_call_operand.hbm [shape: f32[2,10], index: 3, kind: output, shape index: {}]  }
   0x1   :  { %v19_v0 = vld [vmem:[%s282_s1] sm:$0xff]  ;;  %v20_v1 = vld [vmem:[%s282_s1 + $0x8] sm:$0xff]  ;;  %v21_v2 = vld [vmem:[%s282_s1 + $0x10] sm:$0xff]  ;;  %170 = vmatprep.subr.bf16.mxu0 %v211_v4  ;;  %167 = vmatprep.mubr.msk.f32.mxu0 %vm212_vm0, %v213_v7  ;;  %v214_v8 = vmov 1966171168  }
   0x2   :  { %v171_v5 = vpack.c.bf16 %v20_v1, %v19_v0  ;;  %v22_v6 = vld [vmem:[%s282_s1 + $0x18] sm:$0xff]  ;;  %v38_v9 = vunpack.c.l.s4 %v214_v8  ;;  %v41_v10 = vshrl.u32 %v40_v3, 7  ;;  %v15_v12 = vld [vmem:[%s281_s0] sm:$0x1]  ;;  %v16_v13 = vld [vmem:[%s281_s0 + $0x1] sm:$0x1] }
   0x3   :  { %v174_v11 = vpack.c.bf16 %v22_v6, %v21_v2 }
   0x4   :  { %172 = vmatpush3.bf16.msra.mxu0 %v171_v5 }
   0x5   :  { %8 = vsyncpa [#allocation3], 0  ;;  %173 = vmatprep.subr.bf16.mxu0 %v211_v4  ;;  %v23_v14 = vld [vmem:[%s282_s1 + $0x20] sm:$0xff]  ;;  %v24_v15 = vld [vmem:[%s282_s1 + $0x28] sm:$0xff]  ;;  %v39_v16 = vunpack.c.0.s8 %v38_v9  ;;  %v36_v17 = vcombine.low %v15_v12, %v16_v13  ;;  %vm51_vm1 = vcmask 523264   ;;  %s215_s6 = smov [#allocation2]  }
   0x6   :  { %v177_v19 = vpack.c.bf16 %v24_v15, %v23_v14  ;;  %v25_v20 = vld [vmem:[%s282_s1 + $0x30] sm:$0xff]  ;;  %v26_v21 = vld [vmem:[%s282_s1 + $0x38] sm:$0xff]  ;;  %v140_v25 = vld [vmem:[%s283_s2] ss:$0 sm:$0xff]  ;;  %s132_s7 = sshll.u32 %s215_s6, 4  ;;  %vm124_vm2 = vcmask 74752   ;;  %s133_s7 = int_to_ptr.vmem [resolvable:$true] %s132_s7 }
   0x7   :  { %v42_v18 = vsub.s32 %v39_v16, %v41_v10  ;;  %v180_v23 = vpack.c.bf16 %v26_v21, %v25_v20  ;;  %s187_s1 = scalar_lea.vmem %s133_s7, 32  ;;  %p192_p1 = scmp.lt.s32.totalorder %s133_s7, %s133_s7 }
   0x8   :  { %175 = vmatpush3.bf16.msra.mxu0 %v174_v11  ;;  %p188_p0 = scmp.ne.s32.totalorder %s133_s7, %s187_s1  ;;  %p193_p2 = scmp.lt.s32.totalorder %s187_s1, %s187_s1 }
   0x9   :  { %176 = vmatprep.subr.bf16.mxu0 %v211_v4  ;;  %v43_v22 = vrot.slane %v36_v17, %v42_v18 }
   0xa   :  { %p194_p3 = por %p193_p2, %p192_p1 }
   0xb   :  { %v50_v24 = vrot.slane %v43_v22, %v42_v18 }
   0xc   :  { %178 = vmatpush3.bf16.msra.mxu0 %v177_v19  ;;  %p195_p4 = pnand %p194_p3, %p188_p0 }
   0xd   :  { %179 = vmatprep.subr.bf16.mxu0 %v211_v4 }
  0x10   :  { %181 = vmatpush3.bf16.msra.mxu0 %v180_v23 }
  0x13   :  { %168 = vmatmul.mubr.msk.f32.vlgmr.msra.gmra.mrb[0].mxu0 %vm51_vm1, %v50_v24 }
  0xe6   :  { %v120_v26 = vpop.f32.mrb[0].mxu0 }
  0xe7   :  { %v121_v27 = vadd.f32 %v140_v25, %v120_v26  ;;  %v169_v28 = vpop.f32.mrb[1].mxu0 }
  0xe9   :  { %125 = vst.msk [vmem:[#allocation2] sm:$0x3] %vm124_vm2, %v121_v27 }
  0xea   :  { %198 = shalt.err (!%p195_p4)
}
  0xeb   :  { %s199_s10 = scalar_lea.hbm %s284_s3, 32 }
  0xec   :  { %p200_p5 = scmp.ne.s32.totalorder %s284_s3, %s199_s10  ;;  %p203_p6 = scmp.lt.u32.totalorder %s199_s10, %s284_s3 }
  0xee   :  { %p205_p7 = pnand %p203_p6, %p200_p5 }
  0xf0   :  { %208 = shalt.err (!%p205_p7)
}
  0xf1   :  { %135 = dma.vmem_to_hbm [thread:$0]  %s133_s7, 32, %s284_s3, [#allocation3]  }
  0xf2   :  { %209 = dma.done.wait [#allocation3], 32  }
  0xf3   :  { %210 = vsyncadd [#allocation3], 4294967264 }
  0xf4   :  { %139 = vsyncpa [#allocation3], 1 }

</bundles_post_ra>
